<compile_context>
chip_gen: v5e
topology: v5e:2x2
jax: 0.10.0
libtpu: 0.0.40
codegen_flags: <defaults>
</compile_context>

<pallas_src>
import functools

import jax
import jax.numpy as jnp
from jax.experimental import pallas as pl
from jax.experimental.pallas import tpu as pltpu


def _round_up(x, m):
    return ((x + m - 1) // m) * m


# ----------------------------------------------------------------------------
# Pallas kernel: tiled matmul, f32 accumulator, fused bias + sigmoid epilogue
# ----------------------------------------------------------------------------
def _mm_kernel(x_ref, w_ref, b_ref, o_ref, acc_ref, *, has_bias, apply_sigmoid):
    # x_ref: (tm, tk) bf16   w_ref: (tk, tn) bf16   b_ref: (1, tn) f32
    # o_ref: (tm, tn)        acc_ref: (tm, tn) f32 scratch (persists over K)
    @pl.when(pl.program_id(2) == 0)
    def _init():
        acc_ref[...] = jnp.zeros_like(acc_ref)

    acc_ref[...] += jnp.dot(x_ref[...], w_ref[...],
                            preferred_element_type=jnp.float32)

    @pl.when(pl.program_id(2) == pl.num_programs(2) - 1)
    def _finalize():
        out = acc_ref[...]
        if has_bias:
            out = out + b_ref[...]          # broadcast (1, tn) over rows, f32
        if apply_sigmoid:
            out = jax.nn.sigmoid(out)       # EUP transcendental, once per tile
        o_ref[...] = out.astype(o_ref.dtype)


def _matmul_bias_act(x, w, b, *, has_bias, apply_sigmoid):
    """out = act(x @ w + b) via a tiled Pallas kernel. x:(M,K) w:(K,N) b:(N,)."""
    M, K = x.shape
    K2, N = w.shape
    assert K == K2

    # Lane-dense padding: K and N to multiples of 128; M to the chosen M tile.
    k_pad = _round_up(K, 128)
    n_pad = _round_up(N, 128)
    tm = 256 if M >= 256 else _round_up(M, 16)
    m_pad = _round_up(M, tm)
    tk = 512 if k_pad % 512 == 0 else (256 if k_pad % 256 == 0 else 128)
    tn = 256 if n_pad % 256 == 0 else 128

    # bf16 operands into the MXU; zero-padding the contraction dim is exact.
    xp = jnp.pad(x.astype(jnp.bfloat16), ((0, m_pad - M), (0, k_pad - K)))
    wp = jnp.pad(w.astype(jnp.bfloat16), ((0, k_pad - K), (0, n_pad - N)))
    bp = jnp.pad(b.astype(jnp.float32), (0, n_pad - N)).reshape(1, n_pad)

    grid = (m_pad // tm, n_pad // tn, k_pad // tk)
    kernel = functools.partial(_mm_kernel, has_bias=has_bias,
                               apply_sigmoid=apply_sigmoid)

    out = pl.pallas_call(
        kernel,
        out_shape=jax.ShapeDtypeStruct((m_pad, n_pad), jnp.float32),
        grid=grid,
        in_specs=[
            pl.BlockSpec((tm, tk), lambda i, j, k: (i, k)),
            pl.BlockSpec((tk, tn), lambda i, j, k: (k, j)),
            pl.BlockSpec((1, tn), lambda i, j, k: (0, j)),
        ],
        out_specs=pl.BlockSpec((tm, tn), lambda i, j, k: (i, j)),
        scratch_shapes=[pltpu.VMEM((tm, tn), jnp.float32)],
        compiler_params=pltpu.CompilerParams(
            dimension_semantics=("parallel", "parallel", "arbitrary"),
            vmem_limit_bytes=32 * 1024 * 1024,
        ),
    )(xp, wp, bp)
    return out[:M, :N]


# ----------------------------------------------------------------------------
# Conv2d via im2col (glue) + tiled Pallas matmul (hot path)
# ----------------------------------------------------------------------------
def _extract_patches(x, kh, kw, stride, pad):
    # x: (B, H, W, C) NHWC -> (B*Ho*Wo, kh*kw*C), Ho, Wo
    B, H, W, C = x.shape
    xp = jnp.pad(x, ((0, 0), (pad, pad), (pad, pad), (0, 0)))
    Hp, Wp = H + 2 * pad, W + 2 * pad
    Ho = (Hp - kh) // stride + 1
    Wo = (Wp - kw) // stride + 1
    cols = []
    for i in range(kh):
        for j in range(kw):
            cols.append(xp[:, i:i + stride * Ho:stride, j:j + stride * Wo:stride, :])
    patches = jnp.concatenate(cols, axis=-1)        # (B, Ho, Wo, kh*kw*C)
    return patches.reshape(B * Ho * Wo, kh * kw * C), Ho, Wo


def conv2d_pallas(x, w, b, *, stride, pad, has_bias, apply_sigmoid):
    # x: (B, H, W, Cin) NHWC ; w: (KH, KW, Cin, Cout) HWIO ; b: (Cout,)
    B = x.shape[0]
    kh, kw, cin, cout = w.shape
    # TODO(synk): stream the kh*kw taps inside the kernel (index_map-offset
    # windows over the padded NHWC activation) to avoid materializing the
    # kh*kw-duplicated im2col patches in HBM.
    patches, Ho, Wo = _extract_patches(x, kh, kw, stride, pad)
    w2 = w.reshape(kh * kw * cin, cout)
    out = _matmul_bias_act(patches, w2, b, has_bias=has_bias,
                           apply_sigmoid=apply_sigmoid)
    return out.reshape(B, Ho, Wo, cout)


# ----------------------------------------------------------------------------
# DummyModel config + deterministic parameter init
# ----------------------------------------------------------------------------
# (cin, cout, kh, kw, stride, pad, has_bias, followed_by_sigmoid)
LAYERS = [
    (3,    32,   3, 3, 1, 1, True,  True),
    (32,   64,   3, 3, 1, 1, True,  True),
    (64,   128,  1, 1, 2, 1, False, True),   # 1x1 conv with pad=1: mirrors PyTorch spec
    (128,  256,  3, 3, 2, 2, True,  True),
    (256,  512,  3, 3, 2, 2, True,  True),
    (512,  1024, 2, 2, 2, 0, True,  True),
    (1024, 256,  2, 2, 1, 0, True,  True),
    (256,  128,  2, 2, 1, 0, True,  False),   # final conv, no sigmoid after
]


def init_params(key):
    params = []
    for (cin, cout, kh, kw, _s, _p, has_bias, _sig) in LAYERS:
        key, kw_key, kb_key = jax.random.split(key, 3)
        fan_in = kh * kw * cin
        bound = 1.0 / (fan_in ** 0.5)
        w = jax.random.uniform(kw_key, (kh, kw, cin, cout), jnp.float32,
                               minval=-bound, maxval=bound)
        if has_bias:
            b = jax.random.uniform(kb_key, (cout,), jnp.float32,
                                   minval=-bound, maxval=bound)
        else:
            b = jnp.zeros((cout,), jnp.float32)
        params.append((w, b))
    return params


@jax.jit
def dummy_model_forward(x_nchw, params):
    # x_nchw: (B, 3, H, W) float32  — same convention as the PyTorch module.
    x = jnp.transpose(x_nchw, (0, 2, 3, 1))        # NCHW -> NHWC
    for (w, b), (_ci, _co, _kh, _kw, stride, pad, has_bias, sig) in zip(params, LAYERS):
        x = conv2d_pallas(x, w, b, stride=stride, pad=pad,
                          has_bias=has_bias, apply_sigmoid=sig)
    # final activation is (B, 1, 1, 128); torch.flatten(start_dim=1) -> (B, 128)
    B = x.shape[0]
    return x.reshape(B, -1)


if __name__ == "__main__":
    key = jax.random.PRNGKey(0)
    key, pkey, xkey = jax.random.split(key, 3)
    params = init_params(pkey)
    # 32x32 spatial keeps every conv in the stack valid (final feature map 1x1).
    x = jax.random.normal(xkey, (2, 3, 32, 32), jnp.float32)

    out = dummy_model_forward(x, params)
    out = jax.block_until_ready(out)
    assert out.shape == (2, 128), out.shape
    assert jnp.all(jnp.isfinite(out))
    print("KERNEL_OK")
</pallas_src>

<mosaic_0001>
module attributes {stable_mosaic.version = 11 : i64} {
  func.func @_mm_kernel(%arg0: i32, %arg1: i32, %arg2: i32, %arg3: memref<256x128xbf16, #tpu.memory_space<vmem>>, %arg4: memref<128x128xbf16, #tpu.memory_space<vmem>>, %arg5: memref<1x128xf32, #tpu.memory_space<vmem>>, %arg6: memref<256x128xf32, #tpu.memory_space<vmem>>, %arg7: memref<256x128xf32, #tpu.memory_space<vmem>>) attributes {dimension_semantics = [#tpu.dimension_semantics<parallel>, #tpu.dimension_semantics<parallel>, #tpu.dimension_semantics<arbitrary>], iteration_bounds = array<i64: 8, 1, 1>, scalar_prefetch = 0 : i64, scratch_operands = 1 : i64, tpu.core_type = #tpu.core_type<tc>, window_params = [{transform_indices = @transform_0, window_bounds = array<i64: 256, 128>}, {transform_indices = @transform_1, window_bounds = array<i64: 128, 128>}, {transform_indices = @transform_2, window_bounds = array<i64: 1, 128>}, {transform_indices = @transform_3, window_bounds = array<i64: 256, 128>}]} {
    %c0_i32 = arith.constant 0 : i32
    %0 = arith.cmpi eq, %arg2, %c0_i32 : i32
    %1 = arith.extui %0 : i1 to i32
    %c0_i32_0 = arith.constant 0 : i32
    %2 = arith.cmpi ne, %1, %c0_i32_0 : i32
    scf.if %2 {
      %cst_10 = arith.constant 0.000000e+00 : f32
      %12 = vector.broadcast %cst_10 : f32 to vector<256x128xf32>
      %c0_11 = arith.constant 0 : index
      %c0_12 = arith.constant 0 : index
      %13 = vector.load %arg7[%c0_11, %c0_12] : memref<256x128xf32, #tpu.memory_space<vmem>>, vector<256x128xf32>
      tpu.vector_store %arg7[%c0_11, %c0_12], %12 {strides = array<i32>} : memref<256x128xf32, #tpu.memory_space<vmem>>, vector<256x128xf32>,
    } else {
    }
    %c0 = arith.constant 0 : index
    %c0_1 = arith.constant 0 : index
    %3 = vector.load %arg7[%c0, %c0_1] : memref<256x128xf32, #tpu.memory_space<vmem>>, vector<256x128xf32>
    %c0_2 = arith.constant 0 : index
    %c0_3 = arith.constant 0 : index
    %4 = vector.load %arg3[%c0_2, %c0_3] : memref<256x128xbf16, #tpu.memory_space<vmem>>, vector<256x128xbf16>
    %c0_4 = arith.constant 0 : index
    %c0_5 = arith.constant 0 : index
    %5 = vector.load %arg4[%c0_4, %c0_5] : memref<128x128xbf16, #tpu.memory_space<vmem>>, vector<128x128xbf16>
    %cst = arith.constant dense<0.000000e+00> : vector<256x128xf32>
    %6 = tpu.matmul %4, %5, %cst {dimension_numbers = #tpu.dot_dimension_numbers<[1], [0], [0], [1], [0, 0, 1, 1], [], []>} : vector<256x128xbf16>, vector<128x128xbf16>, vector<256x128xf32> -> vector<256x128xf32>
    %7 = arith.addf %3, %6 : vector<256x128xf32>
    %c0_6 = arith.constant 0 : index
    %c0_7 = arith.constant 0 : index
    %8 = vector.load %arg7[%c0_6, %c0_7] : memref<256x128xf32, #tpu.memory_space<vmem>>, vector<256x128xf32>
    tpu.vector_store %arg7[%c0_6, %c0_7], %7 {strides = array<i32>} : memref<256x128xf32, #tpu.memory_space<vmem>>, vector<256x128xf32>,
    %c0_i32_8 = arith.constant 0 : i32
    %9 = arith.cmpi eq, %arg2, %c0_i32_8 : i32
    %10 = arith.extui %9 : i1 to i32
    %c0_i32_9 = arith.constant 0 : i32
    %11 = arith.cmpi ne, %10, %c0_i32_9 : i32
    scf.if %11 {
      %c0_10 = arith.constant 0 : index
      %c0_11 = arith.constant 0 : index
      %12 = vector.load %arg7[%c0_10, %c0_11] : memref<256x128xf32, #tpu.memory_space<vmem>>, vector<256x128xf32>
      %c0_12 = arith.constant 0 : index
      %c0_13 = arith.constant 0 : index
      %13 = vector.load %arg5[%c0_12, %c0_13] : memref<1x128xf32, #tpu.memory_space<vmem>>, vector<1x128xf32>
      %14 = vector.broadcast %13 : vector<1x128xf32> to vector<256x128xf32>
      %15 = arith.addf %12, %14 : vector<256x128xf32>
      %16 = arith.negf %15 : vector<256x128xf32>
      %17 = math.exp %16 : vector<256x128xf32>
      %cst_14 = arith.constant 1.000000e+00 : f32
      %18 = vector.broadcast %cst_14 : f32 to vector<256x128xf32>
      %19 = arith.addf %18, %17 : vector<256x128xf32>
      %20 = arith.divf %18, %19 : vector<256x128xf32>
      %c0_15 = arith.constant 0 : index
      %c0_16 = arith.constant 0 : index
      %21 = vector.load %arg6[%c0_15, %c0_16] : memref<256x128xf32, #tpu.memory_space<vmem>>, vector<256x128xf32>
      tpu.vector_store %arg6[%c0_15, %c0_16], %20 {strides = array<i32>} : memref<256x128xf32, #tpu.memory_space<vmem>>, vector<256x128xf32>,
    } else {
    }
    return
  }
  func.func @transform_0(%arg0: i32, %arg1: i32, %arg2: i32) -> (i32, i32) {
    %c0_i32 = arith.constant 0 : i32
    return %arg0, %arg2 : i32, i32
  }
  func.func @transform_1(%arg0: i32, %arg1: i32, %arg2: i32) -> (i32, i32) {
    %c0_i32 = arith.constant 0 : i32
    return %arg2, %arg1 : i32, i32
  }
  func.func @transform_2(%arg0: i32, %arg1: i32, %arg2: i32) -> (i32, i32) {
    %c0_i32 = arith.constant 0 : i32
    %c0_i32_0 = arith.constant 0 : i32
    return %c0_i32, %arg1 : i32, i32
  }
  func.func @transform_3(%arg0: i32, %arg1: i32, %arg2: i32) -> (i32, i32) {
    %c0_i32 = arith.constant 0 : i32
    return %arg0, %arg1 : i32, i32
  }
}

module attributes {stable_mosaic.version = 11 : i64} {
  func.func @_mm_kernel(%arg0: i32, %arg1: i32, %arg2: i32, %arg3: memref<256x128xbf16, #tpu.memory_space<vmem>>, %arg4: memref<128x128xbf16, #tpu.memory_space<vmem>>, %arg5: memref<1x128xf32, #tpu.memory_space<vmem>>, %arg6: memref<256x128xf32, #tpu.memory_space<vmem>>, %arg7: memref<256x128xf32, #tpu.memory_space<vmem>>) attributes {dimension_semantics = [#tpu.dimension_semantics<parallel>, #tpu.dimension_semantics<parallel>, #tpu.dimension_semantics<arbitrary>], iteration_bounds = array<i64: 8, 1, 3>, scalar_prefetch = 0 : i64, scratch_operands = 1 : i64, tpu.core_type = #tpu.core_type<tc>, window_params = [{transform_indices = @transform_0, window_bounds = array<i64: 256, 128>}, {transform_indices = @transform_1, window_bounds = array<i64: 128, 128>}, {transform_indices = @transform_2, window_bounds = array<i64: 1, 128>}, {transform_indices = @transform_3, window_bounds = array<i64: 256, 128>}]} {
    %c0_i32 = arith.constant 0 : i32
    %0 = arith.cmpi eq, %arg2, %c0_i32 : i32
    %1 = arith.extui %0 : i1 to i32
    %c0_i32_0 = arith.constant 0 : i32
    %2 = arith.cmpi ne, %1, %c0_i32_0 : i32
    scf.if %2 {
      %cst_9 = arith.constant 0.000000e+00 : f32
      %12 = vector.broadcast %cst_9 : f32 to vector<256x128xf32>
      %c0_10 = arith.constant 0 : index
      %c0_11 = arith.constant 0 : index
      %13 = vector.load %arg7[%c0_10, %c0_11] : memref<256x128xf32, #tpu.memory_space<vmem>>, vector<256x128xf32>
      tpu.vector_store %arg7[%c0_10, %c0_11], %12 {strides = array<i32>} : memref<256x128xf32, #tpu.memory_space<vmem>>, vector<256x128xf32>,
    } else {
    }
    %c0 = arith.constant 0 : index
    %c0_1 = arith.constant 0 : index
    %3 = vector.load %arg7[%c0, %c0_1] : memref<256x128xf32, #tpu.memory_space<vmem>>, vector<256x128xf32>
    %c0_2 = arith.constant 0 : index
    %c0_3 = arith.constant 0 : index
    %4 = vector.load %arg3[%c0_2, %c0_3] : memref<256x128xbf16, #tpu.memory_space<vmem>>, vector<256x128xbf16>
    %c0_4 = arith.constant 0 : index
    %c0_5 = arith.constant 0 : index
    %5 = vector.load %arg4[%c0_4, %c0_5] : memref<128x128xbf16, #tpu.memory_space<vmem>>, vector<128x128xbf16>
    %cst = arith.constant dense<0.000000e+00> : vector<256x128xf32>
    %6 = tpu.matmul %4, %5, %cst {dimension_numbers = #tpu.dot_dimension_numbers<[1], [0], [0], [1], [0, 0, 1, 1], [], []>} : vector<256x128xbf16>, vector<128x128xbf16>, vector<256x128xf32> -> vector<256x128xf32>
    %7 = arith.addf %3, %6 : vector<256x128xf32>
    %c0_6 = arith.constant 0 : index
    %c0_7 = arith.constant 0 : index
    %8 = vector.load %arg7[%c0_6, %c0_7] : memref<256x128xf32, #tpu.memory_space<vmem>>, vector<256x128xf32>
    tpu.vector_store %arg7[%c0_6, %c0_7], %7 {strides = array<i32>} : memref<256x128xf32, #tpu.memory_space<vmem>>, vector<256x128xf32>,
    %c2_i32 = arith.constant 2 : i32
    %9 = arith.cmpi eq, %arg2, %c2_i32 : i32
    %10 = arith.extui %9 : i1 to i32
    %c0_i32_8 = arith.constant 0 : i32
    %11 = arith.cmpi ne, %10, %c0_i32_8 : i32
    scf.if %11 {
      %c0_9 = arith.constant 0 : index
      %c0_10 = arith.constant 0 : index
      %12 = vector.load %arg7[%c0_9, %c0_10] : memref<256x128xf32, #tpu.memory_space<vmem>>, vector<256x128xf32>
      %c0_11 = arith.constant 0 : index
      %c0_12 = arith.constant 0 : index
      %13 = vector.load %arg5[%c0_11, %c0_12] : memref<1x128xf32, #tpu.memory_space<vmem>>, vector<1x128xf32>
      %14 = vector.broadcast %13 : vector<1x128xf32> to vector<256x128xf32>
      %15 = arith.addf %12, %14 : vector<256x128xf32>
      %16 = arith.negf %15 : vector<256x128xf32>
      %17 = math.exp %16 : vector<256x128xf32>
      %cst_13 = arith.constant 1.000000e+00 : f32
      %18 = vector.broadcast %cst_13 : f32 to vector<256x128xf32>
      %19 = arith.addf %18, %17 : vector<256x128xf32>
      %20 = arith.divf %18, %19 : vector<256x128xf32>
      %c0_14 = arith.constant 0 : index
      %c0_15 = arith.constant 0 : index
      %21 = vector.load %arg6[%c0_14, %c0_15] : memref<256x128xf32, #tpu.memory_space<vmem>>, vector<256x128xf32>
      tpu.vector_store %arg6[%c0_14, %c0_15], %20 {strides = array<i32>} : memref<256x128xf32, #tpu.memory_space<vmem>>, vector<256x128xf32>,
    } else {
    }
    return
  }
  func.func @transform_0(%arg0: i32, %arg1: i32, %arg2: i32) -> (i32, i32) {
    %c0_i32 = arith.constant 0 : i32
    return %arg0, %arg2 : i32, i32
  }
  func.func @transform_1(%arg0: i32, %arg1: i32, %arg2: i32) -> (i32, i32) {
    %c0_i32 = arith.constant 0 : i32
    return %arg2, %arg1 : i32, i32
  }
  func.func @transform_2(%arg0: i32, %arg1: i32, %arg2: i32) -> (i32, i32) {
    %c0_i32 = arith.constant 0 : i32
    %c0_i32_0 = arith.constant 0 : i32
    return %c0_i32, %arg1 : i32, i32
  }
  func.func @transform_3(%arg0: i32, %arg1: i32, %arg2: i32) -> (i32, i32) {
    %c0_i32 = arith.constant 0 : i32
    return %arg0, %arg1 : i32, i32
  }
}

module attributes {stable_mosaic.version = 11 : i64} {
  func.func @_mm_kernel(%arg0: i32, %arg1: i32, %arg2: i32, %arg3: memref<256x128xbf16, #tpu.memory_space<vmem>>, %arg4: memref<128x128xbf16, #tpu.memory_space<vmem>>, %arg5: memref<1x128xf32, #tpu.memory_space<vmem>>, %arg6: memref<256x128xf32, #tpu.memory_space<vmem>>, %arg7: memref<256x128xf32, #tpu.memory_space<vmem>>) attributes {dimension_semantics = [#tpu.dimension_semantics<parallel>, #tpu.dimension_semantics<parallel>, #tpu.dimension_semantics<arbitrary>], iteration_bounds = array<i64: 3, 1, 1>, scalar_prefetch = 0 : i64, scratch_operands = 1 : i64, tpu.core_type = #tpu.core_type<tc>, window_params = [{transform_indices = @transform_0, window_bounds = array<i64: 256, 128>}, {transform_indices = @transform_1, window_bounds = array<i64: 128, 128>}, {transform_indices = @transform_2, window_bounds = array<i64: 1, 128>}, {transform_indices = @transform_3, window_bounds = array<i64: 256, 128>}]} {
    %c0_i32 = arith.constant 0 : i32
    %0 = arith.cmpi eq, %arg2, %c0_i32 : i32
    %1 = arith.extui %0 : i1 to i32
    %c0_i32_0 = arith.constant 0 : i32
    %2 = arith.cmpi ne, %1, %c0_i32_0 : i32
    scf.if %2 {
      %cst_10 = arith.constant 0.000000e+00 : f32
      %12 = vector.broadcast %cst_10 : f32 to vector<256x128xf32>
      %c0_11 = arith.constant 0 : index
      %c0_12 = arith.constant 0 : index
      %13 = vector.load %arg7[%c0_11, %c0_12] : memref<256x128xf32, #tpu.memory_space<vmem>>, vector<256x128xf32>
      tpu.vector_store %arg7[%c0_11, %c0_12], %12 {strides = array<i32>} : memref<256x128xf32, #tpu.memory_space<vmem>>, vector<256x128xf32>,
    } else {
    }
    %c0 = arith.constant 0 : index
    %c0_1 = arith.constant 0 : index
    %3 = vector.load %arg7[%c0, %c0_1] : memref<256x128xf32, #tpu.memory_space<vmem>>, vector<256x128xf32>
    %c0_2 = arith.constant 0 : index
    %c0_3 = arith.constant 0 : index
    %4 = vector.load %arg3[%c0_2, %c0_3] : memref<256x128xbf16, #tpu.memory_space<vmem>>, vector<256x128xbf16>
    %c0_4 = arith.constant 0 : index
    %c0_5 = arith.constant 0 : index
    %5 = vector.load %arg4[%c0_4, %c0_5] : memref<128x128xbf16, #tpu.memory_space<vmem>>, vector<128x128xbf16>
    %cst = arith.constant dense<0.000000e+00> : vector<256x128xf32>
    %6 = tpu.matmul %4, %5, %cst {dimension_numbers = #tpu.dot_dimension_numbers<[1], [0], [0], [1], [0, 0, 1, 1], [], []>} : vector<256x128xbf16>, vector<128x128xbf16>, vector<256x128xf32> -> vector<256x128xf32>
    %7 = arith.addf %3, %6 : vector<256x128xf32>
    %c0_6 = arith.constant 0 : index
    %c0_7 = arith.constant 0 : index
    %8 = vector.load %arg7[%c0_6, %c0_7] : memref<256x128xf32, #tpu.memory_space<vmem>>, vector<256x128xf32>
    tpu.vector_store %arg7[%c0_6, %c0_7], %7 {strides = array<i32>} : memref<256x128xf32, #tpu.memory_space<vmem>>, vector<256x128xf32>,
    %c0_i32_8 = arith.constant 0 : i32
    %9 = arith.cmpi eq, %arg2, %c0_i32_8 : i32
    %10 = arith.extui %9 : i1 to i32
    %c0_i32_9 = arith.constant 0 : i32
    %11 = arith.cmpi ne, %10, %c0_i32_9 : i32
    scf.if %11 {
      %c0_10 = arith.constant 0 : index
      %c0_11 = arith.constant 0 : index
      %12 = vector.load %arg7[%c0_10, %c0_11] : memref<256x128xf32, #tpu.memory_space<vmem>>, vector<256x128xf32>
      %13 = arith.negf %12 : vector<256x128xf32>
      %14 = math.exp %13 : vector<256x128xf32>
      %cst_12 = arith.constant 1.000000e+00 : f32
      %15 = vector.broadcast %cst_12 : f32 to vector<256x128xf32>
      %16 = arith.addf %15, %14 : vector<256x128xf32>
      %17 = arith.divf %15, %16 : vector<256x128xf32>
      %c0_13 = arith.constant 0 : index
      %c0_14 = arith.constant 0 : index
      %18 = vector.load %arg6[%c0_13, %c0_14] : memref<256x128xf32, #tpu.memory_space<vmem>>, vector<256x128xf32>
      tpu.vector_store %arg6[%c0_13, %c0_14], %17 {strides = array<i32>} : memref<256x128xf32, #tpu.memory_space<vmem>>, vector<256x128xf32>,
    } else {
    }
    return
  }
  func.func @transform_0(%arg0: i32, %arg1: i32, %arg2: i32) -> (i32, i32) {
    %c0_i32 = arith.constant 0 : i32
    return %arg0, %arg2 : i32, i32
  }
  func.func @transform_1(%arg0: i32, %arg1: i32, %arg2: i32) -> (i32, i32) {
    %c0_i32 = arith.constant 0 : i32
    return %arg2, %arg1 : i32, i32
  }
  func.func @transform_2(%arg0: i32, %arg1: i32, %arg2: i32) -> (i32, i32) {
    %c0_i32 = arith.constant 0 : i32
    %c0_i32_0 = arith.constant 0 : i32
    return %c0_i32, %arg1 : i32, i32
  }
  func.func @transform_3(%arg0: i32, %arg1: i32, %arg2: i32) -> (i32, i32) {
    %c0_i32 = arith.constant 0 : i32
    return %arg0, %arg1 : i32, i32
  }
}

module attributes {stable_mosaic.version = 11 : i64} {
  func.func @_mm_kernel(%arg0: i32, %arg1: i32, %arg2: i32, %arg3: memref<208x128xbf16, #tpu.memory_space<vmem>>, %arg4: memref<128x256xbf16, #tpu.memory_space<vmem>>, %arg5: memref<1x256xf32, #tpu.memory_space<vmem>>, %arg6: memref<208x256xf32, #tpu.memory_space<vmem>>, %arg7: memref<208x256xf32, #tpu.memory_space<vmem>>) attributes {dimension_semantics = [#tpu.dimension_semantics<parallel>, #tpu.dimension_semantics<parallel>, #tpu.dimension_semantics<arbitrary>], iteration_bounds = array<i64: 1, 1, 9>, scalar_prefetch = 0 : i64, scratch_operands = 1 : i64, tpu.core_type = #tpu.core_type<tc>, window_params = [{transform_indices = @transform_0, window_bounds = array<i64: 208, 128>}, {transform_indices = @transform_1, window_bounds = array<i64: 128, 256>}, {transform_indices = @transform_2, window_bounds = array<i64: 1, 256>}, {transform_indices = @transform_3, window_bounds = array<i64: 208, 256>}]} {
    %c0_i32 = arith.constant 0 : i32
    %0 = arith.cmpi eq, %arg2, %c0_i32 : i32
    %1 = arith.extui %0 : i1 to i32
    %c0_i32_0 = arith.constant 0 : i32
    %2 = arith.cmpi ne, %1, %c0_i32_0 : i32
    scf.if %2 {
      %cst_9 = arith.constant 0.000000e+00 : f32
      %12 = vector.broadcast %cst_9 : f32 to vector<208x256xf32>
      %c0_10 = arith.constant 0 : index
      %c0_11 = arith.constant 0 : index
      %13 = vector.load %arg7[%c0_10, %c0_11] : memref<208x256xf32, #tpu.memory_space<vmem>>, vector<208x256xf32>
      tpu.vector_store %arg7[%c0_10, %c0_11], %12 {strides = array<i32>} : memref<208x256xf32, #tpu.memory_space<vmem>>, vector<208x256xf32>,
    } else {
    }
    %c0 = arith.constant 0 : index
    %c0_1 = arith.constant 0 : index
    %3 = vector.load %arg7[%c0, %c0_1] : memref<208x256xf32, #tpu.memory_space<vmem>>, vector<208x256xf32>
    %c0_2 = arith.constant 0 : index
    %c0_3 = arith.constant 0 : index
    %4 = vector.load %arg3[%c0_2, %c0_3] : memref<208x128xbf16, #tpu.memory_space<vmem>>, vector<208x128xbf16>
    %c0_4 = arith.constant 0 : index
    %c0_5 = arith.constant 0 : index
    %5 = vector.load %arg4[%c0_4, %c0_5] : memref<128x256xbf16, #tpu.memory_space<vmem>>, vector<128x256xbf16>
    %cst = arith.constant dense<0.000000e+00> : vector<208x256xf32>
    %6 = tpu.matmul %4, %5, %cst {dimension_numbers = #tpu.dot_dimension_numbers<[1], [0], [0], [1], [0, 0, 1, 1], [], []>} : vector<208x128xbf16>, vector<128x256xbf16>, vector<208x256xf32> -> vector<208x256xf32>
    %7 = arith.addf %3, %6 : vector<208x256xf32>
    %c0_6 = arith.constant 0 : index
    %c0_7 = arith.constant 0 : index
    %8 = vector.load %arg7[%c0_6, %c0_7] : memref<208x256xf32, #tpu.memory_space<vmem>>, vector<208x256xf32>
    tpu.vector_store %arg7[%c0_6, %c0_7], %7 {strides = array<i32>} : memref<208x256xf32, #tpu.memory_space<vmem>>, vector<208x256xf32>,
    %c8_i32 = arith.constant 8 : i32
    %9 = arith.cmpi eq, %arg2, %c8_i32 : i32
    %10 = arith.extui %9 : i1 to i32
    %c0_i32_8 = arith.constant 0 : i32
    %11 = arith.cmpi ne, %10, %c0_i32_8 : i32
    scf.if %11 {
      %c0_9 = arith.constant 0 : index
      %c0_10 = arith.constant 0 : index
      %12 = vector.load %arg7[%c0_9, %c0_10] : memref<208x256xf32, #tpu.memory_space<vmem>>, vector<208x256xf32>
      %c0_11 = arith.constant 0 : index
      %c0_12 = arith.constant 0 : index
      %13 = vector.load %arg5[%c0_11, %c0_12] : memref<1x256xf32, #tpu.memory_space<vmem>>, vector<1x256xf32>
      %14 = vector.broadcast %13 : vector<1x256xf32> to vector<208x256xf32>
      %15 = arith.addf %12, %14 : vector<208x256xf32>
      %16 = arith.negf %15 : vector<208x256xf32>
      %17 = math.exp %16 : vector<208x256xf32>
      %cst_13 = arith.constant 1.000000e+00 : f32
      %18 = vector.broadcast %cst_13 : f32 to vector<208x256xf32>
      %19 = arith.addf %18, %17 : vector<208x256xf32>
      %20 = arith.divf %18, %19 : vector<208x256xf32>
      %c0_14 = arith.constant 0 : index
      %c0_15 = arith.constant 0 : index
      %21 = vector.load %arg6[%c0_14, %c0_15] : memref<208x256xf32, #tpu.memory_space<vmem>>, vector<208x256xf32>
      tpu.vector_store %arg6[%c0_14, %c0_15], %20 {strides = array<i32>} : memref<208x256xf32, #tpu.memory_space<vmem>>, vector<208x256xf32>,
    } else {
    }
    return
  }
  func.func @transform_0(%arg0: i32, %arg1: i32, %arg2: i32) -> (i32, i32) {
    %c0_i32 = arith.constant 0 : i32
    return %arg0, %arg2 : i32, i32
  }
  func.func @transform_1(%arg0: i32, %arg1: i32, %arg2: i32) -> (i32, i32) {
    %c0_i32 = arith.constant 0 : i32
    return %arg2, %arg1 : i32, i32
  }
  func.func @transform_2(%arg0: i32, %arg1: i32, %arg2: i32) -> (i32, i32) {
    %c0_i32 = arith.constant 0 : i32
    %c0_i32_0 = arith.constant 0 : i32
    return %c0_i32, %arg1 : i32, i32
  }
  func.func @transform_3(%arg0: i32, %arg1: i32, %arg2: i32) -> (i32, i32) {
    %c0_i32 = arith.constant 0 : i32
    return %arg0, %arg1 : i32, i32
  }
}

module attributes {stable_mosaic.version = 11 : i64} {
  func.func @_mm_kernel(%arg0: i32, %arg1: i32, %arg2: i32, %arg3: memref<80x256xbf16, #tpu.memory_space<vmem>>, %arg4: memref<256x256xbf16, #tpu.memory_space<vmem>>, %arg5: memref<1x256xf32, #tpu.memory_space<vmem>>, %arg6: memref<80x256xf32, #tpu.memory_space<vmem>>, %arg7: memref<80x256xf32, #tpu.memory_space<vmem>>) attributes {dimension_semantics = [#tpu.dimension_semantics<parallel>, #tpu.dimension_semantics<parallel>, #tpu.dimension_semantics<arbitrary>], iteration_bounds = array<i64: 1, 2, 9>, scalar_prefetch = 0 : i64, scratch_operands = 1 : i64, tpu.core_type = #tpu.core_type<tc>, window_params = [{transform_indices = @transform_0, window_bounds = array<i64: 80, 256>}, {transform_indices = @transform_1, window_bounds = array<i64: 256, 256>}, {transform_indices = @transform_2, window_bounds = array<i64: 1, 256>}, {transform_indices = @transform_3, window_bounds = array<i64: 80, 256>}]} {
    %c0_i32 = arith.constant 0 : i32
    %0 = arith.cmpi eq, %arg2, %c0_i32 : i32
    %1 = arith.extui %0 : i1 to i32
    %c0_i32_0 = arith.constant 0 : i32
    %2 = arith.cmpi ne, %1, %c0_i32_0 : i32
    scf.if %2 {
      %cst_9 = arith.constant 0.000000e+00 : f32
      %12 = vector.broadcast %cst_9 : f32 to vector<80x256xf32>
      %c0_10 = arith.constant 0 : index
      %c0_11 = arith.constant 0 : index
      %13 = vector.load %arg7[%c0_10, %c0_11] : memref<80x256xf32, #tpu.memory_space<vmem>>, vector<80x256xf32>
      tpu.vector_store %arg7[%c0_10, %c0_11], %12 {strides = array<i32>} : memref<80x256xf32, #tpu.memory_space<vmem>>, vector<80x256xf32>,
    } else {
    }
    %c0 = arith.constant 0 : index
    %c0_1 = arith.constant 0 : index
    %3 = vector.load %arg7[%c0, %c0_1] : memref<80x256xf32, #tpu.memory_space<vmem>>, vector<80x256xf32>
    %c0_2 = arith.constant 0 : index
    %c0_3 = arith.constant 0 : index
    %4 = vector.load %arg3[%c0_2, %c0_3] : memref<80x256xbf16, #tpu.memory_space<vmem>>, vector<80x256xbf16>
    %c0_4 = arith.constant 0 : index
    %c0_5 = arith.constant 0 : index
    %5 = vector.load %arg4[%c0_4, %c0_5] : memref<256x256xbf16, #tpu.memory_space<vmem>>, vector<256x256xbf16>
    %cst = arith.constant dense<0.000000e+00> : vector<80x256xf32>
    %6 = tpu.matmul %4, %5, %cst {dimension_numbers = #tpu.dot_dimension_numbers<[1], [0], [0], [1], [0, 0, 1, 1], [], []>} : vector<80x256xbf16>, vector<256x256xbf16>, vector<80x256xf32> -> vector<80x256xf32>
    %7 = arith.addf %3, %6 : vector<80x256xf32>
    %c0_6 = arith.constant 0 : index
    %c0_7 = arith.constant 0 : index
    %8 = vector.load %arg7[%c0_6, %c0_7] : memref<80x256xf32, #tpu.memory_space<vmem>>, vector<80x256xf32>
    tpu.vector_store %arg7[%c0_6, %c0_7], %7 {strides = array<i32>} : memref<80x256xf32, #tpu.memory_space<vmem>>, vector<80x256xf32>,
    %c8_i32 = arith.constant 8 : i32
    %9 = arith.cmpi eq, %arg2, %c8_i32 : i32
    %10 = arith.extui %9 : i1 to i32
    %c0_i32_8 = arith.constant 0 : i32
    %11 = arith.cmpi ne, %10, %c0_i32_8 : i32
    scf.if %11 {
      %c0_9 = arith.constant 0 : index
      %c0_10 = arith.constant 0 : index
      %12 = vector.load %arg7[%c0_9, %c0_10] : memref<80x256xf32, #tpu.memory_space<vmem>>, vector<80x256xf32>
      %c0_11 = arith.constant 0 : index
      %c0_12 = arith.constant 0 : index
      %13 = vector.load %arg5[%c0_11, %c0_12] : memref<1x256xf32, #tpu.memory_space<vmem>>, vector<1x256xf32>
      %14 = vector.broadcast %13 : vector<1x256xf32> to vector<80x256xf32>
      %15 = arith.addf %12, %14 : vector<80x256xf32>
      %16 = arith.negf %15 : vector<80x256xf32>
      %17 = math.exp %16 : vector<80x256xf32>
      %cst_13 = arith.constant 1.000000e+00 : f32
      %18 = vector.broadcast %cst_13 : f32 to vector<80x256xf32>
      %19 = arith.addf %18, %17 : vector<80x256xf32>
      %20 = arith.divf %18, %19 : vector<80x256xf32>
      %c0_14 = arith.constant 0 : index
      %c0_15 = arith.constant 0 : index
      %21 = vector.load %arg6[%c0_14, %c0_15] : memref<80x256xf32, #tpu.memory_space<vmem>>, vector<80x256xf32>
      tpu.vector_store %arg6[%c0_14, %c0_15], %20 {strides = array<i32>} : memref<80x256xf32, #tpu.memory_space<vmem>>, vector<80x256xf32>,
    } else {
    }
    return
  }
  func.func @transform_0(%arg0: i32, %arg1: i32, %arg2: i32) -> (i32, i32) {
    %c0_i32 = arith.constant 0 : i32
    return %arg0, %arg2 : i32, i32
  }
  func.func @transform_1(%arg0: i32, %arg1: i32, %arg2: i32) -> (i32, i32) {
    %c0_i32 = arith.constant 0 : i32
    return %arg2, %arg1 : i32, i32
  }
  func.func @transform_2(%arg0: i32, %arg1: i32, %arg2: i32) -> (i32, i32) {
    %c0_i32 = arith.constant 0 : i32
    %c0_i32_0 = arith.constant 0 : i32
    return %c0_i32, %arg1 : i32, i32
  }
  func.func @transform_3(%arg0: i32, %arg1: i32, %arg2: i32) -> (i32, i32) {
    %c0_i32 = arith.constant 0 : i32
    return %arg0, %arg1 : i32, i32
  }
}

module attributes {stable_mosaic.version = 11 : i64} {
  func.func @_mm_kernel(%arg0: i32, %arg1: i32, %arg2: i32, %arg3: memref<32x512xbf16, #tpu.memory_space<vmem>>, %arg4: memref<512x256xbf16, #tpu.memory_space<vmem>>, %arg5: memref<1x256xf32, #tpu.memory_space<vmem>>, %arg6: memref<32x256xf32, #tpu.memory_space<vmem>>, %arg7: memref<32x256xf32, #tpu.memory_space<vmem>>) attributes {dimension_semantics = [#tpu.dimension_semantics<parallel>, #tpu.dimension_semantics<parallel>, #tpu.dimension_semantics<arbitrary>], iteration_bounds = array<i64: 1, 4, 4>, scalar_prefetch = 0 : i64, scratch_operands = 1 : i64, tpu.core_type = #tpu.core_type<tc>, window_params = [{transform_indices = @transform_0, window_bounds = array<i64: 32, 512>}, {transform_indices = @transform_1, window_bounds = array<i64: 512, 256>}, {transform_indices = @transform_2, window_bounds = array<i64: 1, 256>}, {transform_indices = @transform_3, window_bounds = array<i64: 32, 256>}]} {
    %c0_i32 = arith.constant 0 : i32
    %0 = arith.cmpi eq, %arg2, %c0_i32 : i32
    %1 = arith.extui %0 : i1 to i32
    %c0_i32_0 = arith.constant 0 : i32
    %2 = arith.cmpi ne, %1, %c0_i32_0 : i32
    scf.if %2 {
      %cst_9 = arith.constant 0.000000e+00 : f32
      %12 = vector.broadcast %cst_9 : f32 to vector<32x256xf32>
      %c0_10 = arith.constant 0 : index
      %c0_11 = arith.constant 0 : index
      %13 = vector.load %arg7[%c0_10, %c0_11] : memref<32x256xf32, #tpu.memory_space<vmem>>, vector<32x256xf32>
      tpu.vector_store %arg7[%c0_10, %c0_11], %12 {strides = array<i32>} : memref<32x256xf32, #tpu.memory_space<vmem>>, vector<32x256xf32>,
    } else {
    }
    %c0 = arith.constant 0 : index
    %c0_1 = arith.constant 0 : index
    %3 = vector.load %arg7[%c0, %c0_1] : memref<32x256xf32, #tpu.memory_space<vmem>>, vector<32x256xf32>
    %c0_2 = arith.constant 0 : index
    %c0_3 = arith.constant 0 : index
    %4 = vector.load %arg3[%c0_2, %c0_3] : memref<32x512xbf16, #tpu.memory_space<vmem>>, vector<32x512xbf16>
    %c0_4 = arith.constant 0 : index
    %c0_5 = arith.constant 0 : index
    %5 = vector.load %arg4[%c0_4, %c0_5] : memref<512x256xbf16, #tpu.memory_space<vmem>>, vector<512x256xbf16>
    %cst = arith.constant dense<0.000000e+00> : vector<32x256xf32>
    %6 = tpu.matmul %4, %5, %cst {dimension_numbers = #tpu.dot_dimension_numbers<[1], [0], [0], [1], [0, 0, 1, 1], [], []>} : vector<32x512xbf16>, vector<512x256xbf16>, vector<32x256xf32> -> vector<32x256xf32>
    %7 = arith.addf %3, %6 : vector<32x256xf32>
    %c0_6 = arith.constant 0 : index
    %c0_7 = arith.constant 0 : index
    %8 = vector.load %arg7[%c0_6, %c0_7] : memref<32x256xf32, #tpu.memory_space<vmem>>, vector<32x256xf32>
    tpu.vector_store %arg7[%c0_6, %c0_7], %7 {strides = array<i32>} : memref<32x256xf32, #tpu.memory_space<vmem>>, vector<32x256xf32>,
    %c3_i32 = arith.constant 3 : i32
    %9 = arith.cmpi eq, %arg2, %c3_i32 : i32
    %10 = arith.extui %9 : i1 to i32
    %c0_i32_8 = arith.constant 0 : i32
    %11 = arith.cmpi ne, %10, %c0_i32_8 : i32
    scf.if %11 {
      %c0_9 = arith.constant 0 : index
      %c0_10 = arith.constant 0 : index
      %12 = vector.load %arg7[%c0_9, %c0_10] : memref<32x256xf32, #tpu.memory_space<vmem>>, vector<32x256xf32>
      %c0_11 = arith.constant 0 : index
      %c0_12 = arith.constant 0 : index
      %13 = vector.load %arg5[%c0_11, %c0_12] : memref<1x256xf32, #tpu.memory_space<vmem>>, vector<1x256xf32>
      %14 = vector.broadcast %13 : vector<1x256xf32> to vector<32x256xf32>
      %15 = arith.addf %12, %14 : vector<32x256xf32>
      %16 = arith.negf %15 : vector<32x256xf32>
      %17 = math.exp %16 : vector<32x256xf32>
      %cst_13 = arith.constant 1.000000e+00 : f32
      %18 = vector.broadcast %cst_13 : f32 to vector<32x256xf32>
      %19 = arith.addf %18, %17 : vector<32x256xf32>
      %20 = arith.divf %18, %19 : vector<32x256xf32>
      %c0_14 = arith.constant 0 : index
      %c0_15 = arith.constant 0 : index
      %21 = vector.load %arg6[%c0_14, %c0_15] : memref<32x256xf32, #tpu.memory_space<vmem>>, vector<32x256xf32>
      tpu.vector_store %arg6[%c0_14, %c0_15], %20 {strides = array<i32>} : memref<32x256xf32, #tpu.memory_space<vmem>>, vector<32x256xf32>,
    } else {
    }
    return
  }
  func.func @transform_0(%arg0: i32, %arg1: i32, %arg2: i32) -> (i32, i32) {
    %c0_i32 = arith.constant 0 : i32
    return %arg0, %arg2 : i32, i32
  }
  func.func @transform_1(%arg0: i32, %arg1: i32, %arg2: i32) -> (i32, i32) {
    %c0_i32 = arith.constant 0 : i32
    return %arg2, %arg1 : i32, i32
  }
  func.func @transform_2(%arg0: i32, %arg1: i32, %arg2: i32) -> (i32, i32) {
    %c0_i32 = arith.constant 0 : i32
    %c0_i32_0 = arith.constant 0 : i32
    return %c0_i32, %arg1 : i32, i32
  }
  func.func @transform_3(%arg0: i32, %arg1: i32, %arg2: i32) -> (i32, i32) {
    %c0_i32 = arith.constant 0 : i32
    return %arg0, %arg1 : i32, i32
  }
}

module attributes {stable_mosaic.version = 11 : i64} {
  func.func @_mm_kernel(%arg0: i32, %arg1: i32, %arg2: i32, %arg3: memref<16x512xbf16, #tpu.memory_space<vmem>>, %arg4: memref<512x256xbf16, #tpu.memory_space<vmem>>, %arg5: memref<1x256xf32, #tpu.memory_space<vmem>>, %arg6: memref<16x256xf32, #tpu.memory_space<vmem>>, %arg7: memref<16x256xf32, #tpu.memory_space<vmem>>) attributes {dimension_semantics = [#tpu.dimension_semantics<parallel>, #tpu.dimension_semantics<parallel>, #tpu.dimension_semantics<arbitrary>], iteration_bounds = array<i64: 1, 1, 8>, scalar_prefetch = 0 : i64, scratch_operands = 1 : i64, tpu.core_type = #tpu.core_type<tc>, window_params = [{transform_indices = @transform_0, window_bounds = array<i64: 16, 512>}, {transform_indices = @transform_1, window_bounds = array<i64: 512, 256>}, {transform_indices = @transform_2, window_bounds = array<i64: 1, 256>}, {transform_indices = @transform_3, window_bounds = array<i64: 16, 256>}]} {
    %c0_i32 = arith.constant 0 : i32
    %0 = arith.cmpi eq, %arg2, %c0_i32 : i32
    %1 = arith.extui %0 : i1 to i32
    %c0_i32_0 = arith.constant 0 : i32
    %2 = arith.cmpi ne, %1, %c0_i32_0 : i32
    scf.if %2 {
      %cst_9 = arith.constant 0.000000e+00 : f32
      %12 = vector.broadcast %cst_9 : f32 to vector<16x256xf32>
      %c0_10 = arith.constant 0 : index
      %c0_11 = arith.constant 0 : index
      %13 = vector.load %arg7[%c0_10, %c0_11] : memref<16x256xf32, #tpu.memory_space<vmem>>, vector<16x256xf32>
      tpu.vector_store %arg7[%c0_10, %c0_11], %12 {strides = array<i32>} : memref<16x256xf32, #tpu.memory_space<vmem>>, vector<16x256xf32>,
    } else {
    }
    %c0 = arith.constant 0 : index
    %c0_1 = arith.constant 0 : index
    %3 = vector.load %arg7[%c0, %c0_1] : memref<16x256xf32, #tpu.memory_space<vmem>>, vector<16x256xf32>
    %c0_2 = arith.constant 0 : index
    %c0_3 = arith.constant 0 : index
    %4 = vector.load %arg3[%c0_2, %c0_3] : memref<16x512xbf16, #tpu.memory_space<vmem>>, vector<16x512xbf16>
    %c0_4 = arith.constant 0 : index
    %c0_5 = arith.constant 0 : index
    %5 = vector.load %arg4[%c0_4, %c0_5] : memref<512x256xbf16, #tpu.memory_space<vmem>>, vector<512x256xbf16>
    %cst = arith.constant dense<0.000000e+00> : vector<16x256xf32>
    %6 = tpu.matmul %4, %5, %cst {dimension_numbers = #tpu.dot_dimension_numbers<[1], [0], [0], [1], [0, 0, 1, 1], [], []>} : vector<16x512xbf16>, vector<512x256xbf16>, vector<16x256xf32> -> vector<16x256xf32>
    %7 = arith.addf %3, %6 : vector<16x256xf32>
    %c0_6 = arith.constant 0 : index
    %c0_7 = arith.constant 0 : index
    %8 = vector.load %arg7[%c0_6, %c0_7] : memref<16x256xf32, #tpu.memory_space<vmem>>, vector<16x256xf32>
    tpu.vector_store %arg7[%c0_6, %c0_7], %7 {strides = array<i32>} : memref<16x256xf32, #tpu.memory_space<vmem>>, vector<16x256xf32>,
    %c7_i32 = arith.constant 7 : i32
    %9 = arith.cmpi eq, %arg2, %c7_i32 : i32
    %10 = arith.extui %9 : i1 to i32
    %c0_i32_8 = arith.constant 0 : i32
    %11 = arith.cmpi ne, %10, %c0_i32_8 : i32
    scf.if %11 {
      %c0_9 = arith.constant 0 : index
      %c0_10 = arith.constant 0 : index
      %12 = vector.load %arg7[%c0_9, %c0_10] : memref<16x256xf32, #tpu.memory_space<vmem>>, vector<16x256xf32>
      %c0_11 = arith.constant 0 : index
      %c0_12 = arith.constant 0 : index
      %13 = vector.load %arg5[%c0_11, %c0_12] : memref<1x256xf32, #tpu.memory_space<vmem>>, vector<1x256xf32>
      %14 = vector.broadcast %13 : vector<1x256xf32> to vector<16x256xf32>
      %15 = arith.addf %12, %14 : vector<16x256xf32>
      %16 = arith.negf %15 : vector<16x256xf32>
      %17 = math.exp %16 : vector<16x256xf32>
      %cst_13 = arith.constant 1.000000e+00 : f32
      %18 = vector.broadcast %cst_13 : f32 to vector<16x256xf32>
      %19 = arith.addf %18, %17 : vector<16x256xf32>
      %20 = arith.divf %18, %19 : vector<16x256xf32>
      %c0_14 = arith.constant 0 : index
      %c0_15 = arith.constant 0 : index
      %21 = vector.load %arg6[%c0_14, %c0_15] : memref<16x256xf32, #tpu.memory_space<vmem>>, vector<16x256xf32>
      tpu.vector_store %arg6[%c0_14, %c0_15], %20 {strides = array<i32>} : memref<16x256xf32, #tpu.memory_space<vmem>>, vector<16x256xf32>,
    } else {
    }
    return
  }
  func.func @transform_0(%arg0: i32, %arg1: i32, %arg2: i32) -> (i32, i32) {
    %c0_i32 = arith.constant 0 : i32
    return %arg0, %arg2 : i32, i32
  }
  func.func @transform_1(%arg0: i32, %arg1: i32, %arg2: i32) -> (i32, i32) {
    %c0_i32 = arith.constant 0 : i32
    return %arg2, %arg1 : i32, i32
  }
  func.func @transform_2(%arg0: i32, %arg1: i32, %arg2: i32) -> (i32, i32) {
    %c0_i32 = arith.constant 0 : i32
    %c0_i32_0 = arith.constant 0 : i32
    return %c0_i32, %arg1 : i32, i32
  }
  func.func @transform_3(%arg0: i32, %arg1: i32, %arg2: i32) -> (i32, i32) {
    %c0_i32 = arith.constant 0 : i32
    return %arg0, %arg1 : i32, i32
  }
}

module attributes {stable_mosaic.version = 11 : i64} {
  func.func @_mm_kernel(%arg0: i32, %arg1: i32, %arg2: i32, %arg3: memref<16x512xbf16, #tpu.memory_space<vmem>>, %arg4: memref<512x128xbf16, #tpu.memory_space<vmem>>, %arg5: memref<1x128xf32, #tpu.memory_space<vmem>>, %arg6: memref<16x128xf32, #tpu.memory_space<vmem>>, %arg7: memref<16x128xf32, #tpu.memory_space<vmem>>) attributes {dimension_semantics = [#tpu.dimension_semantics<parallel>, #tpu.dimension_semantics<parallel>, #tpu.dimension_semantics<arbitrary>], iteration_bounds = array<i64: 1, 1, 2>, scalar_prefetch = 0 : i64, scratch_operands = 1 : i64, tpu.core_type = #tpu.core_type<tc>, window_params = [{transform_indices = @transform_0, window_bounds = array<i64: 16, 512>}, {transform_indices = @transform_1, window_bounds = array<i64: 512, 128>}, {transform_indices = @transform_2, window_bounds = array<i64: 1, 128>}, {transform_indices = @transform_3, window_bounds = array<i64: 16, 128>}]} {
    %c0_i32 = arith.constant 0 : i32
    %0 = arith.cmpi eq, %arg2, %c0_i32 : i32
    %1 = arith.extui %0 : i1 to i32
    %c0_i32_0 = arith.constant 0 : i32
    %2 = arith.cmpi ne, %1, %c0_i32_0 : i32
    scf.if %2 {
      %cst_9 = arith.constant 0.000000e+00 : f32
      %12 = vector.broadcast %cst_9 : f32 to vector<16x128xf32>
      %c0_10 = arith.constant 0 : index
      %c0_11 = arith.constant 0 : index
      %13 = vector.load %arg7[%c0_10, %c0_11] : memref<16x128xf32, #tpu.memory_space<vmem>>, vector<16x128xf32>
      tpu.vector_store %arg7[%c0_10, %c0_11], %12 {strides = array<i32>} : memref<16x128xf32, #tpu.memory_space<vmem>>, vector<16x128xf32>,
    } else {
    }
    %c0 = arith.constant 0 : index
    %c0_1 = arith.constant 0 : index
    %3 = vector.load %arg7[%c0, %c0_1] : memref<16x128xf32, #tpu.memory_space<vmem>>, vector<16x128xf32>
    %c0_2 = arith.constant 0 : index
    %c0_3 = arith.constant 0 : index
    %4 = vector.load %arg3[%c0_2, %c0_3] : memref<16x512xbf16, #tpu.memory_space<vmem>>, vector<16x512xbf16>
    %c0_4 = arith.constant 0 : index
    %c0_5 = arith.constant 0 : index
    %5 = vector.load %arg4[%c0_4, %c0_5] : memref<512x128xbf16, #tpu.memory_space<vmem>>, vector<512x128xbf16>
    %cst = arith.constant dense<0.000000e+00> : vector<16x128xf32>
    %6 = tpu.matmul %4, %5, %cst {dimension_numbers = #tpu.dot_dimension_numbers<[1], [0], [0], [1], [0, 0, 1, 1], [], []>} : vector<16x512xbf16>, vector<512x128xbf16>, vector<16x128xf32> -> vector<16x128xf32>
    %7 = arith.addf %3, %6 : vector<16x128xf32>
    %c0_6 = arith.constant 0 : index
    %c0_7 = arith.constant 0 : index
    %8 = vector.load %arg7[%c0_6, %c0_7] : memref<16x128xf32, #tpu.memory_space<vmem>>, vector<16x128xf32>
    tpu.vector_store %arg7[%c0_6, %c0_7], %7 {strides = array<i32>} : memref<16x128xf32, #tpu.memory_space<vmem>>, vector<16x128xf32>,
    %c1_i32 = arith.constant 1 : i32
    %9 = arith.cmpi eq, %arg2, %c1_i32 : i32
    %10 = arith.extui %9 : i1 to i32
    %c0_i32_8 = arith.constant 0 : i32
    %11 = arith.cmpi ne, %10, %c0_i32_8 : i32
    scf.if %11 {
      %c0_9 = arith.constant 0 : index
      %c0_10 = arith.constant 0 : index
      %12 = vector.load %arg7[%c0_9, %c0_10] : memref<16x128xf32, #tpu.memory_space<vmem>>, vector<16x128xf32>
      %c0_11 = arith.constant 0 : index
      %c0_12 = arith.constant 0 : index
      %13 = vector.load %arg5[%c0_11, %c0_12] : memref<1x128xf32, #tpu.memory_space<vmem>>, vector<1x128xf32>
      %14 = vector.broadcast %13 : vector<1x128xf32> to vector<16x128xf32>
      %15 = arith.addf %12, %14 : vector<16x128xf32>
      %c0_13 = arith.constant 0 : index
      %c0_14 = arith.constant 0 : index
      %16 = vector.load %arg6[%c0_13, %c0_14] : memref<16x128xf32, #tpu.memory_space<vmem>>, vector<16x128xf32>
      tpu.vector_store %arg6[%c0_13, %c0_14], %15 {strides = array<i32>} : memref<16x128xf32, #tpu.memory_space<vmem>>, vector<16x128xf32>,
    } else {
    }
    return
  }
  func.func @transform_0(%arg0: i32, %arg1: i32, %arg2: i32) -> (i32, i32) {
    %c0_i32 = arith.constant 0 : i32
    return %arg0, %arg2 : i32, i32
  }
  func.func @transform_1(%arg0: i32, %arg1: i32, %arg2: i32) -> (i32, i32) {
    %c0_i32 = arith.constant 0 : i32
    return %arg2, %arg1 : i32, i32
  }
  func.func @transform_2(%arg0: i32, %arg1: i32, %arg2: i32) -> (i32, i32) {
    %c0_i32 = arith.constant 0 : i32
    %c0_i32_0 = arith.constant 0 : i32
    return %c0_i32, %arg1 : i32, i32
  }
  func.func @transform_3(%arg0: i32, %arg1: i32, %arg2: i32) -> (i32, i32) {
    %c0_i32 = arith.constant 0 : i32
    return %arg0, %arg1 : i32, i32
  }
}

</mosaic_0001>

<bundles_post_ra>
// kernel: dummy_model_forward.8
= control target key start
LH: loop header
LB: loop body
LE: loop exit
PB: predicated region body
PF: predicated region fallthrough
CT: control target
= control target key end

     0   :  { %s1881_s12 = smov 0   ;;  %s1883_s13 = smov 0   ;;  %s2462_s0 = inlined_call_operand.vmem [shape: bf16[2048,128], index: 0, kind: input, shape index: {}]   ;;  %s2463_s1 = inlined_call_operand.vmem [shape: bf16[128,128], index: 1, kind: input, shape index: {}]   ;;  %s2464_s2 = inlined_call_operand.vmem [shape: f32[1,128], index: 2, kind: input, shape index: {}]   ;;  %s2465_s3 = inlined_call_operand.vmem [shape: f32[2048,128], index: 3, kind: output, shape index: {}]  }
   0x1   :  { %s1885_s14 = smov 0  }
   0x2 LB: > { %s32_s15 = sadd.s32 1, %s1855_s13  ;;  %p1500_p0 = scmp.ge.s32.totalorder %s1859_s14, 1  ;;  %s1859_s14 = sphi %s1885_s14, %s13_s14   ;;  %s1855_s13 = sphi %s1883_s13, %s2513_s13   ;;  %s1851_s12 = sphi %s1881_s12, %s2512_s12  }
   0x3   : > { %p34_p1 = scmp.ge.s32.totalorder %s32_s15, 8  ;;  %p188_p2 = scmp.lt.s32.totalorder %s1859_s14, 9 }
   0x5   : > { %s2515_s15 = smov (%p34_p1, %s32_s15), 0  ;;  %p189_p3 = pnand %p1500_p0, %p188_p2 }
   0x6   : > { %s1501_s24 = sshll.u32 (!%p189_p3), %s1851_s12, 5 }
   0x7   : > { %192 = sbr.rel (%p189_p3) target bundleno = 324 (0x144), region = 32  ;;  %p230_p4 = scmp.lt.s32.totalorder (!%p189_p3), %s1501_s24, 255 }
   0xc   : > { %v1658_v0 = vld [vmem:[%s2463_s1 + $0x38] sm:$0xff]  ;;  %v1657_v1 = vld [vmem:[%s2463_s1 + $0x30] sm:$0xff]  ;;  %v1656_v2 = vld [vmem:[%s2463_s1 + $0x28] sm:$0xff]  ;;  %s2517_s24 = smov (!%p230_p4, %s1501_s24), 255 }
   0xd   : > { %519 = vmatpush.bf16.msra.mxu0 %v1658_v0  ;;  %1659 = vmatpush.bf16.msra.mxu1 %v1658_v0  ;;  %v1655_v3 = vld [vmem:[%s2463_s1 + $0x20] sm:$0xff]  ;;  %v1654_v4 = vld [vmem:[%s2463_s1 + $0x18] sm:$0xff]  ;;  %v1653_v5 = vld [vmem:[%s2463_s1 + $0x10] sm:$0xff]  ;;  %s1502_s4 = sshll.u32 %s2517_s24, 2  ;;  %s1504_s12 = sshll.u32 %s2517_s24, 3 }
   0xe   : > { %1660 = vmatpush.bf16.msra.mxu2 %v1658_v0  ;;  %1661 = vmatpush.bf16.msra.mxu3 %v1658_v0  ;;  %v1652_v6 = vld [vmem:[%s2463_s1 + $0x8] sm:$0xff]  ;;  %v1651_v7 = vld [vmem:[%s2463_s1] sm:$0xff]  ;;  %s1932_s9 = scalar_lea.vmem %s2462_s0, %s1502_s4  ;;  %s2008_s18 = scalar_lea.vmem %s2465_s3, %s1504_s12 }
   0xf   : > { %v1635_v8 = vld [vmem:[%s1932_s9] sm:$0xff]  ;;  %v1636_v12 = vld [vmem:[%s1932_s9 + $0x8] sm:$0xff]  ;;  %v1637_v16 = vld [vmem:[%s1932_s9 + $0x10] sm:$0xff] }
  0x10   : > { %v1639_v9 = vld [vmem:[%s1932_s9 + $0x20] sm:$0xff]  ;;  %v1640_v13 = vld [vmem:[%s1932_s9 + $0x28] sm:$0xff]  ;;  %v1641_v17 = vld [vmem:[%s1932_s9 + $0x30] sm:$0xff] }
  0x11   : > { %520 = vmatpush.bf16.msra.mxu0 %v1657_v1  ;;  %1662 = vmatpush.bf16.msra.mxu1 %v1657_v1  ;;  %v1643_v10 = vld [vmem:[%s1932_s9 + $0x40] sm:$0xff]  ;;  %v1644_v14 = vld [vmem:[%s1932_s9 + $0x48] sm:$0xff]  ;;  %v1645_v18 = vld [vmem:[%s1932_s9 + $0x50] sm:$0xff] }
  0x12   : > { %1663 = vmatpush.bf16.msra.mxu2 %v1657_v1  ;;  %1664 = vmatpush.bf16.msra.mxu3 %v1657_v1  ;;  %v1647_v11 = vld [vmem:[%s1932_s9 + $0x60] sm:$0xff]  ;;  %v1648_v15 = vld [vmem:[%s1932_s9 + $0x68] sm:$0xff]  ;;  %v1649_v19 = vld [vmem:[%s1932_s9 + $0x70] sm:$0xff] }
  0x13   : > { %v1638_v20 = vld [vmem:[%s1932_s9 + $0x18] sm:$0xff]  ;;  %v1953_v24 = vld [vmem:[%s2464_s2] ss:$0 sm:$0xff] }
  0x14   : > { %v1642_v21 = vld [vmem:[%s1932_s9 + $0x38] sm:$0xff] }
  0x15   : > { %521 = vmatpush.bf16.msra.mxu0 %v1656_v2  ;;  %1665 = vmatpush.bf16.msra.mxu1 %v1656_v2  ;;  %v1646_v22 = vld [vmem:[%s1932_s9 + $0x58] sm:$0xff] }
  0x16   : > { %1666 = vmatpush.bf16.msra.mxu2 %v1656_v2  ;;  %1667 = vmatpush.bf16.msra.mxu3 %v1656_v2  ;;  %v1650_v23 = vld [vmem:[%s1932_s9 + $0x78] sm:$0xff] }
  0x19   : > { %522 = vmatpush.bf16.msra.mxu0 %v1655_v3  ;;  %1668 = vmatpush.bf16.msra.mxu1 %v1655_v3 }
  0x1a   : > { %1669 = vmatpush.bf16.msra.mxu2 %v1655_v3  ;;  %1670 = vmatpush.bf16.msra.mxu3 %v1655_v3 }
  0x1d   : > { %523 = vmatpush.bf16.msra.mxu0 %v1654_v4  ;;  %1671 = vmatpush.bf16.msra.mxu1 %v1654_v4 }
  0x1e   : > { %1672 = vmatpush.bf16.msra.mxu2 %v1654_v4  ;;  %1673 = vmatpush.bf16.msra.mxu3 %v1654_v4 }
  0x21   : > { %524 = vmatpush.bf16.msra.mxu0 %v1653_v5  ;;  %1674 = vmatpush.bf16.msra.mxu1 %v1653_v5 }
  0x22   : > { %1675 = vmatpush.bf16.msra.mxu2 %v1653_v5  ;;  %1676 = vmatpush.bf16.msra.mxu3 %v1653_v5 }
  0x25   : > { %525 = vmatpush.bf16.msra.mxu0 %v1652_v6  ;;  %1677 = vmatpush.bf16.msra.mxu1 %v1652_v6 }
  0x26   : > { %1678 = vmatpush.bf16.msra.mxu2 %v1652_v6  ;;  %1679 = vmatpush.bf16.msra.mxu3 %v1652_v6 }
  0x29   : > { %526 = vmatpush.bf16.msra.mxu0 %v1651_v7  ;;  %1680 = vmatpush.bf16.msra.mxu1 %v1651_v7 }
  0x2a   : > { %1681 = vmatpush.bf16.msra.mxu2 %v1651_v7  ;;  %1682 = vmatpush.bf16.msra.mxu3 %v1651_v7 }
  0x2c   : > { %527 = vmatmul.bf16.vlgmr.msra.gmra.mxu0 %v1635_v8  ;;  %547 = vmatmul.bf16.vlgmr.msra.gmra.mxu1 %v1639_v9 }
  0x2d   : > { %567 = vmatmul.bf16.vlgmr.msra.gmra.mxu2 %v1643_v10  ;;  %587 = vmatmul.bf16.vlgmr.msra.gmra.mxu3 %v1647_v11 }
  0x3c   : > { %532 = vmatmul.bf16.gmra.mxu0 %v1636_v12  ;;  %552 = vmatmul.bf16.gmra.mxu1 %v1640_v13 }
  0x3d   : > { %572 = vmatmul.bf16.gmra.mxu2 %v1644_v14  ;;  %592 = vmatmul.bf16.gmra.mxu3 %v1648_v15 }
  0x4c   : > { %537 = vmatmul.bf16.gmra.mxu0 %v1637_v16  ;;  %557 = vmatmul.bf16.gmra.mxu1 %v1641_v17 }
  0x4d   : > { %577 = vmatmul.bf16.gmra.mxu2 %v1645_v18  ;;  %597 = vmatmul.bf16.gmra.mxu3 %v1649_v19 }
  0x5c   : > { %542 = vmatmul.bf16.gmra.mxu0 %v1638_v20  ;;  %562 = vmatmul.bf16.gmra.mxu1 %v1642_v21 }
  0x5d   : > { %582 = vmatmul.bf16.gmra.mxu2 %v1646_v22  ;;  %602 = vmatmul.bf16.gmra.mxu3 %v1650_v23 }
  0xa9   : > { %v528_v25 = vpop.f32.mrf.mxu0  ;;  %v548_v26 = vpop.f32.mrf.mxu1 }
  0xaa   : > { %v711_v27 = vadd.f32 %v1953_v24, %v528_v25  ;;  %v719_v28 = vadd.f32 %v1953_v24, %v548_v26 }
  0xac   : > { %v1601_v29 = vmul.f32 -1.442695, %v711_v27  ;;  %v1609_v30 = vmul.f32 -1.442695, %v719_v28 }
  0xae   : > { %1708 = vpow2.f32 %v1601_v29 }
  0xaf   : > { %1710 = vpow2.f32 %v1609_v30 }
  0xb0   : > { %v568_v31 = vpop.f32.mrf.mxu2  ;;  %v588_v32 = vpop.f32.mrf.mxu3 }
  0xb1   : > { %v727_v33 = vadd.f32 %v1953_v24, %v568_v31  ;;  %v735_v34 = vadd.f32 %v1953_v24, %v588_v32  ;;  %v530_v35 = vpop.f32.mrf.mxu0  ;;  %v550_v36 = vpop.f32.mrf.mxu1 }
  0xb2   : > { %v712_v37 = vadd.f32 %v1953_v24, %v530_v35  ;;  %v720_v38 = vadd.f32 %v1953_v24, %v550_v36 }
  0xb3   : > { %v1617_v39 = vmul.f32 -1.442695, %v727_v33  ;;  %v1625_v40 = vmul.f32 -1.442695, %v735_v34 }
  0xb4   : > { %v1709_v41 = vpop.eup %1708  ;;  %v1602_v44 = vmul.f32 -1.442695, %v712_v37  ;;  %v1610_v46 = vmul.f32 -1.442695, %v720_v38 }
  0xb5   : > { %v1711_v42 = vpop.eup %1710  ;;  %v1961_v43 = vadd.f32 1.0, %v1709_v41  ;;  %1712 = vpow2.f32 %v1617_v39 }
  0xb6   : > { %v1963_v45 = vadd.f32 1.0, %v1711_v42  ;;  %1714 = vpow2.f32 %v1625_v40 }
  0xb7   : > { %1716 = vrcp.f32 %v1961_v43  ;;  %v880_v50 = vand.u32 2147483647, %v1961_v43  ;;  %v882_v51 = vand.u32 2147483648, %v1961_v43  ;;  %vm876_vm0 = vweird.f32 %v1961_v43 }
  0xb8   : > { %1718 = vrcp.f32 %v1963_v45  ;;  %v570_v47 = vpop.f32.mrf.mxu2  ;;  %v590_v48 = vpop.f32.mrf.mxu3  ;;  %v1000_v54 = vand.u32 2147483647, %v1963_v45  ;;  %v1002_v58 = vand.u32 2147483648, %v1963_v45  ;;  %vm996_vm1 = vweird.f32 %v1963_v45 }
  0xb9   : > { %1720 = vpow2.f32 %v1602_v44  ;;  %v728_v49 = vadd.f32 %v1953_v24, %v570_v47  ;;  %v533_v52 = vpop.f32.mrf.mxu0  ;;  %v736_v56 = vadd.f32 %v1953_v24, %v590_v48  ;;  %v553_v63 = vpop.f32.mrf.mxu1  ;;  %vm1981_vm2 = vcmp.eq.f32.partialorder %v880_v50, 8.507059e+37 }
  0xba   : > { %1722 = vpow2.f32 %v1610_v46  ;;  %v713_v62 = vadd.f32 %v1953_v24, %v533_v52  ;;  %v883_v3 = vor.u32 1.1754944e-38, %v882_v51  ;;  %vm1987_vm3 = vcmp.eq.f32.partialorder %v1000_v54, 8.507059e+37 }
  0xbb   : > { %v1713_v53 = vpop.eup %1712  ;;  %v1618_v55 = vmul.f32 -1.442695, %v728_v49  ;;  %v1626_v7 = vmul.f32 -1.442695, %v736_v56  ;;  %v1003_v10 = vor.u32 1.1754944e-38, %v1002_v58  ;;  %v721_v11 = vadd.f32 %v1953_v24, %v553_v63 }
  0xbc   : > { %v1715_v57 = vpop.eup %1714  ;;  %v1973_v59 = vadd.f32 1.0, %v1713_v53  ;;  %v1603_v14 = vmul.f32 -1.442695, %v713_v62 }
  0xbd   : > { %v1717_v60 = vpop.eup %1716  ;;  %v1977_v61 = vadd.f32 1.0, %v1715_v57  ;;  %v2003_v25 = vmul.f32 -1.442695, %v721_v11 }
  0xbe   : > { %v1719_v0 = vpop.eup %1718  ;;  %v872_v1 = vmul.f32 %v1717_v60, %v1961_v43  ;;  %1724 = vrcp.f32 %v1973_v59  ;;  %vm877_vm4 = vweird.f32 %v1717_v60  ;;  %v1120_v13 = vand.u32 2147483647, %v1973_v59 }
  0xbf   : > { %v1721_v4 = vpop.eup %1720  ;;  %v992_v5 = vmul.f32 %v1719_v0, %v1963_v45  ;;  %1726 = vpow2.f32 %v1618_v55  ;;  %v1122_v16 = vand.u32 2147483648, %v1973_v59  ;;  %vm997_vm5 = vweird.f32 %v1719_v0  ;;  %vm878_vm6 = vmor %vm876_vm0, %vm877_vm4 }
  0xc0   : > { %v1723_v8 = vpop.eup %1722  ;;  %v873_v9 = vsub.f32 1.0, %v872_v1  ;;  %1728 = vrcp.f32 %v1977_v61  ;;  %v1996_v17 = vadd.f32 1.0, %v1721_v4  ;;  %v1240_v20 = vand.u32 2147483647, %v1977_v61  ;;  %v573_v29 = vpop.f32.mrf.mxu2  ;;  %vm998_vm9 = vmor %vm996_vm1, %vm997_vm5 }
  0xc1   : > { %v993_v12 = vsub.f32 1.0, %v992_v5  ;;  %v1998_v18 = vadd.f32 1.0, %v1723_v8  ;;  %1730 = vpow2.f32 %v1626_v7  ;;  %v1242_v23 = vand.u32 2147483648, %v1977_v61  ;;  %v593_v56 = vpop.f32.mrf.mxu3  ;;  %v535_v11 = vpop.f32.mrf.mxu0 }
  0xc2   : > { %v874_v15 = vmul.f32 %v1717_v60, %v873_v9  ;;  %1732 = vrcp.f32 %v1996_v17  ;;  %vm1116_vm7 = vweird.f32 %v1973_v59  ;;  %vm1236_vm8 = vweird.f32 %v1977_v61 }
  0xc3   : > { %v994_v19 = vmul.f32 %v1719_v0, %v993_v12  ;;  %vm2019_vm10 = vcmp.eq.f32.partialorder %v1120_v13, 8.507059e+37  ;;  %v1123_v33 = vor.u32 1.1754944e-38, %v1122_v16  ;;  %1734 = vrcp.f32 %v1998_v18 }
  0xc4   : > { %v1725_v21 = vpop.eup %1724  ;;  %v875_v22 = vadd.f32 %v1717_v60, %v874_v15  ;;  %vm2027_vm11 = vcmp.eq.f32.partialorder %v1240_v20, 8.507059e+37  ;;  %v1243_v40 = vor.u32 1.1754944e-38, %v1242_v23  ;;  %v895_v41 = vand.u32 2147483647, %v1996_v17 }
  0xc5   : > { %v1727_v26 = vpop.eup %1726  ;;  %v995_v27 = vadd.f32 %v1719_v0, %v994_v19  ;;  %v1112_v28 = vmul.f32 %v1725_v21, %v1973_v59  ;;  %v729_v42 = vadd.f32 %v1953_v24, %v573_v29  ;;  %vm1117_vm12 = vweird.f32 %v1725_v21  ;;  %v555_v29 = vpop.f32.mrf.mxu1 }
  0xc6   : > { %v1729_v30 = vpop.eup %1728  ;;  %v879_v31 = vsel %vm878_vm6, %v1717_v60, %v875_v22  ;;  %v2037_v46 = vadd.f32 1.0, %v1727_v26  ;;  %vm891_vm14 = vweird.f32 %v1996_v17  ;;  %v897_v48 = vand.u32 2147483648, %v1996_v17  ;;  %vm1118_vm15 = vmor %vm1116_vm7, %vm1117_vm12 }
  0xc7   : > { %v884_v34 = vsel %vm1981_vm2, %v883_v3, %v879_v31  ;;  %v999_v35 = vsel %vm998_vm9, %v1719_v0, %v995_v27  ;;  %v1113_v36 = vsub.f32 1.0, %v1112_v28  ;;  %v1232_v37 = vmul.f32 %v1729_v30, %v1977_v61  ;;  %v1731_v43 = vpop.eup %1730 }
  0xc8   : > { %1351 = vst [vmem:[%s2008_s18] sm:$0xff] %v884_v34  ;;  %v1004_v39 = vsel %vm1987_vm3, %v1003_v10, %v999_v35  ;;  %v1733_v47 = vpop.eup %1732  ;;  %vm1237_vm13 = vweird.f32 %v1729_v30  ;;  %1736 = vpow2.f32 %v1603_v14  ;;  %v2042_v52 = vadd.f32 1.0, %v1731_v43 }
  0xc9   : > { %1359 = vst [vmem:[%s2008_s18 + $0x40] sm:$0xff] %v1004_v39  ;;  %v1114_v44 = vmul.f32 %v1725_v21, %v1113_v36  ;;  %v1233_v45 = vsub.f32 1.0, %v1232_v37  ;;  %v887_v51 = vmul.f32 %v1733_v47, %v1996_v17  ;;  %v1735_v53 = vpop.eup %1734  ;;  %vm2046_vm0 = vcmp.eq.f32.partialorder %v895_v41, 8.507059e+37  ;;  %vm1238_vm2 = vmor %vm1236_vm8, %vm1237_vm13 }
  0xca   : > { %vm1011_vm1 = vweird.f32 %v1998_v18  ;;  %v1015_v55 = vand.u32 2147483647, %v1998_v18  ;;  %1738 = vrcp.f32 %v2037_v46  ;;  %v1007_v62 = vmul.f32 %v1735_v53, %v1998_v18 }
  0xcb   : > { %v1115_v49 = vadd.f32 %v1725_v21, %v1114_v44  ;;  %v1234_v50 = vmul.f32 %v1729_v30, %v1233_v45  ;;  %v888_v60 = vsub.f32 1.0, %v887_v51  ;;  %vm892_vm3 = vweird.f32 %v1733_v47 }
  0xcc   : > { %v1017_v63 = vand.u32 2147483648, %v1998_v18  ;;  %v1135_v0 = vand.u32 2147483647, %v2037_v46  ;;  %v1008_v3 = vsub.f32 1.0, %v1007_v62  ;;  %1740 = vrcp.f32 %v2042_v52  ;;  %vm893_vm6 = vmor %vm891_vm14, %vm892_vm3 }
  0xcd   : > { %v1119_v57 = vsel %vm1118_vm15, %v1725_v21, %v1115_v49  ;;  %v1235_v58 = vadd.f32 %v1729_v30, %v1234_v50  ;;  %v889_v2 = vmul.f32 %v1733_v47, %v888_v60  ;;  %v898_v6 = vor.u32 1.1754944e-38, %v897_v48 }
  0xce   : > { %v1124_v59 = vsel %vm2019_vm10, %v1123_v33, %v1119_v57  ;;  %v1737_v4 = vpop.eup %1736  ;;  %vm2065_vm4 = vcmp.eq.f32.partialorder %v1015_v55, 8.507059e+37  ;;  %v1137_v61 = vand.u32 2147483648, %v2037_v46  ;;  %v1009_v9 = vmul.f32 %v1735_v53, %v1008_v3  ;;  %v595_v33 = vpop.f32.mrf.mxu3 }
  0xcf   : > { %1367 = vst [vmem:[%s2008_s18 + $0x80] sm:$0xff] %v1124_v59  ;;  %v1239_v1 = vsel %vm1238_vm2, %v1729_v30, %v1235_v58  ;;  %v890_v8 = vadd.f32 %v1733_v47, %v889_v2  ;;  %vm1012_vm5 = vweird.f32 %v1735_v53  ;;  %v2071_v10 = vadd.f32 1.0, %v1737_v4  ;;  %v575_v30 = vpop.f32.mrf.mxu2 }
  0xd0   : > { %v1244_v5 = vsel %vm2027_vm11, %v1243_v40, %v1239_v1  ;;  %v1739_v12 = vpop.eup %1738  ;;  %v1018_v13 = vor.u32 1.1754944e-38, %v1017_v63  ;;  %vm1131_vm7 = vweird.f32 %v2037_v46  ;;  %1742 = vpow2.f32 %v2003_v25  ;;  %vm1013_vm9 = vmor %vm1011_vm1, %vm1012_vm5 }
  0xd1   : > { %1375 = vst [vmem:[%s2008_s18 + $0xc0] sm:$0xff] %v1244_v5  ;;  %v1619_v14 = vmul.f32 -1.442695, %v729_v42  ;;  %v894_v15 = vsel %vm893_vm6, %v1733_v47, %v890_v8  ;;  %v1010_v16 = vadd.f32 %v1735_v53, %v1009_v9  ;;  %v1127_v19 = vmul.f32 %v1739_v12, %v2037_v46  ;;  %v538_v9 = vpop.f32.mrf.mxu0 }
  0xd2   : > { %vm2079_vm8 = vcmp.eq.f32.partialorder %v1135_v0, 8.507059e+37  ;;  %v737_v21 = vadd.f32 %v1953_v24, %v593_v56  ;;  %v899_v17 = vsel %vm2046_vm0, %v898_v6, %v894_v15  ;;  %v1138_v22 = vor.u32 1.1754944e-38, %v1137_v61  ;;  %v1741_v25 = vpop.eup %1740 }
  0xd3   : > { %1744 = vrcp.f32 %v2071_v10  ;;  %v714_v23 = vadd.f32 %v1953_v24, %v535_v11  ;;  %1352 = vst [vmem:[%s2008_s18 + $0x8] sm:$0xff] %v899_v17  ;;  %v1014_v26 = vsel %vm1013_vm9, %v1735_v53, %v1010_v16  ;;  %v1128_v27 = vsub.f32 1.0, %v1127_v19 }
  0xd4   : > { %vm1251_vm10 = vweird.f32 %v2042_v52  ;;  %v1255_v28 = vand.u32 2147483647, %v2042_v52  ;;  %v1019_v18 = vsel %vm2065_vm4, %v1018_v13, %v1014_v26  ;;  %v1247_v31 = vmul.f32 %v1741_v25, %v2042_v52 }
  0xd5   : > { %v1257_v32 = vand.u32 2147483648, %v2042_v52  ;;  %1746 = vpow2.f32 %v1619_v14  ;;  %1360 = vst [vmem:[%s2008_s18 + $0x48] sm:$0xff] %v1019_v18  ;;  %v1129_v34 = vmul.f32 %v1739_v12, %v1128_v27  ;;  %vm1132_vm11 = vweird.f32 %v1739_v12 }
  0xd6   : > { %vm1252_vm12 = vweird.f32 %v1741_v25  ;;  %v1627_v35 = vmul.f32 -1.442695, %v737_v21  ;;  %v1743_v36 = vpop.eup %1742  ;;  %v1248_v37 = vsub.f32 1.0, %v1247_v31  ;;  %v1604_v38 = vmul.f32 -1.442695, %v714_v23  ;;  %vm1133_vm13 = vmor %vm1131_vm7, %vm1132_vm11 }
  0xd7   : > { %v722_v39 = vadd.f32 %v1953_v24, %v555_v29  ;;  %v730_v40 = vadd.f32 %v1953_v24, %v575_v30  ;;  %v1130_v41 = vadd.f32 %v1739_v12, %v1129_v34  ;;  %v2101_v42 = vadd.f32 1.0, %v1743_v36  ;;  %vm1253_vm0 = vmor %vm1251_vm10, %vm1252_vm12 }
  0xd8   : > { %1748 = vpow2.f32 %v1627_v35  ;;  %v738_v43 = vadd.f32 %v1953_v24, %v595_v33  ;;  %v1249_v45 = vmul.f32 %v1741_v25, %v1248_v37  ;;  %vm2106_vm14 = vcmp.eq.f32.partialorder %v1255_v28, 8.507059e+37 }
  0xd9   : > { %v1745_v44 = vpop.eup %1744  ;;  %1750 = vpow2.f32 %v1604_v38  ;;  %v1612_v47 = vmul.f32 -1.442695, %v722_v39  ;;  %v1620_v48 = vmul.f32 -1.442695, %v730_v40  ;;  %v1134_v49 = vsel %vm1133_vm13, %v1739_v12, %v1130_v41 }
  0xda   : > { %v902_v51 = vmul.f32 %v1745_v44, %v2071_v10  ;;  %1752 = vrcp.f32 %v2101_v42  ;;  %v1139_v54 = vsel %vm2079_vm8, %v1138_v22, %v1134_v49  ;;  %v1250_v55 = vadd.f32 %v1741_v25, %v1249_v45 }
  0xdb   : > { %v1747_v53 = vpop.eup %1746  ;;  %v1258_v46 = vor.u32 1.1754944e-38, %v1257_v32  ;;  %vm906_vm15 = vweird.f32 %v2071_v10  ;;  %1368 = vst [vmem:[%s2008_s18 + $0x88] sm:$0xff] %v1139_v54  ;;  %v910_v57 = vand.u32 2147483647, %v2071_v10  ;;  %1754 = vpow2.f32 %v1612_v47 }
  0xdc   : > { %v903_v56 = vsub.f32 1.0, %v902_v51  ;;  %v2120_v58 = vadd.f32 1.0, %v1747_v53  ;;  %v1254_v60 = vsel %vm1253_vm0, %v1741_v25, %v1250_v55  ;;  %v912_v62 = vand.u32 2147483648, %v2071_v10 }
  0xdd   : > { %1756 = vpow2.f32 %v1620_v48  ;;  %v1628_v59 = vmul.f32 -1.442695, %v738_v43  ;;  %v1259_v0 = vsel %vm2106_vm14, %v1258_v46, %v1254_v60  ;;  %vm907_vm1 = vweird.f32 %v1745_v44 }
  0xde   : > { %v1749_v63 = vpop.eup %1748  ;;  %v904_v1 = vmul.f32 %v1745_v44, %v903_v56  ;;  %1758 = vrcp.f32 %v2120_v58  ;;  %1376 = vst [vmem:[%s2008_s18 + $0xc8] sm:$0xff] %v1259_v0  ;;  %v1030_v2 = vand.u32 2147483647, %v2101_v42  ;;  %v1032_v6 = vand.u32 2147483648, %v2101_v42  ;;  %vm908_vm2 = vmor %vm906_vm15, %vm907_vm1 }
  0xdf   : > { %v1751_v52 = vpop.eup %1750  ;;  %v2128_v3 = vadd.f32 1.0, %v1749_v63  ;;  %1760 = vpow2.f32 %v1628_v59  ;;  %vm911_vm3 = vcmp.eq.f32.partialorder %v910_v57, 8.507059e+37  ;;  %v913_v61 = vor.u32 1.1754944e-38, %v912_v62  ;;  %v578_v57 = vpop.f32.mrf.mxu2 }
  0xe0   : > { %v1753_v4 = vpop.eup %1752  ;;  %v905_v5 = vadd.f32 %v1745_v44, %v904_v1  ;;  %v2131_v7 = vadd.f32 1.0, %v1751_v52  ;;  %v1150_v13 = vand.u32 2147483647, %v2120_v58  ;;  %v1152_v14 = vand.u32 2147483648, %v2120_v58 }
  0xe1   : > { %v1022_v8 = vmul.f32 %v1753_v4, %v2101_v42  ;;  %v1755_v11 = vpop.eup %1754  ;;  %1762 = vrcp.f32 %v2128_v3  ;;  %vm1026_vm4 = vweird.f32 %v2101_v42  ;;  %vm2142_vm5 = vcmp.eq.f32.partialorder %v1030_v2, 8.507059e+37  ;;  %v558_v42 = vpop.f32.mrf.mxu1 }
  0xe2   : > { %v909_v12 = vsel %vm908_vm2, %v1745_v44, %v905_v5  ;;  %1764 = vrcp.f32 %v2131_v7  ;;  %v1033_v21 = vor.u32 1.1754944e-38, %v1032_v6  ;;  %vm1146_vm6 = vweird.f32 %v2120_v58 }
  0xe3   : > { %v1757_v15 = vpop.eup %1756  ;;  %v914_v16 = vsel %vm911_vm3, %v913_v61, %v909_v12  ;;  %v1023_v19 = vsub.f32 1.0, %v1022_v8  ;;  %v715_v17 = vadd.f32 %v1953_v24, %v538_v9  ;;  %vm1027_vm7 = vweird.f32 %v1753_v4 }
  0xe4   : > { %v1759_v10 = vpop.eup %1758  ;;  %1353 = vst [vmem:[%s2008_s18 + $0x10] sm:$0xff] %v914_v16  ;;  %v1270_v25 = vand.u32 2147483647, %v2128_v3  ;;  %vm2150_vm8 = vcmp.eq.f32.partialorder %v1150_v13, 8.507059e+37  ;;  %v1153_v28 = vor.u32 1.1754944e-38, %v1152_v14  ;;  %v1272_v29 = vand.u32 2147483648, %v2128_v3  ;;  %vm1028_vm10 = vmor %vm1026_vm4, %vm1027_vm7  ;;  %v598_v14 = vpop.f32.mrf.mxu3 }
  0xe5   : > { %v1024_v22 = vmul.f32 %v1753_v4, %v1023_v19  ;;  %v1142_v23 = vmul.f32 %v1759_v10, %v2120_v58  ;;  %v1761_v26 = vpop.eup %1760  ;;  %v2155_v30 = vadd.f32 1.0, %v1755_v11  ;;  %vm1266_vm9 = vweird.f32 %v2128_v3 }
  0xe6   : > { %v2158_v32 = vadd.f32 1.0, %v1757_v15  ;;  %vm1147_vm11 = vweird.f32 %v1759_v10  ;;  %vm921_vm12 = vweird.f32 %v2131_v7  ;;  %v925_v34 = vand.u32 2147483647, %v2131_v7  ;;  %v540_v15 = vpop.f32.mrf.mxu0 }
  0xe7   : > { %v1025_v18 = vadd.f32 %v1753_v4, %v1024_v22  ;;  %v1143_v31 = vsub.f32 1.0, %v1142_v23  ;;  %v1763_v33 = vpop.eup %1762  ;;  %v927_v35 = vand.u32 2147483648, %v2131_v7  ;;  %1766 = vrcp.f32 %v2155_v30  ;;  %vm1148_vm14 = vmor %vm1146_vm6, %vm1147_vm11 }
  0xe8   : > { %v1765_v36 = vpop.eup %1764  ;;  %v1262_v39 = vmul.f32 %v1763_v33, %v2128_v3  ;;  %vm2167_vm13 = vcmp.eq.f32.partialorder %v1270_v25, 8.507059e+37  ;;  %v2171_v41 = vadd.f32 1.0, %v1761_v26  ;;  %v1273_v44 = vor.u32 1.1754944e-38, %v1272_v29 }
  0xe9   : > { %v1029_v37 = vsel %vm1028_vm10, %v1753_v4, %v1025_v18  ;;  %v1144_v38 = vmul.f32 %v1759_v10, %v1143_v31  ;;  %v917_v45 = vmul.f32 %v1765_v36, %v2131_v7  ;;  %v1045_v47 = vand.u32 2147483647, %v2155_v30 }
  0xea   : > { %v1034_v43 = vsel %vm2142_vm5, %v1033_v21, %v1029_v37  ;;  %v1263_v49 = vsub.f32 1.0, %v1262_v39  ;;  %v1047_v50 = vand.u32 2147483648, %v2155_v30  ;;  %1768 = vrcp.f32 %v2158_v32  ;;  %v560_v21 = vpop.f32.mrf.mxu1  ;;  %v580_v37 = vpop.f32.mrf.mxu2 }
  0xeb   : > { %1361 = vst [vmem:[%s2008_s18 + $0x50] sm:$0xff] %v1034_v43  ;;  %v1145_v48 = vadd.f32 %v1759_v10, %v1144_v38  ;;  %v918_v51 = vsub.f32 1.0, %v917_v45  ;;  %vm2183_vm15 = vcmp.eq.f32.partialorder %v925_v34, 8.507059e+37  ;;  %v928_v54 = vor.u32 1.1754944e-38, %v927_v35 }
  0xec   : > { %v1605_v55 = vmul.f32 -1.442695, %v715_v17  ;;  %v1264_v56 = vmul.f32 %v1763_v33, %v1263_v49  ;;  %vm1267_vm0 = vweird.f32 %v1763_v33  ;;  %1770 = vrcp.f32 %v2171_v41 }
  0xed   : > { %v1149_v46 = vsel %vm1148_vm14, %v1759_v10, %v1145_v48  ;;  %v1767_v60 = vpop.eup %1766  ;;  %v919_v58 = vmul.f32 %v1765_v36, %v918_v51  ;;  %vm922_vm1 = vweird.f32 %v1765_v36  ;;  %vm1041_vm2 = vweird.f32 %v2155_v30  ;;  %vm1268_vm4 = vmor %vm1266_vm9, %vm1267_vm0 }
  0xee   : > { %v1154_v62 = vsel %vm2150_vm8, %v1153_v28, %v1149_v46  ;;  %v1265_v59 = vadd.f32 %v1763_v33, %v1264_v56  ;;  %v1037_v63 = vmul.f32 %v1767_v60, %v2155_v30  ;;  %vm2193_vm3 = vcmp.eq.f32.partialorder %v1045_v47, 8.507059e+37  ;;  %vm923_vm6 = vmor %vm921_vm12, %vm922_vm1 }
  0xef   : > { %1369 = vst [vmem:[%s2008_s18 + $0x90] sm:$0xff] %v1154_v62  ;;  %v1048_v1 = vor.u32 1.1754944e-38, %v1047_v50  ;;  %v1165_v52 = vand.u32 2147483647, %v2158_v32  ;;  %v920_v2 = vadd.f32 %v1765_v36, %v919_v58  ;;  %vm1161_vm5 = vweird.f32 %v2158_v32 }
  0xf0   : > { %v1167_v4 = vand.u32 2147483648, %v2158_v32  ;;  %1772 = vpow2.f32 %v1605_v55  ;;  %v723_v5 = vadd.f32 %v1953_v24, %v558_v42  ;;  %v1769_v6 = vpop.eup %1768  ;;  %v1269_v61 = vsel %vm1268_vm4, %v1763_v33, %v1265_v59 }
  0xf1   : > { %v1038_v8 = vsub.f32 1.0, %v1037_v63  ;;  %vm1042_vm7 = vweird.f32 %v1767_v60  ;;  %v731_v3 = vadd.f32 %v1953_v24, %v578_v57  ;;  %v1274_v9 = vsel %vm2167_vm13, %v1273_v44, %v1269_v61  ;;  %v543_v57 = vpop.f32.mrf.mxu0 }
  0xf2   : > { %v924_v11 = vsel %vm923_vm6, %v1765_v36, %v920_v2  ;;  %v1157_v12 = vmul.f32 %v1769_v6, %v2158_v32  ;;  %vm1281_vm8 = vweird.f32 %v2171_v41  ;;  %v1285_v13 = vand.u32 2147483647, %v2171_v41  ;;  %v1771_v16 = vpop.eup %1770  ;;  %1377 = vst [vmem:[%s2008_s18 + $0xd0] sm:$0xff] %v1274_v9  ;;  %vm1043_vm10 = vmor %vm1041_vm2, %vm1042_vm7 }
  0xf3   : > { %v929_v7 = vsel %vm2183_vm15, %v928_v54, %v924_v11  ;;  %v1039_v19 = vmul.f32 %v1767_v60, %v1038_v8  ;;  %v1287_v10 = vand.u32 2147483648, %v2171_v41  ;;  %v1613_v20 = vmul.f32 -1.442695, %v723_v5  ;;  %v600_v54 = vpop.f32.mrf.mxu3 }
  0xf4   : > { %1354 = vst [vmem:[%s2008_s18 + $0x18] sm:$0xff] %v929_v7  ;;  %v1158_v17 = vsub.f32 1.0, %v1157_v12  ;;  %vm1162_vm9 = vweird.f32 %v1769_v6  ;;  %v1277_v22 = vmul.f32 %v1771_v16, %v2171_v41  ;;  %v1621_v23 = vmul.f32 -1.442695, %v731_v3 }
  0xf5   : > { %v1040_v25 = vadd.f32 %v1767_v60, %v1039_v19  ;;  %1774 = vpow2.f32 %v1613_v20  ;;  %v739_v26 = vadd.f32 %v1953_v24, %v598_v14  ;;  %v716_v27 = vadd.f32 %v1953_v24, %v540_v15  ;;  %vm1163_vm12 = vmor %vm1161_vm5, %vm1162_vm9 }
  0xf6   : > { %v1773_v28 = vpop.eup %1772  ;;  %v1159_v29 = vmul.f32 %v1769_v6, %v1158_v17  ;;  %v1278_v18 = vsub.f32 1.0, %v1277_v22  ;;  %1776 = vpow2.f32 %v1621_v23  ;;  %v724_v31 = vadd.f32 %v1953_v24, %v560_v21 }
  0xf7   : > { %v1044_v33 = vsel %vm1043_vm10, %v1767_v60, %v1040_v25  ;;  %v2224_v34 = vadd.f32 1.0, %v1773_v28  ;;  %v1629_v35 = vmul.f32 -1.442695, %v739_v26  ;;  %v1606_v36 = vmul.f32 -1.442695, %v716_v27 }
  0xf8   : > { %v1049_v38 = vsel %vm2193_vm3, %v1048_v1, %v1044_v33  ;;  %v1160_v39 = vadd.f32 %v1769_v6, %v1159_v29  ;;  %v1279_v40 = vmul.f32 %v1771_v16, %v1278_v18  ;;  %vm1282_vm11 = vweird.f32 %v1771_v16 }
  0xf9   : > { %1362 = vst [vmem:[%s2008_s18 + $0x58] sm:$0xff] %v1049_v38  ;;  %vm1166_vm13 = vcmp.eq.f32.partialorder %v1165_v52, 8.507059e+37  ;;  %v1168_v30 = vor.u32 1.1754944e-38, %v1167_v4  ;;  %1778 = vrcp.f32 %v2224_v34  ;;  %v1614_v42 = vmul.f32 -1.442695, %v724_v31  ;;  %vm1283_vm14 = vmor %vm1281_vm8, %vm1282_vm11 }
  0xfa   : > { %v1164_v43 = vsel %vm1163_vm12, %v1769_v6, %v1160_v39  ;;  %v1280_v44 = vadd.f32 %v1771_v16, %v1279_v40  ;;  %1780 = vpow2.f32 %v1629_v35  ;;  %v732_v45 = vadd.f32 %v1953_v24, %v580_v37 }
  0xfb   : > { %v1775_v47 = vpop.eup %1774  ;;  %v1169_v48 = vsel %vm1166_vm13, %v1168_v30, %v1164_v43  ;;  %v1288_v49 = vor.u32 1.1754944e-38, %v1287_v10  ;;  %1782 = vpow2.f32 %v1606_v36  ;;  %vm1286_vm15 = vcmp.eq.f32.partialorder %v1285_v13, 8.507059e+37 }
  0xfc   : > { %v1777_v32 = vpop.eup %1776  ;;  %1370 = vst [vmem:[%s2008_s18 + $0x98] sm:$0xff] %v1169_v48  ;;  %v1284_v50 = vsel %vm1283_vm14, %v1771_v16, %v1280_v44  ;;  %v940_v51 = vand.u32 2147483647, %v2224_v34  ;;  %v2238_v53 = vadd.f32 1.0, %v1775_v47  ;;  %1784 = vpow2.f32 %v1614_v42 }
  0xfd   : > { %v1289_v55 = vsel %vm1286_vm15, %v1288_v49, %v1284_v50  ;;  %v2240_v46 = vadd.f32 1.0, %v1777_v32  ;;  %v1622_v56 = vmul.f32 -1.442695, %v732_v45  ;;  %v942_v60 = vand.u32 2147483648, %v2224_v34  ;;  %v563_v49 = vpop.f32.mrf.mxu1  ;;  %v583_v32 = vpop.f32.mrf.mxu2 }
  0xfe   : > { %1378 = vst [vmem:[%s2008_s18 + $0xd8] sm:$0xff] %v1289_v55  ;;  %1786 = vrcp.f32 %v2238_v53  ;;  %v740_v62 = vadd.f32 %v1953_v24, %v600_v54  ;;  %vm936_vm0 = vweird.f32 %v2224_v34  ;;  %vm2249_vm1 = vcmp.eq.f32.partialorder %v940_v51, 8.507059e+37 }
  0xff   : > { %v1779_v41 = vpop.eup %1778  ;;  %1788 = vrcp.f32 %v2240_v46  ;;  %v717_v0 = vadd.f32 %v1953_v24, %v543_v57  ;;  %v1060_v52 = vand.u32 2147483647, %v2238_v53  ;;  %v1062_v2 = vand.u32 2147483648, %v2238_v53 }
 0x100   : > { %v1781_v58 = vpop.eup %1780  ;;  %v932_v59 = vmul.f32 %v1779_v41, %v2224_v34  ;;  %1790 = vpow2.f32 %v1622_v56  ;;  %v1180_v6 = vand.u32 2147483647, %v2240_v46  ;;  %v1182_v61 = vand.u32 2147483648, %v2240_v46 }
 0x101   : > { %v1783_v1 = vpop.eup %1782  ;;  %v2256_v4 = vadd.f32 1.0, %v1781_v58  ;;  %v943_v9 = vor.u32 1.1754944e-38, %v942_v60  ;;  %vm1056_vm2 = vweird.f32 %v2238_v53  ;;  %v1630_v24 = vmul.f32 -1.442695, %v740_v62 }
 0x102   : > { %v933_v5 = vsub.f32 1.0, %v932_v59  ;;  %v2260_v8 = vadd.f32 1.0, %v1783_v1  ;;  %v1785_v3 = vpop.eup %1784  ;;  %vm937_vm3 = vweird.f32 %v1779_v41  ;;  %v1607_v13 = vmul.f32 -1.442695, %v717_v0 }
 0x103   : > { %1792 = vrcp.f32 %v2256_v4  ;;  %vm2266_vm4 = vcmp.eq.f32.partialorder %v1060_v52, 8.507059e+37  ;;  %v1063_v7 = vor.u32 1.1754944e-38, %v1062_v2  ;;  %vm1176_vm5 = vweird.f32 %v2240_v46  ;;  %vm938_vm7 = vmor %vm936_vm0, %vm937_vm3 }
 0x104   : > { %v1787_v11 = vpop.eup %1786  ;;  %v934_v12 = vmul.f32 %v1779_v41, %v933_v5  ;;  %1794 = vrcp.f32 %v2260_v8  ;;  %vm2272_vm6 = vcmp.eq.f32.partialorder %v1180_v6, 8.507059e+37  ;;  %v1183_v21 = vor.u32 1.1754944e-38, %v1182_v61 }
 0x105   : > { %v1789_v14 = vpop.eup %1788  ;;  %v1052_v15 = vmul.f32 %v1787_v11, %v2238_v53  ;;  %v1300_v17 = vand.u32 2147483647, %v2256_v4  ;;  %v1302_v25 = vand.u32 2147483648, %v2256_v4  ;;  %v2280_v26 = vadd.f32 1.0, %v1785_v3 }
 0x106   : > { %v935_v19 = vadd.f32 %v1779_v41, %v934_v12  ;;  %v1172_v10 = vmul.f32 %v1789_v14, %v2240_v46  ;;  %v1791_v22 = vpop.eup %1790  ;;  %1796 = vpow2.f32 %v1630_v24  ;;  %vm1057_vm8 = vweird.f32 %v1787_v11 }
 0x107   : > { %v1053_v23 = vsub.f32 1.0, %v1052_v15  ;;  %v2282_v29 = vadd.f32 1.0, %v1791_v22  ;;  %1798 = vpow2.f32 %v1607_v13  ;;  %vm1177_vm9 = vweird.f32 %v1789_v14  ;;  %vm1058_vm12 = vmor %vm1056_vm2, %vm1057_vm8  ;;  %v545_v13 = vpop.f32.mrf.mxu0  ;;  %v585_v22 = vpop.f32.mrf.mxu2 }
 0x108   : > { %v939_v27 = vsel %vm938_vm7, %v1779_v41, %v935_v19  ;;  %v1173_v28 = vsub.f32 1.0, %v1172_v10  ;;  %1800 = vrcp.f32 %v2280_v26  ;;  %vm1296_vm10 = vweird.f32 %v2256_v4  ;;  %vm1178_vm13 = vmor %vm1176_vm5, %vm1177_vm9  ;;  %v1836_v10 = vld [vmem:[%s2464_s2] ss:$0 sm:$0xff] }
 0x109   : > { %v1793_v18 = vpop.eup %1792  ;;  %v944_v31 = vsel %vm2249_vm1, %v943_v9, %v939_v27  ;;  %v1054_v33 = vmul.f32 %v1787_v11, %v1053_v23  ;;  %vm951_vm11 = vweird.f32 %v2260_v8  ;;  %v957_v39 = vand.u32 2147483648, %v2260_v8  ;;  %v603_v9 = vpop.f32.mrf.mxu3 }
 0x10a   : > { %v1795_v34 = vpop.eup %1794  ;;  %1355 = vst [vmem:[%s2008_s18 + $0x20] sm:$0xff] %v944_v31  ;;  %v1174_v35 = vmul.f32 %v1789_v14, %v1173_v28  ;;  %v1292_v36 = vmul.f32 %v1793_v18, %v2256_v4  ;;  %v955_v42 = vand.u32 2147483647, %v2260_v8  ;;  %1802 = vrcp.f32 %v2282_v29 }
 0x10b   : > { %v1055_v37 = vadd.f32 %v1787_v11, %v1054_v33  ;;  %v947_v38 = vmul.f32 %v1795_v34, %v2260_v8  ;;  %vm2299_vm14 = vcmp.eq.f32.partialorder %v1300_v17, 8.507059e+37  ;;  %v1303_v47 = vor.u32 1.1754944e-38, %v1302_v25  ;;  %v565_v17 = vpop.f32.mrf.mxu1 }
 0x10c   : > { %v1175_v40 = vadd.f32 %v1789_v14, %v1174_v35  ;;  %v1293_v30 = vsub.f32 1.0, %v1292_v36  ;;  %v1797_v43 = vpop.eup %1796  ;;  %vm1297_vm15 = vweird.f32 %v1793_v18  ;;  %vm952_vm0 = vweird.f32 %v1795_v34 }
 0x10d   : > { %v1059_v44 = vsel %vm1058_vm12, %v1787_v11, %v1055_v37  ;;  %v948_v48 = vsub.f32 1.0, %v947_v38  ;;  %v1799_v50 = vpop.eup %1798  ;;  %v958_v57 = vor.u32 1.1754944e-38, %v957_v39  ;;  %v1075_v62 = vand.u32 2147483647, %v2280_v26  ;;  %vm1298_vm1 = vmor %vm1296_vm10, %vm1297_vm15 }
 0x10e   : > { %v1064_v51 = vsel %vm2266_vm4, %v1063_v7, %v1059_v44  ;;  %v1179_v53 = vsel %vm1178_vm13, %v1789_v14, %v1175_v40  ;;  %v1294_v54 = vmul.f32 %v1793_v18, %v1293_v30  ;;  %v1801_v55 = vpop.eup %1800  ;;  %v2311_v58 = vadd.f32 1.0, %v1797_v43  ;;  %vm953_vm2 = vmor %vm951_vm11, %vm952_vm0 }
 0x10f   : > { %1363 = vst [vmem:[%s2008_s18 + $0x60] sm:$0xff] %v1064_v51  ;;  %v1184_v46 = vsel %vm2272_vm6, %v1183_v21, %v1179_v53  ;;  %v949_v56 = vmul.f32 %v1795_v34, %v948_v48  ;;  %v1067_v60 = vmul.f32 %v1801_v55, %v2280_v26  ;;  %v1077_v63 = vand.u32 2147483648, %v2280_v26 }
 0x110   : > { %1371 = vst [vmem:[%s2008_s18 + $0xa0] sm:$0xff] %v1184_v46  ;;  %v1295_v41 = vadd.f32 %v1793_v18, %v1294_v54  ;;  %v1195_v0 = vand.u32 2147483647, %v2282_v29  ;;  %v2317_v1 = vadd.f32 1.0, %v1799_v50  ;;  %v1803_v52 = vpop.eup %1802  ;;  %v1197_v6 = vand.u32 2147483648, %v2282_v29 }
 0x111   : > { %v950_v59 = vadd.f32 %v1795_v34, %v949_v56  ;;  %v1068_v5 = vsub.f32 1.0, %v1067_v60  ;;  %1804 = vrcp.f32 %v2311_v58  ;;  %vm956_vm3 = vcmp.eq.f32.partialorder %v955_v42, 8.507059e+37 }
 0x112   : > { %v1299_v2 = vsel %vm1298_vm1, %v1793_v18, %v1295_v41  ;;  %v1187_v3 = vmul.f32 %v1803_v52, %v2282_v29  ;;  %vm1071_vm4 = vweird.f32 %v2280_v26  ;;  %vm1072_vm5 = vweird.f32 %v1801_v55 }
 0x113   : > { %v1304_v4 = vsel %vm2299_vm14, %v1303_v47, %v1299_v2  ;;  %v954_v61 = vsel %vm953_vm2, %v1795_v34, %v950_v59  ;;  %v1069_v11 = vmul.f32 %v1801_v55, %v1068_v5  ;;  %vm2329_vm6 = vcmp.eq.f32.partialorder %v1075_v62, 8.507059e+37  ;;  %vm1073_vm9 = vmor %vm1071_vm4, %vm1072_vm5 }
 0x114   : > { %1379 = vst [vmem:[%s2008_s18 + $0xe0] sm:$0xff] %v1304_v4  ;;  %v959_v24 = vsel %vm956_vm3, %v958_v57, %v954_v61  ;;  %v1188_v12 = vsub.f32 1.0, %v1187_v3  ;;  %vm1191_vm7 = vweird.f32 %v2282_v29  ;;  %1806 = vrcp.f32 %v2317_v1 }
 0x115   : > { %1356 = vst [vmem:[%s2008_s18 + $0x28] sm:$0xff] %v959_v24  ;;  %v1070_v14 = vadd.f32 %v1801_v55, %v1069_v11  ;;  %v1078_v15 = vor.u32 1.1754944e-38, %v1077_v63  ;;  %vm2335_vm8 = vcmp.eq.f32.partialorder %v1195_v0, 8.507059e+37  ;;  %v1198_v7 = vor.u32 1.1754944e-38, %v1197_v6 }
 0x116   : > { %v1189_v19 = vmul.f32 %v1803_v52, %v1188_v12  ;;  %vm1192_vm10 = vweird.f32 %v1803_v52  ;;  %vm1311_vm11 = vweird.f32 %v2311_v58  ;;  %v725_v20 = vadd.f32 %v1836_v10, %v563_v49  ;;  %v605_v49 = vpop.f32.mrf.mxu3 }
 0x117   : > { %v733_v21 = vadd.f32 %v1836_v10, %v583_v32  ;;  %v1805_v23 = vpop.eup %1804  ;;  %v1074_v25 = vsel %vm1073_vm9, %v1801_v55, %v1070_v14  ;;  %v1315_v26 = vand.u32 2147483647, %v2311_v58  ;;  %v741_v27 = vadd.f32 %v1836_v10, %v603_v9  ;;  %vm1193_vm12 = vmor %vm1191_vm7, %vm1192_vm10 }
 0x118   : > { %v718_v28 = vadd.f32 %v1836_v10, %v545_v13  ;;  %v1079_v18 = vsel %vm2329_vm6, %v1078_v15, %v1074_v25  ;;  %v1190_v31 = vadd.f32 %v1803_v52, %v1189_v19  ;;  %v1307_v33 = vmul.f32 %v1805_v23, %v2311_v58 }
 0x119   : > { %v1317_v34 = vand.u32 2147483648, %v2311_v58  ;;  %1364 = vst [vmem:[%s2008_s18 + $0x68] sm:$0xff] %v1079_v18  ;;  %v1615_v35 = vmul.f32 -1.442695, %v725_v20  ;;  %v1623_v36 = vmul.f32 -1.442695, %v733_v21  ;;  %v726_v37 = vadd.f32 %v1836_v10, %v565_v17 }
 0x11a   : > { %v734_v38 = vadd.f32 %v1836_v10, %v585_v22  ;;  %v1807_v39 = vpop.eup %1806  ;;  %v1194_v40 = vsel %vm1193_vm12, %v1803_v52, %v1190_v31  ;;  %v1308_v30 = vsub.f32 1.0, %v1307_v33  ;;  %v1631_v42 = vmul.f32 -1.442695, %v741_v27 }
 0x11b   : > { %v1608_v43 = vmul.f32 -1.442695, %v718_v28  ;;  %v1199_v44 = vsel %vm2335_vm8, %v1198_v7, %v1194_v40  ;;  %vm1312_vm13 = vweird.f32 %v1805_v23  ;;  %v962_v45 = vmul.f32 %v1807_v39, %v2317_v1 }
 0x11c   : > { %1808 = vpow2.f32 %v1615_v35  ;;  %1372 = vst [vmem:[%s2008_s18 + $0xa8] sm:$0xff] %v1199_v44  ;;  %v1309_v47 = vmul.f32 %v1805_v23, %v1308_v30  ;;  %v1616_v29 = vmul.f32 -1.442695, %v726_v37  ;;  %v1624_v48 = vmul.f32 -1.442695, %v734_v38  ;;  %vm1313_vm15 = vmor %vm1311_vm11, %vm1312_vm13 }
 0x11d   : > { %1810 = vpow2.f32 %v1623_v36  ;;  %v963_v32 = vsub.f32 1.0, %v962_v45  ;;  %vm966_vm14 = vweird.f32 %v2317_v1  ;;  %v970_v50 = vand.u32 2147483647, %v2317_v1 }
 0x11e   : > { %1812 = vpow2.f32 %v1631_v42  ;;  %v1310_v51 = vadd.f32 %v1805_v23, %v1309_v47  ;;  %v1318_v53 = vor.u32 1.1754944e-38, %v1317_v34  ;;  %v972_v54 = vand.u32 2147483648, %v2317_v1 }
 0x11f   : > { %1814 = vpow2.f32 %v1608_v43  ;;  %v964_v55 = vmul.f32 %v1807_v39, %v963_v32  ;;  %vm967_vm0 = vweird.f32 %v1807_v39  ;;  %v742_v46 = vadd.f32 %v1836_v10, %v605_v49 }
 0x120   : > { %1816 = vpow2.f32 %v1616_v29  ;;  %v1314_v56 = vsel %vm1313_vm15, %v1805_v23, %v1310_v51  ;;  %vm1316_vm1 = vcmp.eq.f32.partialorder %v1315_v26, 8.507059e+37  ;;  %vm968_vm2 = vmor %vm966_vm14, %vm967_vm0  ;;  %v973_v59 = vor.u32 1.1754944e-38, %v972_v54 }
 0x121   : > { %1818 = vpow2.f32 %v1624_v48  ;;  %v1319_v41 = vsel %vm1316_vm1, %v1318_v53, %v1314_v56  ;;  %v965_v60 = vadd.f32 %v1807_v39, %v964_v55  ;;  %vm971_vm3 = vcmp.eq.f32.partialorder %v970_v50, 8.507059e+37 }
 0x122   : > { %v1809_v57 = vpop.eup %1808  ;;  %1380 = vst [vmem:[%s2008_s18 + $0xe8] sm:$0xff] %v1319_v41  ;;  %v1632_v2 = vmul.f32 -1.442695, %v742_v46 }
 0x123   : > { %v1811_v62 = vpop.eup %1810  ;;  %v2365_v63 = vadd.f32 1.0, %v1809_v57  ;;  %v969_v0 = vsel %vm968_vm2, %v1807_v39, %v965_v60 }
 0x124   : > { %v1813_v58 = vpop.eup %1812  ;;  %v2367_v52 = vadd.f32 1.0, %v1811_v62  ;;  %v974_v6 = vsel %vm971_vm3, %v973_v59, %v969_v0 }
 0x125   : > { %v1815_v5 = vpop.eup %1814  ;;  %1820 = vrcp.f32 %v2365_v63  ;;  %1357 = vst [vmem:[%s2008_s18 + $0x30] sm:$0xff] %v974_v6  ;;  %v2372_v1 = vadd.f32 1.0, %v1813_v58  ;;  %v1090_v9 = vand.u32 2147483647, %v2365_v63  ;;  %v1092_v11 = vand.u32 2147483648, %v2365_v63 }
 0x126   : > { %v1817_v4 = vpop.eup %1816  ;;  %1822 = vrcp.f32 %v2367_v52  ;;  %v2374_v3 = vadd.f32 1.0, %v1815_v5  ;;  %v1210_v8 = vand.u32 2147483647, %v2367_v52  ;;  %v1212_v12 = vand.u32 2147483648, %v2367_v52 }
 0x127   : > { %v1819_v61 = vpop.eup %1818  ;;  %v2377_v24 = vadd.f32 1.0, %v1817_v4  ;;  %1824 = vpow2.f32 %v1632_v2  ;;  %vm1086_vm4 = vweird.f32 %v2365_v63  ;;  %vm1206_vm5 = vweird.f32 %v2367_v52 }
 0x128   : > { %1826 = vrcp.f32 %v2372_v1  ;;  %v2384_v13 = vadd.f32 1.0, %v1819_v61  ;;  %vm2390_vm6 = vcmp.eq.f32.partialorder %v1090_v9, 8.507059e+37  ;;  %v1330_v19 = vand.u32 2147483647, %v2372_v1 }
 0x129   : > { %1828 = vrcp.f32 %v2374_v3  ;;  %v1332_v10 = vand.u32 2147483648, %v2372_v1  ;;  %v1093_v20 = vor.u32 1.1754944e-38, %v1092_v11  ;;  %v985_v17 = vand.u32 2147483647, %v2374_v3 }
 0x12a   : > { %1830 = vrcp.f32 %v2377_v24  ;;  %v987_v22 = vand.u32 2147483648, %v2374_v3  ;;  %vm2399_vm7 = vcmp.eq.f32.partialorder %v1210_v8, 8.507059e+37  ;;  %v1213_v27 = vor.u32 1.1754944e-38, %v1212_v12 }
 0x12b   : > { %v1821_v14 = vpop.eup %1820  ;;  %1832 = vrcp.f32 %v2384_v13  ;;  %vm1326_vm9 = vweird.f32 %v2372_v1  ;;  %vm981_vm10 = vweird.f32 %v2374_v3  ;;  %vm2407_vm12 = vcmp.eq.f32.partialorder %v1330_v19, 8.507059e+37 }
 0x12c   : > { %v1823_v15 = vpop.eup %1822  ;;  %v1082_v16 = vmul.f32 %v1821_v14, %v2365_v63  ;;  %vm1087_vm8 = vweird.f32 %v1821_v14  ;;  %v1333_v36 = vor.u32 1.1754944e-38, %v1332_v10  ;;  %vm1101_vm13 = vweird.f32 %v2377_v24 }
 0x12d   : > { %v1202_v21 = vmul.f32 %v1823_v15, %v2367_v52  ;;  %v1825_v23 = vpop.eup %1824  ;;  %vm1207_vm11 = vweird.f32 %v1823_v15  ;;  %vm2413_vm14 = vcmp.eq.f32.partialorder %v985_v17, 8.507059e+37  ;;  %v988_v30 = vor.u32 1.1754944e-38, %v987_v22  ;;  %vm1088_vm15 = vmor %vm1086_vm4, %vm1087_vm8 }
 0x12e   : > { %v1083_v25 = vsub.f32 1.0, %v1082_v16  ;;  %v1827_v28 = vpop.eup %1826  ;;  %v1105_v42 = vand.u32 2147483647, %v2377_v24  ;;  %v1107_v47 = vand.u32 2147483648, %v2377_v24  ;;  %v870_v49 = vadd.f32 1.0, %v1825_v23  ;;  %vm1208_vm1 = vmor %vm1206_vm5, %vm1207_vm11 }
 0x12f   : > { %v1203_v18 = vsub.f32 1.0, %v1202_v21  ;;  %v1829_v31 = vpop.eup %1828  ;;  %v1322_v34 = vmul.f32 %v1827_v28, %v2372_v1  ;;  %vm1327_vm0 = vweird.f32 %v1827_v28  ;;  %v1225_v63 = vand.u32 2147483647, %v2384_v13 }
 0x130   : > { %v1084_v33 = vmul.f32 %v1821_v14, %v1083_v25  ;;  %v1831_v37 = vpop.eup %1830  ;;  %v977_v39 = vmul.f32 %v1829_v31, %v2374_v3  ;;  %vm982_vm2 = vweird.f32 %v1829_v31  ;;  %vm1328_vm4 = vmor %vm1326_vm9, %vm1327_vm0  ;;  %1834 = vrcp.f32 %v870_v49 }
 0x131   : > { %v1204_v38 = vmul.f32 %v1823_v15, %v1203_v18  ;;  %v1323_v44 = vsub.f32 1.0, %v1322_v34  ;;  %v1097_v45 = vmul.f32 %v1831_v37, %v2377_v24  ;;  %v1833_v32 = vpop.eup %1832  ;;  %vm1102_vm3 = vweird.f32 %v1831_v37  ;;  %vm983_vm5 = vmor %vm981_vm10, %vm982_vm2 }
 0x132   : > { %v1085_v43 = vadd.f32 %v1821_v14, %v1084_v33  ;;  %v978_v48 = vsub.f32 1.0, %v977_v39  ;;  %v1217_v56 = vmul.f32 %v1833_v32, %v2384_v13  ;;  %v1108_v52 = vor.u32 1.1754944e-38, %v1107_v47 }
 0x133   : > { %v1205_v29 = vadd.f32 %v1823_v15, %v1204_v38  ;;  %v1324_v51 = vmul.f32 %v1827_v28, %v1323_v44  ;;  %v1098_v53 = vsub.f32 1.0, %v1097_v45  ;;  %v1227_v2 = vand.u32 2147483648, %v2384_v13 }
 0x134   : > { %v1089_v50 = vsel %vm1088_vm15, %v1821_v14, %v1085_v43  ;;  %v979_v46 = vmul.f32 %v1829_v31, %v978_v48  ;;  %v1218_v59 = vsub.f32 1.0, %v1217_v56  ;;  %vm1106_vm8 = vcmp.eq.f32.partialorder %v1105_v42, 8.507059e+37 }
 0x135   : > { %v1094_v54 = vsel %vm2390_vm6, %v1093_v20, %v1089_v50  ;;  %v1209_v55 = vsel %vm1208_vm1, %v1823_v15, %v1205_v29  ;;  %v1325_v41 = vadd.f32 %v1827_v28, %v1324_v51  ;;  %v1099_v60 = vmul.f32 %v1831_v37, %v1098_v53  ;;  %vm1103_vm6 = vmor %vm1101_vm13, %vm1102_vm3 }
 0x136   : > { %1365 = vst [vmem:[%s2008_s18 + $0x70] sm:$0xff] %v1094_v54  ;;  %v1214_v57 = vsel %vm2399_vm7, %v1213_v27, %v1209_v55  ;;  %v980_v62 = vadd.f32 %v1829_v31, %v979_v46  ;;  %v1219_v4 = vmul.f32 %v1833_v32, %v1218_v59  ;;  %vm1222_vm7 = vweird.f32 %v1833_v32  ;;  %v1835_v8 = vpop.eup %1834 }
 0x137   : > { %1373 = vst [vmem:[%s2008_s18 + $0xb0] sm:$0xff] %v1214_v57  ;;  %v1329_v58 = vsel %vm1328_vm4, %v1827_v28, %v1325_v41  ;;  %v1100_v0 = vadd.f32 %v1831_v37, %v1099_v60  ;;  %vm1221_vm9 = vweird.f32 %v2384_v13  ;;  %v1228_v11 = vor.u32 1.1754944e-38, %v1227_v2 }
 0x138   : > { %v1334_v5 = vsel %vm2407_vm12, %v1333_v36, %v1329_v58  ;;  %v984_v6 = vsel %vm983_vm5, %v1829_v31, %v980_v62  ;;  %v1220_v9 = vadd.f32 %v1833_v32, %v1219_v4  ;;  %vm1223_vm10 = vmor %vm1221_vm9, %vm1222_vm7  ;;  %vm1226_vm11 = vcmp.eq.f32.partialorder %v1225_v63, 8.507059e+37 }
 0x139   : > { %1381 = vst [vmem:[%s2008_s18 + $0xf0] sm:$0xff] %v1334_v5  ;;  %v989_v61 = vsel %vm2413_vm14, %v988_v30, %v984_v6  ;;  %v1104_v1 = vsel %vm1103_vm6, %v1831_v37, %v1100_v0  ;;  %v1337_v14 = vmul.f32 %v1835_v8, %v870_v49  ;;  %v1347_v16 = vand.u32 2147483648, %v870_v49 }
 0x13a   : > { %1358 = vst [vmem:[%s2008_s18 + $0x38] sm:$0xff] %v989_v61  ;;  %v1109_v3 = vsel %vm1106_vm8, %v1108_v52, %v1104_v1  ;;  %v1224_v24 = vsel %vm1223_vm10, %v1833_v32, %v1220_v9  ;;  %vm1342_vm12 = vweird.f32 %v1835_v8  ;;  %v1345_v19 = vand.u32 2147483647, %v870_v49 }
 0x13b   : > { %1366 = vst [vmem:[%s2008_s18 + $0x78] sm:$0xff] %v1109_v3  ;;  %v1229_v12 = vsel %vm1226_vm11, %v1228_v11, %v1224_v24  ;;  %v1338_v15 = vsub.f32 1.0, %v1337_v14  ;;  %vm1341_vm13 = vweird.f32 %v870_v49  ;;  %v1348_v20 = vor.u32 1.1754944e-38, %v1347_v16 }
 0x13c   : > { %1374 = vst [vmem:[%s2008_s18 + $0xb8] sm:$0xff] %v1229_v12  ;;  %vm1343_vm14 = vmor %vm1341_vm13, %vm1342_vm12  ;;  %vm1346_vm15 = vcmp.eq.f32.partialorder %v1345_v19, 8.507059e+37 }
 0x13d   : > { %v1339_v7 = vmul.f32 %v1835_v8, %v1338_v15 }
 0x13f   : > { %v1340_v10 = vadd.f32 %v1835_v8, %v1339_v7 }
 0x141   : > { %v1344_v13 = vsel %vm1343_vm14, %v1835_v8, %v1340_v10 }
 0x142   : > { %v1349_v21 = vsel %vm1346_vm15, %v1348_v20, %v1344_v13 }
 0x143   : > { %1382 = vst [vmem:[%s2008_s18 + $0xf8] sm:$0xff] %v1349_v21 }
 0x144 PF: > { %s13_s14 = sadd.s32 1, %s1859_s14   ;;  %s2512_s12 = smov %s1855_s13 }
 0x145   : > { %p10_p5 = scmp.ge.s32.totalorder %s13_s14, 10   ;;  %s2513_s13 = smov %s2515_s15 }
 0x147   :  { %12 = sbr.rel (!%p10_p5) target bundleno = 2 (0x2), region = 76 }

// kernel: dummy_model_forward.9
= control target key start
LH: loop header
LB: loop body
LE: loop exit
PB: predicated region body
PF: predicated region fallthrough
CT: control target
= control target key end

     0   :  { %s2120_s12 = smov 0   ;;  %s2122_s13 = smov 0   ;;  %s3030_s0 = inlined_call_operand.vmem [shape: bf16[2048,384], index: 0, kind: input, shape index: {}]   ;;  %s3031_s1 = inlined_call_operand.vmem [shape: bf16[384,128], index: 1, kind: input, shape index: {}]   ;;  %s3032_s2 = inlined_call_operand.vmem [shape: f32[1,128], index: 2, kind: input, shape index: {}]   ;;  %s3033_s3 = inlined_call_operand.vmem [shape: f32[2048,128], index: 3, kind: output, shape index: {}]  }
   0x1   :  { %s2124_s14 = smov 0   ;;  %s2126_s15 = smov 0  }
   0x2   :  { %s2128_s16 = smov 0   ;;  %s2130_s17 = smov 0  }
   0x3   :  { %s2132_s18 = smov 0  }
   0x4 LB: > { %s25_s19 = sadd.s32 1, %s2089_s16  ;;  %s32_s20 = sadd.s32 1, %s2093_s17  ;;  %s2097_s18 = sphi %s2132_s18, %s13_s18   ;;  %s2093_s17 = sphi %s2130_s17, %s3152_s17   ;;  %s2089_s16 = sphi %s2128_s16, %s3151_s16   ;;  %s2085_s15 = sphi %s2126_s15, %s3150_s15   ;;  %s2081_s14 = sphi %s2124_s14, %s3149_s14   ;;  %s2077_s13 = sphi %s2122_s13, %s3148_s13   ;;  %s2073_s12 = sphi %s2120_s12, %s3147_s12  }
   0x5   : > { %p26_p0 = scmp.ge.s32.totalorder %s25_s19, 3  ;;  %p48_p1 = scmp.ne.s32.totalorder %s2077_s13, %s2073_s12 }
   0x6   : > { %p49_p2 = scmp.eq.s32.totalorder %s2097_s18, 0  ;;  %s41_s24 = sadd.s32 1, %s2077_s13 }
   0x7   : > { %s3154_s19 = smov (%p26_p0, %s25_s19), 0  ;;  %s3156_s20 = smov (!%p26_p0, %s32_s20), %s2093_s17 }
   0x8   : > { %p50_p3 = por %p49_p2, %p48_p1  ;;  %p34_p4 = scmp.ge.s32.totalorder %s3156_s20, 8 }
   0x9   : > { %s37_s21 = ssub.s32 %s2089_s16, %s3154_s19  ;;  %p1664_p6 = scmp.ge.s32.totalorder %s2097_s18, 24 }
   0xa   : > { %s3158_s20 = smov (%p34_p4, %s3156_s20), 0 }
   0xb   : > { %s36_s22 = ssub.s32 %s2093_s17, %s3158_s20  ;;  %162 = sbr.rel (%p1664_p6) target bundleno = 55 (0x37), region = 20 }
   0xc   : > { %s38_s23 = sor.u32 %s37_s21, %s36_s22 }
   0xd   : > { %p39_p5 = scmp.eq.s32.totalorder %s38_s23, 0 }
   0xf   : > { %s2171_s25 = scalar_select %p39_p5, %s2077_s13, %s41_s24  }
  0x10   : > { %165 = sbr.rel (!%p50_p3) target bundleno = 55 (0x37), region = 24  ;;  %s167_s26 = sand.u32 (%p50_p3), 1, %s2077_s13  }
  0x11   : > { %s1855_s27 = smul.u32 (%p50_p3), 96, %s2093_s17  ;;  %s1665_s28 = sshll.u32 (%p50_p3), %s167_s26, 7 }
  0x12   : > { %s2185_s7 = scalar_lea.vmem (%p50_p3), [#allocation3], %s1665_s28 }
  0x13   : > { %s172_s29 = sadd.s32 (%p50_p3), %s2089_s16, %s1855_s27 }
  0x14   : > { %s1668_s30 = sshll.u32 (%p50_p3), %s172_s29, 2 }
  0x15   : > { %s2180_s6 = scalar_lea.vmem %s3030_s0, %s1668_s30 }
  0x16   : > { %v191_v0 = vld [vmem:[%s2180_s6] sm:$0xf]  ;;  %v193_v1 = vld [vmem:[%s2180_s6 + $0xc] sm:$0xf]  ;;  %v195_v2 = vld [vmem:[%s2180_s6 + $0x18] sm:$0xf] }
  0x17   : > { %192 = vst [vmem:[%s2185_s7] sm:$0xf] %v191_v0  ;;  %v197_v3 = vld [vmem:[%s2180_s6 + $0x24] sm:$0xf]  ;;  %v199_v4 = vld [vmem:[%s2180_s6 + $0x30] sm:$0xf] }
  0x18   : > { %194 = vst [vmem:[%s2185_s7 + $0x4] sm:$0xf] %v193_v1  ;;  %v201_v5 = vld [vmem:[%s2180_s6 + $0x3c] sm:$0xf]  ;;  %v203_v6 = vld [vmem:[%s2180_s6 + $0x48] sm:$0xf] }
  0x19   : > { %196 = vst [vmem:[%s2185_s7 + $0x8] sm:$0xf] %v195_v2  ;;  %v205_v7 = vld [vmem:[%s2180_s6 + $0x54] sm:$0xf]  ;;  %v207_v8 = vld [vmem:[%s2180_s6 + $0x60] sm:$0xf] }
  0x1a   : > { %198 = vst [vmem:[%s2185_s7 + $0xc] sm:$0xf] %v197_v3  ;;  %v209_v9 = vld [vmem:[%s2180_s6 + $0x6c] sm:$0xf]  ;;  %v211_v10 = vld [vmem:[%s2180_s6 + $0x78] sm:$0xf] }
  0x1b   : > { %200 = vst [vmem:[%s2185_s7 + $0x10] sm:$0xf] %v199_v4  ;;  %v213_v11 = vld [vmem:[%s2180_s6 + $0x84] sm:$0xf]  ;;  %v215_v12 = vld [vmem:[%s2180_s6 + $0x90] sm:$0xf] }
  0x1c   : > { %202 = vst [vmem:[%s2185_s7 + $0x14] sm:$0xf] %v201_v5  ;;  %v217_v13 = vld [vmem:[%s2180_s6 + $0x9c] sm:$0xf]  ;;  %v219_v14 = vld [vmem:[%s2180_s6 + $0xa8] sm:$0xf] }
  0x1d   : > { %204 = vst [vmem:[%s2185_s7 + $0x18] sm:$0xf] %v203_v6  ;;  %v221_v15 = vld [vmem:[%s2180_s6 + $0xb4] sm:$0xf]  ;;  %v223_v16 = vld [vmem:[%s2180_s6 + $0xc0] sm:$0xf] }
  0x1e   : > { %206 = vst [vmem:[%s2185_s7 + $0x1c] sm:$0xf] %v205_v7  ;;  %v225_v17 = vld [vmem:[%s2180_s6 + $0xcc] sm:$0xf]  ;;  %v227_v18 = vld [vmem:[%s2180_s6 + $0xd8] sm:$0xf] }
  0x1f   : > { %208 = vst [vmem:[%s2185_s7 + $0x20] sm:$0xf] %v207_v8  ;;  %v229_v19 = vld [vmem:[%s2180_s6 + $0xe4] sm:$0xf]  ;;  %v231_v20 = vld [vmem:[%s2180_s6 + $0xf0] sm:$0xf] }
  0x20   : > { %210 = vst [vmem:[%s2185_s7 + $0x24] sm:$0xf] %v209_v9  ;;  %v233_v21 = vld [vmem:[%s2180_s6 + $0xfc] sm:$0xf]  ;;  %v235_v22 = vld [vmem:[%s2180_s6 + $0x108] sm:$0xf] }
  0x21   : > { %212 = vst [vmem:[%s2185_s7 + $0x28] sm:$0xf] %v211_v10  ;;  %v237_v23 = vld [vmem:[%s2180_s6 + $0x114] sm:$0xf]  ;;  %v239_v24 = vld [vmem:[%s2180_s6 + $0x120] sm:$0xf] }
  0x22   : > { %214 = vst [vmem:[%s2185_s7 + $0x2c] sm:$0xf] %v213_v11  ;;  %v241_v25 = vld [vmem:[%s2180_s6 + $0x12c] sm:$0xf]  ;;  %v243_v26 = vld [vmem:[%s2180_s6 + $0x138] sm:$0xf] }
  0x23   : > { %216 = vst [vmem:[%s2185_s7 + $0x30] sm:$0xf] %v215_v12  ;;  %v245_v27 = vld [vmem:[%s2180_s6 + $0x144] sm:$0xf]  ;;  %v247_v28 = vld [vmem:[%s2180_s6 + $0x150] sm:$0xf] }
  0x24   : > { %218 = vst [vmem:[%s2185_s7 + $0x34] sm:$0xf] %v217_v13  ;;  %v249_v29 = vld [vmem:[%s2180_s6 + $0x15c] sm:$0xf]  ;;  %v251_v30 = vld [vmem:[%s2180_s6 + $0x168] sm:$0xf] }
  0x25   : > { %220 = vst [vmem:[%s2185_s7 + $0x38] sm:$0xf] %v219_v14  ;;  %v253_v31 = vld [vmem:[%s2180_s6 + $0x174] sm:$0xf] }
  0x26   : > { %222 = vst [vmem:[%s2185_s7 + $0x3c] sm:$0xf] %v221_v15 }
  0x27   : > { %224 = vst [vmem:[%s2185_s7 + $0x40] sm:$0xf] %v223_v16 }
  0x28   : > { %226 = vst [vmem:[%s2185_s7 + $0x44] sm:$0xf] %v225_v17 }
  0x29   : > { %228 = vst [vmem:[%s2185_s7 + $0x48] sm:$0xf] %v227_v18 }
  0x2a   : > { %230 = vst [vmem:[%s2185_s7 + $0x4c] sm:$0xf] %v229_v19 }
  0x2b   : > { %232 = vst [vmem:[%s2185_s7 + $0x50] sm:$0xf] %v231_v20 }
  0x2c   : > { %234 = vst [vmem:[%s2185_s7 + $0x54] sm:$0xf] %v233_v21 }
  0x2d   : > { %236 = vst [vmem:[%s2185_s7 + $0x58] sm:$0xf] %v235_v22 }
  0x2e   : > { %238 = vst [vmem:[%s2185_s7 + $0x5c] sm:$0xf] %v237_v23 }
  0x2f   : > { %240 = vst [vmem:[%s2185_s7 + $0x60] sm:$0xf] %v239_v24 }
  0x30   : > { %242 = vst [vmem:[%s2185_s7 + $0x64] sm:$0xf] %v241_v25 }
  0x31   : > { %244 = vst [vmem:[%s2185_s7 + $0x68] sm:$0xf] %v243_v26 }
  0x32   : > { %246 = vst [vmem:[%s2185_s7 + $0x6c] sm:$0xf] %v245_v27 }
  0x33   : > { %248 = vst [vmem:[%s2185_s7 + $0x70] sm:$0xf] %v247_v28 }
  0x34   : > { %250 = vst [vmem:[%s2185_s7 + $0x74] sm:$0xf] %v249_v29 }
  0x35   : > { %252 = vst [vmem:[%s2185_s7 + $0x78] sm:$0xf] %v251_v30 }
  0x36   : > { %254 = vst [vmem:[%s2185_s7 + $0x7c] sm:$0xf] %v253_v31 }
  0x37 PF: > { %p1669_p7 = scmp.ge.s32.totalorder %s2097_s18, 1  ;;  %p353_p8 = scmp.lt.s32.totalorder %s2097_s18, 25 }
  0x39   : > { %p354_p9 = pnand %p1669_p7, %p353_p8 }
  0x3a   : > { %s360_s8 = sand.u32 (!%p354_p9), 1, %s2073_s12   ;;  %s1671_s9 = sshll.u32 (!%p354_p9), %s2081_s14, 4 }
  0x3b   : > { %357 = sbr.rel (%p354_p9) target bundleno = 477 (0x1dd), region = 69  ;;  %s1670_s10 = sshll.u32 (!%p354_p9), %s360_s8, 7 }
  0x3c   : > { %p399_p10 = scmp.lt.s32.totalorder (!%p354_p9), %s1671_s9, 47  ;;  %s1673_s11 = sshll.u32 (!%p354_p9), %s2085_s15, 5 }
  0x3d   : > { %p411_p11 = scmp.lt.s32.totalorder (!%p354_p9), %s1673_s11, 255  ;;  %s2263_s12 = scalar_lea.vmem (!%p354_p9), [#allocation3], %s1670_s10 }
  0x3e   : > { %p1675_p12 = scmp.ne.s32.totalorder (!%p354_p9), %s2081_s14, 0 }
  0x40   : > { %s3160_s9 = smov (!%p399_p10, %s1671_s9), 47  ;;  %s3162_s11 = smov (!%p411_p11, %s1673_s11), 255 }
  0x41   : > { %s1672_s21 = sshll.u32 %s3160_s9, 2  ;;  %s1674_s26 = sshll.u32 %s3162_s11, 3 }
  0x42   : > { %s2256_s24 = scalar_lea.vmem %s3031_s1, %s1672_s21  ;;  %s2261_s29 = scalar_lea.vmem %s3033_s3, %s1674_s26 }
  0x43   : > { %422 = sbr.rel (%p1675_p12) target bundleno = 105 (0x69), region = 77 }
  0x48   : > { %v2099_v32 = vmov 0.0  }
  0x49   : > { %423 = vst [vmem:[#allocation2 + $0xb0] sm:$0xff] %v2099_v32 }
  0x4a   : > { %424 = vst [vmem:[#allocation2] sm:$0xff] %v2099_v32 }
  0x4b   : > { %425 = vst [vmem:[#allocation2 + $0xd8] sm:$0xff] %v2099_v32 }
  0x4c   : > { %426 = vst [vmem:[#allocation2 + $0x18] sm:$0xff] %v2099_v32 }
  0x4d   : > { %427 = vst [vmem:[#allocation2 + $0x50] sm:$0xff] %v2099_v32 }
  0x4e   : > { %428 = vst [vmem:[#allocation2 + $0x68] sm:$0xff] %v2099_v32 }
  0x4f   : > { %429 = vst [vmem:[#allocation2 + $0x30] sm:$0xff] %v2099_v32 }
  0x50   : > { %430 = vst [vmem:[#allocation2 + $0x48] sm:$0xff] %v2099_v32 }
  0x51   : > { %431 = vst [vmem:[#allocation2 + $0x80] sm:$0xff] %v2099_v32 }
  0x52   : > { %432 = vst [vmem:[#allocation2 + $0x88] sm:$0xff] %v2099_v32 }
  0x53   : > { %433 = vst [vmem:[#allocation2 + $0xe8] sm:$0xff] %v2099_v32 }
  0x54   : > { %434 = vst [vmem:[#allocation2 + $0xb8] sm:$0xff] %v2099_v32 }
  0x55   : > { %435 = vst [vmem:[#allocation2 + $0x60] sm:$0xff] %v2099_v32 }
  0x56   : > { %436 = vst [vmem:[#allocation2 + $0xf0] sm:$0xff] %v2099_v32 }
  0x57   : > { %437 = vst [vmem:[#allocation2 + $0x8] sm:$0xff] %v2099_v32 }
  0x58   : > { %438 = vst [vmem:[#allocation2 + $0x78] sm:$0xff] %v2099_v32 }
  0x59   : > { %439 = vst [vmem:[#allocation2 + $0x38] sm:$0xff] %v2099_v32 }
  0x5a   : > { %440 = vst [vmem:[#allocation2 + $0x58] sm:$0xff] %v2099_v32 }
  0x5b   : > { %441 = vst [vmem:[#allocation2 + $0x40] sm:$0xff] %v2099_v32 }
  0x5c   : > { %442 = vst [vmem:[#allocation2 + $0xc8] sm:$0xff] %v2099_v32 }
  0x5d   : > { %443 = vst [vmem:[#allocation2 + $0xe0] sm:$0xff] %v2099_v32 }
  0x5e   : > { %444 = vst [vmem:[#allocation2 + $0x90] sm:$0xff] %v2099_v32 }
  0x5f   : > { %445 = vst [vmem:[#allocation2 + $0x70] sm:$0xff] %v2099_v32 }
  0x60   : > { %446 = vst [vmem:[#allocation2 + $0xc0] sm:$0xff] %v2099_v32 }
  0x61   : > { %447 = vst [vmem:[#allocation2 + $0xa8] sm:$0xff] %v2099_v32 }
  0x62   : > { %448 = vst [vmem:[#allocation2 + $0xd0] sm:$0xff] %v2099_v32 }
  0x63   : > { %449 = vst [vmem:[#allocation2 + $0x10] sm:$0xff] %v2099_v32 }
  0x64   : > { %450 = vst [vmem:[#allocation2 + $0x28] sm:$0xff] %v2099_v32 }
  0x65   : > { %451 = vst [vmem:[#allocation2 + $0xa0] sm:$0xff] %v2099_v32 }
  0x66   : > { %452 = vst [vmem:[#allocation2 + $0xf8] sm:$0xff] %v2099_v32 }
  0x67   : > { %453 = vst [vmem:[#allocation2 + $0x20] sm:$0xff] %v2099_v32 }
  0x68   : > { %454 = vst [vmem:[#allocation2 + $0x98] sm:$0xff] %v2099_v32 }
  0x69 PF: > { %v1830_v33 = vld [vmem:[%s2256_s24 + $0x38] sm:$0xff]  ;;  %v1829_v34 = vld [vmem:[%s2256_s24 + $0x30] sm:$0xff]  ;;  %v1828_v35 = vld [vmem:[%s2256_s24 + $0x28] sm:$0xff]  ;;  %p1772_p13 = scmp.ne.s32.totalorder %s2081_s14, 2 }
  0x6a   : > { %679 = vmatpush.bf16.msra.mxu0 %v1830_v33  ;;  %1831 = vmatpush.bf16.msra.mxu1 %v1830_v33  ;;  %v1827_v36 = vld [vmem:[%s2256_s24 + $0x20] sm:$0xff]  ;;  %v1826_v37 = vld [vmem:[%s2256_s24 + $0x18] sm:$0xff]  ;;  %v1825_v38 = vld [vmem:[%s2256_s24 + $0x10] sm:$0xff] }
  0x6b   : > { %1832 = vmatpush.bf16.msra.mxu2 %v1830_v33  ;;  %1833 = vmatpush.bf16.msra.mxu3 %v1830_v33  ;;  %v1824_v39 = vld [vmem:[%s2256_s24 + $0x8] sm:$0xff]  ;;  %v1823_v40 = vld [vmem:[%s2256_s24] sm:$0xff]  ;;  %v1809_v49 = vld [vmem:[%s2263_s12 + $0x10] sm:$0xff] }
  0x6c   : > { %v1807_v41 = vld [vmem:[%s2263_s12] sm:$0xff]  ;;  %v1808_v45 = vld [vmem:[%s2263_s12 + $0x8] sm:$0xff]  ;;  %v1813_v50 = vld [vmem:[%s2263_s12 + $0x30] sm:$0xff] }
  0x6d   : > { %v1811_v42 = vld [vmem:[%s2263_s12 + $0x20] sm:$0xff]  ;;  %v1812_v46 = vld [vmem:[%s2263_s12 + $0x28] sm:$0xff]  ;;  %v1817_v51 = vld [vmem:[%s2263_s12 + $0x50] sm:$0xff] }
  0x6e   : > { %680 = vmatpush.bf16.msra.mxu0 %v1829_v34  ;;  %1834 = vmatpush.bf16.msra.mxu1 %v1829_v34  ;;  %v1815_v43 = vld [vmem:[%s2263_s12 + $0x40] sm:$0xff]  ;;  %v1816_v47 = vld [vmem:[%s2263_s12 + $0x48] sm:$0xff]  ;;  %v1821_v52 = vld [vmem:[%s2263_s12 + $0x70] sm:$0xff] }
  0x6f   : > { %1835 = vmatpush.bf16.msra.mxu2 %v1829_v34  ;;  %1836 = vmatpush.bf16.msra.mxu3 %v1829_v34  ;;  %v1819_v44 = vld [vmem:[%s2263_s12 + $0x60] sm:$0xff]  ;;  %v1820_v48 = vld [vmem:[%s2263_s12 + $0x68] sm:$0xff]  ;;  %v1810_v53 = vld [vmem:[%s2263_s12 + $0x18] sm:$0xff] }
  0x70   : > { %v1814_v54 = vld [vmem:[%s2263_s12 + $0x38] sm:$0xff]  ;;  %v455_v57 = vld [vmem:[#allocation2 + $0xb0] sm:$0xff]  ;;  %v463_v58 = vld [vmem:[#allocation2 + $0x80] sm:$0xff] }
  0x71   : > { %v1818_v55 = vld [vmem:[%s2263_s12 + $0x58] sm:$0xff]  ;;  %v479_v0 = vld [vmem:[#allocation2 + $0xa8] sm:$0xff]  ;;  %v456_v1 = vld [vmem:[#allocation2] sm:$0xff] }
  0x72   : > { %681 = vmatpush.bf16.msra.mxu0 %v1828_v35  ;;  %1837 = vmatpush.bf16.msra.mxu1 %v1828_v35  ;;  %v1822_v56 = vld [vmem:[%s2263_s12 + $0x78] sm:$0xff]  ;;  %v464_v2 = vld [vmem:[#allocation2 + $0x88] sm:$0xff]  ;;  %v480_v12 = vld [vmem:[#allocation2 + $0xd0] sm:$0xff] }
  0x73   : > { %1838 = vmatpush.bf16.msra.mxu2 %v1828_v35  ;;  %1839 = vmatpush.bf16.msra.mxu3 %v1828_v35  ;;  %v471_v63 = vld [vmem:[#allocation2 + $0x38] sm:$0xff]  ;;  %v465_v14 = vld [vmem:[#allocation2 + $0xe8] sm:$0xff]  ;;  %v473_v23 = vld [vmem:[#allocation2 + $0x40] sm:$0xff] }
  0x74   : > { %v472_v11 = vld [vmem:[#allocation2 + $0x58] sm:$0xff]  ;;  %v481_v24 = vld [vmem:[#allocation2 + $0x10] sm:$0xff]  ;;  %v474_v35 = vld [vmem:[#allocation2 + $0xc8] sm:$0xff] }
  0x75   : > { %v457_v13 = vld [vmem:[#allocation2 + $0xd8] sm:$0xff] }
  0x76   : > { %682 = vmatpush.bf16.msra.mxu0 %v1827_v36  ;;  %1840 = vmatpush.bf16.msra.mxu1 %v1827_v36  ;;  %v458_v25 = vld [vmem:[#allocation2 + $0x18] sm:$0xff] }
  0x77   : > { %1841 = vmatpush.bf16.msra.mxu2 %v1827_v36  ;;  %1842 = vmatpush.bf16.msra.mxu3 %v1827_v36  ;;  %v466_v26 = vld [vmem:[#allocation2 + $0xb8] sm:$0xff]  ;;  %v482_v36 = vld [vmem:[#allocation2 + $0x28] sm:$0xff] }
  0x7a   : > { %683 = vmatpush.bf16.msra.mxu0 %v1826_v37  ;;  %1843 = vmatpush.bf16.msra.mxu1 %v1826_v37 }
  0x7b   : > { %1844 = vmatpush.bf16.msra.mxu2 %v1826_v37  ;;  %1845 = vmatpush.bf16.msra.mxu3 %v1826_v37  ;;  %v459_v37 = vld [vmem:[#allocation2 + $0x50] sm:$0xff] }
  0x7e   : > { %684 = vmatpush.bf16.msra.mxu0 %v1825_v38  ;;  %1846 = vmatpush.bf16.msra.mxu1 %v1825_v38 }
  0x7f   : > { %1847 = vmatpush.bf16.msra.mxu2 %v1825_v38  ;;  %1848 = vmatpush.bf16.msra.mxu3 %v1825_v38  ;;  %v467_v38 = vld [vmem:[#allocation2 + $0x60] sm:$0xff] }
  0x82   : > { %685 = vmatpush.bf16.msra.mxu0 %v1824_v39  ;;  %1849 = vmatpush.bf16.msra.mxu1 %v1824_v39 }
  0x83   : > { %1850 = vmatpush.bf16.msra.mxu2 %v1824_v39  ;;  %1851 = vmatpush.bf16.msra.mxu3 %v1824_v39 }
  0x86   : > { %686 = vmatpush.bf16.msra.mxu0 %v1823_v40  ;;  %1852 = vmatpush.bf16.msra.mxu1 %v1823_v40 }
  0x87   : > { %1853 = vmatpush.bf16.msra.mxu2 %v1823_v40  ;;  %1854 = vmatpush.bf16.msra.mxu3 %v1823_v40 }
  0x89   : > { %687 = vmatmul.bf16.vlgmr.msra.gmra.mxu0 %v1807_v41  ;;  %707 = vmatmul.bf16.vlgmr.msra.gmra.mxu1 %v1811_v42 }
  0x8a   : > { %727 = vmatmul.bf16.vlgmr.msra.gmra.mxu2 %v1815_v43  ;;  %747 = vmatmul.bf16.vlgmr.msra.gmra.mxu3 %v1819_v44 }
  0x99   : > { %692 = vmatmul.bf16.gmra.mxu0 %v1808_v45  ;;  %712 = vmatmul.bf16.gmra.mxu1 %v1812_v46 }
  0x9a   : > { %732 = vmatmul.bf16.gmra.mxu2 %v1816_v47  ;;  %752 = vmatmul.bf16.gmra.mxu3 %v1820_v48  ;;  %v475_v47 = vld [vmem:[#allocation2 + $0xe0] sm:$0xff] }
  0x9b   : > { %v483_v48 = vld [vmem:[#allocation2 + $0xa0] sm:$0xff] }
  0xa9   : > { %697 = vmatmul.bf16.gmra.mxu0 %v1809_v49  ;;  %717 = vmatmul.bf16.gmra.mxu1 %v1813_v50  ;;  %v460_v49 = vld [vmem:[#allocation2 + $0x68] sm:$0xff]  ;;  %v468_v50 = vld [vmem:[#allocation2 + $0xf0] sm:$0xff] }
  0xaa   : > { %737 = vmatmul.bf16.gmra.mxu2 %v1817_v51  ;;  %757 = vmatmul.bf16.gmra.mxu3 %v1821_v52 }
  0xb9   : > { %702 = vmatmul.bf16.gmra.mxu0 %v1810_v53  ;;  %722 = vmatmul.bf16.gmra.mxu1 %v1814_v54 }
  0xba   : > { %742 = vmatmul.bf16.gmra.mxu2 %v1818_v55  ;;  %762 = vmatmul.bf16.gmra.mxu3 %v1822_v56 }
 0x106   : > { %v688_v59 = vpop.f32.mrf.mxu0  ;;  %v708_v60 = vpop.f32.mrf.mxu1 }
 0x107   : > { %v768_v61 = vadd.f32 %v688_v59, %v455_v57  ;;  %v776_v62 = vadd.f32 %v708_v60, %v463_v58  ;;  %v476_v59 = vld [vmem:[#allocation2 + $0x90] sm:$0xff]  ;;  %v484_v60 = vld [vmem:[#allocation2 + $0xf8] sm:$0xff] }
 0x109   : > { %800 = vst [vmem:[#allocation2 + $0xb0] sm:$0xff] %v768_v61  ;;  %v461_v61 = vld [vmem:[#allocation2 + $0x30] sm:$0xff] }
 0x10a   : > { %808 = vst [vmem:[#allocation2 + $0x80] sm:$0xff] %v776_v62  ;;  %v469_v62 = vld [vmem:[#allocation2 + $0x8] sm:$0xff] }
 0x10d   : > { %v728_v3 = vpop.f32.mrf.mxu2  ;;  %v748_v4 = vpop.f32.mrf.mxu3 }
 0x10e   : > { %v784_v5 = vadd.f32 %v728_v3, %v471_v63  ;;  %v792_v6 = vadd.f32 %v748_v4, %v479_v0  ;;  %v690_v7 = vpop.f32.mrf.mxu0  ;;  %v710_v8 = vpop.f32.mrf.mxu1 }
 0x10f   : > { %v769_v9 = vadd.f32 %v690_v7, %v456_v1  ;;  %v777_v10 = vadd.f32 %v710_v8, %v464_v2  ;;  %v477_v7 = vld [vmem:[#allocation2 + $0x70] sm:$0xff]  ;;  %v485_v8 = vld [vmem:[#allocation2 + $0x20] sm:$0xff] }
 0x110   : > { %816 = vst [vmem:[#allocation2 + $0x38] sm:$0xff] %v784_v5 }
 0x111   : > { %824 = vst [vmem:[#allocation2 + $0xa8] sm:$0xff] %v792_v6 }
 0x112   : > { %801 = vst [vmem:[#allocation2] sm:$0xff] %v769_v9  ;;  %v462_v9 = vld [vmem:[#allocation2 + $0x48] sm:$0xff] }
 0x113   : > { %809 = vst [vmem:[#allocation2 + $0x88] sm:$0xff] %v777_v10  ;;  %v470_v10 = vld [vmem:[#allocation2 + $0x78] sm:$0xff] }
 0x115   : > { %v730_v15 = vpop.f32.mrf.mxu2  ;;  %v750_v16 = vpop.f32.mrf.mxu3 }
 0x116   : > { %v785_v17 = vadd.f32 %v730_v15, %v472_v11  ;;  %v793_v18 = vadd.f32 %v750_v16, %v480_v12  ;;  %v693_v19 = vpop.f32.mrf.mxu0  ;;  %v713_v20 = vpop.f32.mrf.mxu1 }
 0x117   : > { %v770_v21 = vadd.f32 %v693_v19, %v457_v13  ;;  %v778_v22 = vadd.f32 %v713_v20, %v465_v14  ;;  %v478_v19 = vld [vmem:[#allocation2 + $0xc0] sm:$0xff]  ;;  %v486_v20 = vld [vmem:[#allocation2 + $0x98] sm:$0xff] }
 0x118   : > { %817 = vst [vmem:[#allocation2 + $0x58] sm:$0xff] %v785_v17 }
 0x119   : > { %825 = vst [vmem:[#allocation2 + $0xd0] sm:$0xff] %v793_v18 }
 0x11a   : > { %802 = vst [vmem:[#allocation2 + $0xd8] sm:$0xff] %v770_v21 }
 0x11b   : > { %810 = vst [vmem:[#allocation2 + $0xe8] sm:$0xff] %v778_v22 }
 0x11d   : > { %v733_v27 = vpop.f32.mrf.mxu2  ;;  %v753_v28 = vpop.f32.mrf.mxu3 }
 0x11e   : > { %v786_v29 = vadd.f32 %v733_v27, %v473_v23  ;;  %v794_v30 = vadd.f32 %v753_v28, %v481_v24  ;;  %v695_v31 = vpop.f32.mrf.mxu0  ;;  %v715_v32 = vpop.f32.mrf.mxu1 }
 0x11f   : > { %v771_v33 = vadd.f32 %v695_v31, %v458_v25  ;;  %v779_v34 = vadd.f32 %v715_v32, %v466_v26 }
 0x120   : > { %818 = vst [vmem:[#allocation2 + $0x40] sm:$0xff] %v786_v29 }
 0x121   : > { %826 = vst [vmem:[#allocation2 + $0x10] sm:$0xff] %v794_v30 }
 0x122   : > { %803 = vst [vmem:[#allocation2 + $0x18] sm:$0xff] %v771_v33 }
 0x123   : > { %811 = vst [vmem:[#allocation2 + $0xb8] sm:$0xff] %v779_v34 }
 0x125   : > { %v735_v39 = vpop.f32.mrf.mxu2  ;;  %v755_v40 = vpop.f32.mrf.mxu3 }
 0x126   : > { %v787_v41 = vadd.f32 %v735_v39, %v474_v35  ;;  %v795_v42 = vadd.f32 %v755_v40, %v482_v36  ;;  %v698_v43 = vpop.f32.mrf.mxu0  ;;  %v718_v44 = vpop.f32.mrf.mxu1 }
 0x127   : > { %v772_v45 = vadd.f32 %v698_v43, %v459_v37  ;;  %v780_v46 = vadd.f32 %v718_v44, %v467_v38 }
 0x128   : > { %819 = vst [vmem:[#allocation2 + $0xc8] sm:$0xff] %v787_v41 }
 0x129   : > { %827 = vst [vmem:[#allocation2 + $0x28] sm:$0xff] %v795_v42 }
 0x12a   : > { %804 = vst [vmem:[#allocation2 + $0x50] sm:$0xff] %v772_v45 }
 0x12b   : > { %812 = vst [vmem:[#allocation2 + $0x60] sm:$0xff] %v780_v46 }
 0x12d   : > { %v738_v51 = vpop.f32.mrf.mxu2  ;;  %v758_v52 = vpop.f32.mrf.mxu3 }
 0x12e   : > { %v788_v53 = vadd.f32 %v738_v51, %v475_v47  ;;  %v796_v54 = vadd.f32 %v758_v52, %v483_v48  ;;  %v700_v55 = vpop.f32.mrf.mxu0  ;;  %v720_v56 = vpop.f32.mrf.mxu1 }
 0x12f   : > { %v773_v57 = vadd.f32 %v700_v55, %v460_v49  ;;  %v781_v58 = vadd.f32 %v720_v56, %v468_v50 }
 0x130   : > { %820 = vst [vmem:[#allocation2 + $0xe0] sm:$0xff] %v788_v53 }
 0x131   : > { %828 = vst [vmem:[#allocation2 + $0xa0] sm:$0xff] %v796_v54 }
 0x132   : > { %805 = vst [vmem:[#allocation2 + $0x68] sm:$0xff] %v773_v57 }
 0x133   : > { %813 = vst [vmem:[#allocation2 + $0xf0] sm:$0xff] %v781_v58 }
 0x135   : > { %v740_v63 = vpop.f32.mrf.mxu2  ;;  %v760_v0 = vpop.f32.mrf.mxu3 }
 0x136   : > { %v789_v1 = vadd.f32 %v740_v63, %v476_v59  ;;  %v797_v2 = vadd.f32 %v760_v0, %v484_v60  ;;  %v703_v3 = vpop.f32.mrf.mxu0  ;;  %v723_v4 = vpop.f32.mrf.mxu1 }
 0x137   : > { %v774_v5 = vadd.f32 %v703_v3, %v461_v61  ;;  %v782_v6 = vadd.f32 %v723_v4, %v469_v62 }
 0x138   : > { %821 = vst [vmem:[#allocation2 + $0x90] sm:$0xff] %v789_v1 }
 0x139   : > { %829 = vst [vmem:[#allocation2 + $0xf8] sm:$0xff] %v797_v2 }
 0x13a   : > { %806 = vst [vmem:[#allocation2 + $0x30] sm:$0xff] %v774_v5 }
 0x13b   : > { %814 = vst [vmem:[#allocation2 + $0x8] sm:$0xff] %v782_v6 }
 0x13d   : > { %v743_v11 = vpop.f32.mrf.mxu2  ;;  %v763_v12 = vpop.f32.mrf.mxu3 }
 0x13e   : > { %v790_v13 = vadd.f32 %v743_v11, %v477_v7  ;;  %v798_v14 = vadd.f32 %v763_v12, %v485_v8  ;;  %v705_v15 = vpop.f32.mrf.mxu0  ;;  %v725_v16 = vpop.f32.mrf.mxu1 }
 0x13f   : > { %v775_v17 = vadd.f32 %v705_v15, %v462_v9  ;;  %v783_v18 = vadd.f32 %v725_v16, %v470_v10 }
 0x140   : > { %822 = vst [vmem:[#allocation2 + $0x70] sm:$0xff] %v790_v13 }
 0x141   : > { %830 = vst [vmem:[#allocation2 + $0x20] sm:$0xff] %v798_v14 }
 0x142   : > { %807 = vst [vmem:[#allocation2 + $0x48] sm:$0xff] %v775_v17 }
 0x143   : > { %815 = vst [vmem:[#allocation2 + $0x78] sm:$0xff] %v783_v18 }
 0x145   : > { %v745_v21 = vpop.f32.mrf.mxu2  ;;  %v765_v22 = vpop.f32.mrf.mxu3  ;;  %835 = sbr.rel (%p1772_p13) target bundleno = 477 (0x1dd), region = 81 }
 0x146   : > { %v791_v23 = vadd.f32 %v745_v21, %v478_v19  ;;  %v799_v24 = vadd.f32 %v765_v22, %v486_v20 }
 0x148   : > { %823 = vst [vmem:[#allocation2 + $0xc0] sm:$0xff] %v791_v23 }
 0x149   : > { %831 = vst [vmem:[#allocation2 + $0x98] sm:$0xff] %v799_v24 }
 0x14a   : > { %v836_v25 = vld [vmem:[#allocation2 + $0xb0] sm:$0xff]  ;;  %v2294_v26 = vld [vmem:[%s3032_s2] ss:$0 sm:$0xff]  ;;  %v838_v28 = vld [vmem:[#allocation2 + $0xd8] sm:$0xff] }
 0x14b   : > { %v837_v27 = vld [vmem:[#allocation2] sm:$0xff]  ;;  %v839_v29 = vld [vmem:[#allocation2 + $0x18] sm:$0xff]  ;;  %v872_v30 = vadd.f32 %v2294_v26, %v836_v25  ;;  %v874_v32 = vadd.f32 %v2294_v26, %v838_v28  ;;  %v840_v34 = vld [vmem:[#allocation2 + $0x50] sm:$0xff] }
 0x14c   : > { %v873_v31 = vadd.f32 %v2294_v26, %v837_v27  ;;  %v875_v33 = vadd.f32 %v2294_v26, %v839_v29  ;;  %v841_v35 = vld [vmem:[#allocation2 + $0x68] sm:$0xff]  ;;  %v842_v36 = vld [vmem:[#allocation2 + $0x30] sm:$0xff]  ;;  %v876_v37 = vadd.f32 %v2294_v26, %v840_v34  ;;  %v844_v48 = vld [vmem:[#allocation2 + $0x80] sm:$0xff] }
 0x14d   : > { %v877_v38 = vadd.f32 %v2294_v26, %v841_v35  ;;  %v843_v39 = vld [vmem:[#allocation2 + $0x48] sm:$0xff]  ;;  %v1773_v40 = vmul.f32 -1.442695, %v872_v30  ;;  %v1775_v42 = vmul.f32 -1.442695, %v874_v32  ;;  %v878_v44 = vadd.f32 %v2294_v26, %v842_v36  ;;  %v847_v52 = vld [vmem:[#allocation2 + $0xb8] sm:$0xff] }
 0x14e   : > { %v1774_v41 = vmul.f32 -1.442695, %v873_v31  ;;  %v1776_v43 = vmul.f32 -1.442695, %v875_v33  ;;  %v1777_v45 = vmul.f32 -1.442695, %v876_v37  ;;  %v879_v46 = vadd.f32 %v2294_v26, %v843_v39 }
 0x14f   : > { %1914 = vpow2.f32 %v1773_v40  ;;  %v1778_v47 = vmul.f32 -1.442695, %v877_v38  ;;  %v845_v49 = vld [vmem:[#allocation2 + $0x88] sm:$0xff]  ;;  %v1779_v51 = vmul.f32 -1.442695, %v878_v44  ;;  %v848_v53 = vld [vmem:[#allocation2 + $0x60] sm:$0xff]  ;;  %v880_v55 = vadd.f32 %v2294_v26, %v844_v48 }
 0x150   : > { %1916 = vpow2.f32 %v1774_v41  ;;  %v846_v50 = vld [vmem:[#allocation2 + $0xe8] sm:$0xff]  ;;  %v1780_v54 = vmul.f32 -1.442695, %v879_v46  ;;  %v881_v56 = vadd.f32 %v2294_v26, %v845_v49  ;;  %v883_v59 = vadd.f32 %v2294_v26, %v847_v52  ;;  %v849_v6 = vld [vmem:[#allocation2 + $0xf0] sm:$0xff] }
 0x151   : > { %1918 = vpow2.f32 %v1775_v42  ;;  %v882_v57 = vadd.f32 %v2294_v26, %v846_v50  ;;  %v884_v60 = vadd.f32 %v2294_v26, %v848_v53  ;;  %v1781_v1 = vmul.f32 -1.442695, %v880_v55 }
 0x152   : > { %1920 = vpow2.f32 %v1776_v43  ;;  %v2315_v4 = vmul.f32 -1.442695, %v881_v56  ;;  %v2321_v9 = vmul.f32 -1.442695, %v883_v59  ;;  %v2335_v17 = vadd.f32 %v2294_v26, %v849_v6 }
 0x153   : > { %1922 = vpow2.f32 %v1777_v45  ;;  %v2317_v5 = vmul.f32 -1.442695, %v882_v57  ;;  %v2323_v10 = vmul.f32 -1.442695, %v884_v60 }
 0x154   : > { %1924 = vpow2.f32 %v1778_v47 }
 0x155   : > { %v1915_v58 = vpop.eup %1914  ;;  %1926 = vpow2.f32 %v1779_v51  ;;  %v852_v51 = vld [vmem:[#allocation2 + $0x38] sm:$0xff] }
 0x156   : > { %v1917_v61 = vpop.eup %1916  ;;  %v2309_v62 = vadd.f32 1.0, %v1915_v58  ;;  %1928 = vpow2.f32 %v1780_v54 }
 0x157   : > { %v1919_v63 = vpop.eup %1918  ;;  %v2311_v0 = vadd.f32 1.0, %v1917_v61 }
 0x158   : > { %v1921_v2 = vpop.eup %1920  ;;  %1930 = vrcp.f32 %v2309_v62  ;;  %v1043_v3 = vand.u32 2147483648, %v2309_v62  ;;  %v1041_v8 = vand.u32 2147483647, %v2309_v62  ;;  %v2327_v14 = vadd.f32 1.0, %v1919_v63 }
 0x159   : > { %v1923_v7 = vpop.eup %1922  ;;  %1932 = vrcp.f32 %v2311_v0  ;;  %v1056_v12 = vand.u32 2147483647, %v2311_v0  ;;  %v1058_v13 = vand.u32 2147483648, %v2311_v0  ;;  %v2329_v15 = vadd.f32 1.0, %v1921_v2 }
 0x15a   : > { %v1925_v11 = vpop.eup %1924  ;;  %vm1037_vm0 = vweird.f32 %v2309_v62  ;;  %v2332_v16 = vadd.f32 1.0, %v1923_v7  ;;  %1934 = vpow2.f32 %v1781_v1  ;;  %v1044_v19 = vor.u32 1.1754944e-38, %v1043_v3 }
 0x15b   : > { %v1927_v18 = vpop.eup %1926  ;;  %vm1052_vm1 = vweird.f32 %v2311_v0  ;;  %1936 = vrcp.f32 %v2327_v14  ;;  %v1073_v20 = vand.u32 2147483648, %v2327_v14  ;;  %vm2340_vm2 = vcmp.eq.f32.partialorder %v1041_v8, 8.507059e+37 }
 0x15c   : > { %v1929_v21 = vpop.eup %1928  ;;  %v1071_v23 = vand.u32 2147483647, %v2327_v14  ;;  %1938 = vrcp.f32 %v2329_v15  ;;  %v1088_v24 = vand.u32 2147483648, %v2329_v15  ;;  %v2347_v25 = vadd.f32 1.0, %v1925_v11 }
 0x15d   : > { %vm2349_vm3 = vcmp.eq.f32.partialorder %v1056_v12, 8.507059e+37  ;;  %v1059_v29 = vor.u32 1.1754944e-38, %v1058_v13  ;;  %v1086_v30 = vand.u32 2147483647, %v2329_v15  ;;  %1940 = vrcp.f32 %v2332_v16 }
 0x15e   : > { %v1931_v27 = vpop.eup %1930  ;;  %vm1067_vm4 = vweird.f32 %v2327_v14  ;;  %v2357_v33 = vor.u32 1.1754944e-38, %v1073_v20  ;;  %vm1082_vm5 = vweird.f32 %v2329_v15  ;;  %vm1097_vm6 = vweird.f32 %v2332_v16 }
 0x15f   : > { %v1933_v31 = vpop.eup %1932  ;;  %v1033_v32 = vmul.f32 %v1931_v27, %v2309_v62  ;;  %v1101_v35 = vand.u32 2147483647, %v2332_v16  ;;  %v1103_v36 = vand.u32 2147483648, %v2332_v16  ;;  %vm1038_vm7 = vweird.f32 %v1931_v27 }
 0x160   : > { %v1048_v34 = vmul.f32 %v1933_v31, %v2311_v0  ;;  %v1935_v37 = vpop.eup %1934  ;;  %vm2364_vm8 = vcmp.eq.f32.partialorder %v1071_v23, 8.507059e+37  ;;  %v1089_v40 = vor.u32 1.1754944e-38, %v1088_v24  ;;  %1942 = vrcp.f32 %v2347_v25  ;;  %vm2383_vm13 = vmor %vm1037_vm0, %vm1038_vm7 }
 0x161   : > { %v1034_v38 = vsub.f32 1.0, %v1033_v32  ;;  %v1937_v41 = vpop.eup %1936  ;;  %vm1053_vm9 = vweird.f32 %v1933_v31  ;;  %vm2369_vm10 = vcmp.eq.f32.partialorder %v1086_v30, 8.507059e+37  ;;  %v1116_v44 = vand.u32 2147483647, %v2347_v25  ;;  %v850_v30 = vld [vmem:[#allocation2 + $0x8] sm:$0xff] }
 0x162   : > { %v1049_v42 = vsub.f32 1.0, %v1048_v34  ;;  %v1939_v45 = vpop.eup %1938  ;;  %v1063_v47 = vmul.f32 %v1937_v41, %v2327_v14  ;;  %vm2376_vm12 = vcmp.eq.f32.partialorder %v1101_v35, 8.507059e+37  ;;  %v1104_v49 = vor.u32 1.1754944e-38, %v1103_v36  ;;  %vm2392_vm15 = vmor %vm1052_vm1, %vm1053_vm9 }
 0x163   : > { %v1035_v46 = vmul.f32 %v1931_v27, %v1034_v38  ;;  %v1941_v50 = vpop.eup %1940  ;;  %vm1068_vm14 = vweird.f32 %v1937_v41  ;;  %v1078_v53 = vmul.f32 %v1939_v45, %v2329_v15  ;;  %v1118_v54 = vand.u32 2147483648, %v2347_v25 }
 0x164   : > { %v1050_v52 = vmul.f32 %v1933_v31, %v1049_v42  ;;  %v1064_v57 = vsub.f32 1.0, %v1063_v47  ;;  %vm1083_vm11 = vweird.f32 %v1939_v45  ;;  %v1093_v58 = vmul.f32 %v1941_v50, %v2332_v16  ;;  %vm2410_vm1 = vmor %vm1067_vm4, %vm1068_vm14 }
 0x165   : > { %v1036_v55 = vadd.f32 %v1931_v27, %v1035_v46  ;;  %v1079_v60 = vsub.f32 1.0, %v1078_v53  ;;  %vm1098_vm0 = vweird.f32 %v1941_v50  ;;  %v2397_v61 = vadd.f32 1.0, %v1927_v18  ;;  %v851_v46 = vld [vmem:[#allocation2 + $0x78] sm:$0xff] }
 0x166   : > { %v1051_v59 = vadd.f32 %v1933_v31, %v1050_v52  ;;  %v1943_v62 = vpop.eup %1942  ;;  %v1065_v0 = vmul.f32 %v1937_v41, %v1064_v57  ;;  %v1094_v1 = vsub.f32 1.0, %v1093_v58  ;;  %v2401_v2 = vadd.f32 1.0, %v1929_v21  ;;  %vm2431_vm4 = vmor %vm1097_vm6, %vm1098_vm0 }
 0x167   : > { %v1040_v63 = vsel %vm2383_vm13, %v1931_v27, %v1036_v55  ;;  %v1080_v8 = vmul.f32 %v1939_v45, %v1079_v60  ;;  %v1108_v11 = vmul.f32 %v1943_v62, %v2347_v25  ;;  %1944 = vrcp.f32 %v2397_v61 }
 0x168   : > { %v1045_v3 = vsel %vm2340_vm2, %v1044_v19, %v1040_v63  ;;  %v1055_v6 = vsel %vm2392_vm15, %v1933_v31, %v1051_v59  ;;  %v1066_v13 = vadd.f32 %v1937_v41, %v1065_v0  ;;  %vm2421_vm2 = vmor %vm1082_vm5, %vm1083_vm11  ;;  %v1095_v14 = vmul.f32 %v1941_v50, %v1094_v1  ;;  %v854_v0 = vld [vmem:[#allocation2 + $0x40] sm:$0xff] }
 0x169   : > { %1512 = vst [vmem:[%s2261_s29] sm:$0xff] %v1045_v3  ;;  %v1060_v12 = vsel %vm2349_vm3, %v1059_v29, %v1055_v6  ;;  %v2425_v19 = vadd.f32 1.0, %v1935_v37  ;;  %v1081_v20 = vadd.f32 %v1939_v45, %v1080_v8  ;;  %v1109_v22 = vsub.f32 1.0, %v1108_v11 }
 0x16a   : > { %1513 = vst [vmem:[%s2261_s29 + $0x8] sm:$0xff] %v1060_v12  ;;  %vm1113_vm3 = vweird.f32 %v1943_v62  ;;  %v1070_v15 = vsel %vm2410_vm1, %v1937_v41, %v1066_v13  ;;  %v1096_v23 = vadd.f32 %v1941_v50, %v1095_v14  ;;  %v1131_v24 = vand.u32 2147483647, %v2397_v61 }
 0x16b   : > { %v1133_v27 = vand.u32 2147483648, %v2397_v61  ;;  %v1075_v16 = vsel %vm2364_vm8, %v2357_v33, %v1070_v15  ;;  %v1085_v28 = vsel %vm2421_vm2, %v1939_v45, %v1081_v20  ;;  %v1110_v29 = vmul.f32 %v1943_v62, %v1109_v22 }
 0x16c   : > { %1946 = vrcp.f32 %v2401_v2  ;;  %1514 = vst [vmem:[%s2261_s29 + $0x10] sm:$0xff] %v1075_v16  ;;  %v1090_v31 = vsel %vm2369_vm10, %v1089_v40, %v1085_v28  ;;  %v1100_v32 = vsel %vm2431_vm4, %v1941_v50, %v1096_v23  ;;  %vm3054_vm5 = vweird.f32 %v2347_v25 }
 0x16d   : > { %vm2453_vm6 = vmor %vm3054_vm5, %vm1113_vm3  ;;  %v1119_v33 = vor.u32 1.1754944e-38, %v1118_v54  ;;  %v1786_v35 = vmul.f32 -1.442695, %v2335_v17  ;;  %1515 = vst [vmem:[%s2261_s29 + $0x18] sm:$0xff] %v1090_v31  ;;  %v1105_v36 = vsel %vm2376_vm12, %v1104_v49, %v1100_v32  ;;  %v1111_v37 = vadd.f32 %v1943_v62, %v1110_v29  ;;  %v1945_v39 = vpop.eup %1944 }
 0x16e   : > { %vm1117_vm7 = vcmp.eq.f32.partialorder %v1116_v44, 8.507059e+37  ;;  %v1146_v38 = vand.u32 2147483647, %v2401_v2  ;;  %1516 = vst [vmem:[%s2261_s29 + $0x20] sm:$0xff] %v1105_v36  ;;  %vm1127_vm8 = vweird.f32 %v2397_v61  ;;  %vm2464_vm9 = vcmp.eq.f32.partialorder %v1131_v24, 8.507059e+37 }
 0x16f   : > { %1948 = vrcp.f32 %v2425_v19  ;;  %v886_v17 = vadd.f32 %v2294_v26, %v850_v30  ;;  %v1115_v40 = vsel %vm2453_vm6, %v1943_v62, %v1111_v37  ;;  %v1134_v41 = vor.u32 1.1754944e-38, %v1133_v27 }
 0x170   : > { %v1148_v42 = vand.u32 2147483648, %v2401_v2  ;;  %1950 = vpow2.f32 %v2315_v4  ;;  %v1120_v43 = vsel %vm1117_vm7, %v1119_v33, %v1115_v40  ;;  %v1123_v44 = vmul.f32 %v1945_v39, %v2397_v61 }
 0x171   : > { %vm1142_vm10 = vweird.f32 %v2401_v2  ;;  %v1161_v45 = vand.u32 2147483647, %v2425_v19  ;;  %1517 = vst [vmem:[%s2261_s29 + $0x28] sm:$0xff] %v1120_v43  ;;  %vm2478_vm11 = vcmp.eq.f32.partialorder %v1146_v38, 8.507059e+37  ;;  %vm1157_vm12 = vweird.f32 %v2425_v19 }
 0x172   : > { %v1947_v47 = vpop.eup %1946  ;;  %v1163_v49 = vand.u32 2147483648, %v2425_v19  ;;  %1952 = vpow2.f32 %v2317_v5  ;;  %v1124_v4 = vsub.f32 1.0, %v1123_v44  ;;  %vm1128_vm13 = vweird.f32 %v1945_v39  ;;  %v853_v5 = vld [vmem:[#allocation2 + $0x58] sm:$0xff] }
 0x173   : > { %v1138_v50 = vmul.f32 %v1947_v47, %v2401_v2  ;;  %1954 = vpow2.f32 %v2321_v9  ;;  %v1149_v52 = vor.u32 1.1754944e-38, %v1148_v42  ;;  %v1787_v53 = vmul.f32 -1.442695, %v886_v17  ;;  %vm2496_vm0 = vmor %vm1127_vm8, %vm1128_vm13  ;;  %v855_v9 = vld [vmem:[#allocation2 + $0xc8] sm:$0xff] }
 0x174   : > { %1956 = vpow2.f32 %v2323_v10  ;;  %v887_v54 = vadd.f32 %v2294_v26, %v851_v46  ;;  %v1125_v56 = vmul.f32 %v1945_v39, %v1124_v4  ;;  %vm1143_vm14 = vweird.f32 %v1947_v47 }
 0x175   : > { %v1949_v55 = vpop.eup %1948  ;;  %v1139_v57 = vsub.f32 1.0, %v1138_v50  ;;  %vm2489_vm15 = vcmp.eq.f32.partialorder %v1161_v45, 8.507059e+37  ;;  %v1164_v60 = vor.u32 1.1754944e-38, %v1163_v49  ;;  %v888_v63 = vadd.f32 %v2294_v26, %v852_v51  ;;  %vm2507_vm1 = vmor %vm1142_vm10, %vm1143_vm14  ;;  %v856_v51 = vld [vmem:[#allocation2 + $0xe0] sm:$0xff] }
 0x176   : > { %v1951_v59 = vpop.eup %1950  ;;  %v1153_v10 = vmul.f32 %v1949_v55, %v2425_v19  ;;  %v1788_v62 = vmul.f32 -1.442695, %v887_v54  ;;  %v1126_v1 = vadd.f32 %v1945_v39, %v1125_v56  ;;  %1958 = vpow2.f32 %v1786_v35 }
 0x177   : > { %v1140_v3 = vmul.f32 %v1947_v47, %v1139_v57  ;;  %v2502_v6 = vadd.f32 1.0, %v1951_v59  ;;  %vm1158_vm2 = vweird.f32 %v1949_v55  ;;  %1960 = vpow2.f32 %v1787_v53 }
 0x178   : > { %v1953_v7 = vpop.eup %1952  ;;  %v1154_v8 = vsub.f32 1.0, %v1153_v10  ;;  %v889_v11 = vadd.f32 %v2294_v26, %v853_v5  ;;  %v1130_v13 = vsel %vm2496_vm0, %v1945_v39, %v1126_v1  ;;  %v890_v14 = vadd.f32 %v2294_v26, %v854_v0  ;;  %vm2524_vm4 = vmor %vm1157_vm12, %vm1158_vm2 }
 0x179   : > { %v1955_v12 = vpop.eup %1954  ;;  %v1141_v18 = vadd.f32 %v1947_v47, %v1140_v3  ;;  %1962 = vrcp.f32 %v2502_v6  ;;  %v1135_v20 = vsel %vm2464_vm9, %v1134_v41, %v1130_v13  ;;  %v1789_v22 = vmul.f32 -1.442695, %v888_v63 }
 0x17a   : > { %v1957_v2 = vpop.eup %1956  ;;  %v1155_v21 = vmul.f32 %v1949_v55, %v1154_v8  ;;  %1964 = vpow2.f32 %v1788_v62  ;;  %1518 = vst [vmem:[%s2261_s29 + $0x30] sm:$0xff] %v1135_v20  ;;  %v1176_v24 = vand.u32 2147483647, %v2502_v6  ;;  %v2529_v27 = vadd.f32 1.0, %v1953_v7 }
 0x17b   : > { %v1145_v15 = vsel %vm2507_vm1, %v1947_v47, %v1141_v18  ;;  %v2531_v16 = vadd.f32 1.0, %v1955_v12  ;;  %v1178_v30 = vand.u32 2147483648, %v2502_v6  ;;  %v2536_v31 = vadd.f32 1.0, %v1957_v2 }
 0x17c   : > { %v1150_v28 = vsel %vm2478_vm11, %v1149_v52, %v1145_v15  ;;  %v1156_v29 = vadd.f32 %v1949_v55, %v1155_v21  ;;  %v1959_v32 = vpop.eup %1958  ;;  %1966 = vrcp.f32 %v2529_v27  ;;  %v2540_v19 = vmul.f32 -1.442695, %v889_v11 }
 0x17d   : > { %1519 = vst [vmem:[%s2261_s29 + $0x38] sm:$0xff] %v1150_v28  ;;  %v2542_v34 = vmul.f32 -1.442695, %v890_v14  ;;  %v1961_v33 = vpop.eup %1960  ;;  %vm1172_vm3 = vweird.f32 %v2502_v6  ;;  %v1191_v36 = vand.u32 2147483647, %v2529_v27  ;;  %1968 = vrcp.f32 %v2531_v16 }
 0x17e   : > { %v1160_v35 = vsel %vm2524_vm4, %v1949_v55, %v1156_v29  ;;  %v1193_v25 = vand.u32 2147483648, %v2529_v27  ;;  %v1206_v17 = vand.u32 2147483647, %v2531_v16  ;;  %v1208_v39 = vand.u32 2147483648, %v2531_v16 }
 0x17f   : > { %v1963_v37 = vpop.eup %1962  ;;  %v1165_v38 = vsel %vm2489_vm15, %v1164_v60, %v1160_v35  ;;  %vm2556_vm5 = vcmp.eq.f32.partialorder %v1176_v24, 8.507059e+37  ;;  %v1179_v43 = vor.u32 1.1754944e-38, %v1178_v30  ;;  %1970 = vrcp.f32 %v2536_v31 }
 0x180   : > { %v1965_v40 = vpop.eup %1964  ;;  %1520 = vst [vmem:[%s2261_s29 + $0x40] sm:$0xff] %v1165_v38  ;;  %v1168_v41 = vmul.f32 %v1963_v37, %v2502_v6  ;;  %vm1187_vm6 = vweird.f32 %v2529_v27  ;;  %vm1202_vm7 = vweird.f32 %v2531_v16  ;;  %v1221_v44 = vand.u32 2147483647, %v2536_v31 }
 0x181   : > { %v1223_v45 = vand.u32 2147483648, %v2536_v31  ;;  %vm1173_vm8 = vweird.f32 %v1963_v37  ;;  %vm2565_vm9 = vcmp.eq.f32.partialorder %v1191_v36, 8.507059e+37  ;;  %v2569_v48 = vadd.f32 1.0, %v1959_v32 }
 0x182   : > { %v1169_v46 = vsub.f32 1.0, %v1168_v41  ;;  %v2571_v49 = vadd.f32 1.0, %v1961_v33  ;;  %v1967_v4 = vpop.eup %1966  ;;  %v1194_v50 = vor.u32 1.1754944e-38, %v1193_v25  ;;  %vm2573_vm10 = vcmp.eq.f32.partialorder %v1206_v17, 8.507059e+37  ;;  %vm2584_vm12 = vmor %vm1172_vm3, %vm1173_vm8 }
 0x183   : > { %v1209_v52 = vor.u32 1.1754944e-38, %v1208_v39  ;;  %vm1217_vm11 = vweird.f32 %v2536_v31  ;;  %v1969_v53 = vpop.eup %1968  ;;  %v1183_v55 = vmul.f32 %v1967_v4, %v2529_v27  ;;  %1972 = vrcp.f32 %v2569_v48 }
 0x184   : > { %v1170_v54 = vmul.f32 %v1963_v37, %v1169_v46  ;;  %v2580_v56 = vadd.f32 1.0, %v1965_v40  ;;  %vm1188_vm13 = vweird.f32 %v1967_v4  ;;  %v1198_v58 = vmul.f32 %v1969_v53, %v2531_v16 }
 0x185   : > { %vm2589_vm14 = vcmp.eq.f32.partialorder %v1221_v44, 8.507059e+37  ;;  %v1224_v59 = vor.u32 1.1754944e-38, %v1223_v45  ;;  %1974 = vpow2.f32 %v1789_v22  ;;  %v1971_v10 = vpop.eup %1970  ;;  %v1184_v62 = vsub.f32 1.0, %v1183_v55  ;;  %vm2606_vm1 = vmor %vm1187_vm6, %vm1188_vm13 }
 0x186   : > { %v1171_v60 = vadd.f32 %v1963_v37, %v1170_v54  ;;  %v1236_v63 = vand.u32 2147483647, %v2569_v48  ;;  %1976 = vrcp.f32 %v2571_v49  ;;  %v1199_v0 = vsub.f32 1.0, %v1198_v58 }
 0x187   : > { %vm1203_vm15 = vweird.f32 %v1969_v53  ;;  %v1213_v1 = vmul.f32 %v1971_v10, %v2536_v31  ;;  %v1238_v3 = vand.u32 2147483648, %v2569_v48  ;;  %v1185_v7 = vmul.f32 %v1967_v4, %v1184_v62 }
 0x188   : > { %v1175_v6 = vsel %vm2584_vm12, %v1963_v37, %v1171_v60  ;;  %vm1232_vm0 = vweird.f32 %v2569_v48  ;;  %v891_v61 = vadd.f32 %v2294_v26, %v855_v9  ;;  %v1200_v12 = vmul.f32 %v1969_v53, %v1199_v0  ;;  %vm2614_vm4 = vmor %vm1202_vm7, %vm1203_vm15 }
 0x189   : > { %v1180_v8 = vsel %vm2556_vm5, %v1179_v43, %v1175_v6  ;;  %v1214_v13 = vsub.f32 1.0, %v1213_v1  ;;  %vm1218_vm2 = vweird.f32 %v1971_v10  ;;  %v1973_v18 = vpop.eup %1972  ;;  %v1186_v14 = vadd.f32 %v1967_v4, %v1185_v7  ;;  %v859_v1 = vld [vmem:[#allocation2 + $0xc0] sm:$0xff] }
 0x18a   : > { %1521 = vst [vmem:[%s2261_s29 + $0x48] sm:$0xff] %v1180_v8  ;;  %vm2618_vm3 = vcmp.eq.f32.partialorder %v1236_v63, 8.507059e+37  ;;  %v1251_v21 = vand.u32 2147483647, %v2571_v49  ;;  %1978 = vrcp.f32 %v2580_v56  ;;  %v1201_v15 = vadd.f32 %v1969_v53, %v1200_v12  ;;  %vm2630_vm5 = vmor %vm1217_vm11, %vm1218_vm2 }
 0x18b   : > { %v1975_v22 = vpop.eup %1974  ;;  %v1215_v23 = vmul.f32 %v1971_v10, %v1214_v13  ;;  %v1228_v24 = vmul.f32 %v1973_v18, %v2569_v48  ;;  %v1239_v27 = vor.u32 1.1754944e-38, %v1238_v3  ;;  %v1190_v28 = vsel %vm2606_vm1, %v1967_v4, %v1186_v14 }
 0x18c   : > { %v1977_v16 = vpop.eup %1976  ;;  %vm1233_vm6 = vweird.f32 %v1973_v18  ;;  %vm1247_vm7 = vweird.f32 %v2571_v49  ;;  %v1253_v30 = vand.u32 2147483648, %v2571_v49  ;;  %v1195_v32 = vsel %vm2565_vm9, %v1194_v50, %v1190_v28 }
 0x18d   : > { %v1205_v33 = vsel %vm2614_vm4, %v1969_v53, %v1201_v15  ;;  %v1216_v35 = vadd.f32 %v1971_v10, %v1215_v23  ;;  %v1229_v36 = vsub.f32 1.0, %v1228_v24  ;;  %1522 = vst [vmem:[%s2261_s29 + $0x50] sm:$0xff] %v1195_v32  ;;  %v1243_v37 = vmul.f32 %v1977_v16, %v2571_v49  ;;  %v865_v53 = vld [vmem:[#allocation2 + $0xf8] sm:$0xff] }
 0x18e   : > { %v1210_v31 = vsel %vm2573_vm10, %v1209_v52, %v1205_v33  ;;  %vm2644_vm8 = vcmp.eq.f32.partialorder %v1251_v21, 8.507059e+37  ;;  %vm1262_vm11 = vweird.f32 %v2580_v56  ;;  %vm1248_vm9 = vweird.f32 %v1977_v16  ;;  %vm2659_vm10 = vmor %vm1232_vm0, %vm1233_vm6  ;;  %v857_v52 = vld [vmem:[#allocation2 + $0x90] sm:$0xff]  ;;  %v860_v21 = vld [vmem:[#allocation2 + $0xa8] sm:$0xff] }
 0x18f   : > { %1523 = vst [vmem:[%s2261_s29 + $0x58] sm:$0xff] %v1210_v31  ;;  %v1220_v25 = vsel %vm2630_vm5, %v1971_v10, %v1216_v35  ;;  %v1230_v17 = vmul.f32 %v1973_v18, %v1229_v36  ;;  %v2652_v39 = vadd.f32 1.0, %v1975_v22  ;;  %v1244_v43 = vsub.f32 1.0, %v1243_v37  ;;  %vm2674_vm13 = vmor %vm1247_vm7, %vm1248_vm9  ;;  %v858_v10 = vld [vmem:[#allocation2 + $0x70] sm:$0xff] }
 0x190   : > { %v1979_v40 = vpop.eup %1978  ;;  %v1225_v41 = vsel %vm2589_vm14, %v1224_v59, %v1220_v25  ;;  %1980 = vpow2.f32 %v2540_v19  ;;  %v1792_v44 = vmul.f32 -1.442695, %v891_v61  ;;  %v1254_v46 = vor.u32 1.1754944e-38, %v1253_v30  ;;  %v861_v22 = vld [vmem:[#allocation2 + $0xd0] sm:$0xff] }
 0x191   : > { %1524 = vst [vmem:[%s2261_s29 + $0x60] sm:$0xff] %v1225_v41  ;;  %v1231_v45 = vadd.f32 %v1973_v18, %v1230_v17  ;;  %v1258_v47 = vmul.f32 %v1979_v40, %v2580_v56  ;;  %v1266_v4 = vand.u32 2147483647, %v2580_v56  ;;  %v1245_v50 = vmul.f32 %v1977_v16, %v1244_v43 }
 0x192   : > { %vm1263_vm12 = vweird.f32 %v1979_v40  ;;  %v1268_v48 = vand.u32 2147483648, %v2580_v56  ;;  %1982 = vrcp.f32 %v2652_v39  ;;  %v1281_v55 = vand.u32 2147483647, %v2652_v39 }
 0x193   : > { %v1235_v19 = vsel %vm2659_vm10, %v1973_v18, %v1231_v45  ;;  %v1259_v54 = vsub.f32 1.0, %v1258_v47  ;;  %1984 = vpow2.f32 %v2542_v34  ;;  %v1246_v58 = vadd.f32 %v1977_v16, %v1245_v50  ;;  %vm2691_vm14 = vmor %vm1262_vm11, %vm1263_vm12 }
 0x194   : > { %v1240_v57 = vsel %vm2618_vm3, %v1239_v27, %v1235_v19  ;;  %v1283_v5 = vand.u32 2147483648, %v2652_v39  ;;  %1986 = vpow2.f32 %v1792_v44  ;;  %v892_v49 = vadd.f32 %v2294_v26, %v856_v51 }
 0x195   : > { %1525 = vst [vmem:[%s2261_s29 + $0x68] sm:$0xff] %v1240_v57  ;;  %v1260_v59 = vmul.f32 %v1979_v40, %v1259_v54  ;;  %v893_v9 = vadd.f32 %v2294_v26, %v857_v52  ;;  %v1250_v62 = vsel %vm2674_vm13, %v1977_v16, %v1246_v58  ;;  %vm2695_vm15 = vcmp.eq.f32.partialorder %v1266_v4, 8.507059e+37  ;;  %v862_v16 = vld [vmem:[#allocation2 + $0x10] sm:$0xff] }
 0x196   : > { %v1981_v60 = vpop.eup %1980  ;;  %v1269_v0 = vor.u32 1.1754944e-38, %v1268_v48  ;;  %vm1277_vm0 = vweird.f32 %v2652_v39  ;;  %v1255_v3 = vsel %vm2644_vm8, %v1254_v46, %v1250_v62  ;;  %v1793_v61 = vmul.f32 -1.442695, %v892_v49  ;;  %v863_v49 = vld [vmem:[#allocation2 + $0x28] sm:$0xff] }
 0x197   : > { %v1261_v6 = vadd.f32 %v1979_v40, %v1260_v59  ;;  %v2702_v7 = vadd.f32 1.0, %v1981_v60  ;;  %1526 = vst [vmem:[%s2261_s29 + $0x70] sm:$0xff] %v1255_v3  ;;  %vm2705_vm1 = vcmp.eq.f32.partialorder %v1281_v55, 8.507059e+37  ;;  %v1284_v11 = vor.u32 1.1754944e-38, %v1283_v5 }
 0x198   : > { %v1983_v56 = vpop.eup %1982  ;;  %v1794_v12 = vmul.f32 -1.442695, %v893_v9  ;;  %v894_v13 = vadd.f32 %v2294_v26, %v858_v10  ;;  %v895_v20 = vadd.f32 %v2294_v26, %v859_v1  ;;  %v896_v33 = vadd.f32 %v2294_v26, %v860_v21 }
 0x199   : > { %v1985_v18 = vpop.eup %1984  ;;  %v1265_v14 = vsel %vm2691_vm14, %v1979_v40, %v1261_v6  ;;  %v1273_v2 = vmul.f32 %v1983_v56, %v2652_v39  ;;  %1988 = vrcp.f32 %v2702_v7  ;;  %vm1278_vm2 = vweird.f32 %v1983_v56 }
 0x19a   : > { %v1987_v15 = vpop.eup %1986  ;;  %v1270_v23 = vsel %vm2695_vm15, %v1269_v0, %v1265_v14  ;;  %v1296_v24 = vand.u32 2147483647, %v2702_v7  ;;  %v1298_v27 = vand.u32 2147483648, %v2702_v7  ;;  %v2720_v29 = vadd.f32 1.0, %v1985_v18  ;;  %vm2731_vm4 = vmor %vm1277_vm0, %vm1278_vm2 }
 0x19b   : > { %1527 = vst [vmem:[%s2261_s29 + $0x78] sm:$0xff] %v1270_v23  ;;  %v1274_v28 = vsub.f32 1.0, %v1273_v2  ;;  %v2722_v30 = vadd.f32 1.0, %v1987_v15  ;;  %1990 = vpow2.f32 %v1793_v61  ;;  %v1795_v32 = vmul.f32 -1.442695, %v894_v13 }
 0x19c   : > { %1992 = vpow2.f32 %v1794_v12  ;;  %v897_v35 = vadd.f32 %v2294_v26, %v861_v22  ;;  %v1796_v31 = vmul.f32 -1.442695, %v895_v20  ;;  %v898_v37 = vadd.f32 %v2294_v26, %v862_v16 }
 0x19d   : > { %v1275_v36 = vmul.f32 %v1983_v56, %v1274_v28  ;;  %1994 = vrcp.f32 %v2720_v29  ;;  %vm1292_vm3 = vweird.f32 %v2702_v7  ;;  %vm2736_vm5 = vcmp.eq.f32.partialorder %v1296_v24, 8.507059e+37 }
 0x19e   : > { %v1299_v17 = vor.u32 1.1754944e-38, %v1298_v27  ;;  %1996 = vrcp.f32 %v2722_v30  ;;  %vm1307_vm6 = vweird.f32 %v2720_v29  ;;  %v1311_v42 = vand.u32 2147483647, %v2720_v29 }
 0x19f   : > { %v1989_v40 = vpop.eup %1988  ;;  %v1276_v41 = vadd.f32 %v1983_v56, %v1275_v36  ;;  %v1313_v39 = vand.u32 2147483648, %v2720_v29  ;;  %vm1322_vm7 = vweird.f32 %v2722_v30  ;;  %v1326_v44 = vand.u32 2147483647, %v2722_v30 }
 0x1a0   : > { %v1288_v43 = vmul.f32 %v1989_v40, %v2702_v7  ;;  %1998 = vpow2.f32 %v1795_v32  ;;  %v1328_v47 = vand.u32 2147483648, %v2722_v30  ;;  %v1797_v4 = vmul.f32 -1.442695, %v896_v33 }
 0x1a1   : > { %v1991_v45 = vpop.eup %1990  ;;  %v1280_v46 = vsel %vm2731_vm4, %v1983_v56, %v1276_v41  ;;  %2000 = vpow2.f32 %v1796_v31  ;;  %vm1293_vm8 = vweird.f32 %v1989_v40  ;;  %vm2755_vm11 = vcmp.eq.f32.partialorder %v1311_v42, 8.507059e+37 }
 0x1a2   : > { %v1993_v50 = vpop.eup %1992  ;;  %v1285_v48 = vsel %vm2705_vm1, %v1284_v11, %v1280_v46  ;;  %v1289_v51 = vsub.f32 1.0, %v1288_v43  ;;  %v2752_v52 = vadd.f32 1.0, %v1991_v45  ;;  %v1314_v54 = vor.u32 1.1754944e-38, %v1313_v39  ;;  %vm2769_vm10 = vmor %vm1292_vm3, %vm1293_vm8 }
 0x1a3   : > { %v1995_v19 = vpop.eup %1994  ;;  %1528 = vst [vmem:[%s2261_s29 + $0x80] sm:$0xff] %v1285_v48  ;;  %v2759_v55 = vadd.f32 1.0, %v1993_v50  ;;  %2002 = vpow2.f32 %v1797_v4  ;;  %vm2762_vm9 = vcmp.eq.f32.partialorder %v1326_v44, 8.507059e+37  ;;  %v1329_v60 = vor.u32 1.1754944e-38, %v1328_v47 }
 0x1a4   : > { %v1997_v57 = vpop.eup %1996  ;;  %v1290_v58 = vmul.f32 %v1989_v40, %v1289_v51  ;;  %v1303_v5 = vmul.f32 %v1995_v19, %v2720_v29  ;;  %2004 = vrcp.f32 %v2752_v52  ;;  %v1341_v62 = vand.u32 2147483647, %v2752_v52 }
 0x1a5   : > { %v1318_v10 = vmul.f32 %v1997_v57, %v2722_v30  ;;  %v2775_v34 = vmul.f32 -1.442695, %v897_v35  ;;  %vm1308_vm12 = vweird.f32 %v1995_v19  ;;  %2006 = vrcp.f32 %v2759_v55 }
 0x1a6   : > { %v1999_v63 = vpop.eup %1998  ;;  %v1291_v0 = vadd.f32 %v1989_v40, %v1290_v58  ;;  %v1304_v1 = vsub.f32 1.0, %v1303_v5  ;;  %vm1323_vm13 = vweird.f32 %v1997_v57  ;;  %v2778_v7 = vmul.f32 -1.442695, %v898_v37  ;;  %vm2791_vm15 = vmor %vm1307_vm6, %vm1308_vm12 }
 0x1a7   : > { %v2001_v3 = vpop.eup %2000  ;;  %v1319_v6 = vsub.f32 1.0, %v1318_v10  ;;  %v2781_v61 = vadd.f32 %v2294_v26, %v863_v49  ;;  %vm1337_vm14 = vweird.f32 %v2752_v52  ;;  %v1343_v11 = vand.u32 2147483648, %v2752_v52  ;;  %vm2806_vm2 = vmor %vm1322_vm7, %vm1323_vm13  ;;  %v2042_v10 = vld [vmem:[%s3032_s2] ss:$0 sm:$0xff] }
 0x1a8   : > { %v1295_v56 = vsel %vm2769_vm10, %v1989_v40, %v1291_v0  ;;  %v1305_v8 = vmul.f32 %v1995_v19, %v1304_v1  ;;  %vm2795_vm0 = vcmp.eq.f32.partialorder %v1341_v62, 8.507059e+37  ;;  %vm1352_vm1 = vweird.f32 %v2759_v55 }
 0x1a9   : > { %v2003_v12 = vpop.eup %2002  ;;  %v1300_v13 = vsel %vm2736_vm5, %v1299_v17, %v1295_v56  ;;  %v1320_v26 = vmul.f32 %v1997_v57, %v1319_v6  ;;  %v2800_v2 = vadd.f32 1.0, %v1999_v63  ;;  %v1356_v15 = vand.u32 2147483647, %v2759_v55  ;;  %v866_v63 = vld [vmem:[#allocation2 + $0x20] sm:$0xff] }
 0x1aa   : > { %v2005_v20 = vpop.eup %2004  ;;  %1529 = vst [vmem:[%s2261_s29 + $0x88] sm:$0xff] %v1300_v13  ;;  %v1306_v21 = vadd.f32 %v1995_v19, %v1305_v8  ;;  %v1358_v23 = vand.u32 2147483648, %v2759_v55  ;;  %v2812_v24 = vadd.f32 1.0, %v2001_v3  ;;  %v2816_v28 = vadd.f32 1.0, %v2003_v12 }
 0x1ab   : > { %v1321_v27 = vadd.f32 %v1997_v57, %v1320_v26  ;;  %v1333_v16 = vmul.f32 %v2005_v20, %v2752_v52  ;;  %2008 = vrcp.f32 %v2800_v2  ;;  %v2007_v29 = vpop.eup %2006  ;;  %vm1338_vm4 = vweird.f32 %v2005_v20 }
 0x1ac   : > { %v1310_v30 = vsel %vm2791_vm15, %v1995_v19, %v1306_v21  ;;  %v1371_v32 = vand.u32 2147483647, %v2800_v2  ;;  %v1373_v33 = vand.u32 2147483648, %v2800_v2  ;;  %v1348_v37 = vmul.f32 %v2007_v29, %v2759_v55  ;;  %vm2839_vm6 = vmor %vm1337_vm14, %vm1338_vm4  ;;  %v864_v19 = vld [vmem:[#allocation2 + $0xa0] sm:$0xff] }
 0x1ad   : > { %v1315_v35 = vsel %vm2755_vm11, %v1314_v54, %v1310_v30  ;;  %v1325_v36 = vsel %vm2806_vm2, %v1997_v57, %v1321_v27  ;;  %v1334_v31 = vsub.f32 1.0, %v1333_v16  ;;  %v1344_v25 = vor.u32 1.1754944e-38, %v1343_v11 }
 0x1ae   : > { %1530 = vst [vmem:[%s2261_s29 + $0x90] sm:$0xff] %v1315_v35  ;;  %v1330_v38 = vsel %vm2762_vm9, %v1329_v60, %v1325_v36  ;;  %vm2830_vm3 = vcmp.eq.f32.partialorder %v1356_v15, 8.507059e+37  ;;  %v1359_v40 = vor.u32 1.1754944e-38, %v1358_v23  ;;  %v1349_v42 = vsub.f32 1.0, %v1348_v37 }
 0x1af   : > { %1531 = vst [vmem:[%s2261_s29 + $0x98] sm:$0xff] %v1330_v38  ;;  %v1335_v41 = vmul.f32 %v2005_v20, %v1334_v31  ;;  %vm1353_vm5 = vweird.f32 %v2007_v29  ;;  %2010 = vrcp.f32 %v2812_v24  ;;  %vm1367_vm7 = vweird.f32 %v2800_v2 }
 0x1b0   : > { %vm2844_vm8 = vcmp.eq.f32.partialorder %v1371_v32, 8.507059e+37  ;;  %v1374_v44 = vor.u32 1.1754944e-38, %v1373_v33  ;;  %2012 = vrcp.f32 %v2816_v28  ;;  %v1350_v47 = vmul.f32 %v2007_v29, %v1349_v42  ;;  %vm2853_vm9 = vmor %vm1352_vm1, %vm1353_vm5 }
 0x1b1   : > { %v2009_v45 = vpop.eup %2008  ;;  %v1336_v46 = vadd.f32 %v2005_v20, %v1335_v41  ;;  %vm1382_vm11 = vweird.f32 %v2812_v24  ;;  %v1386_v4 = vand.u32 2147483647, %v2812_v24  ;;  %v1388_v51 = vand.u32 2147483648, %v2812_v24 }
 0x1b2   : > { %v1363_v48 = vmul.f32 %v2009_v45, %v2800_v2  ;;  %vm1397_vm10 = vweird.f32 %v2816_v28  ;;  %v1401_v52 = vand.u32 2147483647, %v2816_v28  ;;  %v1351_v57 = vadd.f32 %v2007_v29, %v1350_v47 }
 0x1b3   : > { %v1340_v54 = vsel %vm2839_vm6, %v2005_v20, %v1336_v46  ;;  %vm1368_vm12 = vweird.f32 %v2009_v45  ;;  %v1403_v55 = vand.u32 2147483648, %v2816_v28  ;;  %2014 = vpow2.f32 %v2775_v34 }
 0x1b4   : > { %v1345_v58 = vsel %vm2795_vm0, %v1344_v25, %v1340_v54  ;;  %v1364_v5 = vsub.f32 1.0, %v1363_v48  ;;  %v1800_v59 = vmul.f32 -1.442695, %v2781_v61  ;;  %v1355_v9 = vsel %vm2853_vm9, %v2007_v29, %v1351_v57  ;;  %v867_v61 = vld [vmem:[#allocation2 + $0x98] sm:$0xff]  ;;  %vm2886_vm14 = vmor %vm1367_vm7, %vm1368_vm12 }
 0x1b5   : > { %v2011_v49 = vpop.eup %2010  ;;  %1532 = vst [vmem:[%s2261_s29 + $0xa0] sm:$0xff] %v1345_v58  ;;  %2016 = vpow2.f32 %v2778_v7  ;;  %v900_v60 = vadd.f32 %v2042_v10, %v864_v19  ;;  %v901_v62 = vadd.f32 %v2042_v10, %v865_v53  ;;  %v1360_v34 = vsel %vm2830_vm3, %v1359_v40, %v1355_v9 }
 0x1b6   : > { %v2013_v0 = vpop.eup %2012  ;;  %v1365_v1 = vmul.f32 %v2009_v45, %v1364_v5  ;;  %v1378_v3 = vmul.f32 %v2011_v49, %v2812_v24  ;;  %vm2878_vm13 = vcmp.eq.f32.partialorder %v1386_v4, 8.507059e+37  ;;  %1533 = vst [vmem:[%s2261_s29 + $0xa8] sm:$0xff] %v1360_v34  ;;  %vm1383_vm15 = vweird.f32 %v2011_v49 }
 0x1b7   : > { %v1393_v56 = vmul.f32 %v2013_v0, %v2816_v28  ;;  %2018 = vpow2.f32 %v1800_v59  ;;  %v1801_v8 = vmul.f32 -1.442695, %v900_v60  ;;  %v1802_v13 = vmul.f32 -1.442695, %v901_v62  ;;  %vm2898_vm1 = vmor %vm1382_vm11, %vm1383_vm15 }
 0x1b8   : > { %v1366_v11 = vadd.f32 %v2009_v45, %v1365_v1  ;;  %v1379_v12 = vsub.f32 1.0, %v1378_v3  ;;  %v902_v18 = vadd.f32 %v2042_v10, %v866_v63  ;;  %vm1398_vm0 = vweird.f32 %v2013_v0 }
 0x1b9   : > { %v1394_v26 = vsub.f32 1.0, %v1393_v56  ;;  %2020 = vpow2.f32 %v1801_v8  ;;  %v903_v14 = vadd.f32 %v2042_v10, %v867_v61  ;;  %v2015_v20 = vpop.eup %2014  ;;  %v1389_v16 = vor.u32 1.1754944e-38, %v1388_v51  ;;  %vm2906_vm2 = vmor %vm1397_vm10, %vm1398_vm0 }
 0x1ba   : > { %v1370_v2 = vsel %vm2886_vm14, %v2009_v45, %v1366_v11  ;;  %v1380_v21 = vmul.f32 %v2011_v49, %v1379_v12  ;;  %2022 = vpow2.f32 %v1802_v13  ;;  %v1803_v22 = vmul.f32 -1.442695, %v902_v18 }
 0x1bb   : > { %v2017_v15 = vpop.eup %2016  ;;  %v1375_v23 = vsel %vm2844_vm8, %v1374_v44, %v1370_v2  ;;  %v1395_v29 = vmul.f32 %v2013_v0, %v1394_v26  ;;  %v1025_v30 = vadd.f32 1.0, %v2015_v20  ;;  %v1404_v35 = vor.u32 1.1754944e-38, %v1403_v55 }
 0x1bc   : > { %1534 = vst [vmem:[%s2261_s29 + $0xb0] sm:$0xff] %v1375_v23  ;;  %v1381_v32 = vadd.f32 %v2011_v49, %v1380_v21  ;;  %v1026_v36 = vadd.f32 1.0, %v2017_v15  ;;  %2024 = vpow2.f32 %v1803_v22  ;;  %vm1402_vm4 = vcmp.eq.f32.partialorder %v1401_v52, 8.507059e+37 }
 0x1bd   : > { %v2019_v24 = vpop.eup %2018  ;;  %v1396_v31 = vadd.f32 %v2013_v0, %v1395_v29  ;;  %2026 = vrcp.f32 %v1025_v30  ;;  %v1804_v37 = vmul.f32 -1.442695, %v903_v14  ;;  %v1416_v42 = vand.u32 2147483647, %v1025_v30 }
 0x1be   : > { %v1385_v38 = vsel %vm2898_vm1, %v2011_v49, %v1381_v32  ;;  %2028 = vrcp.f32 %v1026_v36  ;;  %v1418_v39 = vand.u32 2147483648, %v1025_v30  ;;  %v1027_v43 = vadd.f32 1.0, %v2019_v24 }
 0x1bf   : > { %v2021_v25 = vpop.eup %2020  ;;  %v1390_v28 = vsel %vm2878_vm13, %v1389_v16, %v1385_v38  ;;  %v1400_v17 = vsel %vm2906_vm2, %v2013_v0, %v1396_v31  ;;  %v1431_v44 = vand.u32 2147483647, %v1026_v36  ;;  %2030 = vpow2.f32 %v1804_v37 }
 0x1c0   : > { %v2023_v40 = vpop.eup %2022  ;;  %1535 = vst [vmem:[%s2261_s29 + $0xb8] sm:$0xff] %v1390_v28  ;;  %v1405_v41 = vsel %vm1402_vm4, %v1404_v35, %v1400_v17  ;;  %v2918_v45 = vadd.f32 1.0, %v2021_v25  ;;  %2032 = vrcp.f32 %v1027_v43  ;;  %vm1412_vm3 = vweird.f32 %v1025_v30 }
 0x1c1   : > { %1536 = vst [vmem:[%s2261_s29 + $0xc0] sm:$0xff] %v1405_v41  ;;  %v2920_v47 = vadd.f32 1.0, %v2023_v40  ;;  %v1433_v50 = vand.u32 2147483648, %v1026_v36  ;;  %vm2923_vm5 = vcmp.eq.f32.partialorder %v1416_v42, 8.507059e+37  ;;  %v1419_v19 = vor.u32 1.1754944e-38, %v1418_v39 }
 0x1c2   : > { %v2025_v46 = vpop.eup %2024  ;;  %2034 = vrcp.f32 %v2918_v45  ;;  %vm1427_vm6 = vweird.f32 %v1026_v36  ;;  %vm2927_vm7 = vcmp.eq.f32.partialorder %v1431_v44, 8.507059e+37  ;;  %v1446_v57 = vand.u32 2147483647, %v1027_v43 }
 0x1c3   : > { %v2027_v4 = vpop.eup %2026  ;;  %v1448_v55 = vand.u32 2147483648, %v1027_v43  ;;  %v1463_v5 = vand.u32 2147483648, %v2918_v45  ;;  %2036 = vrcp.f32 %v2920_v47  ;;  %v1434_v9 = vor.u32 1.1754944e-38, %v1433_v50 }
 0x1c4   : > { %v2029_v48 = vpop.eup %2028  ;;  %v1408_v51 = vmul.f32 %v2027_v4, %v1025_v30  ;;  %vm1413_vm8 = vweird.f32 %v2027_v4  ;;  %v2933_v10 = vadd.f32 1.0, %v2025_v46  ;;  %vm1442_vm9 = vweird.f32 %v1027_v43 }
 0x1c5   : > { %v1423_v53 = vmul.f32 %v2029_v48, %v1026_v36  ;;  %v2031_v59 = vpop.eup %2030  ;;  %vm1428_vm11 = vweird.f32 %v2029_v48  ;;  %vm1457_vm10 = vweird.f32 %v2918_v45  ;;  %v1461_v63 = vand.u32 2147483647, %v2918_v45  ;;  %vm2938_vm12 = vmor %vm1412_vm3, %vm1413_vm8 }
 0x1c6   : > { %v1409_v58 = vsub.f32 1.0, %v1408_v51  ;;  %v2033_v60 = vpop.eup %2032  ;;  %vm2942_vm13 = vcmp.eq.f32.partialorder %v1446_v57, 8.507059e+37  ;;  %v1449_v61 = vor.u32 1.1754944e-38, %v1448_v55  ;;  %vm2948_vm14 = vmor %vm1427_vm6, %vm1428_vm11  ;;  %v1464_v11 = vor.u32 1.1754944e-38, %v1463_v5 }
 0x1c7   : > { %v1424_v49 = vsub.f32 1.0, %v1423_v53  ;;  %v1438_v3 = vmul.f32 %v2033_v60, %v1027_v43  ;;  %v2953_v12 = vadd.f32 1.0, %v2031_v59  ;;  %vm1443_vm15 = vweird.f32 %v2033_v60 }
 0x1c8   : > { %v1410_v62 = vmul.f32 %v2027_v4, %v1409_v58  ;;  %v2035_v0 = vpop.eup %2034  ;;  %2038 = vrcp.f32 %v2933_v10  ;;  %v1476_v2 = vand.u32 2147483647, %v2920_v47  ;;  %vm2968_vm1 = vmor %vm1442_vm9, %vm1443_vm15  ;;  %vm1472_vm2 = vweird.f32 %v2920_v47 }
 0x1c9   : > { %v1425_v1 = vmul.f32 %v2029_v48, %v1424_v49  ;;  %v1453_v8 = vmul.f32 %v2035_v0, %v2918_v45  ;;  %v1439_v18 = vsub.f32 1.0, %v1438_v3  ;;  %v2037_v26 = vpop.eup %2036  ;;  %vm1458_vm0 = vweird.f32 %v2035_v0 }
 0x1ca   : > { %v1411_v7 = vadd.f32 %v2027_v4, %v1410_v62  ;;  %v1468_v23 = vmul.f32 %v2037_v26, %v2920_v47  ;;  %v1478_v30 = vand.u32 2147483648, %v2920_v47  ;;  %vm2977_vm4 = vmor %vm1457_vm10, %vm1458_vm0  ;;  %vm1473_vm3 = vweird.f32 %v2037_v26 }
 0x1cb   : > { %v1426_v13 = vadd.f32 %v2029_v48, %v1425_v1  ;;  %v1454_v20 = vsub.f32 1.0, %v1453_v8  ;;  %v1440_v15 = vmul.f32 %v2033_v60, %v1439_v18  ;;  %2040 = vrcp.f32 %v2953_v12 }
 0x1cc   : > { %v1415_v14 = vsel %vm2938_vm12, %v2027_v4, %v1411_v7  ;;  %v1469_v35 = vsub.f32 1.0, %v1468_v23  ;;  %vm2984_vm6 = vcmp.eq.f32.partialorder %v1476_v2, 8.507059e+37  ;;  %v1479_v17 = vor.u32 1.1754944e-38, %v1478_v30 }
 0x1cd   : > { %v1420_v21 = vsel %vm2923_vm5, %v1419_v19, %v1415_v14  ;;  %v1430_v22 = vsel %vm2948_vm14, %v2029_v48, %v1426_v13  ;;  %v1455_v29 = vmul.f32 %v2035_v0, %v1454_v20  ;;  %v1441_v32 = vadd.f32 %v2033_v60, %v1440_v15 }
 0x1ce   : > { %1537 = vst [vmem:[%s2261_s29 + $0xc8] sm:$0xff] %v1420_v21  ;;  %v1435_v27 = vsel %vm2927_vm7, %v1434_v9, %v1430_v22  ;;  %vm1462_vm5 = vcmp.eq.f32.partialorder %v1461_v63, 8.507059e+37  ;;  %v2039_v24 = vpop.eup %2038  ;;  %v1470_v37 = vmul.f32 %v2037_v26, %v1469_v35  ;;  %vm1474_vm7 = vmor %vm1472_vm2, %vm1473_vm3  ;;  %v1491_v39 = vand.u32 2147483647, %v2933_v10 }
 0x1cf   : > { %1538 = vst [vmem:[%s2261_s29 + $0xd0] sm:$0xff] %v1435_v27  ;;  %v1456_v36 = vadd.f32 %v2035_v0, %v1455_v29  ;;  %v1445_v31 = vsel %vm2968_vm1, %v2033_v60, %v1441_v32  ;;  %v1483_v40 = vmul.f32 %v2039_v24, %v2933_v10  ;;  %v1493_v43 = vand.u32 2147483648, %v2933_v10 }
 0x1d0   : > { %v1450_v25 = vsel %vm2942_vm13, %v1449_v61, %v1445_v31  ;;  %v1471_v42 = vadd.f32 %v2037_v26, %v1470_v37  ;;  %vm1487_vm8 = vweird.f32 %v2933_v10  ;;  %vm1488_vm11 = vweird.f32 %v2039_v24 }
 0x1d1   : > { %v1460_v28 = vsel %vm2977_vm4, %v2035_v0, %v1456_v36  ;;  %1539 = vst [vmem:[%s2261_s29 + $0xd8] sm:$0xff] %v1450_v25  ;;  %v1484_v44 = vsub.f32 1.0, %v1483_v40  ;;  %v2041_v45 = vpop.eup %2040  ;;  %vm1489_vm9 = vmor %vm1487_vm8, %vm1488_vm11  ;;  %vm1492_vm10 = vcmp.eq.f32.partialorder %v1491_v39, 8.507059e+37  ;;  %v1494_v48 = vor.u32 1.1754944e-38, %v1493_v43 }
 0x1d2   : > { %v1465_v41 = vsel %vm1462_vm5, %v1464_v11, %v1460_v28  ;;  %v1475_v46 = vsel %vm1474_vm7, %v2037_v26, %v1471_v42  ;;  %v1498_v50 = vmul.f32 %v2041_v45, %v2953_v12  ;;  %vm1502_vm12 = vweird.f32 %v2953_v12 }
 0x1d3   : > { %1540 = vst [vmem:[%s2261_s29 + $0xe0] sm:$0xff] %v1465_v41  ;;  %v1480_v47 = vsel %vm2984_vm6, %v1479_v17, %v1475_v46  ;;  %v1485_v4 = vmul.f32 %v2039_v24, %v1484_v44  ;;  %v1508_v51 = vand.u32 2147483648, %v2953_v12  ;;  %vm1503_vm13 = vweird.f32 %v2041_v45 }
 0x1d4   : > { %1541 = vst [vmem:[%s2261_s29 + $0xe8] sm:$0xff] %v1480_v47  ;;  %v1499_v19 = vsub.f32 1.0, %v1498_v50  ;;  %v1506_v53 = vand.u32 2147483647, %v2953_v12  ;;  %vm1504_vm14 = vmor %vm1502_vm12, %vm1503_vm13 }
 0x1d5   : > { %v1486_v52 = vadd.f32 %v2039_v24, %v1485_v4  ;;  %v1509_v58 = vor.u32 1.1754944e-38, %v1508_v51 }
 0x1d6   : > { %v1500_v57 = vmul.f32 %v2041_v45, %v1499_v19  ;;  %vm1507_vm15 = vcmp.eq.f32.partialorder %v1506_v53, 8.507059e+37 }
 0x1d7   : > { %v1490_v54 = vsel %vm1489_vm9, %v2039_v24, %v1486_v52 }
 0x1d8   : > { %v1495_v55 = vsel %vm1492_vm10, %v1494_v48, %v1490_v54  ;;  %v1501_v5 = vadd.f32 %v2041_v45, %v1500_v57 }
 0x1d9   : > { %1542 = vst [vmem:[%s2261_s29 + $0xf0] sm:$0xff] %v1495_v55 }
 0x1da   : > { %v1505_v59 = vsel %vm1504_vm14, %v2041_v45, %v1501_v5 }
 0x1db   : > { %v1510_v49 = vsel %vm1507_vm15, %v1509_v58, %v1505_v59 }
 0x1dc   : > { %1543 = vst [vmem:[%s2261_s29 + $0xf8] sm:$0xff] %v1510_v49 }
 0x1dd PF: > { %s13_s18 = sadd.s32 1, %s2097_s18   ;;  %s3147_s12 = smov %s2077_s13 }
 0x1de   : > { %p10_p0 = scmp.ge.s32.totalorder %s13_s18, 26   ;;  %s3148_s13 = smov %s2171_s25 }
 0x1df   : > { %s3149_s14 = smov %s2089_s16  ;;  %s3150_s15 = smov %s2093_s17 }
 0x1e0   : > { %s3151_s16 = smov %s3154_s19  ;;  %s3152_s17 = smov %s3158_s20 }
 0x1e1   :  { %12 = sbr.rel (!%p10_p0) target bundleno = 4 (0x4), region = 122 }

// kernel: dummy_model_forward.10
= control target key start
LH: loop header
LB: loop body
LE: loop exit
PB: predicated region body
PF: predicated region fallthrough
CT: control target
= control target key end

     0   :  { %s1843_s12 = smov 0   ;;  %s1845_s13 = smov 0   ;;  %s2363_s0 = inlined_call_operand.vmem [shape: bf16[768,128], index: 0, kind: input, shape index: {}]   ;;  %s2364_s1 = inlined_call_operand.vmem [shape: bf16[128,128], index: 1, kind: input, shape index: {}]   ;;  %s2365_s2 = inlined_call_operand.vmem [shape: f32[1,128], index: 2, kind: input, shape index: {}]   ;;  %s2366_s3 = inlined_call_operand.vmem [shape: f32[768,128], index: 3, kind: output, shape index: {}]  }
   0x1   :  { %s1847_s14 = smov 0  }
   0x2 LB: > { %s32_s2 = sadd.s32 1, %s1817_s13  ;;  %p1464_p0 = scmp.ge.s32.totalorder %s1821_s14, 1  ;;  %s1821_s14 = sphi %s1847_s14, %s13_s14   ;;  %s1817_s13 = sphi %s1845_s13, %s2414_s13   ;;  %s1813_s12 = sphi %s1843_s12, %s2413_s12  }
   0x3   : > { %p34_p1 = scmp.ge.s32.totalorder %s32_s2, 3  ;;  %p188_p2 = scmp.lt.s32.totalorder %s1821_s14, 4 }
   0x5   : > { %s2416_s2 = smov (%p34_p1, %s32_s2), 0  ;;  %p189_p3 = pnand %p1464_p0, %p188_p2 }
   0x6   : > { %s1465_s23 = sshll.u32 (!%p189_p3), %s1813_s12, 5 }
   0x7   : > { %192 = sbr.rel (%p189_p3) target bundleno = 312 (0x138), region = 32  ;;  %p230_p4 = scmp.lt.s32.totalorder (!%p189_p3), %s1465_s23, 95 }
   0xc   : > { %v1622_v0 = vld [vmem:[%s2364_s1 + $0x38] sm:$0xff]  ;;  %v1621_v1 = vld [vmem:[%s2364_s1 + $0x30] sm:$0xff]  ;;  %v1620_v2 = vld [vmem:[%s2364_s1 + $0x28] sm:$0xff]  ;;  %s2418_s23 = smov (!%p230_p4, %s1465_s23), 95 }
   0xd   : > { %519 = vmatpush.bf16.msra.mxu0 %v1622_v0  ;;  %1623 = vmatpush.bf16.msra.mxu1 %v1622_v0  ;;  %v1619_v3 = vld [vmem:[%s2364_s1 + $0x20] sm:$0xff]  ;;  %v1618_v4 = vld [vmem:[%s2364_s1 + $0x18] sm:$0xff]  ;;  %v1617_v5 = vld [vmem:[%s2364_s1 + $0x10] sm:$0xff]  ;;  %s1466_s30 = sshll.u32 %s2418_s23, 2  ;;  %s1468_s9 = sshll.u32 %s2418_s23, 3 }
   0xe   : > { %1624 = vmatpush.bf16.msra.mxu2 %v1622_v0  ;;  %1625 = vmatpush.bf16.msra.mxu3 %v1622_v0  ;;  %v1616_v6 = vld [vmem:[%s2364_s1 + $0x8] sm:$0xff]  ;;  %v1615_v7 = vld [vmem:[%s2364_s1] sm:$0xff]  ;;  %s1894_s8 = scalar_lea.vmem %s2363_s0, %s1466_s30  ;;  %s1946_s12 = scalar_lea.vmem %s2366_s3, %s1468_s9 }
   0xf   : > { %v1599_v8 = vld [vmem:[%s1894_s8] sm:$0xff]  ;;  %v1600_v12 = vld [vmem:[%s1894_s8 + $0x8] sm:$0xff]  ;;  %v1601_v16 = vld [vmem:[%s1894_s8 + $0x10] sm:$0xff] }
  0x10   : > { %v1603_v9 = vld [vmem:[%s1894_s8 + $0x20] sm:$0xff]  ;;  %v1604_v13 = vld [vmem:[%s1894_s8 + $0x28] sm:$0xff]  ;;  %v1605_v17 = vld [vmem:[%s1894_s8 + $0x30] sm:$0xff] }
  0x11   : > { %520 = vmatpush.bf16.msra.mxu0 %v1621_v1  ;;  %1626 = vmatpush.bf16.msra.mxu1 %v1621_v1  ;;  %v1607_v10 = vld [vmem:[%s1894_s8 + $0x40] sm:$0xff]  ;;  %v1608_v14 = vld [vmem:[%s1894_s8 + $0x48] sm:$0xff]  ;;  %v1609_v18 = vld [vmem:[%s1894_s8 + $0x50] sm:$0xff] }
  0x12   : > { %1627 = vmatpush.bf16.msra.mxu2 %v1621_v1  ;;  %1628 = vmatpush.bf16.msra.mxu3 %v1621_v1  ;;  %v1611_v11 = vld [vmem:[%s1894_s8 + $0x60] sm:$0xff]  ;;  %v1612_v15 = vld [vmem:[%s1894_s8 + $0x68] sm:$0xff]  ;;  %v1613_v19 = vld [vmem:[%s1894_s8 + $0x70] sm:$0xff] }
  0x13   : > { %v1602_v20 = vld [vmem:[%s1894_s8 + $0x18] sm:$0xff] }
  0x14   : > { %v1606_v21 = vld [vmem:[%s1894_s8 + $0x38] sm:$0xff] }
  0x15   : > { %521 = vmatpush.bf16.msra.mxu0 %v1620_v2  ;;  %1629 = vmatpush.bf16.msra.mxu1 %v1620_v2  ;;  %v1610_v22 = vld [vmem:[%s1894_s8 + $0x58] sm:$0xff] }
  0x16   : > { %1630 = vmatpush.bf16.msra.mxu2 %v1620_v2  ;;  %1631 = vmatpush.bf16.msra.mxu3 %v1620_v2  ;;  %v1614_v23 = vld [vmem:[%s1894_s8 + $0x78] sm:$0xff] }
  0x19   : > { %522 = vmatpush.bf16.msra.mxu0 %v1619_v3  ;;  %1632 = vmatpush.bf16.msra.mxu1 %v1619_v3 }
  0x1a   : > { %1633 = vmatpush.bf16.msra.mxu2 %v1619_v3  ;;  %1634 = vmatpush.bf16.msra.mxu3 %v1619_v3 }
  0x1d   : > { %523 = vmatpush.bf16.msra.mxu0 %v1618_v4  ;;  %1635 = vmatpush.bf16.msra.mxu1 %v1618_v4 }
  0x1e   : > { %1636 = vmatpush.bf16.msra.mxu2 %v1618_v4  ;;  %1637 = vmatpush.bf16.msra.mxu3 %v1618_v4 }
  0x21   : > { %524 = vmatpush.bf16.msra.mxu0 %v1617_v5  ;;  %1638 = vmatpush.bf16.msra.mxu1 %v1617_v5 }
  0x22   : > { %1639 = vmatpush.bf16.msra.mxu2 %v1617_v5  ;;  %1640 = vmatpush.bf16.msra.mxu3 %v1617_v5 }
  0x25   : > { %525 = vmatpush.bf16.msra.mxu0 %v1616_v6  ;;  %1641 = vmatpush.bf16.msra.mxu1 %v1616_v6 }
  0x26   : > { %1642 = vmatpush.bf16.msra.mxu2 %v1616_v6  ;;  %1643 = vmatpush.bf16.msra.mxu3 %v1616_v6 }
  0x29   : > { %526 = vmatpush.bf16.msra.mxu0 %v1615_v7  ;;  %1644 = vmatpush.bf16.msra.mxu1 %v1615_v7 }
  0x2a   : > { %1645 = vmatpush.bf16.msra.mxu2 %v1615_v7  ;;  %1646 = vmatpush.bf16.msra.mxu3 %v1615_v7 }
  0x2c   : > { %527 = vmatmul.bf16.vlgmr.msra.gmra.mxu0 %v1599_v8  ;;  %547 = vmatmul.bf16.vlgmr.msra.gmra.mxu1 %v1603_v9 }
  0x2d   : > { %567 = vmatmul.bf16.vlgmr.msra.gmra.mxu2 %v1607_v10  ;;  %587 = vmatmul.bf16.vlgmr.msra.gmra.mxu3 %v1611_v11 }
  0x3c   : > { %532 = vmatmul.bf16.gmra.mxu0 %v1600_v12  ;;  %552 = vmatmul.bf16.gmra.mxu1 %v1604_v13 }
  0x3d   : > { %572 = vmatmul.bf16.gmra.mxu2 %v1608_v14  ;;  %592 = vmatmul.bf16.gmra.mxu3 %v1612_v15 }
  0x4c   : > { %537 = vmatmul.bf16.gmra.mxu0 %v1601_v16  ;;  %557 = vmatmul.bf16.gmra.mxu1 %v1605_v17 }
  0x4d   : > { %577 = vmatmul.bf16.gmra.mxu2 %v1609_v18  ;;  %597 = vmatmul.bf16.gmra.mxu3 %v1613_v19 }
  0x5c   : > { %542 = vmatmul.bf16.gmra.mxu0 %v1602_v20  ;;  %562 = vmatmul.bf16.gmra.mxu1 %v1606_v21 }
  0x5d   : > { %582 = vmatmul.bf16.gmra.mxu2 %v1610_v22  ;;  %602 = vmatmul.bf16.gmra.mxu3 %v1614_v23 }
  0xa9   : > { %v528_v24 = vpop.f32.mrf.mxu0  ;;  %v548_v25 = vpop.f32.mrf.mxu1 }
  0xaa   : > { %v1565_v26 = vmul.f32 -1.442695, %v528_v24  ;;  %v1573_v27 = vmul.f32 -1.442695, %v548_v25 }
  0xac   : > { %1671 = vpow2.f32 %v1565_v26 }
  0xad   : > { %1673 = vpow2.f32 %v1573_v27 }
  0xb0   : > { %v568_v28 = vpop.f32.mrf.mxu2  ;;  %v588_v29 = vpop.f32.mrf.mxu3 }
  0xb1   : > { %v1581_v30 = vmul.f32 -1.442695, %v568_v28  ;;  %v1589_v31 = vmul.f32 -1.442695, %v588_v29  ;;  %v530_v32 = vpop.f32.mrf.mxu0  ;;  %v550_v33 = vpop.f32.mrf.mxu1 }
  0xb2   : > { %v1672_v34 = vpop.eup %1671  ;;  %v1566_v37 = vmul.f32 -1.442695, %v530_v32  ;;  %v1574_v39 = vmul.f32 -1.442695, %v550_v33 }
  0xb3   : > { %v1674_v35 = vpop.eup %1673  ;;  %v803_v36 = vadd.f32 1.0, %v1672_v34  ;;  %1675 = vpow2.f32 %v1581_v30 }
  0xb4   : > { %v1912_v38 = vadd.f32 1.0, %v1674_v35  ;;  %1677 = vpow2.f32 %v1589_v31 }
  0xb5   : > { %1679 = vrcp.f32 %v803_v36  ;;  %v844_v42 = vand.u32 2147483647, %v803_v36  ;;  %v846_v45 = vand.u32 2147483648, %v803_v36  ;;  %vm840_vm0 = vweird.f32 %v803_v36 }
  0xb6   : > { %1681 = vrcp.f32 %v1912_v38  ;;  %v964_v46 = vand.u32 2147483647, %v1912_v38  ;;  %v966_v50 = vand.u32 2147483648, %v1912_v38  ;;  %vm960_vm1 = vweird.f32 %v1912_v38 }
  0xb7   : > { %1683 = vpow2.f32 %v1566_v37  ;;  %vm1923_vm2 = vcmp.eq.f32.partialorder %v844_v42, 8.507059e+37  ;;  %v847_v61 = vor.u32 1.1754944e-38, %v846_v45 }
  0xb8   : > { %1685 = vpow2.f32 %v1574_v39  ;;  %v570_v40 = vpop.f32.mrf.mxu2  ;;  %v590_v48 = vpop.f32.mrf.mxu3  ;;  %vm1928_vm3 = vcmp.eq.f32.partialorder %v964_v46, 8.507059e+37  ;;  %v967_v0 = vor.u32 1.1754944e-38, %v966_v50 }
  0xb9   : > { %v1676_v41 = vpop.eup %1675  ;;  %v1582_v43 = vmul.f32 -1.442695, %v570_v40  ;;  %v533_v54 = vpop.f32.mrf.mxu0  ;;  %v1590_v58 = vmul.f32 -1.442695, %v590_v48 }
  0xba   : > { %v1678_v44 = vpop.eup %1677  ;;  %v1916_v47 = vadd.f32 1.0, %v1676_v41  ;;  %v1567_v1 = vmul.f32 -1.442695, %v533_v54  ;;  %v553_v6 = vpop.f32.mrf.mxu1 }
  0xbb   : > { %v1680_v49 = vpop.eup %1679  ;;  %v1919_v51 = vadd.f32 1.0, %v1678_v44  ;;  %v1952_v16 = vmul.f32 -1.442695, %v553_v6 }
  0xbc   : > { %v1682_v52 = vpop.eup %1681  ;;  %v836_v53 = vmul.f32 %v1680_v49, %v803_v36  ;;  %1687 = vrcp.f32 %v1916_v47  ;;  %vm841_vm4 = vweird.f32 %v1680_v49  ;;  %v1084_v3 = vand.u32 2147483647, %v1916_v47 }
  0xbd   : > { %v1684_v55 = vpop.eup %1683  ;;  %v956_v57 = vmul.f32 %v1682_v52, %v1912_v38  ;;  %1689 = vpow2.f32 %v1582_v43  ;;  %vm961_vm5 = vweird.f32 %v1682_v52  ;;  %v1086_v8 = vand.u32 2147483648, %v1916_v47  ;;  %vm842_vm6 = vmor %vm840_vm0, %vm841_vm4 }
  0xbe   : > { %v1686_v59 = vpop.eup %1685  ;;  %v837_v60 = vsub.f32 1.0, %v836_v53  ;;  %1691 = vrcp.f32 %v1919_v51  ;;  %v1935_v4 = vadd.f32 1.0, %v1684_v55  ;;  %v1204_v11 = vand.u32 2147483647, %v1919_v51  ;;  %vm962_vm8 = vmor %vm960_vm1, %vm961_vm5 }
  0xbf   : > { %v957_v63 = vsub.f32 1.0, %v956_v57  ;;  %v1937_v5 = vadd.f32 1.0, %v1686_v59  ;;  %1693 = vpow2.f32 %v1590_v58  ;;  %v1206_v12 = vand.u32 2147483648, %v1919_v51 }
  0xc0   : > { %v838_v2 = vmul.f32 %v1680_v49, %v837_v60  ;;  %1695 = vrcp.f32 %v1935_v4  ;;  %vm1080_vm7 = vweird.f32 %v1916_v47  ;;  %vm1957_vm9 = vcmp.eq.f32.partialorder %v1084_v3, 8.507059e+37  ;;  %v573_v24 = vpop.f32.mrf.mxu2  ;;  %v593_v54 = vpop.f32.mrf.mxu3 }
  0xc1   : > { %v958_v7 = vmul.f32 %v1682_v52, %v957_v63  ;;  %vm1200_vm10 = vweird.f32 %v1919_v51  ;;  %1697 = vrcp.f32 %v1937_v5  ;;  %v1087_v26 = vor.u32 1.1754944e-38, %v1086_v8 }
  0xc2   : > { %v1688_v9 = vpop.eup %1687  ;;  %v839_v10 = vadd.f32 %v1680_v49, %v838_v2  ;;  %vm1969_vm11 = vcmp.eq.f32.partialorder %v1204_v11, 8.507059e+37  ;;  %v1207_v28 = vor.u32 1.1754944e-38, %v1206_v12  ;;  %v859_v34 = vand.u32 2147483647, %v1935_v4 }
  0xc3   : > { %v1690_v13 = vpop.eup %1689  ;;  %v959_v14 = vadd.f32 %v1682_v52, %v958_v7  ;;  %v1076_v15 = vmul.f32 %v1688_v9, %v1916_v47  ;;  %vm1081_vm12 = vweird.f32 %v1688_v9  ;;  %1699 = vpow2.f32 %v1567_v1  ;;  %v555_v7 = vpop.f32.mrf.mxu1 }
  0xc4   : > { %v1692_v17 = vpop.eup %1691  ;;  %v843_v18 = vsel %vm842_vm6, %v1680_v49, %v839_v10  ;;  %v1974_v32 = vadd.f32 1.0, %v1690_v13  ;;  %v1583_v35 = vmul.f32 -1.442695, %v573_v24  ;;  %vm1082_vm14 = vmor %vm1080_vm7, %vm1081_vm12  ;;  %vm855_vm15 = vweird.f32 %v1935_v4 }
  0xc5   : > { %v848_v20 = vsel %vm1923_vm2, %v847_v61, %v843_v18  ;;  %v963_v21 = vsel %vm962_vm8, %v1682_v52, %v959_v14  ;;  %v1077_v22 = vsub.f32 1.0, %v1076_v15  ;;  %v1196_v23 = vmul.f32 %v1692_v17, %v1919_v51  ;;  %v1694_v29 = vpop.eup %1693  ;;  %v535_v61 = vpop.f32.mrf.mxu0 }
  0xc6   : > { %1315 = vst [vmem:[%s1946_s12] sm:$0xff] %v848_v20  ;;  %v968_v25 = vsel %vm1928_vm3, %v967_v0, %v963_v21  ;;  %v1696_v33 = vpop.eup %1695  ;;  %vm1201_vm13 = vweird.f32 %v1692_v17  ;;  %v1978_v39 = vadd.f32 1.0, %v1694_v29  ;;  %v861_v41 = vand.u32 2147483648, %v1935_v4 }
  0xc7   : > { %1323 = vst [vmem:[%s1946_s12 + $0x40] sm:$0xff] %v968_v25  ;;  %v1078_v30 = vmul.f32 %v1688_v9, %v1077_v22  ;;  %v1197_v31 = vsub.f32 1.0, %v1196_v23  ;;  %v851_v38 = vmul.f32 %v1696_v33, %v1935_v4  ;;  %v1698_v40 = vpop.eup %1697  ;;  %v979_v42 = vand.u32 2147483647, %v1937_v5  ;;  %vm1202_vm0 = vmor %vm1200_vm10, %vm1201_vm13 }
  0xc8   : > { %1701 = vrcp.f32 %v1974_v32  ;;  %v971_v46 = vmul.f32 %v1698_v40, %v1937_v5  ;;  %vm856_vm1 = vweird.f32 %v1696_v33  ;;  %vm1992_vm2 = vcmp.eq.f32.partialorder %v859_v34, 8.507059e+37  ;;  %v575_v10 = vpop.f32.mrf.mxu2 }
  0xc9   : > { %v1079_v36 = vadd.f32 %v1688_v9, %v1078_v30  ;;  %v1198_v37 = vmul.f32 %v1692_v17, %v1197_v31  ;;  %v852_v45 = vsub.f32 1.0, %v851_v38  ;;  %v981_v49 = vand.u32 2147483648, %v1937_v5  ;;  %v1700_v55 = vpop.eup %1699  ;;  %vm857_vm6 = vmor %vm855_vm15, %vm856_vm1  ;;  %v595_v30 = vpop.f32.mrf.mxu3 }
  0xca   : > { %v972_v53 = vsub.f32 1.0, %v971_v46  ;;  %1703 = vrcp.f32 %v1978_v39  ;;  %v862_v56 = vor.u32 1.1754944e-38, %v861_v41  ;;  %vm975_vm3 = vweird.f32 %v1937_v5 }
  0xcb   : > { %v1083_v43 = vsel %vm1082_vm14, %v1688_v9, %v1079_v36  ;;  %v1199_v44 = vadd.f32 %v1692_v17, %v1198_v37  ;;  %v853_v52 = vmul.f32 %v1696_v33, %v852_v45  ;;  %vm2002_vm4 = vcmp.eq.f32.partialorder %v979_v42, 8.507059e+37 }
  0xcc   : > { %v1088_v48 = vsel %vm1957_vm9, %v1087_v26, %v1083_v43  ;;  %v973_v59 = vmul.f32 %v1698_v40, %v972_v53  ;;  %vm976_vm5 = vweird.f32 %v1698_v40  ;;  %v2007_v60 = vadd.f32 1.0, %v1700_v55 }
  0xcd   : > { %1331 = vst [vmem:[%s1946_s12 + $0x80] sm:$0xff] %v1088_v48  ;;  %v1203_v50 = vsel %vm1202_vm0, %v1692_v17, %v1199_v44  ;;  %v854_v58 = vadd.f32 %v1696_v33, %v853_v52  ;;  %v982_v63 = vor.u32 1.1754944e-38, %v981_v49  ;;  %vm1095_vm7 = vweird.f32 %v1974_v32  ;;  %vm977_vm8 = vmor %vm975_vm3, %vm976_vm5  ;;  %v538_v34 = vpop.f32.mrf.mxu0  ;;  %v558_v48 = vpop.f32.mrf.mxu1 }
  0xce   : > { %v1208_v51 = vsel %vm1969_vm11, %v1207_v28, %v1203_v50  ;;  %v1702_v62 = vpop.eup %1701  ;;  %1705 = vpow2.f32 %v1952_v16  ;;  %v1591_v0 = vmul.f32 -1.442695, %v593_v54  ;;  %v974_v2 = vadd.f32 %v1698_v40, %v973_v59 }
  0xcf   : > { %1339 = vst [vmem:[%s1946_s12 + $0xc0] sm:$0xff] %v1208_v51  ;;  %v858_v1 = vsel %vm857_vm6, %v1696_v33, %v854_v58  ;;  %v1091_v3 = vmul.f32 %v1702_v62, %v1974_v32  ;;  %v1099_v6 = vand.u32 2147483647, %v1974_v32  ;;  %v1101_v4 = vand.u32 2147483648, %v1974_v32 }
  0xd0   : > { %v863_v8 = vsel %vm1992_vm2, %v862_v56, %v858_v1  ;;  %v1219_v9 = vand.u32 2147483647, %v1978_v39  ;;  %1707 = vrcp.f32 %v2007_v60  ;;  %v1704_v11 = vpop.eup %1703  ;;  %v978_v12 = vsel %vm977_vm8, %v1698_v40, %v974_v2  ;;  %v578_v47 = vpop.f32.mrf.mxu2 }
  0xd1   : > { %1316 = vst [vmem:[%s1946_s12 + $0x8] sm:$0xff] %v863_v8  ;;  %v1092_v13 = vsub.f32 1.0, %v1091_v3  ;;  %v1221_v14 = vand.u32 2147483648, %v1978_v39  ;;  %v1568_v15 = vmul.f32 -1.442695, %v535_v61  ;;  %v983_v16 = vsel %vm2002_vm4, %v982_v63, %v978_v12 }
  0xd2   : > { %v1211_v5 = vmul.f32 %v1704_v11, %v1978_v39  ;;  %1709 = vpow2.f32 %v1583_v35  ;;  %v1576_v17 = vmul.f32 -1.442695, %v555_v7  ;;  %1324 = vst [vmem:[%s1946_s12 + $0x48] sm:$0xff] %v983_v16  ;;  %vm1096_vm9 = vweird.f32 %v1702_v62 }
  0xd3   : > { %v1093_v18 = vmul.f32 %v1702_v62, %v1092_v13  ;;  %vm2030_vm10 = vcmp.eq.f32.partialorder %v1099_v6, 8.507059e+37  ;;  %1711 = vpow2.f32 %v1591_v0  ;;  %v1102_v21 = vor.u32 1.1754944e-38, %v1101_v4  ;;  %vm1097_vm13 = vmor %vm1095_vm7, %vm1096_vm9 }
  0xd4   : > { %v1706_v20 = vpop.eup %1705  ;;  %v1212_v22 = vsub.f32 1.0, %v1211_v5  ;;  %vm1215_vm11 = vweird.f32 %v1978_v39  ;;  %v1584_v23 = vmul.f32 -1.442695, %v575_v10  ;;  %vm2035_vm12 = vcmp.eq.f32.partialorder %v1219_v9, 8.507059e+37 }
  0xd5   : > { %v1094_v24 = vadd.f32 %v1702_v62, %v1093_v18  ;;  %v2039_v26 = vadd.f32 1.0, %v1706_v20  ;;  %1713 = vpow2.f32 %v1568_v15  ;;  %vm1216_vm14 = vweird.f32 %v1704_v11 }
  0xd6   : > { %v1708_v27 = vpop.eup %1707  ;;  %v1213_v28 = vmul.f32 %v1704_v11, %v1212_v22  ;;  %v1222_v29 = vor.u32 1.1754944e-38, %v1221_v14  ;;  %1715 = vpow2.f32 %v1576_v17  ;;  %vm870_vm15 = vweird.f32 %v2007_v60  ;;  %vm1217_vm0 = vmor %vm1215_vm11, %vm1216_vm14 }
  0xd7   : > { %v1098_v31 = vsel %vm1097_vm13, %v1702_v62, %v1094_v24  ;;  %v866_v33 = vmul.f32 %v1708_v27, %v2007_v60  ;;  %1717 = vrcp.f32 %v2039_v26  ;;  %v874_v37 = vand.u32 2147483647, %v2007_v60 }
  0xd8   : > { %v1710_v35 = vpop.eup %1709  ;;  %v1103_v36 = vsel %vm2030_vm10, %v1102_v21, %v1098_v31  ;;  %v1214_v32 = vadd.f32 %v1704_v11, %v1213_v28  ;;  %1719 = vpow2.f32 %v1584_v23  ;;  %v876_v41 = vand.u32 2147483648, %v2007_v60 }
  0xd9   : > { %v1712_v38 = vpop.eup %1711  ;;  %1332 = vst [vmem:[%s1946_s12 + $0x88] sm:$0xff] %v1103_v36  ;;  %v867_v40 = vsub.f32 1.0, %v866_v33  ;;  %v2054_v42 = vadd.f32 1.0, %v1710_v35  ;;  %v1592_v43 = vmul.f32 -1.442695, %v595_v30  ;;  %vm871_vm1 = vweird.f32 %v1708_v27 }
  0xda   : > { %v1218_v44 = vsel %vm1217_vm0, %v1704_v11, %v1214_v32  ;;  %v2056_v45 = vadd.f32 1.0, %v1712_v38  ;;  %v1569_v46 = vmul.f32 -1.442695, %v538_v34  ;;  %v994_v52 = vand.u32 2147483647, %v2039_v26  ;;  %vm872_vm3 = vmor %vm870_vm15, %vm871_vm1 }
  0xdb   : > { %v1714_v49 = vpop.eup %1713  ;;  %v1223_v50 = vsel %vm2035_vm12, %v1222_v29, %v1218_v44  ;;  %v868_v39 = vmul.f32 %v1708_v27, %v867_v40  ;;  %1721 = vrcp.f32 %v2054_v42  ;;  %vm2063_vm2 = vcmp.eq.f32.partialorder %v874_v37, 8.507059e+37 }
  0xdc   : > { %v1716_v53 = vpop.eup %1715  ;;  %1340 = vst [vmem:[%s1946_s12 + $0xc8] sm:$0xff] %v1223_v50  ;;  %1723 = vrcp.f32 %v2056_v45  ;;  %v877_v56 = vor.u32 1.1754944e-38, %v876_v41  ;;  %v2068_v57 = vmul.f32 -1.442695, %v558_v48  ;;  %v2070_v58 = vmul.f32 -1.442695, %v578_v47 }
  0xdd   : > { %v1718_v55 = vpop.eup %1717  ;;  %v869_v51 = vadd.f32 %v1708_v27, %v868_v39  ;;  %vm990_vm4 = vweird.f32 %v2039_v26  ;;  %v996_v62 = vand.u32 2147483648, %v2039_v26  ;;  %1725 = vpow2.f32 %v1592_v43 }
  0xde   : > { %v1720_v59 = vpop.eup %1719  ;;  %v986_v61 = vmul.f32 %v1718_v55, %v2039_v26  ;;  %vm2078_vm5 = vcmp.eq.f32.partialorder %v994_v52, 8.507059e+37  ;;  %v2082_v1 = vadd.f32 1.0, %v1714_v49  ;;  %1727 = vpow2.f32 %v1569_v46 }
  0xdf   : > { %v873_v63 = vsel %vm872_vm3, %v1708_v27, %v869_v51  ;;  %v1114_v3 = vand.u32 2147483647, %v2054_v42  ;;  %v2087_v6 = vadd.f32 1.0, %v1716_v53  ;;  %v1116_v8 = vand.u32 2147483648, %v2054_v42 }
  0xe0   : > { %v878_v2 = vsel %vm2063_vm2, %v877_v56, %v873_v63  ;;  %v987_v60 = vsub.f32 1.0, %v986_v61  ;;  %v1234_v4 = vand.u32 2147483647, %v2056_v45  ;;  %1729 = vrcp.f32 %v2082_v1  ;;  %v540_v63 = vpop.f32.mrf.mxu0 }
  0xe1   : > { %v1722_v7 = vpop.eup %1721  ;;  %1317 = vst [vmem:[%s1946_s12 + $0x10] sm:$0xff] %v878_v2  ;;  %v2093_v9 = vadd.f32 1.0, %v1720_v59  ;;  %vm991_vm6 = vweird.f32 %v1718_v55  ;;  %1731 = vrcp.f32 %v2087_v6  ;;  %v997_v13 = vor.u32 1.1754944e-38, %v996_v62 }
  0xe2   : > { %v1724_v10 = vpop.eup %1723  ;;  %v988_v11 = vmul.f32 %v1718_v55, %v987_v60  ;;  %v1106_v12 = vmul.f32 %v1722_v7, %v2054_v42  ;;  %vm1110_vm7 = vweird.f32 %v2054_v42  ;;  %v1236_v15 = vand.u32 2147483648, %v2056_v45  ;;  %vm992_vm10 = vmor %vm990_vm4, %vm991_vm6 }
  0xe3   : > { %v1226_v14 = vmul.f32 %v1724_v10, %v2056_v45  ;;  %v1726_v16 = vpop.eup %1725  ;;  %vm2100_vm8 = vcmp.eq.f32.partialorder %v1114_v3, 8.507059e+37  ;;  %vm1230_vm9 = vweird.f32 %v2056_v45  ;;  %v1117_v20 = vor.u32 1.1754944e-38, %v1116_v8 }
  0xe4   : > { %v989_v5 = vadd.f32 %v1718_v55, %v988_v11  ;;  %v1107_v17 = vsub.f32 1.0, %v1106_v12  ;;  %v1728_v19 = vpop.eup %1727  ;;  %v889_v22 = vand.u32 2147483647, %v2082_v1  ;;  %1733 = vrcp.f32 %v2093_v9  ;;  %v560_v11 = vpop.f32.mrf.mxu1 }
  0xe5   : > { %v1227_v21 = vsub.f32 1.0, %v1226_v14  ;;  %vm1111_vm11 = vweird.f32 %v1722_v7  ;;  %vm2109_vm12 = vcmp.eq.f32.partialorder %v1234_v4, 8.507059e+37  ;;  %vm1231_vm13 = vweird.f32 %v1724_v10 }
  0xe6   : > { %v993_v23 = vsel %vm992_vm10, %v1718_v55, %v989_v5  ;;  %v1108_v24 = vmul.f32 %v1722_v7, %v1107_v17  ;;  %v1730_v27 = vpop.eup %1729  ;;  %v1237_v29 = vor.u32 1.1754944e-38, %v1236_v15  ;;  %vm885_vm14 = vweird.f32 %v2082_v1  ;;  %vm1112_vm15 = vmor %vm1110_vm7, %vm1111_vm11  ;;  %v598_v55 = vpop.f32.mrf.mxu3 }
  0xe7   : > { %v998_v28 = vsel %vm2078_vm5, %v997_v13, %v993_v23  ;;  %v1228_v26 = vmul.f32 %v1724_v10, %v1227_v21  ;;  %v1732_v30 = vpop.eup %1731  ;;  %v881_v33 = vmul.f32 %v1730_v27, %v2082_v1  ;;  %v891_v34 = vand.u32 2147483648, %v2082_v1  ;;  %vm1232_vm1 = vmor %vm1230_vm9, %vm1231_vm13 }
  0xe8   : > { %1325 = vst [vmem:[%s1946_s12 + $0x50] sm:$0xff] %v998_v28  ;;  %v1109_v31 = vadd.f32 %v1722_v7, %v1108_v24  ;;  %vm2121_vm0 = vcmp.eq.f32.partialorder %v889_v22, 8.507059e+37  ;;  %v1001_v32 = vmul.f32 %v1732_v30, %v2087_v6  ;;  %v1011_v37 = vand.u32 2147483648, %v2087_v6 }
  0xe9   : > { %v1229_v35 = vadd.f32 %v1724_v10, %v1228_v26  ;;  %v882_v40 = vsub.f32 1.0, %v881_v33  ;;  %v2129_v41 = vadd.f32 1.0, %v1726_v16  ;;  %v2131_v42 = vadd.f32 1.0, %v1728_v19  ;;  %v580_v16 = vpop.f32.mrf.mxu2 }
  0xea   : > { %v1113_v38 = vsel %vm1112_vm15, %v1722_v7, %v1109_v31  ;;  %v1734_v43 = vpop.eup %1733  ;;  %v1002_v48 = vsub.f32 1.0, %v1001_v32  ;;  %1735 = vpow2.f32 %v2068_v57  ;;  %vm886_vm2 = vweird.f32 %v1730_v27  ;;  %v543_v32 = vpop.f32.mrf.mxu0 }
  0xeb   : > { %v1118_v44 = vsel %vm2100_vm8, %v1117_v20, %v1113_v38  ;;  %v1233_v46 = vsel %vm1232_vm1, %v1724_v10, %v1229_v35  ;;  %v883_v49 = vmul.f32 %v1730_v27, %v882_v40  ;;  %v1121_v45 = vmul.f32 %v1734_v43, %v2093_v9  ;;  %vm887_vm4 = vmor %vm885_vm14, %vm886_vm2 }
  0xec   : > { %1333 = vst [vmem:[%s1946_s12 + $0x90] sm:$0xff] %v1118_v44  ;;  %v1238_v47 = vsel %vm2109_vm12, %v1237_v29, %v1233_v46  ;;  %v1003_v50 = vmul.f32 %v1732_v30, %v1002_v48  ;;  %vm1006_vm3 = vweird.f32 %v1732_v30  ;;  %v1009_v39 = vand.u32 2147483647, %v2087_v6 }
  0xed   : > { %1341 = vst [vmem:[%s1946_s12 + $0xd0] sm:$0xff] %v1238_v47  ;;  %1737 = vrcp.f32 %v2129_v41  ;;  %v884_v52 = vadd.f32 %v1730_v27, %v883_v49  ;;  %v892_v53 = vor.u32 1.1754944e-38, %v891_v34  ;;  %v1122_v54 = vsub.f32 1.0, %v1121_v45  ;;  %v563_v47 = vpop.f32.mrf.mxu1 }
  0xee   : > { %1739 = vrcp.f32 %v2131_v42  ;;  %v1004_v51 = vadd.f32 %v1732_v30, %v1003_v50  ;;  %vm1005_vm5 = vweird.f32 %v2087_v6  ;;  %v1129_v56 = vand.u32 2147483647, %v2093_v9  ;;  %v600_v25 = vpop.f32.mrf.mxu3 }
  0xef   : > { %v1131_v57 = vand.u32 2147483648, %v2093_v9  ;;  %v888_v59 = vsel %vm887_vm4, %v1730_v27, %v884_v52  ;;  %vm1007_vm6 = vmor %vm1005_vm5, %vm1006_vm3  ;;  %v1012_v61 = vor.u32 1.1754944e-38, %v1011_v37  ;;  %v1123_v62 = vmul.f32 %v1734_v43, %v1122_v54 }
  0xf0   : > { %vm1126_vm7 = vweird.f32 %v1734_v43  ;;  %v1736_v0 = vpop.eup %1735  ;;  %v893_v1 = vsel %vm2121_vm0, %v892_v53, %v888_v59  ;;  %v1008_v2 = vsel %vm1007_vm6, %v1732_v30, %v1004_v51  ;;  %vm1010_vm8 = vcmp.eq.f32.partialorder %v1009_v39, 8.507059e+37 }
  0xf1   : > { %1741 = vpow2.f32 %v2070_v58  ;;  %1318 = vst [vmem:[%s1946_s12 + $0x18] sm:$0xff] %v893_v1  ;;  %v1013_v60 = vsel %vm1010_vm8, %v1012_v61, %v1008_v2  ;;  %v1124_v3 = vadd.f32 %v1734_v43, %v1123_v62  ;;  %vm1125_vm9 = vweird.f32 %v2093_v9 }
  0xf2   : > { %v2154_v6 = vadd.f32 1.0, %v1736_v0  ;;  %1326 = vst [vmem:[%s1946_s12 + $0x58] sm:$0xff] %v1013_v60  ;;  %vm1127_vm10 = vmor %vm1125_vm9, %vm1126_vm7  ;;  %v1132_v8 = vor.u32 1.1754944e-38, %v1131_v57  ;;  %v1593_v4 = vmul.f32 -1.442695, %v598_v55  ;;  %vm1130_vm11 = vcmp.eq.f32.partialorder %v1129_v56, 8.507059e+37 }
  0xf3   : > { %v1738_v7 = vpop.eup %1737  ;;  %v1570_v10 = vmul.f32 -1.442695, %v540_v63  ;;  %v1128_v13 = vsel %vm1127_vm10, %v1734_v43, %v1124_v3  ;;  %vm1245_vm12 = vweird.f32 %v2129_v41  ;;  %v1249_v9 = vand.u32 2147483647, %v2129_v41  ;;  %v583_v3 = vpop.f32.mrf.mxu2 }
  0xf4   : > { %v1740_v12 = vpop.eup %1739  ;;  %v1241_v58 = vmul.f32 %v1738_v7, %v2129_v41  ;;  %1743 = vrcp.f32 %v2154_v6  ;;  %v1133_v14 = vsel %vm1130_vm11, %v1132_v8, %v1128_v13  ;;  %v1251_v17 = vand.u32 2147483648, %v2129_v41 }
  0xf5   : > { %v896_v15 = vmul.f32 %v1740_v12, %v2131_v42  ;;  %1334 = vst [vmem:[%s1946_s12 + $0x98] sm:$0xff] %v1133_v14  ;;  %vm900_vm13 = vweird.f32 %v2131_v42  ;;  %1745 = vpow2.f32 %v1593_v4  ;;  %v906_v20 = vand.u32 2147483648, %v2131_v42 }
  0xf6   : > { %v1242_v5 = vsub.f32 1.0, %v1241_v58  ;;  %1747 = vpow2.f32 %v1570_v10  ;;  %v1578_v21 = vmul.f32 -1.442695, %v560_v11  ;;  %vm1246_vm14 = vweird.f32 %v1738_v7  ;;  %v603_v8 = vpop.f32.mrf.mxu3  ;;  %v565_v58 = vpop.f32.mrf.mxu1 }
  0xf7   : > { %v1742_v18 = vpop.eup %1741  ;;  %v897_v19 = vsub.f32 1.0, %v896_v15  ;;  %v1586_v24 = vmul.f32 -1.442695, %v580_v16  ;;  %vm901_vm15 = vweird.f32 %v1740_v12  ;;  %v904_v28 = vand.u32 2147483647, %v2131_v42  ;;  %vm1247_vm1 = vmor %vm1245_vm12, %vm1246_vm14 }
  0xf8   : > { %v1243_v22 = vmul.f32 %v1738_v7, %v1242_v5  ;;  %v2166_v23 = vadd.f32 1.0, %v1742_v18  ;;  %1749 = vpow2.f32 %v1578_v21  ;;  %vm2169_vm0 = vcmp.eq.f32.partialorder %v1249_v9, 8.507059e+37  ;;  %vm902_vm2 = vmor %vm900_vm13, %vm901_vm15 }
  0xf9   : > { %v898_v27 = vmul.f32 %v1740_v12, %v897_v19  ;;  %v1252_v31 = vor.u32 1.1754944e-38, %v1251_v17  ;;  %v907_v34 = vor.u32 1.1754944e-38, %v906_v20  ;;  %v1594_v36 = vmul.f32 -1.442695, %v600_v25 }
  0xfa   : > { %v1744_v26 = vpop.eup %1743  ;;  %v1244_v29 = vadd.f32 %v1738_v7, %v1243_v22  ;;  %1751 = vrcp.f32 %v2166_v23  ;;  %v1024_v40 = vand.u32 2147483647, %v2154_v6  ;;  %v1026_v43 = vand.u32 2147483648, %v2154_v6 }
  0xfb   : > { %v899_v33 = vadd.f32 %v1740_v12, %v898_v27  ;;  %v1016_v35 = vmul.f32 %v1744_v26, %v2154_v6  ;;  %v1746_v37 = vpop.eup %1745  ;;  %1753 = vpow2.f32 %v1586_v24  ;;  %vm905_vm3 = vcmp.eq.f32.partialorder %v904_v28, 8.507059e+37 }
  0xfc   : > { %v1248_v38 = vsel %vm1247_vm1, %v1738_v7, %v1244_v29  ;;  %v1748_v41 = vpop.eup %1747  ;;  %v2185_v45 = vadd.f32 1.0, %v1746_v37  ;;  %v1571_v50 = vmul.f32 -1.442695, %v543_v32  ;;  %vm1020_vm4 = vweird.f32 %v2154_v6 }
  0xfd   : > { %v1253_v44 = vsel %vm2169_vm0, %v1252_v31, %v1248_v38  ;;  %v903_v46 = vsel %vm902_vm2, %v1740_v12, %v899_v33  ;;  %v1017_v48 = vsub.f32 1.0, %v1016_v35  ;;  %v2187_v42 = vadd.f32 1.0, %v1748_v41 }
  0xfe   : > { %1342 = vst [vmem:[%s1946_s12 + $0xd8] sm:$0xff] %v1253_v44  ;;  %v908_v49 = vsel %vm905_vm3, %v907_v34, %v903_v46  ;;  %v1750_v39 = vpop.eup %1749  ;;  %vm1021_vm5 = vweird.f32 %v1744_v26  ;;  %1755 = vpow2.f32 %v1594_v36  ;;  %vm2191_vm6 = vcmp.eq.f32.partialorder %v1024_v40, 8.507059e+37 }
  0xff   : > { %1319 = vst [vmem:[%s1946_s12 + $0x20] sm:$0xff] %v908_v49  ;;  %v1018_v52 = vmul.f32 %v1744_v26, %v1017_v48  ;;  %v1027_v55 = vor.u32 1.1754944e-38, %v1026_v43  ;;  %1757 = vrcp.f32 %v2185_v45  ;;  %v1579_v51 = vmul.f32 -1.442695, %v563_v47  ;;  %vm1022_vm8 = vmor %vm1020_vm4, %vm1021_vm5 }
 0x100   : > { %v1752_v53 = vpop.eup %1751  ;;  %vm1140_vm7 = vweird.f32 %v2166_v23  ;;  %1759 = vrcp.f32 %v2187_v42  ;;  %v1144_v61 = vand.u32 2147483647, %v2166_v23  ;;  %v1146_v62 = vand.u32 2147483648, %v2166_v23 }
 0x101   : > { %v1019_v56 = vadd.f32 %v1744_v26, %v1018_v52  ;;  %v1136_v57 = vmul.f32 %v1752_v53, %v2166_v23  ;;  %v1754_v59 = vpop.eup %1753  ;;  %v1264_v63 = vand.u32 2147483647, %v2185_v45  ;;  %1761 = vpow2.f32 %v1571_v50 }
 0x102   : > { %v1266_v2 = vand.u32 2147483648, %v2185_v45  ;;  %v2203_v60 = vadd.f32 1.0, %v1750_v39  ;;  %vm1141_vm9 = vweird.f32 %v1752_v53  ;;  %v2207_v7 = vadd.f32 1.0, %v1754_v59 }
 0x103   : > { %v1023_v0 = vsel %vm1022_vm8, %v1744_v26, %v1019_v56  ;;  %v1137_v1 = vsub.f32 1.0, %v1136_v57  ;;  %1763 = vpow2.f32 %v1579_v51  ;;  %v919_v11 = vand.u32 2147483647, %v2187_v42  ;;  %vm1142_vm12 = vmor %vm1140_vm7, %vm1141_vm9 }
 0x104   : > { %v1028_v6 = vsel %vm2191_vm6, %v1027_v55, %v1023_v0  ;;  %v1756_v4 = vpop.eup %1755  ;;  %v921_v12 = vand.u32 2147483648, %v2187_v42  ;;  %1765 = vrcp.f32 %v2203_v60  ;;  %vm2213_vm10 = vcmp.eq.f32.partialorder %v1144_v61, 8.507059e+37 }
 0x105   : > { %1327 = vst [vmem:[%s1946_s12 + $0x60] sm:$0xff] %v1028_v6  ;;  %v1138_v10 = vmul.f32 %v1752_v53, %v1137_v1  ;;  %v1758_v13 = vpop.eup %1757  ;;  %v1147_v14 = vor.u32 1.1754944e-38, %v1146_v62  ;;  %1767 = vrcp.f32 %v2207_v7  ;;  %v1587_v9 = vmul.f32 -1.442695, %v583_v3 }
 0x106   : > { %v1760_v15 = vpop.eup %1759  ;;  %v1256_v5 = vmul.f32 %v1758_v13, %v2185_v45  ;;  %vm1260_vm11 = vweird.f32 %v2185_v45  ;;  %v2220_v17 = vmul.f32 -1.442695, %v603_v8  ;;  %vm2225_vm13 = vcmp.eq.f32.partialorder %v1264_v63, 8.507059e+37 }
 0x107   : > { %v1139_v16 = vadd.f32 %v1752_v53, %v1138_v10  ;;  %v1762_v18 = vpop.eup %1761  ;;  %v1267_v20 = vor.u32 1.1754944e-38, %v1266_v2  ;;  %v911_v21 = vmul.f32 %v1760_v15, %v2187_v42  ;;  %vm915_vm14 = vweird.f32 %v2187_v42 }
 0x108   : > { %v1257_v24 = vsub.f32 1.0, %v1256_v5  ;;  %vm2231_vm15 = vcmp.eq.f32.partialorder %v919_v11, 8.507059e+37  ;;  %v922_v27 = vor.u32 1.1754944e-38, %v921_v12  ;;  %vm1035_vm0 = vweird.f32 %v2203_v60  ;;  %v545_v11 = vpop.f32.mrf.mxu0 }
 0x109   : > { %v1143_v22 = vsel %vm1142_vm12, %v1752_v53, %v1139_v16  ;;  %v1764_v28 = vpop.eup %1763  ;;  %v912_v26 = vsub.f32 1.0, %v911_v21  ;;  %v1039_v29 = vand.u32 2147483647, %v2203_v60  ;;  %v2239_v30 = vadd.f32 1.0, %v1756_v4  ;;  %v585_v16 = vpop.f32.mrf.mxu2 }
 0x10a   : > { %v1148_v23 = vsel %vm2213_vm10, %v1147_v14, %v1143_v22  ;;  %v1766_v31 = vpop.eup %1765  ;;  %v1258_v33 = vmul.f32 %v1758_v13, %v1257_v24  ;;  %vm1261_vm1 = vweird.f32 %v1758_v13  ;;  %v2242_v34 = vadd.f32 1.0, %v1762_v18  ;;  %v605_v21 = vpop.f32.mrf.mxu3 }
 0x10b   : > { %1335 = vst [vmem:[%s1946_s12 + $0xa0] sm:$0xff] %v1148_v23  ;;  %1769 = vpow2.f32 %v1587_v9  ;;  %v1768_v35 = vpop.eup %1767  ;;  %v913_v36 = vmul.f32 %v1760_v15, %v912_v26  ;;  %vm916_vm2 = vweird.f32 %v1760_v15  ;;  %v1031_v32 = vmul.f32 %v1766_v31, %v2203_v60  ;;  %vm1262_vm4 = vmor %vm1260_vm11, %vm1261_vm1 }
 0x10c   : > { %1771 = vrcp.f32 %v2239_v30  ;;  %v1259_v37 = vadd.f32 %v1758_v13, %v1258_v33  ;;  %v1041_v38 = vand.u32 2147483648, %v2203_v60  ;;  %v1151_v40 = vmul.f32 %v1768_v35, %v2207_v7  ;;  %vm917_vm5 = vmor %vm915_vm14, %vm916_vm2 }
 0x10d   : > { %vm1155_vm3 = vweird.f32 %v2207_v7  ;;  %v914_v43 = vadd.f32 %v1760_v15, %v913_v36  ;;  %v1032_v41 = vsub.f32 1.0, %v1031_v32  ;;  %v1159_v44 = vand.u32 2147483647, %v2207_v7 }
 0x10e   : > { %v2252_v46 = vadd.f32 1.0, %v1764_v28  ;;  %v1263_v48 = vsel %vm1262_vm4, %v1758_v13, %v1259_v37  ;;  %v1152_v47 = vsub.f32 1.0, %v1151_v40  ;;  %v1161_v49 = vand.u32 2147483648, %v2207_v7 }
 0x10f   : > { %1773 = vrcp.f32 %v2242_v34  ;;  %v1268_v45 = vsel %vm2225_vm13, %v1267_v20, %v1263_v48  ;;  %v918_v50 = vsel %vm917_vm5, %v1760_v15, %v914_v43  ;;  %v1033_v39 = vmul.f32 %v1766_v31, %v1032_v41 }
 0x110   : > { %vm1036_vm6 = vweird.f32 %v1766_v31  ;;  %1343 = vst [vmem:[%s1946_s12 + $0xe0] sm:$0xff] %v1268_v45  ;;  %v923_v53 = vsel %vm2231_vm15, %v922_v27, %v918_v50  ;;  %vm2263_vm7 = vcmp.eq.f32.partialorder %v1039_v29, 8.507059e+37  ;;  %v1153_v54 = vmul.f32 %v1768_v35, %v1152_v47 }
 0x111   : > { %v1770_v52 = vpop.eup %1769  ;;  %vm1156_vm8 = vweird.f32 %v1768_v35  ;;  %1320 = vst [vmem:[%s1946_s12 + $0x28] sm:$0xff] %v923_v53  ;;  %v1034_v51 = vadd.f32 %v1766_v31, %v1033_v39  ;;  %v1279_v56 = vand.u32 2147483647, %v2239_v30  ;;  %v1281_v57 = vand.u32 2147483648, %v2239_v30  ;;  %vm1037_vm9 = vmor %vm1035_vm0, %vm1036_vm6 }
 0x112   : > { %v1772_v55 = vpop.eup %1771  ;;  %1775 = vrcp.f32 %v2252_v46  ;;  %v1042_v59 = vor.u32 1.1754944e-38, %v1041_v38  ;;  %v1154_v61 = vadd.f32 %v1768_v35, %v1153_v54  ;;  %vm1160_vm10 = vcmp.eq.f32.partialorder %v1159_v44, 8.507059e+37  ;;  %vm1157_vm11 = vmor %vm1155_vm3, %vm1156_vm8 }
 0x113   : > { %v1271_v62 = vmul.f32 %v1772_v55, %v2239_v30  ;;  %v1038_v63 = vsel %vm1037_vm9, %v1766_v31, %v1034_v51  ;;  %v1162_v0 = vor.u32 1.1754944e-38, %v1161_v49  ;;  %vm1275_vm12 = vweird.f32 %v2239_v30 }
 0x114   : > { %vm930_vm13 = vweird.f32 %v2242_v34  ;;  %v1043_v2 = vsel %vm2263_vm7, %v1042_v59, %v1038_v63  ;;  %v1158_v60 = vsel %vm1157_vm11, %v1768_v35, %v1154_v61  ;;  %v2280_v6 = vadd.f32 1.0, %v1770_v52 }
 0x115   : > { %v1774_v1 = vpop.eup %1773  ;;  %v1272_v3 = vsub.f32 1.0, %v1271_v62  ;;  %1328 = vst [vmem:[%s1946_s12 + $0x68] sm:$0xff] %v1043_v2  ;;  %v1163_v8 = vsel %vm1160_vm10, %v1162_v0, %v1158_v60  ;;  %vm2283_vm14 = vcmp.eq.f32.partialorder %v1279_v56, 8.507059e+37  ;;  %v1282_v7 = vor.u32 1.1754944e-38, %v1281_v57 }
 0x116   : > { %v926_v10 = vmul.f32 %v1774_v1, %v2242_v34  ;;  %1336 = vst [vmem:[%s1946_s12 + $0xa8] sm:$0xff] %v1163_v8  ;;  %vm1276_vm15 = vweird.f32 %v1772_v55  ;;  %v934_v13 = vand.u32 2147483647, %v2242_v34  ;;  %1777 = vrcp.f32 %v2280_v6 }
 0x117   : > { %v1273_v12 = vmul.f32 %v1772_v55, %v1272_v3  ;;  %v936_v15 = vand.u32 2147483648, %v2242_v34  ;;  %vm1050_vm0 = vweird.f32 %v2252_v46  ;;  %1779 = vpow2.f32 %v2220_v17  ;;  %vm1277_vm1 = vmor %vm1275_vm12, %vm1276_vm15 }
 0x118   : > { %v1776_v14 = vpop.eup %1775  ;;  %v927_v9 = vsub.f32 1.0, %v926_v10  ;;  %v1054_v19 = vand.u32 2147483647, %v2252_v46  ;;  %v1572_v20 = vmul.f32 -1.442695, %v545_v11  ;;  %vm931_vm2 = vweird.f32 %v1774_v1 }
 0x119   : > { %v1274_v5 = vadd.f32 %v1772_v55, %v1273_v12  ;;  %v1046_v18 = vmul.f32 %v1776_v14, %v2252_v46  ;;  %v1056_v24 = vand.u32 2147483648, %v2252_v46  ;;  %v1580_v25 = vmul.f32 -1.442695, %v565_v58  ;;  %vm932_vm3 = vmor %vm930_vm13, %vm931_vm2 }
 0x11a   : > { %v928_v22 = vmul.f32 %v1774_v1, %v927_v9  ;;  %1781 = vpow2.f32 %v1572_v20  ;;  %v1588_v28 = vmul.f32 -1.442695, %v585_v16  ;;  %v1596_v29 = vmul.f32 -1.442695, %v605_v21 }
 0x11b   : > { %v1278_v27 = vsel %vm1277_vm1, %v1772_v55, %v1274_v5  ;;  %v1047_v17 = vsub.f32 1.0, %v1046_v18  ;;  %1783 = vpow2.f32 %v1580_v25  ;;  %v937_v30 = vor.u32 1.1754944e-38, %v936_v15 }
 0x11c   : > { %v1283_v23 = vsel %vm2283_vm14, %v1282_v7, %v1278_v27  ;;  %v929_v26 = vadd.f32 %v1774_v1, %v928_v22  ;;  %v1778_v31 = vpop.eup %1777  ;;  %vm1051_vm4 = vweird.f32 %v1776_v14  ;;  %1785 = vpow2.f32 %v1588_v28 }
 0x11d   : > { %1344 = vst [vmem:[%s1946_s12 + $0xe8] sm:$0xff] %v1283_v23  ;;  %v1048_v33 = vmul.f32 %v1776_v14, %v1047_v17  ;;  %v1780_v35 = vpop.eup %1779  ;;  %vm935_vm5 = vcmp.eq.f32.partialorder %v934_v13, 8.507059e+37  ;;  %v1166_v32 = vmul.f32 %v1778_v31, %v2280_v6  ;;  %1787 = vpow2.f32 %v1596_v29  ;;  %vm1052_vm6 = vmor %vm1050_vm0, %vm1051_vm4 }
 0x11e   : > { %v933_v36 = vsel %vm932_vm3, %v1774_v1, %v929_v26  ;;  %v833_v40 = vadd.f32 1.0, %v1780_v35  ;;  %vm1055_vm7 = vcmp.eq.f32.partialorder %v1054_v19, 8.507059e+37  ;;  %v1057_v34 = vor.u32 1.1754944e-38, %v1056_v24 }
 0x11f   : > { %v938_v37 = vsel %vm935_vm5, %v937_v30, %v933_v36  ;;  %v1049_v38 = vadd.f32 %v1776_v14, %v1048_v33  ;;  %v1167_v43 = vsub.f32 1.0, %v1166_v32  ;;  %v1174_v48 = vand.u32 2147483647, %v2280_v6 }
 0x120   : > { %1321 = vst [vmem:[%s1946_s12 + $0x30] sm:$0xff] %v938_v37  ;;  %v1782_v41 = vpop.eup %1781  ;;  %v1176_v47 = vand.u32 2147483648, %v2280_v6  ;;  %1789 = vrcp.f32 %v833_v40  ;;  %vm1171_vm8 = vweird.f32 %v1778_v31  ;;  %vm1170_vm9 = vweird.f32 %v2280_v6 }
 0x121   : > { %v1053_v44 = vsel %vm1052_vm6, %v1776_v14, %v1049_v38  ;;  %v1784_v49 = vpop.eup %1783  ;;  %v1168_v50 = vmul.f32 %v1778_v31, %v1167_v43  ;;  %v810_v39 = vadd.f32 1.0, %v1782_v41  ;;  %vm1172_vm10 = vmor %vm1170_vm9, %vm1171_vm8  ;;  %vm1175_vm11 = vcmp.eq.f32.partialorder %v1174_v48, 8.507059e+37 }
 0x122   : > { %v1058_v45 = vsel %vm1055_vm7, %v1057_v34, %v1053_v44  ;;  %v1786_v52 = vpop.eup %1785  ;;  %v818_v46 = vadd.f32 1.0, %v1784_v49  ;;  %v1177_v54 = vor.u32 1.1754944e-38, %v1176_v47  ;;  %v1294_v62 = vand.u32 2147483647, %v833_v40 }
 0x123   : > { %1329 = vst [vmem:[%s1946_s12 + $0x70] sm:$0xff] %v1058_v45  ;;  %v1788_v53 = vpop.eup %1787  ;;  %v1169_v42 = vadd.f32 %v1778_v31, %v1168_v50  ;;  %1791 = vrcp.f32 %v810_v39  ;;  %v2313_v51 = vadd.f32 1.0, %v1786_v52  ;;  %v1296_v63 = vand.u32 2147483648, %v833_v40 }
 0x124   : > { %1793 = vrcp.f32 %v818_v46  ;;  %v2315_v59 = vadd.f32 1.0, %v1788_v53  ;;  %vm1290_vm12 = vweird.f32 %v833_v40  ;;  %v949_v3 = vand.u32 2147483647, %v810_v39 }
 0x125   : > { %v1173_v55 = vsel %vm1172_vm10, %v1778_v31, %v1169_v42  ;;  %1795 = vrcp.f32 %v2313_v51  ;;  %v951_v6 = vand.u32 2147483648, %v810_v39  ;;  %vm2320_vm14 = vcmp.eq.f32.partialorder %v1294_v62, 8.507059e+37 }
 0x126   : > { %v1790_v56 = vpop.eup %1789  ;;  %v1178_v57 = vsel %vm1175_vm11, %v1177_v54, %v1173_v55  ;;  %1797 = vrcp.f32 %v2315_v59  ;;  %v1297_v10 = vor.u32 1.1754944e-38, %v1296_v63  ;;  %vm945_vm15 = vweird.f32 %v810_v39 }
 0x127   : > { %1337 = vst [vmem:[%s1946_s12 + $0xb0] sm:$0xff] %v1178_v57  ;;  %v1286_v61 = vmul.f32 %v1790_v56, %v833_v40  ;;  %vm1291_vm13 = vweird.f32 %v1790_v56  ;;  %v1069_v12 = vand.u32 2147483647, %v818_v46  ;;  %vm1065_vm0 = vweird.f32 %v818_v46 }
 0x128   : > { %v1071_v14 = vand.u32 2147483648, %v818_v46  ;;  %vm1292_vm1 = vmor %vm1290_vm12, %vm1291_vm13  ;;  %vm2325_vm3 = vcmp.eq.f32.partialorder %v949_v3, 8.507059e+37  ;;  %v952_v5 = vor.u32 1.1754944e-38, %v951_v6  ;;  %v1189_v26 = vand.u32 2147483647, %v2313_v51 }
 0x129   : > { %v1792_v0 = vpop.eup %1791  ;;  %v1287_v1 = vsub.f32 1.0, %v1286_v61  ;;  %vm2332_vm5 = vcmp.eq.f32.partialorder %v1069_v12, 8.507059e+37  ;;  %v1191_v31 = vand.u32 2147483648, %v2313_v51  ;;  %v1311_v33 = vand.u32 2147483648, %v2315_v59 }
 0x12a   : > { %v1794_v2 = vpop.eup %1793  ;;  %v941_v60 = vmul.f32 %v1792_v0, %v810_v39  ;;  %vm946_vm2 = vweird.f32 %v1792_v0  ;;  %v1072_v28 = vor.u32 1.1754944e-38, %v1071_v14  ;;  %v1309_v40 = vand.u32 2147483647, %v2315_v59 }
 0x12b   : > { %v1288_v8 = vmul.f32 %v1790_v56, %v1287_v1  ;;  %v1061_v7 = vmul.f32 %v1794_v2, %v818_v46  ;;  %v1796_v9 = vpop.eup %1795  ;;  %vm1066_vm4 = vweird.f32 %v1794_v2  ;;  %vm947_vm6 = vmor %vm945_vm15, %vm946_vm2  ;;  %vm1185_vm10 = vweird.f32 %v2313_v51 }
 0x12c   : > { %v942_v11 = vsub.f32 1.0, %v941_v60  ;;  %v1798_v18 = vpop.eup %1797  ;;  %v1181_v21 = vmul.f32 %v1796_v9, %v2313_v51  ;;  %vm1067_vm7 = vmor %vm1065_vm0, %vm1066_vm4  ;;  %vm1186_vm8 = vweird.f32 %v1796_v9  ;;  %v1192_v43 = vor.u32 1.1754944e-38, %v1191_v31 }
 0x12d   : > { %v1289_v13 = vadd.f32 %v1790_v56, %v1288_v8  ;;  %v1062_v58 = vsub.f32 1.0, %v1061_v7  ;;  %v1301_v27 = vmul.f32 %v1798_v18, %v2315_v59  ;;  %vm1306_vm9 = vweird.f32 %v1798_v18  ;;  %vm1187_vm11 = vmor %vm1185_vm10, %vm1186_vm8 }
 0x12e   : > { %v943_v15 = vmul.f32 %v1792_v0, %v942_v11  ;;  %v1182_v23 = vsub.f32 1.0, %v1181_v21  ;;  %vm1305_vm12 = vweird.f32 %v2315_v59  ;;  %vm1190_vm13 = vcmp.eq.f32.partialorder %v1189_v26, 8.507059e+37 }
 0x12f   : > { %v1293_v19 = vsel %vm1292_vm1, %v1790_v56, %v1289_v13  ;;  %v1063_v20 = vmul.f32 %v1794_v2, %v1062_v58  ;;  %v1302_v30 = vsub.f32 1.0, %v1301_v27  ;;  %v1312_v48 = vor.u32 1.1754944e-38, %v1311_v33 }
 0x130   : > { %v1298_v22 = vsel %vm2320_vm14, %v1297_v10, %v1293_v19  ;;  %v944_v24 = vadd.f32 %v1792_v0, %v943_v15  ;;  %v1183_v32 = vmul.f32 %v1796_v9, %v1182_v23  ;;  %vm1307_vm14 = vmor %vm1305_vm12, %vm1306_vm9  ;;  %vm1310_vm15 = vcmp.eq.f32.partialorder %v1309_v40, 8.507059e+37 }
 0x131   : > { %1345 = vst [vmem:[%s1946_s12 + $0xf0] sm:$0xff] %v1298_v22  ;;  %v1064_v17 = vadd.f32 %v1794_v2, %v1063_v20  ;;  %v1303_v38 = vmul.f32 %v1798_v18, %v1302_v30 }
 0x132   : > { %v948_v29 = vsel %vm947_vm6, %v1792_v0, %v944_v24  ;;  %v1184_v34 = vadd.f32 %v1796_v9, %v1183_v32 }
 0x133   : > { %v953_v35 = vsel %vm2325_vm3, %v952_v5, %v948_v29  ;;  %v1068_v36 = vsel %vm1067_vm7, %v1794_v2, %v1064_v17  ;;  %v1304_v41 = vadd.f32 %v1798_v18, %v1303_v38 }
 0x134   : > { %1322 = vst [vmem:[%s1946_s12 + $0x38] sm:$0xff] %v953_v35  ;;  %v1073_v37 = vsel %vm2332_vm5, %v1072_v28, %v1068_v36  ;;  %v1188_v44 = vsel %vm1187_vm11, %v1796_v9, %v1184_v34 }
 0x135   : > { %1330 = vst [vmem:[%s1946_s12 + $0x78] sm:$0xff] %v1073_v37  ;;  %v1193_v47 = vsel %vm1190_vm13, %v1192_v43, %v1188_v44  ;;  %v1308_v49 = vsel %vm1307_vm14, %v1798_v18, %v1304_v41 }
 0x136   : > { %1338 = vst [vmem:[%s1946_s12 + $0xb8] sm:$0xff] %v1193_v47  ;;  %v1313_v45 = vsel %vm1310_vm15, %v1312_v48, %v1308_v49 }
 0x137   : > { %1346 = vst [vmem:[%s1946_s12 + $0xf8] sm:$0xff] %v1313_v45 }
 0x138 PF: > { %s13_s14 = sadd.s32 1, %s1821_s14   ;;  %s2413_s12 = smov %s1817_s13 }
 0x139   : > { %p10_p5 = scmp.ge.s32.totalorder %s13_s14, 5   ;;  %s2414_s13 = smov %s2416_s2 }
 0x13b   :  { %12 = sbr.rel (!%p10_p5) target bundleno = 2 (0x2), region = 76 }

// kernel: dummy_model_forward.11
= control target key start
LH: loop header
LB: loop body
LE: loop exit
PB: predicated region body
PF: predicated region fallthrough
CT: control target
= control target key end

     0   :  { %s2790_s12 = smov 0   ;;  %s2792_s13 = smov 0   ;;  %s4248_s0 = inlined_call_operand.vmem [shape: bf16[208,1152], index: 0, kind: input, shape index: {}]   ;;  %s4249_s1 = inlined_call_operand.vmem [shape: bf16[1152,256], index: 1, kind: input, shape index: {}]   ;;  %s4250_s2 = inlined_call_operand.vmem [shape: f32[1,256], index: 2, kind: input, shape index: {}]   ;;  %s4251_s3 = inlined_call_operand.vmem [shape: f32[208,256], index: 3, kind: output, shape index: {}]  }
   0x1   :  { %s2794_s14 = smov 0   ;;  %s2796_s15 = smov 0  }
   0x2   :  { %s2798_s16 = smov 0  }
   0x3 LB: > { %s25_s17 = sadd.s32 1, %s2763_s15  ;;  %p48_p1 = scmp.ne.s32.totalorder %s2755_s13, %s2751_s12  ;;  %s2767_s16 = sphi %s2798_s16, %s13_s16   ;;  %s2763_s15 = sphi %s2796_s15, %s4438_s15   ;;  %s2759_s14 = sphi %s2794_s14, %s4437_s14   ;;  %s2755_s13 = sphi %s2792_s13, %s4436_s13   ;;  %s2751_s12 = sphi %s2790_s12, %s4435_s12  }
   0x4   : > { %p26_p0 = scmp.ge.s32.totalorder %s25_s17, 9  ;;  %p49_p2 = scmp.eq.s32.totalorder %s2767_s16, 0 }
   0x5   : > { %s41_s19 = sadd.s32 1, %s2755_s13  ;;  %p2252_p5 = scmp.ge.s32.totalorder %s2767_s16, 9 }
   0x6   : > { %s4440_s17 = smov (%p26_p0, %s25_s17), 0  ;;  %p50_p3 = por %p49_p2, %p48_p1 }
   0x7   : > { %s37_s18 = ssub.s32 %s2763_s15, %s4440_s17  ;;  %164 = sbr.rel (%p2252_p5) target bundleno = 43 (0x2b), region = 20 }
   0x8   : > { %p39_p4 = scmp.eq.s32.totalorder %s37_s18, 0 }
   0xa   : > { %s2825_s20 = scalar_select %p39_p4, %s2755_s13, %s41_s19  }
   0xc   : > { %167 = sbr.rel (!%p50_p3) target bundleno = 43 (0x2b), region = 24  ;;  %s169_s21 = sand.u32 (%p50_p3), 1, %s2755_s13  }
   0xd   : > { %s2253_s22 = sshll.u32 (%p50_p3), %s2763_s15, 2  ;;  %s2478_s23 = smul.u32 (%p50_p3), 104, %s169_s21 }
   0xe   : > { %s2833_s26 = scalar_lea.vmem (%p50_p3), %s4248_s0, %s2253_s22 }
   0xf   : > { %v193_v0 = vld [vmem:[%s2833_s26] sm:$0xf] (%p50_p3)  ;;  %v195_v1 = vld [vmem:[%s2833_s26 + $0x24] sm:$0xf] (%p50_p3)  ;;  %v197_v2 = vld [vmem:[%s2833_s26 + $0x48] sm:$0xf] (%p50_p3) }
  0x10   : > { %s2838_s27 = scalar_lea.vmem (%p50_p3), [#allocation3], %s2478_s23  ;;  %v199_v3 = vld [vmem:[%s2833_s26 + $0x6c] sm:$0xf] (%p50_p3)  ;;  %v201_v4 = vld [vmem:[%s2833_s26 + $0x90] sm:$0xf] (%p50_p3) }
  0x11   : > { %194 = vst [vmem:[%s2838_s27] sm:$0xf] %v193_v0  ;;  %v203_v5 = vld [vmem:[%s2833_s26 + $0xb4] sm:$0xf]  ;;  %v205_v6 = vld [vmem:[%s2833_s26 + $0xd8] sm:$0xf] }
  0x12   : > { %196 = vst [vmem:[%s2838_s27 + $0x4] sm:$0xf] %v195_v1  ;;  %v207_v7 = vld [vmem:[%s2833_s26 + $0xfc] sm:$0xf]  ;;  %v209_v8 = vld [vmem:[%s2833_s26 + $0x120] sm:$0xf] }
  0x13   : > { %198 = vst [vmem:[%s2838_s27 + $0x8] sm:$0xf] %v197_v2  ;;  %v211_v9 = vld [vmem:[%s2833_s26 + $0x144] sm:$0xf]  ;;  %v213_v10 = vld [vmem:[%s2833_s26 + $0x168] sm:$0xf] }
  0x14   : > { %200 = vst [vmem:[%s2838_s27 + $0xc] sm:$0xf] %v199_v3  ;;  %v215_v11 = vld [vmem:[%s2833_s26 + $0x18c] sm:$0xf]  ;;  %v217_v12 = vld [vmem:[%s2833_s26 + $0x1b0] sm:$0xf] }
  0x15   : > { %202 = vst [vmem:[%s2838_s27 + $0x10] sm:$0xf] %v201_v4  ;;  %v219_v13 = vld [vmem:[%s2833_s26 + $0x1d4] sm:$0xf]  ;;  %v221_v14 = vld [vmem:[%s2833_s26 + $0x1f8] sm:$0xf] }
  0x16   : > { %204 = vst [vmem:[%s2838_s27 + $0x14] sm:$0xf] %v203_v5  ;;  %v223_v15 = vld [vmem:[%s2833_s26 + $0x21c] sm:$0xf]  ;;  %v225_v16 = vld [vmem:[%s2833_s26 + $0x240] sm:$0xf] }
  0x17   : > { %206 = vst [vmem:[%s2838_s27 + $0x18] sm:$0xf] %v205_v6  ;;  %v227_v17 = vld [vmem:[%s2833_s26 + $0x264] sm:$0xf]  ;;  %v229_v18 = vld [vmem:[%s2833_s26 + $0x288] sm:$0xf] }
  0x18   : > { %208 = vst [vmem:[%s2838_s27 + $0x1c] sm:$0xf] %v207_v7  ;;  %v231_v19 = vld [vmem:[%s2833_s26 + $0x2ac] sm:$0xf]  ;;  %v233_v20 = vld [vmem:[%s2833_s26 + $0x2d0] sm:$0xf] }
  0x19   : > { %210 = vst [vmem:[%s2838_s27 + $0x20] sm:$0xf] %v209_v8  ;;  %v235_v21 = vld [vmem:[%s2833_s26 + $0x2f4] sm:$0xf]  ;;  %v237_v22 = vld [vmem:[%s2833_s26 + $0x318] sm:$0xf] }
  0x1a   : > { %212 = vst [vmem:[%s2838_s27 + $0x24] sm:$0xf] %v211_v9  ;;  %v239_v23 = vld [vmem:[%s2833_s26 + $0x33c] sm:$0xf]  ;;  %v241_v24 = vld [vmem:[%s2833_s26 + $0x360] sm:$0xf] }
  0x1b   : > { %214 = vst [vmem:[%s2838_s27 + $0x28] sm:$0xf] %v213_v10  ;;  %v243_v25 = vld [vmem:[%s2833_s26 + $0x384] sm:$0xf] }
  0x1c   : > { %216 = vst [vmem:[%s2838_s27 + $0x2c] sm:$0xf] %v215_v11 }
  0x1d   : > { %218 = vst [vmem:[%s2838_s27 + $0x30] sm:$0xf] %v217_v12 }
  0x1e   : > { %220 = vst [vmem:[%s2838_s27 + $0x34] sm:$0xf] %v219_v13 }
  0x1f   : > { %222 = vst [vmem:[%s2838_s27 + $0x38] sm:$0xf] %v221_v14 }
  0x20   : > { %224 = vst [vmem:[%s2838_s27 + $0x3c] sm:$0xf] %v223_v15 }
  0x21   : > { %226 = vst [vmem:[%s2838_s27 + $0x40] sm:$0xf] %v225_v16 }
  0x22   : > { %228 = vst [vmem:[%s2838_s27 + $0x44] sm:$0xf] %v227_v17 }
  0x23   : > { %230 = vst [vmem:[%s2838_s27 + $0x48] sm:$0xf] %v229_v18 }
  0x24   : > { %232 = vst [vmem:[%s2838_s27 + $0x4c] sm:$0xf] %v231_v19 }
  0x25   : > { %234 = vst [vmem:[%s2838_s27 + $0x50] sm:$0xf] %v233_v20 }
  0x26   : > { %236 = vst [vmem:[%s2838_s27 + $0x54] sm:$0xf] %v235_v21 }
  0x27   : > { %238 = vst [vmem:[%s2838_s27 + $0x58] sm:$0xf] %v237_v22 }
  0x28   : > { %240 = vst [vmem:[%s2838_s27 + $0x5c] sm:$0xf] %v239_v23 }
  0x29   : > { %242 = vst [vmem:[%s2838_s27 + $0x60] sm:$0xf] %v241_v24 }
  0x2a   : > { %244 = vst [vmem:[%s2838_s27 + $0x64] sm:$0xf] %v243_v25 }
  0x2b PF: > { %p2254_p6 = scmp.ge.s32.totalorder %s2767_s16, 1  ;;  %p334_p7 = scmp.lt.s32.totalorder %s2767_s16, 10 }
  0x2d   : > { %p335_p8 = pnand %p2254_p6, %p334_p7 }
  0x2e   : > { %s341_s28 = sand.u32 (!%p335_p8), 1, %s2751_s12   ;;  %s2255_s29 = sshll.u32 (!%p335_p8), %s2759_s14, 4 }
  0x2f   : > { %338 = sbr.rel (%p335_p8) target bundleno = 623 (0x26f), region = 69  ;;  %p386_p9 = scmp.lt.s32.totalorder (!%p335_p8), %s2255_s29, 143 }
  0x30   : > { %s2479_s30 = smul.u32 (!%p335_p8), 104, %s341_s28  ;;  %p2258_p10 = scmp.ne.s32.totalorder (!%p335_p8), %s2759_s14, 0 }
  0x32   : > { %s2898_s8 = scalar_lea.vmem (!%p335_p8), [#allocation3], %s2479_s30 }
  0x34   : > { %s4442_s29 = smov (!%p386_p9, %s2255_s29), 143  ;;  %416 = sbr.rel (%p2258_p10) target bundleno = 110 (0x6e), region = 77 }
  0x35   : > { %s2432_s4 = sshll.u32 %s4442_s29, 3 }
  0x36   : > { %s2896_s7 = scalar_lea.vmem %s4249_s1, %s2432_s4 }
  0x39   : > { %v2769_v26 = vmov 0.0  }
  0x3a   : > { %417 = vst [vmem:[#allocation2 + $0xb0] sm:$0xff] %v2769_v26 }
  0x3b   : > { %418 = vst [vmem:[#allocation2 + $0xd0] sm:$0xff] %v2769_v26 }
  0x3c   : > { %419 = vst [vmem:[#allocation2 + $0x10] sm:$0xff] %v2769_v26 }
  0x3d   : > { %420 = vst [vmem:[#allocation2 + $0x48] sm:$0xff] %v2769_v26 }
  0x3e   : > { %421 = vst [vmem:[#allocation2 + $0x160] sm:$0xff] %v2769_v26 }
  0x3f   : > { %422 = vst [vmem:[#allocation2 + $0x128] sm:$0xff] %v2769_v26 }
  0x40   : > { %423 = vst [vmem:[#allocation2 + $0x40] sm:$0xff] %v2769_v26 }
  0x41   : > { %424 = vst [vmem:[#allocation2 + $0x178] sm:$0xff] %v2769_v26 }
  0x42   : > { %425 = vst [vmem:[#allocation2 + $0x108] sm:$0xff] %v2769_v26 }
  0x43   : > { %426 = vst [vmem:[#allocation2 + $0x110] sm:$0xff] %v2769_v26 }
  0x44   : > { %427 = vst [vmem:[#allocation2 + $0x90] sm:$0xff] %v2769_v26 }
  0x45   : > { %428 = vst [vmem:[#allocation2 + $0x118] sm:$0xff] %v2769_v26 }
  0x46   : > { %429 = vst [vmem:[#allocation2 + $0x148] sm:$0xff] %v2769_v26 }
  0x47   : > { %430 = vst [vmem:[#allocation2 + $0x100] sm:$0xff] %v2769_v26 }
  0x48   : > { %431 = vst [vmem:[#allocation2 + $0x58] sm:$0xff] %v2769_v26 }
  0x49   : > { %432 = vst [vmem:[#allocation2 + $0xd8] sm:$0xff] %v2769_v26 }
  0x4a   : > { %433 = vst [vmem:[#allocation2 + $0x180] sm:$0xff] %v2769_v26 }
  0x4b   : > { %434 = vst [vmem:[#allocation2 + $0x130] sm:$0xff] %v2769_v26 }
  0x4c   : > { %435 = vst [vmem:[#allocation2 + $0x138] sm:$0xff] %v2769_v26 }
  0x4d   : > { %436 = vst [vmem:[#allocation2 + $0x78] sm:$0xff] %v2769_v26 }
  0x4e   : > { %437 = vst [vmem:[#allocation2 + $0xa0] sm:$0xff] %v2769_v26 }
  0x4f   : > { %438 = vst [vmem:[#allocation2] sm:$0xff] %v2769_v26 }
  0x50   : > { %439 = vst [vmem:[#allocation2 + $0x20] sm:$0xff] %v2769_v26 }
  0x51   : > { %440 = vst [vmem:[#allocation2 + $0xe0] sm:$0xff] %v2769_v26 }
  0x52   : > { %441 = vst [vmem:[#allocation2 + $0xf0] sm:$0xff] %v2769_v26 }
  0x53   : > { %442 = vst [vmem:[#allocation2 + $0x188] sm:$0xff] %v2769_v26 }
  0x54   : > { %443 = vst [vmem:[#allocation2 + $0xa8] sm:$0xff] %v2769_v26 }
  0x55   : > { %444 = vst [vmem:[#allocation2 + $0x88] sm:$0xff] %v2769_v26 }
  0x56   : > { %445 = vst [vmem:[#allocation2 + $0xb8] sm:$0xff] %v2769_v26 }
  0x57   : > { %446 = vst [vmem:[#allocation2 + $0x170] sm:$0xff] %v2769_v26 }
  0x58   : > { %447 = vst [vmem:[#allocation2 + $0xc0] sm:$0xff] %v2769_v26 }
  0x59   : > { %448 = vst [vmem:[#allocation2 + $0x140] sm:$0xff] %v2769_v26 }
  0x5a   : > { %449 = vst [vmem:[#allocation2 + $0x50] sm:$0xff] %v2769_v26 }
  0x5b   : > { %450 = vst [vmem:[#allocation2 + $0x168] sm:$0xff] %v2769_v26 }
  0x5c   : > { %451 = vst [vmem:[#allocation2 + $0x190] sm:$0xff] %v2769_v26 }
  0x5d   : > { %452 = vst [vmem:[#allocation2 + $0x38] sm:$0xff] %v2769_v26 }
  0x5e   : > { %453 = vst [vmem:[#allocation2 + $0x60] sm:$0xff] %v2769_v26 }
  0x5f   : > { %454 = vst [vmem:[#allocation2 + $0x18] sm:$0xff] %v2769_v26 }
  0x60   : > { %455 = vst [vmem:[#allocation2 + $0x158] sm:$0xff] %v2769_v26 }
  0x61   : > { %456 = vst [vmem:[#allocation2 + $0x120] sm:$0xff] %v2769_v26 }
  0x62   : > { %457 = vst [vmem:[#allocation2 + $0x198] sm:$0xff] %v2769_v26 }
  0x63   : > { %458 = vst [vmem:[#allocation2 + $0x68] sm:$0xff] %v2769_v26 }
  0x64   : > { %459 = vst [vmem:[#allocation2 + $0x30] sm:$0xff] %v2769_v26 }
  0x65   : > { %460 = vst [vmem:[#allocation2 + $0xc8] sm:$0xff] %v2769_v26 }
  0x66   : > { %461 = vst [vmem:[#allocation2 + $0xf8] sm:$0xff] %v2769_v26 }
  0x67   : > { %462 = vst [vmem:[#allocation2 + $0x28] sm:$0xff] %v2769_v26 }
  0x68   : > { %463 = vst [vmem:[#allocation2 + $0x8] sm:$0xff] %v2769_v26 }
  0x69   : > { %464 = vst [vmem:[#allocation2 + $0x80] sm:$0xff] %v2769_v26 }
  0x6a   : > { %465 = vst [vmem:[#allocation2 + $0x98] sm:$0xff] %v2769_v26 }
  0x6b   : > { %466 = vst [vmem:[#allocation2 + $0x150] sm:$0xff] %v2769_v26 }
  0x6c   : > { %467 = vst [vmem:[#allocation2 + $0xe8] sm:$0xff] %v2769_v26 }
  0x6d   : > { %468 = vst [vmem:[#allocation2 + $0x70] sm:$0xff] %v2769_v26 }
  0x6e PF: > { %v2369_v27 = vld [vmem:[%s2896_s7 + $0x70] sm:$0xf]  ;;  %v2461_v28 = vld [vmem:[%s2896_s7 + $0x74] sm:$0xf0]  ;;  %v2460_v29 = vld [vmem:[%s2896_s7 + $0x74] sm:$0xf] }
  0x6f   : > { %v2370_v30 = vor.u32 %v2461_v28, %v2369_v27  ;;  %v2371_v31 = vld [vmem:[%s2896_s7 + $0x78] sm:$0xf0]  ;;  %v2361_v32 = vld [vmem:[%s2896_s7 + $0x60] sm:$0xf]  ;;  %v2459_v33 = vld [vmem:[%s2896_s7 + $0x64] sm:$0xf0] }
  0x70   : > { %v2374_v34 = vor.u32 %v2460_v29, %v2371_v31  ;;  %v2458_v35 = vld [vmem:[%s2896_s7 + $0x64] sm:$0xf]  ;;  %v2363_v36 = vld [vmem:[%s2896_s7 + $0x68] sm:$0xf0]  ;;  %v2362_v37 = vor.u32 %v2459_v33, %v2361_v32  ;;  %v2353_v39 = vld [vmem:[%s2896_s7 + $0x50] sm:$0xf] }
  0x71   : > { %2462 = vmatpush.bf16.msra.mxu2 %v2370_v30  ;;  %721 = vmatpush.bf16.msra.mxu0 %v2370_v30  ;;  %v2366_v38 = vor.u32 %v2458_v35, %v2363_v36  ;;  %v2457_v40 = vld [vmem:[%s2896_s7 + $0x54] sm:$0xf0]  ;;  %v2456_v41 = vld [vmem:[%s2896_s7 + $0x54] sm:$0xf]  ;;  %v2355_v42 = vld [vmem:[%s2896_s7 + $0x58] sm:$0xf0] }
  0x72   : > { %795 = vmatpush.bf16.msra.mxu1 %v2374_v34  ;;  %2470 = vmatpush.bf16.msra.mxu3 %v2374_v34  ;;  %v2354_v43 = vor.u32 %v2457_v40, %v2353_v39  ;;  %v2358_v44 = vor.u32 %v2456_v41, %v2355_v42  ;;  %v2345_v45 = vld [vmem:[%s2896_s7 + $0x40] sm:$0xf]  ;;  %v2455_v46 = vld [vmem:[%s2896_s7 + $0x44] sm:$0xf0]  ;;  %v2454_v47 = vld [vmem:[%s2896_s7 + $0x44] sm:$0xf] }
  0x73   : > { %v2347_v48 = vld [vmem:[%s2896_s7 + $0x48] sm:$0xf0]  ;;  %v2346_v49 = vor.u32 %v2455_v46, %v2345_v45  ;;  %v2337_v51 = vld [vmem:[%s2896_s7 + $0x30] sm:$0xf]  ;;  %v2453_v52 = vld [vmem:[%s2896_s7 + $0x34] sm:$0xf0] }
  0x74   : > { %v2350_v50 = vor.u32 %v2454_v47, %v2347_v48  ;;  %v2452_v53 = vld [vmem:[%s2896_s7 + $0x34] sm:$0xf]  ;;  %v2339_v54 = vld [vmem:[%s2896_s7 + $0x38] sm:$0xf0]  ;;  %v2338_v55 = vor.u32 %v2453_v52, %v2337_v51  ;;  %v2329_v57 = vld [vmem:[%s2896_s7 + $0x20] sm:$0xf] }
  0x75   : > { %2463 = vmatpush.bf16.msra.mxu2 %v2362_v37  ;;  %722 = vmatpush.bf16.msra.mxu0 %v2362_v37  ;;  %v2342_v56 = vor.u32 %v2452_v53, %v2339_v54  ;;  %v2451_v58 = vld [vmem:[%s2896_s7 + $0x24] sm:$0xf0]  ;;  %v2450_v59 = vld [vmem:[%s2896_s7 + $0x24] sm:$0xf]  ;;  %v2331_v60 = vld [vmem:[%s2896_s7 + $0x28] sm:$0xf0] }
  0x76   : > { %796 = vmatpush.bf16.msra.mxu1 %v2366_v38  ;;  %2471 = vmatpush.bf16.msra.mxu3 %v2366_v38  ;;  %v2330_v61 = vor.u32 %v2451_v58, %v2329_v57  ;;  %v2334_v62 = vor.u32 %v2450_v59, %v2331_v60  ;;  %v2321_v63 = vld [vmem:[%s2896_s7 + $0x10] sm:$0xf]  ;;  %v2449_v0 = vld [vmem:[%s2896_s7 + $0x14] sm:$0xf0]  ;;  %v2448_v1 = vld [vmem:[%s2896_s7 + $0x14] sm:$0xf] }
  0x77   : > { %v2323_v2 = vld [vmem:[%s2896_s7 + $0x18] sm:$0xf0]  ;;  %v2322_v3 = vor.u32 %v2449_v0, %v2321_v63  ;;  %v2313_v5 = vld [vmem:[%s2896_s7] sm:$0xf]  ;;  %v2447_v6 = vld [vmem:[%s2896_s7 + $0x4] sm:$0xf0] }
  0x78   : > { %v2326_v4 = vor.u32 %v2448_v1, %v2323_v2  ;;  %v2446_v7 = vld [vmem:[%s2896_s7 + $0x4] sm:$0xf]  ;;  %v2315_v8 = vld [vmem:[%s2896_s7 + $0x8] sm:$0xf0]  ;;  %v2314_v9 = vor.u32 %v2447_v6, %v2313_v5  ;;  %v2439_v11 = vld [vmem:[%s2898_s8 + $0x30] sm:$0xff]  ;;  %p2375_p11 = scmp.ne.s32.totalorder %s2759_s14, 8 }
  0x79   : > { %2464 = vmatpush.bf16.msra.mxu2 %v2354_v43  ;;  %723 = vmatpush.bf16.msra.mxu0 %v2354_v43  ;;  %v2318_v10 = vor.u32 %v2446_v7, %v2315_v8  ;;  %v2433_v12 = vld [vmem:[%s2898_s8] sm:$0xff]  ;;  %v2440_v13 = vld [vmem:[%s2898_s8 + $0x38] sm:$0xff]  ;;  %v2434_v14 = vld [vmem:[%s2898_s8 + $0x8] sm:$0xff] }
  0x7a   : > { %797 = vmatpush.bf16.msra.mxu1 %v2358_v44  ;;  %2472 = vmatpush.bf16.msra.mxu3 %v2358_v44  ;;  %v2441_v15 = vld [vmem:[%s2898_s8 + $0x40] sm:$0xff]  ;;  %v2435_v16 = vld [vmem:[%s2898_s8 + $0x10] sm:$0xff]  ;;  %v2442_v17 = vld [vmem:[%s2898_s8 + $0x48] sm:$0xff] }
  0x7b   : > { %v2436_v18 = vld [vmem:[%s2898_s8 + $0x18] sm:$0xff]  ;;  %v2443_v19 = vld [vmem:[%s2898_s8 + $0x50] sm:$0xff]  ;;  %v2437_v20 = vld [vmem:[%s2898_s8 + $0x20] sm:$0xff] }
  0x7c   : > { %v2444_v21 = vld [vmem:[%s2898_s8 + $0x58] sm:$0xff]  ;;  %v2438_v22 = vld [vmem:[%s2898_s8 + $0x28] sm:$0xff]  ;;  %v2445_v23 = vld [vmem:[%s2898_s8 + $0x60] sm:$0xff] }
  0x7d   : > { %2465 = vmatpush.bf16.msra.mxu2 %v2346_v49  ;;  %724 = vmatpush.bf16.msra.mxu0 %v2346_v49  ;;  %v469_v24 = vld [vmem:[#allocation2 + $0xb0] sm:$0xff]  ;;  %v472_v35 = vld [vmem:[#allocation2 + $0x48] sm:$0xff]  ;;  %v500_v43 = vld [vmem:[#allocation2 + $0x140] sm:$0xff] }
  0x7e   : > { %798 = vmatpush.bf16.msra.mxu1 %v2350_v50  ;;  %2473 = vmatpush.bf16.msra.mxu3 %v2350_v50  ;;  %v470_v25 = vld [vmem:[#allocation2 + $0xd0] sm:$0xff]  ;;  %v495_v42 = vld [vmem:[#allocation2 + $0xa8] sm:$0xff]  ;;  %v473_v45 = vld [vmem:[#allocation2 + $0x160] sm:$0xff] }
  0x7f   : > { %v493_v30 = vld [vmem:[#allocation2 + $0xf0] sm:$0xff]  ;;  %v474_v47 = vld [vmem:[#allocation2 + $0x128] sm:$0xff]  ;;  %v497_v54 = vld [vmem:[#allocation2 + $0xb8] sm:$0xff] }
  0x80   : > { %v498_v31 = vld [vmem:[#allocation2 + $0x170] sm:$0xff]  ;;  %v475_v57 = vld [vmem:[#allocation2 + $0x40] sm:$0xff]  ;;  %v476_v59 = vld [vmem:[#allocation2 + $0x178] sm:$0xff] }
  0x81   : > { %2466 = vmatpush.bf16.msra.mxu2 %v2338_v55  ;;  %725 = vmatpush.bf16.msra.mxu0 %v2338_v55  ;;  %v471_v33 = vld [vmem:[#allocation2 + $0x10] sm:$0xff]  ;;  %v502_v55 = vld [vmem:[#allocation2 + $0x168] sm:$0xff]  ;;  %v499_v2 = vld [vmem:[#allocation2 + $0xc0] sm:$0xff] }
  0x82   : > { %799 = vmatpush.bf16.msra.mxu1 %v2342_v56  ;;  %2474 = vmatpush.bf16.msra.mxu3 %v2342_v56  ;;  %v477_v5 = vld [vmem:[#allocation2 + $0x108] sm:$0xff]  ;;  %v478_v7 = vld [vmem:[#allocation2 + $0x110] sm:$0xff] }
  0x85   : > { %2467 = vmatpush.bf16.msra.mxu2 %v2330_v61  ;;  %726 = vmatpush.bf16.msra.mxu0 %v2330_v61 }
  0x86   : > { %800 = vmatpush.bf16.msra.mxu1 %v2334_v62  ;;  %2475 = vmatpush.bf16.msra.mxu3 %v2334_v62 }
  0x89   : > { %2468 = vmatpush.bf16.msra.mxu2 %v2322_v3  ;;  %727 = vmatpush.bf16.msra.mxu0 %v2322_v3  ;;  %v504_v3 = vld [vmem:[#allocation2 + $0x38] sm:$0xff] }
  0x8a   : > { %801 = vmatpush.bf16.msra.mxu1 %v2326_v4  ;;  %2476 = vmatpush.bf16.msra.mxu3 %v2326_v4 }
  0x8d   : > { %2469 = vmatpush.bf16.msra.mxu2 %v2314_v9  ;;  %728 = vmatpush.bf16.msra.mxu0 %v2314_v9 }
  0x8e   : > { %802 = vmatpush.bf16.msra.mxu1 %v2318_v10  ;;  %2477 = vmatpush.bf16.msra.mxu3 %v2318_v10 }
  0x90   : > { %759 = vmatmul.bf16.vlgmr.msra.gmra.mxu2 %v2439_v11  ;;  %729 = vmatmul.bf16.vlgmr.msra.gmra.mxu0 %v2433_v12 }
  0x91   : > { %803 = vmatmul.bf16.vlgmr.msra.gmra.mxu1 %v2433_v12  ;;  %838 = vmatmul.bf16.vlgmr.msra.gmra.mxu3 %v2440_v13 }
  0xa0   : > { %764 = vmatmul.bf16.gmra.mxu2 %v2440_v13  ;;  %734 = vmatmul.bf16.gmra.mxu0 %v2434_v14 }
  0xa1   : > { %808 = vmatmul.bf16.gmra.mxu1 %v2434_v14  ;;  %843 = vmatmul.bf16.gmra.mxu3 %v2441_v15  ;;  %v501_v14 = vld [vmem:[#allocation2 + $0x50] sm:$0xff] }
  0xb0   : > { %769 = vmatmul.bf16.gmra.mxu2 %v2441_v15  ;;  %739 = vmatmul.bf16.gmra.mxu0 %v2435_v16  ;;  %v506_v15 = vld [vmem:[#allocation2 + $0x18] sm:$0xff] }
  0xb1   : > { %813 = vmatmul.bf16.gmra.mxu1 %v2435_v16  ;;  %848 = vmatmul.bf16.gmra.mxu3 %v2442_v17 }
  0xc0   : > { %774 = vmatmul.bf16.gmra.mxu2 %v2442_v17  ;;  %744 = vmatmul.bf16.gmra.mxu0 %v2436_v18  ;;  %v479_v17 = vld [vmem:[#allocation2 + $0x90] sm:$0xff] }
  0xc1   : > { %818 = vmatmul.bf16.gmra.mxu1 %v2436_v18  ;;  %853 = vmatmul.bf16.gmra.mxu3 %v2443_v19 }
  0xd0   : > { %779 = vmatmul.bf16.gmra.mxu2 %v2443_v19  ;;  %749 = vmatmul.bf16.gmra.mxu0 %v2437_v20  ;;  %v480_v19 = vld [vmem:[#allocation2 + $0x118] sm:$0xff] }
  0xd1   : > { %823 = vmatmul.bf16.gmra.mxu1 %v2437_v20  ;;  %858 = vmatmul.bf16.gmra.mxu3 %v2444_v21 }
  0xe0   : > { %784 = vmatmul.bf16.gmra.mxu2 %v2444_v21  ;;  %754 = vmatmul.bf16.gmra.mxu0 %v2438_v22 }
  0xe1   : > { %828 = vmatmul.bf16.gmra.mxu1 %v2438_v22  ;;  %863 = vmatmul.bf16.gmra.mxu3 %v2445_v23 }
  0xf0   : > { %789 = vmatmul.bf16.gmra.mxu2 %v2445_v23 }
  0xf1   : > { %833 = vmatmul.bf16.gmra.mxu1 %v2439_v11 }
 0x10d   : > { %v730_v26 = vpop.f32.mrf.mxu0 }
 0x10e   : > { %v804_v27 = vpop.f32.mrf.mxu1  ;;  %v869_v28 = vadd.f32 %v730_v26, %v469_v24  ;;  %v503_v26 = vld [vmem:[#allocation2 + $0x190] sm:$0xff] }
 0x10f   : > { %v870_v29 = vadd.f32 %v804_v27, %v470_v25  ;;  %v508_v27 = vld [vmem:[#allocation2 + $0x120] sm:$0xff] }
 0x110   : > { %921 = vst [vmem:[#allocation2 + $0xb0] sm:$0xff] %v869_v28 }
 0x111   : > { %922 = vst [vmem:[#allocation2 + $0xd0] sm:$0xff] %v870_v29  ;;  %v481_v29 = vld [vmem:[#allocation2 + $0x148] sm:$0xff] }
 0x113   : > { %v760_v32 = vpop.f32.mrf.mxu2 }
 0x114   : > { %v893_v34 = vadd.f32 %v760_v32, %v493_v30  ;;  %v839_v36 = vpop.f32.mrf.mxu3 }
 0x115   : > { %v898_v37 = vadd.f32 %v839_v36, %v498_v31  ;;  %v732_v38 = vpop.f32.mrf.mxu0  ;;  %v482_v31 = vld [vmem:[#allocation2 + $0x100] sm:$0xff] }
 0x116   : > { %945 = vst [vmem:[#allocation2 + $0xf0] sm:$0xff] %v893_v34  ;;  %v806_v39 = vpop.f32.mrf.mxu1  ;;  %v871_v40 = vadd.f32 %v732_v38, %v471_v33  ;;  %v505_v38 = vld [vmem:[#allocation2 + $0x60] sm:$0xff] }
 0x117   : > { %v872_v41 = vadd.f32 %v806_v39, %v472_v35  ;;  %950 = vst [vmem:[#allocation2 + $0x170] sm:$0xff] %v898_v37  ;;  %v510_v39 = vld [vmem:[#allocation2 + $0x68] sm:$0xff] }
 0x118   : > { %923 = vst [vmem:[#allocation2 + $0x10] sm:$0xff] %v871_v40 }
 0x119   : > { %924 = vst [vmem:[#allocation2 + $0x48] sm:$0xff] %v872_v41  ;;  %v483_v41 = vld [vmem:[#allocation2 + $0x58] sm:$0xff] }
 0x11b   : > { %v762_v44 = vpop.f32.mrf.mxu2 }
 0x11c   : > { %v895_v46 = vadd.f32 %v762_v44, %v495_v42  ;;  %v841_v48 = vpop.f32.mrf.mxu3 }
 0x11d   : > { %v900_v49 = vadd.f32 %v841_v48, %v500_v43  ;;  %v735_v50 = vpop.f32.mrf.mxu0  ;;  %v484_v43 = vld [vmem:[#allocation2 + $0xd8] sm:$0xff] }
 0x11e   : > { %947 = vst [vmem:[#allocation2 + $0xa8] sm:$0xff] %v895_v46  ;;  %v809_v51 = vpop.f32.mrf.mxu1  ;;  %v873_v52 = vadd.f32 %v735_v50, %v473_v45  ;;  %v507_v50 = vld [vmem:[#allocation2 + $0x158] sm:$0xff] }
 0x11f   : > { %v874_v53 = vadd.f32 %v809_v51, %v474_v47  ;;  %952 = vst [vmem:[#allocation2 + $0x140] sm:$0xff] %v900_v49  ;;  %v512_v51 = vld [vmem:[#allocation2 + $0xc8] sm:$0xff] }
 0x120   : > { %925 = vst [vmem:[#allocation2 + $0x160] sm:$0xff] %v873_v52 }
 0x121   : > { %926 = vst [vmem:[#allocation2 + $0x128] sm:$0xff] %v874_v53  ;;  %v485_v53 = vld [vmem:[#allocation2 + $0x180] sm:$0xff] }
 0x123   : > { %v765_v56 = vpop.f32.mrf.mxu2 }
 0x124   : > { %v897_v58 = vadd.f32 %v765_v56, %v497_v54  ;;  %v844_v60 = vpop.f32.mrf.mxu3 }
 0x125   : > { %v902_v61 = vadd.f32 %v844_v60, %v502_v55  ;;  %v737_v62 = vpop.f32.mrf.mxu0  ;;  %v486_v55 = vld [vmem:[#allocation2 + $0x130] sm:$0xff] }
 0x126   : > { %949 = vst [vmem:[#allocation2 + $0xb8] sm:$0xff] %v897_v58  ;;  %v811_v63 = vpop.f32.mrf.mxu1  ;;  %v875_v0 = vadd.f32 %v737_v62, %v475_v57  ;;  %v509_v62 = vld [vmem:[#allocation2 + $0x198] sm:$0xff] }
 0x127   : > { %v876_v1 = vadd.f32 %v811_v63, %v476_v59  ;;  %954 = vst [vmem:[#allocation2 + $0x168] sm:$0xff] %v902_v61  ;;  %v514_v63 = vld [vmem:[#allocation2 + $0x28] sm:$0xff] }
 0x128   : > { %927 = vst [vmem:[#allocation2 + $0x40] sm:$0xff] %v875_v0 }
 0x129   : > { %928 = vst [vmem:[#allocation2 + $0x178] sm:$0xff] %v876_v1  ;;  %v487_v1 = vld [vmem:[#allocation2 + $0x138] sm:$0xff] }
 0x12b   : > { %v767_v4 = vpop.f32.mrf.mxu2 }
 0x12c   : > { %v899_v6 = vadd.f32 %v767_v4, %v499_v2  ;;  %v846_v8 = vpop.f32.mrf.mxu3 }
 0x12d   : > { %v904_v9 = vadd.f32 %v846_v8, %v504_v3  ;;  %v740_v10 = vpop.f32.mrf.mxu0  ;;  %v488_v3 = vld [vmem:[#allocation2 + $0x78] sm:$0xff] }
 0x12e   : > { %951 = vst [vmem:[#allocation2 + $0xc0] sm:$0xff] %v899_v6  ;;  %v814_v11 = vpop.f32.mrf.mxu1  ;;  %v877_v12 = vadd.f32 %v740_v10, %v477_v5  ;;  %v511_v10 = vld [vmem:[#allocation2 + $0x30] sm:$0xff] }
 0x12f   : > { %v878_v13 = vadd.f32 %v814_v11, %v478_v7  ;;  %956 = vst [vmem:[#allocation2 + $0x38] sm:$0xff] %v904_v9  ;;  %v516_v11 = vld [vmem:[#allocation2 + $0x80] sm:$0xff] }
 0x130   : > { %929 = vst [vmem:[#allocation2 + $0x108] sm:$0xff] %v877_v12 }
 0x131   : > { %930 = vst [vmem:[#allocation2 + $0x110] sm:$0xff] %v878_v13  ;;  %v489_v13 = vld [vmem:[#allocation2 + $0xa0] sm:$0xff] }
 0x133   : > { %v770_v16 = vpop.f32.mrf.mxu2 }
 0x134   : > { %v901_v18 = vadd.f32 %v770_v16, %v501_v14  ;;  %v849_v20 = vpop.f32.mrf.mxu3 }
 0x135   : > { %v906_v21 = vadd.f32 %v849_v20, %v506_v15  ;;  %v742_v22 = vpop.f32.mrf.mxu0  ;;  %v490_v15 = vld [vmem:[#allocation2] sm:$0xff] }
 0x136   : > { %953 = vst [vmem:[#allocation2 + $0x50] sm:$0xff] %v901_v18  ;;  %v816_v23 = vpop.f32.mrf.mxu1  ;;  %v879_v24 = vadd.f32 %v742_v22, %v479_v17  ;;  %v513_v22 = vld [vmem:[#allocation2 + $0xf8] sm:$0xff] }
 0x137   : > { %v880_v25 = vadd.f32 %v816_v23, %v480_v19  ;;  %958 = vst [vmem:[#allocation2 + $0x18] sm:$0xff] %v906_v21  ;;  %v518_v23 = vld [vmem:[#allocation2 + $0x150] sm:$0xff] }
 0x138   : > { %931 = vst [vmem:[#allocation2 + $0x90] sm:$0xff] %v879_v24 }
 0x139   : > { %932 = vst [vmem:[#allocation2 + $0x118] sm:$0xff] %v880_v25  ;;  %v491_v25 = vld [vmem:[#allocation2 + $0x20] sm:$0xff] }
 0x13b   : > { %v772_v28 = vpop.f32.mrf.mxu2 }
 0x13c   : > { %v903_v30 = vadd.f32 %v772_v28, %v503_v26  ;;  %v851_v32 = vpop.f32.mrf.mxu3 }
 0x13d   : > { %v908_v33 = vadd.f32 %v851_v32, %v508_v27  ;;  %v745_v34 = vpop.f32.mrf.mxu0  ;;  %v492_v27 = vld [vmem:[#allocation2 + $0xe0] sm:$0xff] }
 0x13e   : > { %955 = vst [vmem:[#allocation2 + $0x190] sm:$0xff] %v903_v30  ;;  %v819_v35 = vpop.f32.mrf.mxu1  ;;  %v881_v36 = vadd.f32 %v745_v34, %v481_v29  ;;  %v515_v34 = vld [vmem:[#allocation2 + $0x8] sm:$0xff] }
 0x13f   : > { %v882_v37 = vadd.f32 %v819_v35, %v482_v31  ;;  %960 = vst [vmem:[#allocation2 + $0x120] sm:$0xff] %v908_v33  ;;  %v520_v35 = vld [vmem:[#allocation2 + $0x70] sm:$0xff] }
 0x140   : > { %933 = vst [vmem:[#allocation2 + $0x148] sm:$0xff] %v881_v36 }
 0x141   : > { %934 = vst [vmem:[#allocation2 + $0x100] sm:$0xff] %v882_v37 }
 0x143   : > { %v775_v40 = vpop.f32.mrf.mxu2 }
 0x144   : > { %v905_v42 = vadd.f32 %v775_v40, %v505_v38  ;;  %v854_v44 = vpop.f32.mrf.mxu3  ;;  %v494_v38 = vld [vmem:[#allocation2 + $0x188] sm:$0xff] }
 0x145   : > { %v910_v45 = vadd.f32 %v854_v44, %v510_v39  ;;  %v747_v46 = vpop.f32.mrf.mxu0 }
 0x146   : > { %957 = vst [vmem:[#allocation2 + $0x60] sm:$0xff] %v905_v42  ;;  %v821_v47 = vpop.f32.mrf.mxu1  ;;  %v883_v48 = vadd.f32 %v747_v46, %v483_v41  ;;  %v496_v46 = vld [vmem:[#allocation2 + $0x88] sm:$0xff] }
 0x147   : > { %v884_v49 = vadd.f32 %v821_v47, %v484_v43  ;;  %962 = vst [vmem:[#allocation2 + $0x68] sm:$0xff] %v910_v45  ;;  %v517_v43 = vld [vmem:[#allocation2 + $0x98] sm:$0xff] }
 0x148   : > { %935 = vst [vmem:[#allocation2 + $0x58] sm:$0xff] %v883_v48 }
 0x149   : > { %936 = vst [vmem:[#allocation2 + $0xd8] sm:$0xff] %v884_v49  ;;  %v519_v49 = vld [vmem:[#allocation2 + $0xe8] sm:$0xff] }
 0x14b   : > { %v777_v52 = vpop.f32.mrf.mxu2 }
 0x14c   : > { %v907_v54 = vadd.f32 %v777_v52, %v507_v50  ;;  %v856_v56 = vpop.f32.mrf.mxu3 }
 0x14d   : > { %v912_v57 = vadd.f32 %v856_v56, %v512_v51  ;;  %v750_v58 = vpop.f32.mrf.mxu0 }
 0x14e   : > { %959 = vst [vmem:[#allocation2 + $0x158] sm:$0xff] %v907_v54  ;;  %v824_v59 = vpop.f32.mrf.mxu1  ;;  %v885_v60 = vadd.f32 %v750_v58, %v485_v53 }
 0x14f   : > { %v886_v61 = vadd.f32 %v824_v59, %v486_v55  ;;  %964 = vst [vmem:[#allocation2 + $0xc8] sm:$0xff] %v912_v57 }
 0x150   : > { %937 = vst [vmem:[#allocation2 + $0x180] sm:$0xff] %v885_v60 }
 0x151   : > { %938 = vst [vmem:[#allocation2 + $0x130] sm:$0xff] %v886_v61 }
 0x153   : > { %v780_v0 = vpop.f32.mrf.mxu2 }
 0x154   : > { %v909_v2 = vadd.f32 %v780_v0, %v509_v62  ;;  %v859_v4 = vpop.f32.mrf.mxu3 }
 0x155   : > { %v914_v5 = vadd.f32 %v859_v4, %v514_v63  ;;  %v752_v6 = vpop.f32.mrf.mxu0 }
 0x156   : > { %961 = vst [vmem:[#allocation2 + $0x198] sm:$0xff] %v909_v2  ;;  %v826_v7 = vpop.f32.mrf.mxu1  ;;  %v887_v8 = vadd.f32 %v752_v6, %v487_v1 }
 0x157   : > { %v888_v9 = vadd.f32 %v826_v7, %v488_v3  ;;  %966 = vst [vmem:[#allocation2 + $0x28] sm:$0xff] %v914_v5 }
 0x158   : > { %939 = vst [vmem:[#allocation2 + $0x138] sm:$0xff] %v887_v8 }
 0x159   : > { %940 = vst [vmem:[#allocation2 + $0x78] sm:$0xff] %v888_v9 }
 0x15b   : > { %v782_v12 = vpop.f32.mrf.mxu2 }
 0x15c   : > { %v911_v14 = vadd.f32 %v782_v12, %v511_v10  ;;  %v861_v16 = vpop.f32.mrf.mxu3 }
 0x15d   : > { %v916_v17 = vadd.f32 %v861_v16, %v516_v11  ;;  %v755_v18 = vpop.f32.mrf.mxu0 }
 0x15e   : > { %963 = vst [vmem:[#allocation2 + $0x30] sm:$0xff] %v911_v14  ;;  %v829_v19 = vpop.f32.mrf.mxu1  ;;  %v889_v20 = vadd.f32 %v755_v18, %v489_v13 }
 0x15f   : > { %v890_v21 = vadd.f32 %v829_v19, %v490_v15  ;;  %968 = vst [vmem:[#allocation2 + $0x80] sm:$0xff] %v916_v17 }
 0x160   : > { %941 = vst [vmem:[#allocation2 + $0xa0] sm:$0xff] %v889_v20 }
 0x161   : > { %942 = vst [vmem:[#allocation2] sm:$0xff] %v890_v21 }
 0x163   : > { %v785_v24 = vpop.f32.mrf.mxu2 }
 0x164   : > { %v913_v26 = vadd.f32 %v785_v24, %v513_v22  ;;  %v864_v28 = vpop.f32.mrf.mxu3 }
 0x165   : > { %v918_v29 = vadd.f32 %v864_v28, %v518_v23  ;;  %v757_v30 = vpop.f32.mrf.mxu0 }
 0x166   : > { %965 = vst [vmem:[#allocation2 + $0xf8] sm:$0xff] %v913_v26  ;;  %v831_v31 = vpop.f32.mrf.mxu1  ;;  %v891_v32 = vadd.f32 %v757_v30, %v491_v25 }
 0x167   : > { %v892_v33 = vadd.f32 %v831_v31, %v492_v27  ;;  %970 = vst [vmem:[#allocation2 + $0x150] sm:$0xff] %v918_v29 }
 0x168   : > { %943 = vst [vmem:[#allocation2 + $0x20] sm:$0xff] %v891_v32 }
 0x169   : > { %944 = vst [vmem:[#allocation2 + $0xe0] sm:$0xff] %v892_v33 }
 0x16b   : > { %v787_v36 = vpop.f32.mrf.mxu2 }
 0x16c   : > { %v915_v37 = vadd.f32 %v787_v36, %v515_v34  ;;  %v866_v39 = vpop.f32.mrf.mxu3 }
 0x16d   : > { %v920_v40 = vadd.f32 %v866_v39, %v520_v35 }
 0x16e   : > { %967 = vst [vmem:[#allocation2 + $0x8] sm:$0xff] %v915_v37  ;;  %v834_v41 = vpop.f32.mrf.mxu1 }
 0x16f   : > { %v894_v42 = vadd.f32 %v834_v41, %v494_v38  ;;  %972 = vst [vmem:[#allocation2 + $0x70] sm:$0xff] %v920_v40 }
 0x171   : > { %946 = vst [vmem:[#allocation2 + $0x188] sm:$0xff] %v894_v42 }
 0x173   : > { %v790_v44 = vpop.f32.mrf.mxu2 }
 0x174   : > { %v917_v45 = vadd.f32 %v790_v44, %v517_v43 }
 0x176   : > { %969 = vst [vmem:[#allocation2 + $0x98] sm:$0xff] %v917_v45  ;;  %v836_v47 = vpop.f32.mrf.mxu1 }
 0x177   : > { %v896_v48 = vadd.f32 %v836_v47, %v496_v46 }
 0x179   : > { %948 = vst [vmem:[#allocation2 + $0x88] sm:$0xff] %v896_v48 }
 0x17a   : > { %976 = sbr.rel (%p2375_p11) target bundleno = 623 (0x26f), region = 81 }
 0x17b   : > { %v792_v50 = vpop.f32.mrf.mxu2 }
 0x17c   : > { %v919_v51 = vadd.f32 %v792_v50, %v519_v49 }
 0x17e   : > { %971 = vst [vmem:[#allocation2 + $0xe8] sm:$0xff] %v919_v51 }
 0x17f   : > { %v977_v52 = vld [vmem:[#allocation2 + $0xb0] sm:$0xff]  ;;  %v1029_v53 = vld [vmem:[%s4250_s2] sm:$0x3]  ;;  %v980_v58 = vld [vmem:[#allocation2 + $0x48] sm:$0xff] }
 0x180   : > { %v978_v54 = vld [vmem:[#allocation2 + $0xd0] sm:$0xff]  ;;  %v2950_v55 = vperm.slane %v1029_v53, 0  ;;  %v2952_v56 = vperm.slane %v1029_v53, 1  ;;  %v981_v59 = vld [vmem:[#allocation2 + $0x160] sm:$0xff]  ;;  %v982_v60 = vld [vmem:[#allocation2 + $0x128] sm:$0xff] }
 0x181   : > { %v979_v57 = vld [vmem:[#allocation2 + $0x10] sm:$0xff]  ;;  %v983_v1 = vld [vmem:[#allocation2 + $0x40] sm:$0xff]  ;;  %v984_v4 = vld [vmem:[#allocation2 + $0x178] sm:$0xff] }
 0x182   : > { %v1035_v61 = vadd.f32 %v2950_v55, %v977_v52  ;;  %v1036_v62 = vadd.f32 %v2952_v56, %v978_v54  ;;  %v1037_v63 = vadd.f32 %v2950_v55, %v979_v57  ;;  %v1038_v0 = vadd.f32 %v2952_v56, %v980_v58  ;;  %v985_v13 = vld [vmem:[#allocation2 + $0x108] sm:$0xff]  ;;  %v986_v14 = vld [vmem:[#allocation2 + $0x110] sm:$0xff]  ;;  %v988_v17 = vld [vmem:[#allocation2 + $0x118] sm:$0xff] }
 0x183   : > { %v1039_v2 = vadd.f32 %v2950_v55, %v981_v59  ;;  %v1040_v3 = vadd.f32 %v2952_v56, %v982_v60  ;;  %v1041_v9 = vadd.f32 %v2950_v55, %v983_v1  ;;  %v1042_v11 = vadd.f32 %v2952_v56, %v984_v4  ;;  %v987_v15 = vld [vmem:[#allocation2 + $0x90] sm:$0xff]  ;;  %v989_v18 = vld [vmem:[#allocation2 + $0x148] sm:$0xff]  ;;  %v990_v35 = vld [vmem:[#allocation2 + $0x100] sm:$0xff] }
 0x184   : > { %v2376_v5 = vmul.f32 -1.442695, %v1035_v61  ;;  %v2377_v6 = vmul.f32 -1.442695, %v1036_v62  ;;  %v2378_v7 = vmul.f32 -1.442695, %v1037_v63  ;;  %v1043_v20 = vadd.f32 %v2950_v55, %v985_v13 }
 0x185   : > { %v2379_v8 = vmul.f32 -1.442695, %v1038_v0  ;;  %v2380_v10 = vmul.f32 -1.442695, %v1039_v2  ;;  %v2381_v12 = vmul.f32 -1.442695, %v1040_v3  ;;  %v1044_v21 = vadd.f32 %v2952_v56, %v986_v14 }
 0x186   : > { %2521 = vpow2.f32 %v2376_v5  ;;  %v2382_v16 = vmul.f32 -1.442695, %v1041_v9  ;;  %v2383_v19 = vmul.f32 -1.442695, %v1042_v11  ;;  %v1045_v22 = vadd.f32 %v2950_v55, %v987_v15 }
 0x187   : > { %2523 = vpow2.f32 %v2377_v6  ;;  %v1046_v24 = vadd.f32 %v2952_v56, %v988_v17  ;;  %v1047_v25 = vadd.f32 %v2950_v55, %v989_v18  ;;  %v2384_v30 = vmul.f32 -1.442695, %v1043_v20 }
 0x188   : > { %2525 = vpow2.f32 %v2378_v7  ;;  %v2973_v33 = vmul.f32 -1.442695, %v1044_v21  ;;  %v2975_v34 = vmul.f32 -1.442695, %v1045_v22  ;;  %v2993_v46 = vadd.f32 %v2952_v56, %v990_v35 }
 0x189   : > { %2527 = vpow2.f32 %v2379_v8  ;;  %v2979_v38 = vmul.f32 -1.442695, %v1046_v24  ;;  %v2981_v39 = vmul.f32 -1.442695, %v1047_v25 }
 0x18a   : > { %2529 = vpow2.f32 %v2380_v10 }
 0x18b   : > { %2531 = vpow2.f32 %v2381_v12 }
 0x18c   : > { %v2522_v23 = vpop.eup %2521  ;;  %2533 = vpow2.f32 %v2382_v16 }
 0x18d   : > { %v2524_v26 = vpop.eup %2523  ;;  %v2967_v27 = vadd.f32 1.0, %v2522_v23  ;;  %2535 = vpow2.f32 %v2383_v19 }
 0x18e   : > { %v2526_v28 = vpop.eup %2525  ;;  %v2969_v29 = vadd.f32 1.0, %v2524_v26 }
 0x18f   : > { %v2528_v31 = vpop.eup %2527  ;;  %2537 = vrcp.f32 %v2967_v27  ;;  %v1306_v32 = vand.u32 2147483648, %v2967_v27  ;;  %v1304_v37 = vand.u32 2147483647, %v2967_v27  ;;  %v2985_v43 = vadd.f32 1.0, %v2526_v28 }
 0x190   : > { %v2530_v36 = vpop.eup %2529  ;;  %2539 = vrcp.f32 %v2969_v29  ;;  %v1319_v41 = vand.u32 2147483647, %v2969_v29  ;;  %v1321_v42 = vand.u32 2147483648, %v2969_v29  ;;  %v2987_v44 = vadd.f32 1.0, %v2528_v31 }
 0x191   : > { %v2532_v40 = vpop.eup %2531  ;;  %vm1300_vm0 = vweird.f32 %v2967_v27  ;;  %v2990_v45 = vadd.f32 1.0, %v2530_v36  ;;  %2541 = vpow2.f32 %v2384_v30  ;;  %v1307_v48 = vor.u32 1.1754944e-38, %v1306_v32 }
 0x192   : > { %v2534_v47 = vpop.eup %2533  ;;  %vm1315_vm1 = vweird.f32 %v2969_v29  ;;  %2543 = vrcp.f32 %v2985_v43  ;;  %v1336_v49 = vand.u32 2147483648, %v2985_v43  ;;  %vm2998_vm2 = vcmp.eq.f32.partialorder %v1304_v37, 8.507059e+37 }
 0x193   : > { %v2536_v50 = vpop.eup %2535  ;;  %v1334_v52 = vand.u32 2147483647, %v2985_v43  ;;  %2545 = vrcp.f32 %v2987_v44  ;;  %v1351_v53 = vand.u32 2147483648, %v2987_v44  ;;  %v3005_v54 = vadd.f32 1.0, %v2532_v40 }
 0x194   : > { %vm3007_vm3 = vcmp.eq.f32.partialorder %v1319_v41, 8.507059e+37  ;;  %v1322_v59 = vor.u32 1.1754944e-38, %v1321_v42  ;;  %v1349_v60 = vand.u32 2147483647, %v2987_v44  ;;  %2547 = vrcp.f32 %v2990_v45 }
 0x195   : > { %v2538_v57 = vpop.eup %2537  ;;  %vm1330_vm4 = vweird.f32 %v2985_v43  ;;  %v3015_v63 = vor.u32 1.1754944e-38, %v1336_v49  ;;  %vm1345_vm5 = vweird.f32 %v2987_v44  ;;  %vm1360_vm6 = vweird.f32 %v2990_v45 }
 0x196   : > { %v2540_v61 = vpop.eup %2539  ;;  %v1296_v62 = vmul.f32 %v2538_v57, %v2967_v27  ;;  %v1364_v1 = vand.u32 2147483647, %v2990_v45  ;;  %v1366_v2 = vand.u32 2147483648, %v2990_v45  ;;  %vm1301_vm7 = vweird.f32 %v2538_v57 }
 0x197   : > { %v1311_v0 = vmul.f32 %v2540_v61, %v2969_v29  ;;  %v2542_v3 = vpop.eup %2541  ;;  %vm3022_vm8 = vcmp.eq.f32.partialorder %v1334_v52, 8.507059e+37  ;;  %v1352_v6 = vor.u32 1.1754944e-38, %v1351_v53  ;;  %2549 = vrcp.f32 %v3005_v54  ;;  %vm3041_vm13 = vmor %vm1300_vm0, %vm1301_vm7 }
 0x198   : > { %v1297_v4 = vsub.f32 1.0, %v1296_v62  ;;  %v2544_v7 = vpop.eup %2543  ;;  %vm1316_vm9 = vweird.f32 %v2540_v61  ;;  %vm3027_vm10 = vcmp.eq.f32.partialorder %v1349_v60, 8.507059e+37  ;;  %v1379_v10 = vand.u32 2147483647, %v3005_v54 }
 0x199   : > { %v1312_v8 = vsub.f32 1.0, %v1311_v0  ;;  %v2546_v11 = vpop.eup %2545  ;;  %v1326_v13 = vmul.f32 %v2544_v7, %v2985_v43  ;;  %vm3034_vm12 = vcmp.eq.f32.partialorder %v1364_v1, 8.507059e+37  ;;  %v1367_v15 = vor.u32 1.1754944e-38, %v1366_v2  ;;  %vm3050_vm15 = vmor %vm1315_vm1, %vm1316_vm9 }
 0x19a   : > { %v1298_v12 = vmul.f32 %v2538_v57, %v1297_v4  ;;  %v2548_v16 = vpop.eup %2547  ;;  %vm1331_vm14 = vweird.f32 %v2544_v7  ;;  %v1341_v19 = vmul.f32 %v2546_v11, %v2987_v44  ;;  %v1381_v20 = vand.u32 2147483648, %v3005_v54 }
 0x19b   : > { %v1313_v18 = vmul.f32 %v2540_v61, %v1312_v8  ;;  %v1327_v23 = vsub.f32 1.0, %v1326_v13  ;;  %vm1346_vm11 = vweird.f32 %v2546_v11  ;;  %v1356_v24 = vmul.f32 %v2548_v16, %v2990_v45  ;;  %vm3068_vm1 = vmor %vm1330_vm4, %vm1331_vm14  ;;  %v992_v13 = vld [vmem:[#allocation2 + $0xd8] sm:$0xff] }
 0x19c   : > { %v1299_v21 = vadd.f32 %v2538_v57, %v1298_v12  ;;  %v1342_v26 = vsub.f32 1.0, %v1341_v19  ;;  %vm1361_vm0 = vweird.f32 %v2548_v16  ;;  %v3055_v27 = vadd.f32 1.0, %v2534_v47 }
 0x19d   : > { %v1314_v25 = vadd.f32 %v2540_v61, %v1313_v18  ;;  %v2550_v28 = vpop.eup %2549  ;;  %v1328_v31 = vmul.f32 %v2544_v7, %v1327_v23  ;;  %v1357_v32 = vsub.f32 1.0, %v1356_v24  ;;  %v3059_v29 = vadd.f32 1.0, %v2536_v50  ;;  %v993_v18 = vld [vmem:[#allocation2 + $0x180] sm:$0xff] }
 0x19e   : > { %v1303_v30 = vsel %vm3041_vm13, %v2538_v57, %v1299_v21  ;;  %v1343_v40 = vmul.f32 %v2546_v11, %v1342_v26  ;;  %v1371_v41 = vmul.f32 %v2550_v28, %v3005_v54  ;;  %v3085_v49 = vadd.f32 1.0, %v2542_v3 }
 0x19f   : > { %v1308_v35 = vsel %vm2998_vm2, %v1307_v48, %v1303_v30  ;;  %v1318_v36 = vsel %vm3050_vm15, %v2540_v61, %v1314_v25  ;;  %v1329_v47 = vadd.f32 %v2544_v7, %v1328_v31  ;;  %vm3081_vm2 = vmor %vm1345_vm5, %vm1346_vm11  ;;  %v1358_v48 = vmul.f32 %v2548_v16, %v1357_v32  ;;  %v991_v61 = vld [vmem:[#allocation2 + $0x58] sm:$0xff] }
 0x1a0   : > { %2075 = vst [vmem:[%s4251_s3] sm:$0xff] %v1308_v35  ;;  %v1323_v42 = vsel %vm3007_vm3, %v1322_v59, %v1318_v36  ;;  %v1344_v50 = vadd.f32 %v2546_v11, %v1343_v40  ;;  %vm3093_vm3 = vmor %vm1360_vm6, %vm1361_vm0  ;;  %v1372_v44 = vsub.f32 1.0, %v1371_v41  ;;  %vm1376_vm4 = vweird.f32 %v2550_v28  ;;  %v995_v32 = vld [vmem:[#allocation2 + $0x138] sm:$0xff] }
 0x1a1   : > { %2076 = vst [vmem:[%s4251_s3 + $0x8] sm:$0xff] %v1323_v42  ;;  %2551 = vrcp.f32 %v3055_v27  ;;  %v1333_v52 = vsel %vm3068_vm1, %v2544_v7, %v1329_v47  ;;  %v1359_v53 = vadd.f32 %v2548_v16, %v1358_v48  ;;  %v1394_v57 = vand.u32 2147483647, %v3055_v27 }
 0x1a2   : > { %v1396_v58 = vand.u32 2147483648, %v3055_v27  ;;  %v1338_v45 = vsel %vm3022_vm8, %v3015_v63, %v1333_v52  ;;  %v1348_v59 = vsel %vm3081_vm2, %v2546_v11, %v1344_v50  ;;  %v1373_v60 = vmul.f32 %v2550_v28, %v1372_v44 }
 0x1a3   : > { %2553 = vrcp.f32 %v3059_v29  ;;  %2077 = vst [vmem:[%s4251_s3 + $0x10] sm:$0xff] %v1338_v45  ;;  %v1353_v62 = vsel %vm3027_vm10, %v1352_v6, %v1348_v59  ;;  %v1363_v0 = vsel %vm3093_vm3, %v2548_v16, %v1359_v53  ;;  %vm4272_vm5 = vweird.f32 %v3005_v54 }
 0x1a4   : > { %vm3117_vm6 = vmor %vm4272_vm5, %vm1376_vm4  ;;  %v1382_v1 = vor.u32 1.1754944e-38, %v1381_v20  ;;  %v2389_v2 = vmul.f32 -1.442695, %v2993_v46  ;;  %2078 = vst [vmem:[%s4251_s3 + $0x18] sm:$0xff] %v1353_v62  ;;  %v1368_v3 = vsel %vm3034_vm12, %v1367_v15, %v1363_v0  ;;  %v1374_v4 = vadd.f32 %v2550_v28, %v1373_v60 }
 0x1a5   : > { %vm1380_vm7 = vcmp.eq.f32.partialorder %v1379_v10, 8.507059e+37  ;;  %v1409_v5 = vand.u32 2147483647, %v3059_v29  ;;  %2079 = vst [vmem:[%s4251_s3 + $0x20] sm:$0xff] %v1368_v3  ;;  %vm1390_vm8 = vweird.f32 %v3055_v27  ;;  %vm3132_vm9 = vcmp.eq.f32.partialorder %v1394_v57, 8.507059e+37 }
 0x1a6   : > { %2555 = vrcp.f32 %v3085_v49  ;;  %v1049_v46 = vadd.f32 %v2950_v55, %v991_v61  ;;  %v1378_v7 = vsel %vm3117_vm6, %v2550_v28, %v1374_v4  ;;  %v1397_v8 = vor.u32 1.1754944e-38, %v1396_v58 }
 0x1a7   : > { %v2552_v6 = vpop.eup %2551  ;;  %v1411_v9 = vand.u32 2147483648, %v3059_v29  ;;  %2557 = vpow2.f32 %v2973_v33  ;;  %v1383_v10 = vsel %vm1380_vm7, %v1382_v1, %v1378_v7  ;;  %vm1405_vm10 = vweird.f32 %v3059_v29 }
 0x1a8   : > { %v1386_v11 = vmul.f32 %v2552_v6, %v3055_v27  ;;  %v1424_v12 = vand.u32 2147483647, %v3085_v49  ;;  %2080 = vst [vmem:[%s4251_s3 + $0x28] sm:$0xff] %v1383_v10  ;;  %vm3148_vm11 = vcmp.eq.f32.partialorder %v1409_v5, 8.507059e+37  ;;  %vm1420_vm12 = vweird.f32 %v3085_v49 }
 0x1a9   : > { %v2554_v14 = vpop.eup %2553  ;;  %v1426_v33 = vand.u32 2147483648, %v3085_v49  ;;  %2559 = vpow2.f32 %v2975_v34  ;;  %vm1391_vm13 = vweird.f32 %v2552_v6  ;;  %v1412_v19 = vor.u32 1.1754944e-38, %v1411_v9  ;;  %v994_v34 = vld [vmem:[#allocation2 + $0x130] sm:$0xff] }
 0x1aa   : > { %v1387_v16 = vsub.f32 1.0, %v1386_v11  ;;  %v1401_v17 = vmul.f32 %v2554_v14, %v3059_v29  ;;  %2561 = vpow2.f32 %v2979_v38  ;;  %v2390_v20 = vmul.f32 -1.442695, %v1049_v46  ;;  %vm3166_vm0 = vmor %vm1390_vm8, %vm1391_vm13 }
 0x1ab   : > { %2563 = vpow2.f32 %v2981_v39  ;;  %v1050_v21 = vadd.f32 %v2952_v56, %v992_v13  ;;  %vm1406_vm14 = vweird.f32 %v2554_v14  ;;  %vm3159_vm15 = vcmp.eq.f32.partialorder %v1424_v12, 8.507059e+37 }
 0x1ac   : > { %v2556_v22 = vpop.eup %2555  ;;  %v1388_v23 = vmul.f32 %v2552_v6, %v1387_v16  ;;  %v1402_v24 = vsub.f32 1.0, %v1401_v17  ;;  %v1427_v28 = vor.u32 1.1754944e-38, %v1426_v33  ;;  %v1051_v31 = vadd.f32 %v2950_v55, %v993_v18  ;;  %vm3177_vm1 = vmor %vm1405_vm10, %vm1406_vm14 }
 0x1ad   : > { %v2558_v26 = vpop.eup %2557  ;;  %v1416_v39 = vmul.f32 %v2556_v22, %v3085_v49  ;;  %v2391_v30 = vmul.f32 -1.442695, %v1050_v21  ;;  %2565 = vpow2.f32 %v2389_v2  ;;  %vm1421_vm2 = vweird.f32 %v2556_v22 }
 0x1ae   : > { %v1389_v35 = vadd.f32 %v2552_v6, %v1388_v23  ;;  %v1403_v36 = vmul.f32 %v2554_v14, %v1402_v24  ;;  %v3172_v37 = vadd.f32 1.0, %v2558_v26  ;;  %2567 = vpow2.f32 %v2390_v20  ;;  %vm3196_vm3 = vmor %vm1420_vm12, %vm1421_vm2 }
 0x1af   : > { %v2560_v40 = vpop.eup %2559  ;;  %v1417_v41 = vsub.f32 1.0, %v1416_v39  ;;  %v1052_v42 = vadd.f32 %v2952_v56, %v994_v34  ;;  %v1053_v50 = vadd.f32 %v2950_v55, %v995_v32  ;;  %v2392_v52 = vmul.f32 -1.442695, %v1051_v31  ;;  %v996_v39 = vld [vmem:[#allocation2 + $0x78] sm:$0xff] }
 0x1b0   : > { %v2562_v47 = vpop.eup %2561  ;;  %v1393_v43 = vsel %vm3166_vm0, %v2552_v6, %v1389_v35  ;;  %v1404_v48 = vadd.f32 %v2554_v14, %v1403_v36  ;;  %2569 = vrcp.f32 %v3172_v37  ;;  %v1439_v58 = vand.u32 2147483647, %v3172_v37 }
 0x1b1   : > { %v2564_v51 = vpop.eup %2563  ;;  %v1398_v29 = vsel %vm3132_vm9, %v1397_v8, %v1393_v43  ;;  %v1418_v44 = vmul.f32 %v2556_v22, %v1417_v41  ;;  %2571 = vpow2.f32 %v2391_v30  ;;  %v3201_v45 = vadd.f32 1.0, %v2560_v40 }
 0x1b2   : > { %2081 = vst [vmem:[%s4251_s3 + $0x30] sm:$0xff] %v1398_v29  ;;  %v1408_v53 = vsel %vm3177_vm1, %v2554_v14, %v1404_v48  ;;  %v3203_v59 = vadd.f32 1.0, %v2562_v47  ;;  %v1441_v62 = vand.u32 2147483648, %v3172_v37  ;;  %v3208_v0 = vadd.f32 1.0, %v2564_v51 }
 0x1b3   : > { %v1413_v60 = vsel %vm3148_vm11, %v1412_v19, %v1408_v53  ;;  %v1419_v61 = vadd.f32 %v2556_v22, %v1418_v44  ;;  %v2566_v63 = vpop.eup %2565  ;;  %2573 = vrcp.f32 %v3201_v45  ;;  %v3214_v49 = vmul.f32 -1.442695, %v1052_v42 }
 0x1b4   : > { %2082 = vst [vmem:[%s4251_s3 + $0x38] sm:$0xff] %v1413_v60  ;;  %v3216_v1 = vmul.f32 -1.442695, %v1053_v50  ;;  %v2568_v2 = vpop.eup %2567  ;;  %vm1435_vm4 = vweird.f32 %v3172_v37  ;;  %v1454_v4 = vand.u32 2147483647, %v3201_v45  ;;  %2575 = vrcp.f32 %v3203_v59 }
 0x1b5   : > { %v1423_v3 = vsel %vm3196_vm3, %v2556_v22, %v1419_v61  ;;  %v1456_v46 = vand.u32 2147483648, %v3201_v45  ;;  %v1469_v6 = vand.u32 2147483647, %v3203_v59  ;;  %v1471_v7 = vand.u32 2147483648, %v3203_v59 }
 0x1b6   : > { %v2570_v5 = vpop.eup %2569  ;;  %v1428_v54 = vsel %vm3159_vm15, %v1427_v28, %v1423_v3  ;;  %vm3232_vm5 = vcmp.eq.f32.partialorder %v1439_v58, 8.507059e+37  ;;  %v1442_v11 = vor.u32 1.1754944e-38, %v1441_v62  ;;  %2577 = vrcp.f32 %v3208_v0 }
 0x1b7   : > { %v2572_v8 = vpop.eup %2571  ;;  %2083 = vst [vmem:[%s4251_s3 + $0x40] sm:$0xff] %v1428_v54  ;;  %v1431_v9 = vmul.f32 %v2570_v5, %v3172_v37  ;;  %vm1450_vm6 = vweird.f32 %v3201_v45  ;;  %vm1465_vm7 = vweird.f32 %v3203_v59  ;;  %v1484_v12 = vand.u32 2147483647, %v3208_v0 }
 0x1b8   : > { %v1486_v13 = vand.u32 2147483648, %v3208_v0  ;;  %vm1436_vm8 = vweird.f32 %v2570_v5  ;;  %vm3241_vm9 = vcmp.eq.f32.partialorder %v1454_v4, 8.507059e+37  ;;  %v3245_v33 = vadd.f32 1.0, %v2566_v63 }
 0x1b9   : > { %v1432_v14 = vsub.f32 1.0, %v1431_v9  ;;  %v3247_v16 = vadd.f32 1.0, %v2568_v2  ;;  %v2574_v17 = vpop.eup %2573  ;;  %v1457_v18 = vor.u32 1.1754944e-38, %v1456_v46  ;;  %vm3249_vm10 = vcmp.eq.f32.partialorder %v1469_v6, 8.507059e+37  ;;  %vm3260_vm12 = vmor %vm1435_vm4, %vm1436_vm8 }
 0x1ba   : > { %v1472_v20 = vor.u32 1.1754944e-38, %v1471_v7  ;;  %vm1480_vm11 = vweird.f32 %v3208_v0  ;;  %v2576_v21 = vpop.eup %2575  ;;  %v1446_v23 = vmul.f32 %v2574_v17, %v3201_v45  ;;  %2579 = vrcp.f32 %v3245_v33 }
 0x1bb   : > { %v1433_v22 = vmul.f32 %v2570_v5, %v1432_v14  ;;  %v3256_v24 = vadd.f32 1.0, %v2572_v8  ;;  %vm1451_vm13 = vweird.f32 %v2574_v17  ;;  %v1461_v34 = vmul.f32 %v2576_v21, %v3203_v59 }
 0x1bc   : > { %vm3265_vm14 = vcmp.eq.f32.partialorder %v1484_v12, 8.507059e+37  ;;  %v1487_v38 = vor.u32 1.1754944e-38, %v1486_v13  ;;  %2581 = vpow2.f32 %v2392_v52  ;;  %v2578_v28 = vpop.eup %2577  ;;  %v1447_v31 = vsub.f32 1.0, %v1446_v23  ;;  %vm3282_vm1 = vmor %vm1450_vm6, %vm1451_vm13 }
 0x1bd   : > { %v1434_v30 = vadd.f32 %v2570_v5, %v1433_v22  ;;  %v1499_v32 = vand.u32 2147483647, %v3245_v33  ;;  %2583 = vrcp.f32 %v3247_v16  ;;  %v1462_v35 = vsub.f32 1.0, %v1461_v34 }
 0x1be   : > { %vm1466_vm15 = vweird.f32 %v2576_v21  ;;  %v1476_v36 = vmul.f32 %v2578_v28, %v3208_v0  ;;  %v1501_v37 = vand.u32 2147483648, %v3245_v33  ;;  %v1448_v27 = vmul.f32 %v2574_v17, %v1447_v31 }
 0x1bf   : > { %v1438_v40 = vsel %vm3260_vm12, %v2570_v5, %v1434_v30  ;;  %vm1495_vm0 = vweird.f32 %v3245_v33  ;;  %v1054_v41 = vadd.f32 %v2952_v56, %v996_v39  ;;  %v1463_v43 = vmul.f32 %v2576_v21, %v1462_v35  ;;  %vm3292_vm3 = vmor %vm1465_vm7, %vm1466_vm15  ;;  %v999_v30 = vld [vmem:[#allocation2 + $0x20] sm:$0xff] }
 0x1c0   : > { %v1443_v42 = vsel %vm3232_vm5, %v1442_v11, %v1438_v40  ;;  %v1477_v48 = vsub.f32 1.0, %v1476_v36  ;;  %vm1481_vm2 = vweird.f32 %v2578_v28  ;;  %v2580_v50 = vpop.eup %2579  ;;  %v1449_v51 = vadd.f32 %v2574_v17, %v1448_v27 }
 0x1c1   : > { %2084 = vst [vmem:[%s4251_s3 + $0x48] sm:$0xff] %v1443_v42  ;;  %vm3296_vm4 = vcmp.eq.f32.partialorder %v1499_v32, 8.507059e+37  ;;  %v1514_v52 = vand.u32 2147483647, %v3247_v16  ;;  %2585 = vrcp.f32 %v3256_v24  ;;  %v1464_v57 = vadd.f32 %v2576_v21, %v1463_v43  ;;  %vm3308_vm5 = vmor %vm1480_vm11, %vm1481_vm2 }
 0x1c2   : > { %v2582_v53 = vpop.eup %2581  ;;  %v1478_v58 = vmul.f32 %v2578_v28, %v1477_v48  ;;  %v1491_v45 = vmul.f32 %v2580_v50, %v3245_v33  ;;  %v1502_v60 = vor.u32 1.1754944e-38, %v1501_v37  ;;  %v1453_v59 = vsel %vm3282_vm1, %v2574_v17, %v1449_v51  ;;  %v1000_v37 = vld [vmem:[#allocation2 + $0xe0] sm:$0xff] }
 0x1c3   : > { %v2584_v61 = vpop.eup %2583  ;;  %vm1496_vm6 = vweird.f32 %v2580_v50  ;;  %vm1510_vm7 = vweird.f32 %v3247_v16  ;;  %v1516_v63 = vand.u32 2147483648, %v3247_v16  ;;  %v1458_v2 = vsel %vm3241_vm9, %v1457_v18, %v1453_v59  ;;  %v1003_v59 = vld [vmem:[#allocation2 + $0xa8] sm:$0xff] }
 0x1c4   : > { %v1468_v3 = vsel %vm3292_vm3, %v2576_v21, %v1464_v57  ;;  %v1479_v4 = vadd.f32 %v2578_v28, %v1478_v58  ;;  %v1492_v5 = vsub.f32 1.0, %v1491_v45  ;;  %2085 = vst [vmem:[%s4251_s3 + $0x50] sm:$0xff] %v1458_v2  ;;  %v1506_v54 = vmul.f32 %v2584_v61, %v3247_v16  ;;  %v998_v21 = vld [vmem:[#allocation2] sm:$0xff]  ;;  %v1002_v57 = vld [vmem:[#allocation2 + $0x188] sm:$0xff] }
 0x1c5   : > { %v1473_v0 = vsel %vm3249_vm10, %v1472_v20, %v1468_v3  ;;  %vm3324_vm8 = vcmp.eq.f32.partialorder %v1514_v52, 8.507059e+37  ;;  %vm1525_vm9 = vweird.f32 %v3256_v24  ;;  %vm1511_vm11 = vweird.f32 %v2584_v61  ;;  %vm3341_vm10 = vmor %vm1495_vm0, %vm1496_vm6  ;;  %v997_v20 = vld [vmem:[#allocation2 + $0xa0] sm:$0xff] }
 0x1c6   : > { %2086 = vst [vmem:[%s4251_s3 + $0x58] sm:$0xff] %v1473_v0  ;;  %v1483_v6 = vsel %vm3308_vm5, %v2578_v28, %v1479_v4  ;;  %v1493_v7 = vmul.f32 %v2580_v50, %v1492_v5  ;;  %v3334_v8 = vadd.f32 1.0, %v2582_v53  ;;  %v1507_v12 = vsub.f32 1.0, %v1506_v54  ;;  %vm3358_vm13 = vmor %vm1510_vm7, %vm1511_vm11  ;;  %v1001_v53 = vld [vmem:[#allocation2 + $0xf0] sm:$0xff] }
 0x1c7   : > { %v2586_v9 = vpop.eup %2585  ;;  %v1488_v10 = vsel %vm3265_vm14, %v1487_v38, %v1483_v6  ;;  %2587 = vpow2.f32 %v3214_v49  ;;  %v2395_v13 = vmul.f32 -1.442695, %v1054_v41  ;;  %v1517_v15 = vor.u32 1.1754944e-38, %v1516_v63 }
 0x1c8   : > { %2087 = vst [vmem:[%s4251_s3 + $0x60] sm:$0xff] %v1488_v10  ;;  %v1494_v14 = vadd.f32 %v2580_v50, %v1493_v7  ;;  %v1521_v17 = vmul.f32 %v2586_v9, %v3256_v24  ;;  %v1529_v18 = vand.u32 2147483647, %v3256_v24  ;;  %v1508_v19 = vmul.f32 %v2584_v61, %v1507_v12 }
 0x1c9   : > { %vm1526_vm12 = vweird.f32 %v2586_v9  ;;  %v1531_v33 = vand.u32 2147483648, %v3256_v24  ;;  %2589 = vrcp.f32 %v3334_v8  ;;  %v1544_v25 = vand.u32 2147483647, %v3334_v8 }
 0x1ca   : > { %v1498_v49 = vsel %vm3341_vm10, %v2580_v50, %v1494_v14  ;;  %v1522_v23 = vsub.f32 1.0, %v1521_v17  ;;  %2591 = vpow2.f32 %v3216_v1  ;;  %v1509_v26 = vadd.f32 %v2584_v61, %v1508_v19  ;;  %vm3377_vm14 = vmor %vm1525_vm9, %vm1526_vm12 }
 0x1cb   : > { %v1503_v34 = vsel %vm3296_vm4, %v1502_v60, %v1498_v49  ;;  %v1546_v38 = vand.u32 2147483648, %v3334_v8  ;;  %2593 = vpow2.f32 %v2395_v13  ;;  %v1055_v39 = vadd.f32 %v2950_v55, %v997_v20 }
 0x1cc   : > { %2088 = vst [vmem:[%s4251_s3 + $0x68] sm:$0xff] %v1503_v34  ;;  %v1523_v16 = vmul.f32 %v2586_v9, %v1522_v23  ;;  %v1056_v28 = vadd.f32 %v2952_v56, %v998_v21  ;;  %v1513_v1 = vsel %vm3358_vm13, %v2584_v61, %v1509_v26  ;;  %vm3381_vm15 = vcmp.eq.f32.partialorder %v1529_v18, 8.507059e+37 }
 0x1cd   : > { %v2588_v31 = vpop.eup %2587  ;;  %v1532_v36 = vor.u32 1.1754944e-38, %v1531_v33  ;;  %vm1540_vm0 = vweird.f32 %v3334_v8  ;;  %v1518_v40 = vsel %vm3324_vm8, %v1517_v15, %v1513_v1  ;;  %v2396_v42 = vmul.f32 -1.442695, %v1055_v39 }
 0x1ce   : > { %v1524_v27 = vadd.f32 %v2586_v9, %v1523_v16  ;;  %v3388_v41 = vadd.f32 1.0, %v2588_v31  ;;  %2089 = vst [vmem:[%s4251_s3 + $0x70] sm:$0xff] %v1518_v40  ;;  %vm3393_vm1 = vcmp.eq.f32.partialorder %v1544_v25, 8.507059e+37  ;;  %v1547_v43 = vor.u32 1.1754944e-38, %v1546_v38 }
 0x1cf   : > { %v2590_v24 = vpop.eup %2589  ;;  %v2397_v48 = vmul.f32 -1.442695, %v1056_v28  ;;  %v1057_v50 = vadd.f32 %v2950_v55, %v999_v30  ;;  %v1058_v52 = vadd.f32 %v2952_v56, %v1000_v37  ;;  %v1059_v4 = vadd.f32 %v2950_v55, %v1001_v53  ;;  %v1004_v28 = vld [vmem:[#allocation2 + $0x88] sm:$0xff]  ;;  %v1011_v30 = vld [vmem:[#allocation2 + $0x190] sm:$0xff] }
 0x1d0   : > { %v2592_v51 = vpop.eup %2591  ;;  %v1528_v29 = vsel %vm3377_vm14, %v2586_v9, %v1524_v27  ;;  %v1536_v44 = vmul.f32 %v2590_v24, %v3334_v8  ;;  %2595 = vrcp.f32 %v3388_v41  ;;  %vm1541_vm2 = vweird.f32 %v2590_v24 }
 0x1d1   : > { %v2594_v58 = vpop.eup %2593  ;;  %v1533_v45 = vsel %vm3381_vm15, %v1532_v36, %v1528_v29  ;;  %v1559_v60 = vand.u32 2147483647, %v3388_v41  ;;  %v1561_v61 = vand.u32 2147483648, %v3388_v41  ;;  %v3410_v63 = vadd.f32 1.0, %v2592_v51  ;;  %vm3421_vm3 = vmor %vm1540_vm0, %vm1541_vm2 }
 0x1d2   : > { %2090 = vst [vmem:[%s4251_s3 + $0x78] sm:$0xff] %v1533_v45  ;;  %v1537_v62 = vsub.f32 1.0, %v1536_v44  ;;  %v3412_v2 = vadd.f32 1.0, %v2594_v58  ;;  %2597 = vpow2.f32 %v2396_v42  ;;  %v2398_v3 = vmul.f32 -1.442695, %v1057_v50 }
 0x1d3   : > { %2599 = vpow2.f32 %v2397_v48  ;;  %v1060_v5 = vadd.f32 %v2952_v56, %v1002_v57  ;;  %v2399_v54 = vmul.f32 -1.442695, %v1058_v52  ;;  %v1061_v46 = vadd.f32 %v2950_v55, %v1003_v59 }
 0x1d4   : > { %v1538_v0 = vmul.f32 %v2590_v24, %v1537_v62  ;;  %2601 = vrcp.f32 %v3410_v63  ;;  %vm1555_vm4 = vweird.f32 %v3388_v41  ;;  %vm3426_vm5 = vcmp.eq.f32.partialorder %v1559_v60, 8.507059e+37 }
 0x1d5   : > { %v1562_v9 = vor.u32 1.1754944e-38, %v1561_v61  ;;  %2603 = vrcp.f32 %v3412_v2  ;;  %vm1570_vm6 = vweird.f32 %v3410_v63  ;;  %v1574_v12 = vand.u32 2147483647, %v3410_v63 }
 0x1d6   : > { %v2596_v10 = vpop.eup %2595  ;;  %v1539_v11 = vadd.f32 %v2590_v24, %v1538_v0  ;;  %v1576_v8 = vand.u32 2147483648, %v3410_v63  ;;  %vm1585_vm7 = vweird.f32 %v3412_v2  ;;  %v1589_v14 = vand.u32 2147483647, %v3412_v2 }
 0x1d7   : > { %v1551_v13 = vmul.f32 %v2596_v10, %v3388_v41  ;;  %2605 = vpow2.f32 %v2398_v3  ;;  %v1591_v18 = vand.u32 2147483648, %v3412_v2  ;;  %v2400_v19 = vmul.f32 -1.442695, %v1059_v4 }
 0x1d8   : > { %v2598_v15 = vpop.eup %2597  ;;  %v1543_v17 = vsel %vm3421_vm3, %v2590_v24, %v1539_v11  ;;  %2607 = vpow2.f32 %v2399_v54  ;;  %vm1556_vm8 = vweird.f32 %v2596_v10  ;;  %vm3447_vm9 = vcmp.eq.f32.partialorder %v1574_v12, 8.507059e+37 }
 0x1d9   : > { %v2600_v33 = vpop.eup %2599  ;;  %v1548_v20 = vsel %vm3393_vm1, %v1547_v43, %v1543_v17  ;;  %v1552_v21 = vsub.f32 1.0, %v1551_v13  ;;  %v3442_v49 = vadd.f32 1.0, %v2598_v15  ;;  %v1577_v25 = vor.u32 1.1754944e-38, %v1576_v8  ;;  %vm3461_vm10 = vmor %vm1555_vm4, %vm1556_vm8 }
 0x1da   : > { %v2602_v22 = vpop.eup %2601  ;;  %2091 = vst [vmem:[%s4251_s3 + $0x80] sm:$0xff] %v1548_v20  ;;  %v3451_v34 = vadd.f32 1.0, %v2600_v33  ;;  %2609 = vpow2.f32 %v2400_v19  ;;  %vm3454_vm11 = vcmp.eq.f32.partialorder %v1589_v14, 8.507059e+37  ;;  %v1592_v1 = vor.u32 1.1754944e-38, %v1591_v18 }
 0x1db   : > { %v2604_v26 = vpop.eup %2603  ;;  %v1553_v38 = vmul.f32 %v2596_v10, %v1552_v21  ;;  %v1566_v16 = vmul.f32 %v2602_v22, %v3410_v63  ;;  %2611 = vrcp.f32 %v3442_v49  ;;  %v1604_v32 = vand.u32 2147483647, %v3442_v49 }
 0x1dc   : > { %v1581_v31 = vmul.f32 %v2604_v26, %v3412_v2  ;;  %v3467_v35 = vmul.f32 -1.442695, %v1060_v5  ;;  %vm1571_vm12 = vweird.f32 %v2602_v22  ;;  %2613 = vrcp.f32 %v3451_v34 }
 0x1dd   : > { %v2606_v36 = vpop.eup %2605  ;;  %v1554_v37 = vadd.f32 %v2596_v10, %v1553_v38  ;;  %v1567_v40 = vsub.f32 1.0, %v1566_v16  ;;  %vm1586_vm13 = vweird.f32 %v2604_v26  ;;  %v3470_v41 = vmul.f32 -1.442695, %v1061_v46  ;;  %vm3483_vm15 = vmor %vm1570_vm6, %vm1571_vm12 }
 0x1de   : > { %v2608_v27 = vpop.eup %2607  ;;  %v1582_v42 = vsub.f32 1.0, %v1581_v31  ;;  %v3473_v24 = vadd.f32 %v2952_v56, %v1004_v28  ;;  %vm1600_vm14 = vweird.f32 %v3442_v49  ;;  %v1606_v48 = vand.u32 2147483648, %v3442_v49  ;;  %vm3500_vm2 = vmor %vm1585_vm7, %vm1586_vm13 }
 0x1df   : > { %v1558_v47 = vsel %vm3461_vm10, %v2596_v10, %v1554_v37  ;;  %v1568_v43 = vmul.f32 %v2602_v22, %v1567_v40  ;;  %vm3487_vm0 = vcmp.eq.f32.partialorder %v1604_v32, 8.507059e+37  ;;  %vm1615_vm1 = vweird.f32 %v3451_v34  ;;  %v1007_v40 = vld [vmem:[#allocation2 + $0xc0] sm:$0xff] }
 0x1e0   : > { %v2610_v50 = vpop.eup %2609  ;;  %v1563_v51 = vsel %vm3426_vm5, %v1562_v9, %v1558_v47  ;;  %v1583_v44 = vmul.f32 %v2604_v26, %v1582_v42  ;;  %v3492_v53 = vadd.f32 1.0, %v2606_v36  ;;  %v1619_v60 = vand.u32 2147483647, %v3451_v34 }
 0x1e1   : > { %v2612_v57 = vpop.eup %2611  ;;  %2092 = vst [vmem:[%s4251_s3 + $0x88] sm:$0xff] %v1563_v51  ;;  %v1569_v58 = vadd.f32 %v2602_v22, %v1568_v43  ;;  %v1621_v61 = vand.u32 2147483648, %v3451_v34  ;;  %v3506_v59 = vadd.f32 1.0, %v2608_v27  ;;  %v3510_v3 = vadd.f32 1.0, %v2610_v50  ;;  %v1008_v43 = vld [vmem:[#allocation2 + $0x140] sm:$0xff] }
 0x1e2   : > { %v1584_v62 = vadd.f32 %v2604_v26, %v1583_v44  ;;  %v1596_v63 = vmul.f32 %v2612_v57, %v3442_v49  ;;  %2615 = vrcp.f32 %v3492_v53  ;;  %v2614_v4 = vpop.eup %2613  ;;  %vm1601_vm3 = vweird.f32 %v2612_v57 }
 0x1e3   : > { %v1573_v2 = vsel %vm3483_vm15, %v2602_v22, %v1569_v58  ;;  %v1634_v5 = vand.u32 2147483647, %v3492_v53  ;;  %v1636_v0 = vand.u32 2147483648, %v3492_v53  ;;  %v1611_v7 = vmul.f32 %v2614_v4, %v3451_v34  ;;  %vm3537_vm6 = vmor %vm1600_vm14, %vm1601_vm3 }
 0x1e4   : > { %v1578_v54 = vsel %vm3447_vm9, %v1577_v25, %v1573_v2  ;;  %v1588_v46 = vsel %vm3500_vm2, %v2604_v26, %v1584_v62  ;;  %v1597_v6 = vsub.f32 1.0, %v1596_v63  ;;  %v1607_v10 = vor.u32 1.1754944e-38, %v1606_v48  ;;  %v1005_v25 = vld [vmem:[#allocation2 + $0xb8] sm:$0xff]  ;;  %v1006_v26 = vld [vmem:[#allocation2 + $0x170] sm:$0xff] }
 0x1e5   : > { %2093 = vst [vmem:[%s4251_s3 + $0x90] sm:$0xff] %v1578_v54  ;;  %v1593_v9 = vsel %vm3454_vm11, %v1592_v1, %v1588_v46  ;;  %vm3526_vm4 = vcmp.eq.f32.partialorder %v1619_v60, 8.507059e+37  ;;  %v1622_v12 = vor.u32 1.1754944e-38, %v1621_v61  ;;  %v1612_v13 = vsub.f32 1.0, %v1611_v7 }
 0x1e6   : > { %2094 = vst [vmem:[%s4251_s3 + $0x98] sm:$0xff] %v1593_v9  ;;  %v1598_v8 = vmul.f32 %v2612_v57, %v1597_v6  ;;  %vm1616_vm5 = vweird.f32 %v2614_v4  ;;  %2617 = vrcp.f32 %v3506_v59  ;;  %vm1630_vm7 = vweird.f32 %v3492_v53 }
 0x1e7   : > { %vm3542_vm8 = vcmp.eq.f32.partialorder %v1634_v5, 8.507059e+37  ;;  %v1649_v17 = vand.u32 2147483647, %v3506_v59  ;;  %2619 = vrcp.f32 %v3510_v3  ;;  %v1613_v33 = vmul.f32 %v2614_v4, %v1612_v13  ;;  %vm3551_vm11 = vmor %vm1615_vm1, %vm1616_vm5 }
 0x1e8   : > { %v2616_v18 = vpop.eup %2615  ;;  %v1599_v19 = vadd.f32 %v2612_v57, %v1598_v8  ;;  %v1637_v20 = vor.u32 1.1754944e-38, %v1636_v0  ;;  %vm1645_vm9 = vweird.f32 %v3506_v59  ;;  %v1651_v22 = vand.u32 2147483648, %v3506_v59 }
 0x1e9   : > { %v1626_v49 = vmul.f32 %v2616_v18, %v3492_v53  ;;  %vm1660_vm10 = vweird.f32 %v3510_v3  ;;  %v1664_v23 = vand.u32 2147483647, %v3510_v3  ;;  %v1614_v16 = vadd.f32 %v2614_v4, %v1613_v33  ;;  %v1009_v53 = vld [vmem:[#allocation2 + $0x50] sm:$0xff] }
 0x1ea   : > { %v1603_v38 = vsel %vm3537_vm6, %v2612_v57, %v1599_v19  ;;  %vm1631_vm12 = vweird.f32 %v2616_v18  ;;  %v1666_v34 = vand.u32 2147483648, %v3510_v3  ;;  %vm3564_vm13 = vcmp.eq.f32.partialorder %v1649_v17, 8.507059e+37 }
 0x1eb   : > { %v1608_v39 = vsel %vm3487_vm0, %v1607_v10, %v1603_v38  ;;  %v1627_v28 = vsub.f32 1.0, %v1626_v49  ;;  %2621 = vpow2.f32 %v3467_v35  ;;  %v2403_v31 = vmul.f32 -1.442695, %v3473_v24  ;;  %vm3587_vm14 = vmor %vm1630_vm7, %vm1631_vm12 }
 0x1ec   : > { %v2618_v1 = vpop.eup %2617  ;;  %2095 = vst [vmem:[%s4251_s3 + $0xa0] sm:$0xff] %v1608_v39  ;;  %v1618_v32 = vsel %vm3551_vm11, %v2614_v4, %v1614_v16  ;;  %2623 = vpow2.f32 %v3470_v41  ;;  %v1063_v36 = vadd.f32 %v2950_v55, %v1005_v25  ;;  %v1064_v37 = vadd.f32 %v2952_v56, %v1006_v26 }
 0x1ed   : > { %v2620_v27 = vpop.eup %2619  ;;  %v1623_v35 = vsel %vm3526_vm4, %v1622_v12, %v1618_v32  ;;  %v1628_v42 = vmul.f32 %v2616_v18, %v1627_v28  ;;  %v1641_v24 = vmul.f32 %v2618_v1, %v3506_v59  ;;  %v1652_v47 = vor.u32 1.1754944e-38, %v1651_v22 }
 0x1ee   : > { %2096 = vst [vmem:[%s4251_s3 + $0xa8] sm:$0xff] %v1623_v35  ;;  %vm1646_vm15 = vweird.f32 %v2618_v1  ;;  %v1656_v48 = vmul.f32 %v2620_v27, %v3510_v3  ;;  %2625 = vpow2.f32 %v2403_v31  ;;  %v2404_v50 = vmul.f32 -1.442695, %v1063_v36 }
 0x1ef   : > { %v1629_v51 = vadd.f32 %v2616_v18, %v1628_v42  ;;  %v1642_v29 = vsub.f32 1.0, %v1641_v24  ;;  %v2405_v44 = vmul.f32 -1.442695, %v1064_v37  ;;  %v1065_v52 = vadd.f32 %v2950_v55, %v1007_v40  ;;  %vm3601_vm1 = vmor %vm1645_vm9, %vm1646_vm15 }
 0x1f0   : > { %v1657_v57 = vsub.f32 1.0, %v1656_v48  ;;  %vm1661_vm0 = vweird.f32 %v2620_v27  ;;  %2627 = vpow2.f32 %v2404_v50  ;;  %v1066_v58 = vadd.f32 %v2952_v56, %v1008_v43  ;;  %v1010_v43 = vld [vmem:[#allocation2 + $0x168] sm:$0xff] }
 0x1f1   : > { %v2622_v45 = vpop.eup %2621  ;;  %v1633_v60 = vsel %vm3587_vm14, %v2616_v18, %v1629_v51  ;;  %v1643_v61 = vmul.f32 %v2618_v1, %v1642_v29  ;;  %2629 = vpow2.f32 %v2405_v44  ;;  %v2406_v62 = vmul.f32 -1.442695, %v1065_v52  ;;  %vm3613_vm2 = vmor %vm1660_vm10, %vm1661_vm0 }
 0x1f2   : > { %v2624_v63 = vpop.eup %2623  ;;  %v1638_v4 = vsel %vm3542_vm8, %v1637_v20, %v1633_v60  ;;  %v1658_v5 = vmul.f32 %v2620_v27, %v1657_v57  ;;  %v1667_v0 = vor.u32 1.1754944e-38, %v1666_v34  ;;  %v3605_v54 = vadd.f32 1.0, %v2622_v45 }
 0x1f3   : > { %2097 = vst [vmem:[%s4251_s3 + $0xb0] sm:$0xff] %v1638_v4  ;;  %v1644_v46 = vadd.f32 %v2618_v1, %v1643_v61  ;;  %v3617_v59 = vadd.f32 1.0, %v2624_v63  ;;  %2631 = vpow2.f32 %v2406_v62  ;;  %v1067_v7 = vadd.f32 %v2950_v55, %v1009_v53 }
 0x1f4   : > { %v2626_v9 = vpop.eup %2625  ;;  %v1659_v10 = vadd.f32 %v2620_v27, %v1658_v5  ;;  %vm1665_vm3 = vcmp.eq.f32.partialorder %v1664_v23, 8.507059e+37  ;;  %2633 = vrcp.f32 %v3605_v54  ;;  %v2407_v11 = vmul.f32 -1.442695, %v1066_v58 }
 0x1f5   : > { %v1648_v12 = vsel %vm3601_vm1, %v2618_v1, %v1644_v46  ;;  %v1679_v3 = vand.u32 2147483647, %v3605_v54  ;;  %2635 = vrcp.f32 %v3617_v59  ;;  %v1681_v15 = vand.u32 2147483648, %v3605_v54 }
 0x1f6   : > { %v2628_v8 = vpop.eup %2627  ;;  %v1653_v13 = vsel %vm3564_vm13, %v1652_v47, %v1648_v12  ;;  %v1663_v14 = vsel %vm3613_vm2, %v2620_v27, %v1659_v10  ;;  %v1694_v19 = vand.u32 2147483647, %v3617_v59  ;;  %v3634_v33 = vadd.f32 1.0, %v2626_v9 }
 0x1f7   : > { %v2630_v17 = vpop.eup %2629  ;;  %2098 = vst [vmem:[%s4251_s3 + $0xb8] sm:$0xff] %v1653_v13  ;;  %v1668_v18 = vsel %vm1665_vm3, %v1667_v0, %v1663_v14  ;;  %v2408_v20 = vmul.f32 -1.442695, %v1067_v7  ;;  %vm1675_vm4 = vweird.f32 %v3605_v54  ;;  %v1696_v21 = vand.u32 2147483648, %v3617_v59 }
 0x1f8   : > { %2099 = vst [vmem:[%s4251_s3 + $0xc0] sm:$0xff] %v1668_v18  ;;  %v3641_v49 = vadd.f32 1.0, %v2628_v8  ;;  %2637 = vpow2.f32 %v2407_v11  ;;  %vm3643_vm5 = vcmp.eq.f32.partialorder %v1679_v3, 8.507059e+37  ;;  %vm1690_vm6 = vweird.f32 %v3617_v59 }
 0x1f9   : > { %v2632_v22 = vpop.eup %2631  ;;  %2639 = vrcp.f32 %v3634_v33  ;;  %v3649_v25 = vadd.f32 1.0, %v2630_v17  ;;  %v1682_v38 = vor.u32 1.1754944e-38, %v1681_v15  ;;  %v1709_v16 = vand.u32 2147483647, %v3634_v33 }
 0x1fa   : > { %v2634_v26 = vpop.eup %2633  ;;  %v1711_v34 = vand.u32 2147483648, %v3634_v33  ;;  %2641 = vrcp.f32 %v3641_v49  ;;  %vm3655_vm7 = vcmp.eq.f32.partialorder %v1694_v19, 8.507059e+37  ;;  %v1724_v31 = vand.u32 2147483647, %v3641_v49 }
 0x1fb   : > { %v2636_v39 = vpop.eup %2635  ;;  %v1671_v28 = vmul.f32 %v2634_v26, %v3605_v54  ;;  %v1726_v1 = vand.u32 2147483648, %v3641_v49  ;;  %v1697_v36 = vor.u32 1.1754944e-38, %v1696_v21  ;;  %vm1705_vm8 = vweird.f32 %v3634_v33 }
 0x1fc   : > { %v1686_v32 = vmul.f32 %v2636_v39, %v3617_v59  ;;  %vm1720_vm9 = vweird.f32 %v3641_v49  ;;  %vm1676_vm11 = vweird.f32 %v2634_v26  ;;  %vm1691_vm10 = vweird.f32 %v2636_v39 }
 0x1fd   : > { %v1672_v37 = vsub.f32 1.0, %v1671_v28  ;;  %2643 = vrcp.f32 %v3649_v25  ;;  %vm3665_vm12 = vcmp.eq.f32.partialorder %v1709_v16, 8.507059e+37  ;;  %v1712_v42 = vor.u32 1.1754944e-38, %v1711_v34  ;;  %vm3680_vm14 = vmor %vm1675_vm4, %vm1676_vm11 }
 0x1fe   : > { %v2638_v40 = vpop.eup %2637  ;;  %v1687_v27 = vsub.f32 1.0, %v1686_v32  ;;  %v1739_v24 = vand.u32 2147483647, %v3649_v25  ;;  %v3670_v47 = vadd.f32 1.0, %v2632_v22  ;;  %vm3672_vm13 = vcmp.eq.f32.partialorder %v1724_v31, 8.507059e+37  ;;  %vm3691_vm0 = vmor %vm1690_vm6, %vm1691_vm10 }
 0x1ff   : > { %v2640_v41 = vpop.eup %2639  ;;  %v1673_v48 = vmul.f32 %v2634_v26, %v1672_v37  ;;  %v1727_v51 = vor.u32 1.1754944e-38, %v1726_v1  ;;  %v1741_v29 = vand.u32 2147483648, %v3649_v25  ;;  %2645 = vpow2.f32 %v2408_v20  ;;  %v1012_v37 = vld [vmem:[#allocation2 + $0x38] sm:$0xff] }
 0x200   : > { %v2642_v44 = vpop.eup %2641  ;;  %v1688_v57 = vmul.f32 %v2636_v39, %v1687_v27  ;;  %v1701_v58 = vmul.f32 %v2640_v41, %v3634_v33  ;;  %vm1735_vm15 = vweird.f32 %v3649_v25  ;;  %v3686_v53 = vadd.f32 1.0, %v2638_v40 }
 0x201   : > { %v1674_v45 = vadd.f32 %v2634_v26, %v1673_v48  ;;  %vm1706_vm1 = vweird.f32 %v2640_v41  ;;  %v1716_v61 = vmul.f32 %v2642_v44, %v3641_v49  ;;  %v1068_v62 = vadd.f32 %v2952_v56, %v1010_v43 }
 0x202   : > { %v1689_v63 = vadd.f32 %v2636_v39, %v1688_v57  ;;  %v1702_v4 = vsub.f32 1.0, %v1701_v58  ;;  %vm1721_vm2 = vweird.f32 %v2642_v44  ;;  %vm3697_vm3 = vcmp.eq.f32.partialorder %v1739_v24, 8.507059e+37  ;;  %vm3718_vm4 = vmor %vm1705_vm8, %vm1706_vm1  ;;  %v1014_v24 = vld [vmem:[#allocation2 + $0x18] sm:$0xff] }
 0x203   : > { %2647 = vrcp.f32 %v3670_v47  ;;  %v2644_v5 = vpop.eup %2643  ;;  %v1678_v0 = vsel %vm3680_vm14, %v2634_v26, %v1674_v45  ;;  %v1717_v54 = vsub.f32 1.0, %v1716_v61  ;;  %v1742_v46 = vor.u32 1.1754944e-38, %v1741_v29  ;;  %vm3730_vm6 = vmor %vm1720_vm9, %vm1721_vm2  ;;  %v1016_v29 = vld [vmem:[#allocation2 + $0x120] sm:$0xff] }
 0x204   : > { %v1754_v6 = vand.u32 2147483647, %v3670_v47  ;;  %v1683_v59 = vsel %vm3643_vm5, %v1682_v38, %v1678_v0  ;;  %v1693_v7 = vsel %vm3691_vm0, %v2636_v39, %v1689_v63  ;;  %v1703_v9 = vmul.f32 %v2640_v41, %v1702_v4 }
 0x205   : > { %v1731_v10 = vmul.f32 %v2644_v5, %v3649_v25  ;;  %v2646_v11 = vpop.eup %2645  ;;  %2100 = vst [vmem:[%s4251_s3 + $0xc8] sm:$0xff] %v1683_v59  ;;  %v1698_v12 = vsel %vm3655_vm7, %v1697_v36, %v1693_v7  ;;  %v1718_v8 = vmul.f32 %v2642_v44, %v1717_v54  ;;  %vm1750_vm5 = vweird.f32 %v3670_v47 }
 0x206   : > { %v1756_v13 = vand.u32 2147483648, %v3670_v47  ;;  %2101 = vst [vmem:[%s4251_s3 + $0xd0] sm:$0xff] %v1698_v12  ;;  %v1704_v14 = vadd.f32 %v2640_v41, %v1703_v9  ;;  %vm1736_vm7 = vweird.f32 %v2644_v5  ;;  %2649 = vrcp.f32 %v3686_v53 }
 0x207   : > { %v1732_v17 = vsub.f32 1.0, %v1731_v10  ;;  %v1719_v18 = vadd.f32 %v2642_v44, %v1718_v8  ;;  %vm3735_vm8 = vcmp.eq.f32.partialorder %v1754_v6, 8.507059e+37  ;;  %v1769_v33 = vand.u32 2147483647, %v3686_v53  ;;  %vm3751_vm9 = vmor %vm1735_vm15, %vm1736_vm7  ;;  %v1017_v6 = vld [vmem:[#allocation2 + $0x198] sm:$0xff] }
 0x208   : > { %v1771_v20 = vand.u32 2147483648, %v3686_v53  ;;  %v1708_v49 = vsel %vm3718_vm4, %v2640_v41, %v1704_v14  ;;  %v3743_v23 = vadd.f32 1.0, %v2646_v11  ;;  %v2409_v26 = vmul.f32 -1.442695, %v1068_v62 }
 0x209   : > { %v2648_v21 = vpop.eup %2647  ;;  %v1733_v22 = vmul.f32 %v2644_v5, %v1732_v17  ;;  %v1713_v38 = vsel %vm3665_vm12, %v1712_v42, %v1708_v49  ;;  %v1723_v16 = vsel %vm3730_vm6, %v2642_v44, %v1719_v18  ;;  %v1757_v28 = vor.u32 1.1754944e-38, %v1756_v13  ;;  %v1013_v42 = vld [vmem:[#allocation2 + $0x60] sm:$0xff] }
 0x20a   : > { %v1746_v39 = vmul.f32 %v2648_v21, %v3670_v47  ;;  %2102 = vst [vmem:[%s4251_s3 + $0xd8] sm:$0xff] %v1713_v38  ;;  %v1728_v31 = vsel %vm3672_vm13, %v1727_v51, %v1723_v16  ;;  %vm1751_vm11 = vweird.f32 %v2648_v21  ;;  %vm1765_vm10 = vweird.f32 %v3686_v53  ;;  %v1015_v51 = vld [vmem:[#allocation2 + $0x158] sm:$0xff] }
 0x20b   : > { %v1734_v1 = vadd.f32 %v2644_v5, %v1733_v22  ;;  %2103 = vst [vmem:[%s4251_s3 + $0xe0] sm:$0xff] %v1728_v31  ;;  %vm3765_vm12 = vcmp.eq.f32.partialorder %v1769_v33, 8.507059e+37  ;;  %v1772_v36 = vor.u32 1.1754944e-38, %v1771_v20  ;;  %2651 = vrcp.f32 %v3743_v23  ;;  %vm3784_vm14 = vmor %vm1750_vm5, %vm1751_vm11  ;;  %v1018_v20 = vld [vmem:[#allocation2 + $0x68] sm:$0xff] }
 0x20c   : > { %v1747_v25 = vsub.f32 1.0, %v1746_v39  ;;  %v2650_v40 = vpop.eup %2649  ;;  %vm1780_vm13 = vweird.f32 %v3743_v23  ;;  %2653 = vpow2.f32 %v2409_v26  ;;  %v1069_v35 = vadd.f32 %v2950_v55, %v1011_v30 }
 0x20d   : > { %v1738_v27 = vsel %vm3751_vm9, %v2644_v5, %v1734_v1  ;;  %v1761_v48 = vmul.f32 %v2650_v40, %v3686_v53  ;;  %v1784_v50 = vand.u32 2147483647, %v3743_v23  ;;  %vm1766_vm15 = vweird.f32 %v2650_v40 }
 0x20e   : > { %v1743_v43 = vsel %vm3697_vm3, %v1742_v46, %v1738_v27  ;;  %v1748_v41 = vmul.f32 %v2648_v21, %v1747_v25  ;;  %v1786_v52 = vand.u32 2147483648, %v3743_v23  ;;  %v2410_v57 = vmul.f32 -1.442695, %v1069_v35  ;;  %vm3801_vm0 = vmor %vm1765_vm10, %vm1766_vm15 }
 0x20f   : > { %2104 = vst [vmem:[%s4251_s3 + $0xe8] sm:$0xff] %v1743_v43  ;;  %v1070_v58 = vadd.f32 %v2952_v56, %v1012_v37  ;;  %v1762_v60 = vsub.f32 1.0, %v1761_v48  ;;  %v1071_v61 = vadd.f32 %v2950_v55, %v1013_v42  ;;  %v1072_v62 = vadd.f32 %v2952_v56, %v1014_v24 }
 0x210   : > { %v1749_v45 = vadd.f32 %v2648_v21, %v1748_v41  ;;  %2655 = vpow2.f32 %v2410_v57  ;;  %v1073_v47 = vadd.f32 %v2950_v55, %v1015_v51  ;;  %v1074_v4 = vadd.f32 %v2952_v56, %v1016_v29 }
 0x211   : > { %v2411_v63 = vmul.f32 -1.442695, %v1070_v58  ;;  %v2652_v2 = vpop.eup %2651  ;;  %v1763_v0 = vmul.f32 %v2650_v40, %v1762_v60  ;;  %v2412_v54 = vmul.f32 -1.442695, %v1071_v61  ;;  %v2413_v46 = vmul.f32 -1.442695, %v1072_v62 }
 0x212   : > { %v1753_v5 = vsel %vm3784_vm14, %v2648_v21, %v1749_v45  ;;  %v2654_v59 = vpop.eup %2653  ;;  %v1776_v10 = vmul.f32 %v2652_v2, %v3743_v23  ;;  %vm1781_vm1 = vweird.f32 %v2652_v2  ;;  %v2414_v3 = vmul.f32 -1.442695, %v1073_v47 }
 0x213   : > { %v1758_v7 = vsel %vm3735_vm8, %v1757_v28, %v1753_v5  ;;  %2657 = vpow2.f32 %v2411_v63  ;;  %v1764_v11 = vadd.f32 %v2650_v40, %v1763_v0  ;;  %v3809_v12 = vadd.f32 1.0, %v2654_v59  ;;  %vm3825_vm2 = vmor %vm1780_vm13, %vm1781_vm1  ;;  %v1019_v28 = vld [vmem:[#allocation2 + $0x30] sm:$0xff] }
 0x214   : > { %2105 = vst [vmem:[%s4251_s3 + $0xf0] sm:$0xff] %v1758_v7  ;;  %2659 = vpow2.f32 %v2412_v54  ;;  %v1777_v8 = vsub.f32 1.0, %v1776_v10  ;;  %v2415_v53 = vmul.f32 -1.442695, %v1074_v4  ;;  %v1075_v13 = vadd.f32 %v2950_v55, %v1017_v6  ;;  %v1022_v6 = vld [vmem:[#allocation2 + $0x28] sm:$0xff] }
 0x215   : > { %2661 = vpow2.f32 %v2413_v46  ;;  %v1768_v14 = vsel %vm3801_vm0, %v2650_v40, %v1764_v11  ;;  %v1799_v19 = vand.u32 2147483647, %v3809_v12  ;;  %v1801_v33 = vand.u32 2147483648, %v3809_v12  ;;  %v1023_v10 = vld [vmem:[#allocation2 + $0x8] sm:$0xff] }
 0x216   : > { %2663 = vrcp.f32 %v3809_v12  ;;  %v2656_v15 = vpop.eup %2655  ;;  %v1773_v17 = vsel %vm3765_vm12, %v1772_v36, %v1768_v14  ;;  %v1778_v18 = vmul.f32 %v2652_v2, %v1777_v8  ;;  %v1787_v49 = vor.u32 1.1754944e-38, %v1786_v52 }
 0x217   : > { %2106 = vst [vmem:[%s4251_s3 + $0xf8] sm:$0xff] %v1773_v17  ;;  %v3829_v22 = vadd.f32 1.0, %v2656_v15  ;;  %2665 = vpow2.f32 %v2414_v3  ;;  %v2416_v26 = vmul.f32 -1.442695, %v1075_v13  ;;  %vm1785_vm3 = vcmp.eq.f32.partialorder %v1784_v50, 8.507059e+37 }
 0x218   : > { %v1779_v16 = vadd.f32 %v2652_v2, %v1778_v18  ;;  %2667 = vpow2.f32 %v2415_v53  ;;  %vm1795_vm4 = vweird.f32 %v3809_v12  ;;  %v3832_v39 = vor.u32 1.1754944e-38, %v1801_v33 }
 0x219   : > { %v2658_v38 = vpop.eup %2657  ;;  %2669 = vrcp.f32 %v3829_v22  ;;  %v3836_v23 = vadd.f32 %v2952_v56, %v1018_v20  ;;  %vm3840_vm5 = vcmp.eq.f32.partialorder %v1799_v19, 8.507059e+37  ;;  %v1814_v40 = vand.u32 2147483647, %v3829_v22 }
 0x21a   : > { %v2660_v34 = vpop.eup %2659  ;;  %v1783_v31 = vsel %vm3825_vm2, %v2652_v2, %v1779_v16  ;;  %v3844_v25 = vadd.f32 1.0, %v2658_v38  ;;  %2671 = vpow2.f32 %v2416_v26  ;;  %v1816_v27 = vand.u32 2147483648, %v3829_v22 }
 0x21b   : > { %v2662_v30 = vpop.eup %2661  ;;  %v3846_v32 = vadd.f32 1.0, %v2660_v34  ;;  %v1788_v37 = vsel %vm1785_vm3, %v1787_v49, %v1783_v31  ;;  %vm1810_vm6 = vweird.f32 %v3829_v22  ;;  %v3859_v24 = vadd.f32 %v2950_v55, %v1019_v28 }
 0x21c   : > { %v2664_v36 = vpop.eup %2663  ;;  %v3850_v35 = vadd.f32 1.0, %v2662_v30  ;;  %2107 = vst [vmem:[%s4251_s3 + $0x100] sm:$0xff] %v1788_v37  ;;  %2673 = vrcp.f32 %v3844_v25  ;;  %v1829_v41 = vand.u32 2147483647, %v3844_v25  ;;  %v1831_v48 = vand.u32 2147483648, %v3844_v25 }
 0x21d   : > { %v1791_v42 = vmul.f32 %v2664_v36, %v3809_v12  ;;  %v2666_v43 = vpop.eup %2665  ;;  %vm1796_vm7 = vweird.f32 %v2664_v36  ;;  %2675 = vrcp.f32 %v3846_v32  ;;  %v1844_v29 = vand.u32 2147483647, %v3846_v32 }
 0x21e   : > { %v2668_v50 = vpop.eup %2667  ;;  %v1846_v44 = vand.u32 2147483648, %v3846_v32  ;;  %2677 = vrcp.f32 %v3850_v35  ;;  %vm3867_vm8 = vcmp.eq.f32.partialorder %v1814_v40, 8.507059e+37  ;;  %v1817_v58 = vor.u32 1.1754944e-38, %v1816_v27  ;;  %vm3878_vm10 = vmor %vm1795_vm4, %vm1796_vm7 }
 0x21f   : > { %v1792_v51 = vsub.f32 1.0, %v1791_v42  ;;  %v2670_v52 = vpop.eup %2669  ;;  %vm1825_vm9 = vweird.f32 %v3844_v25  ;;  %v1859_v45 = vand.u32 2147483647, %v3850_v35  ;;  %v1832_v63 = vor.u32 1.1754944e-38, %v1831_v48 }
 0x220   : > { %v2672_v60 = vpop.eup %2671  ;;  %v1806_v62 = vmul.f32 %v2670_v52, %v3829_v22  ;;  %vm1840_vm11 = vweird.f32 %v3846_v32  ;;  %vm1811_vm12 = vweird.f32 %v2670_v52  ;;  %vm3882_vm13 = vcmp.eq.f32.partialorder %v1829_v41, 8.507059e+37 }
 0x221   : > { %v1793_v61 = vmul.f32 %v2664_v36, %v1792_v51  ;;  %vm1855_vm14 = vweird.f32 %v3850_v35  ;;  %v1861_v2 = vand.u32 2147483648, %v3850_v35  ;;  %v3888_v5 = vadd.f32 1.0, %v2666_v43  ;;  %vm3913_vm2 = vmor %vm1810_vm6, %vm1811_vm12 }
 0x222   : > { %v2674_v0 = vpop.eup %2673  ;;  %v1807_v46 = vsub.f32 1.0, %v1806_v62  ;;  %vm3890_vm15 = vcmp.eq.f32.partialorder %v1844_v29, 8.507059e+37  ;;  %v1847_v59 = vor.u32 1.1754944e-38, %v1846_v44  ;;  %vm3895_vm0 = vcmp.eq.f32.partialorder %v1859_v45, 8.507059e+37 }
 0x223   : > { %v1794_v54 = vadd.f32 %v2664_v36, %v1793_v61  ;;  %v2676_v7 = vpop.eup %2675  ;;  %v1821_v9 = vmul.f32 %v2674_v0, %v3844_v25  ;;  %2679 = vrcp.f32 %v3888_v5  ;;  %v3900_v11 = vadd.f32 1.0, %v2668_v50  ;;  %v1020_v50 = vld [vmem:[#allocation2 + $0xc8] sm:$0xff] }
 0x224   : > { %v3902_v12 = vadd.f32 1.0, %v2672_v60  ;;  %v2678_v3 = vpop.eup %2677  ;;  %v1808_v53 = vmul.f32 %v2670_v52, %v1807_v46  ;;  %vm1826_vm1 = vweird.f32 %v2674_v0  ;;  %v1836_v13 = vmul.f32 %v2676_v7, %v3846_v32 }
 0x225   : > { %v1798_v8 = vsel %vm3878_vm10, %v2664_v36, %v1794_v54  ;;  %v1822_v17 = vsub.f32 1.0, %v1821_v9  ;;  %v1851_v18 = vmul.f32 %v2678_v3, %v3850_v35  ;;  %v1862_v19 = vor.u32 1.1754944e-38, %v1861_v2 }
 0x226   : > { %v1803_v14 = vsel %vm3840_vm5, %v3832_v39, %v1798_v8  ;;  %v1809_v33 = vadd.f32 %v2670_v52, %v1808_v53  ;;  %v1837_v20 = vsub.f32 1.0, %v1836_v13  ;;  %vm1841_vm3 = vweird.f32 %v2676_v7  ;;  %vm3928_vm5 = vmor %vm1825_vm9, %vm1826_vm1  ;;  %v1024_v53 = vld [vmem:[#allocation2 + $0x80] sm:$0xff] }
 0x227   : > { %2108 = vst [vmem:[%s4251_s3 + $0x108] sm:$0xff] %v1803_v14  ;;  %v1874_v21 = vand.u32 2147483647, %v3888_v5  ;;  %v1823_v49 = vmul.f32 %v2674_v0, %v1822_v17  ;;  %v1852_v26 = vsub.f32 1.0, %v1851_v18  ;;  %vm1856_vm4 = vweird.f32 %v2678_v3  ;;  %vm3938_vm7 = vmor %vm1840_vm11, %vm1841_vm3 }
 0x228   : > { %2681 = vrcp.f32 %v3900_v11  ;;  %v1813_v22 = vsel %vm3913_vm2, %v2670_v52, %v1809_v33  ;;  %v1838_v16 = vmul.f32 %v2676_v7, %v1837_v20  ;;  %vm1870_vm6 = vweird.f32 %v3888_v5 }
 0x229   : > { %v1876_v34 = vand.u32 2147483648, %v3888_v5  ;;  %v2680_v39 = vpop.eup %2679  ;;  %v1818_v28 = vsel %vm3867_vm8, %v1817_v58, %v1813_v22  ;;  %v1824_v30 = vadd.f32 %v2674_v0, %v1823_v49  ;;  %v1853_v1 = vmul.f32 %v2678_v3, %v1852_v26  ;;  %vm3952_vm8 = vmor %vm1855_vm14, %vm1856_vm4  ;;  %v1021_v58 = vld [vmem:[#allocation2 + $0xf8] sm:$0xff] }
 0x22a   : > { %vm3942_vm9 = vcmp.eq.f32.partialorder %v1874_v21, 8.507059e+37  ;;  %2109 = vst [vmem:[%s4251_s3 + $0x110] sm:$0xff] %v1818_v28  ;;  %v1839_v36 = vadd.f32 %v2676_v7, %v1838_v16  ;;  %v1866_v32 = vmul.f32 %v2680_v39, %v3888_v5  ;;  %vm1885_vm11 = vweird.f32 %v3900_v11  ;;  %v1026_v16 = vld [vmem:[#allocation2 + $0x150] sm:$0xff] }
 0x22b   : > { %v1889_v40 = vand.u32 2147483647, %v3900_v11  ;;  %v1828_v27 = vsel %vm3928_vm5, %v2674_v0, %v1824_v30  ;;  %v1854_v42 = vadd.f32 %v2678_v3, %v1853_v1  ;;  %v1891_v43 = vand.u32 2147483648, %v3900_v11 }
 0x22c   : > { %2683 = vrcp.f32 %v3902_v12  ;;  %v1833_v35 = vsel %vm3882_vm13, %v1832_v63, %v1828_v27  ;;  %v1843_v41 = vsel %vm3938_vm7, %v2676_v7, %v1839_v36  ;;  %v1867_v48 = vsub.f32 1.0, %v1866_v32  ;;  %v1027_v32 = vld [vmem:[#allocation2 + $0xe8] sm:$0xff] }
 0x22d   : > { %vm1871_vm10 = vweird.f32 %v2680_v39  ;;  %2110 = vst [vmem:[%s4251_s3 + $0x118] sm:$0xff] %v1833_v35  ;;  %v1848_v29 = vsel %vm3890_vm15, %v1847_v59, %v1843_v41  ;;  %v1858_v44 = vsel %vm3952_vm8, %v2678_v3, %v1854_v42  ;;  %v1877_v52 = vor.u32 1.1754944e-38, %v1876_v34  ;;  %v1028_v42 = vld [vmem:[#allocation2 + $0x70] sm:$0xff] }
 0x22e   : > { %v2682_v51 = vpop.eup %2681  ;;  %vm3974_vm12 = vcmp.eq.f32.partialorder %v1889_v40, 8.507059e+37  ;;  %2111 = vst [vmem:[%s4251_s3 + $0x120] sm:$0xff] %v1848_v29  ;;  %v1863_v45 = vsel %vm3895_vm0, %v1862_v19, %v1858_v44  ;;  %v1868_v60 = vmul.f32 %v2680_v39, %v1867_v48  ;;  %v1892_v62 = vor.u32 1.1754944e-38, %v1891_v43  ;;  %vm3990_vm13 = vmor %vm1870_vm6, %vm1871_vm10 }
 0x22f   : > { %v1881_v61 = vmul.f32 %v2682_v51, %v3900_v11  ;;  %2112 = vst [vmem:[%s4251_s3 + $0x128] sm:$0xff] %v1863_v45  ;;  %vm1886_vm14 = vweird.f32 %v2682_v51  ;;  %vm1900_vm15 = vweird.f32 %v3902_v12  ;;  %v2417_v47 = vmul.f32 -1.442695, %v3836_v23 }
 0x230   : > { %v1078_v4 = vadd.f32 %v2952_v56, %v1020_v50  ;;  %v1869_v2 = vadd.f32 %v2680_v39, %v1868_v60  ;;  %v2418_v54 = vmul.f32 -1.442695, %v3859_v24  ;;  %v1079_v46 = vadd.f32 %v2950_v55, %v1021_v58  ;;  %v1025_v24 = vld [vmem:[#allocation2 + $0x98] sm:$0xff]  ;;  %vm4009_vm1 = vmor %vm1885_vm11, %vm1886_vm14 }
 0x231   : > { %v1882_v0 = vsub.f32 1.0, %v1881_v61  ;;  %v1904_v5 = vand.u32 2147483647, %v3902_v12  ;;  %v1906_v7 = vand.u32 2147483648, %v3902_v12  ;;  %2685 = vpow2.f32 %v2417_v47 }
 0x232   : > { %v2684_v59 = vpop.eup %2683  ;;  %v2419_v9 = vmul.f32 -1.442695, %v1078_v4  ;;  %v1873_v23 = vsel %vm3990_vm13, %v2680_v39, %v1869_v2  ;;  %2687 = vpow2.f32 %v2418_v54  ;;  %v2420_v15 = vmul.f32 -1.442695, %v1079_v46 }
 0x233   : > { %v1883_v3 = vmul.f32 %v2682_v51, %v1882_v0  ;;  %v1896_v8 = vmul.f32 %v2684_v59, %v3902_v12  ;;  %vm1901_vm0 = vweird.f32 %v2684_v59  ;;  %v1878_v13 = vsel %vm3942_vm9, %v1877_v52, %v1873_v23 }
 0x234   : > { %v1080_v17 = vadd.f32 %v2952_v56, %v1022_v6  ;;  %2113 = vst [vmem:[%s4251_s3 + $0x130] sm:$0xff] %v1878_v13  ;;  %2689 = vpow2.f32 %v2419_v9  ;;  %v1081_v33 = vadd.f32 %v2950_v55, %v1023_v10  ;;  %v1082_v11 = vadd.f32 %v2952_v56, %v1024_v53  ;;  %vm4031_vm3 = vmor %vm1900_vm15, %vm1901_vm0 }
 0x235   : > { %v1884_v18 = vadd.f32 %v2682_v51, %v1883_v3  ;;  %v1897_v19 = vsub.f32 1.0, %v1896_v8  ;;  %2691 = vpow2.f32 %v2420_v15  ;;  %v1083_v21 = vadd.f32 %v2950_v55, %v1025_v24 }
 0x236   : > { %v2421_v20 = vmul.f32 -1.442695, %v1080_v17  ;;  %vm4022_vm2 = vcmp.eq.f32.partialorder %v1904_v5, 8.507059e+37  ;;  %v2422_v38 = vmul.f32 -1.442695, %v1081_v33  ;;  %v1907_v30 = vor.u32 1.1754944e-38, %v1906_v7 }
 0x237   : > { %v1888_v49 = vsel %vm4009_vm1, %v2682_v51, %v1884_v18  ;;  %v1898_v26 = vmul.f32 %v2684_v59, %v1897_v19  ;;  %v2686_v34 = vpop.eup %2685  ;;  %v2423_v31 = vmul.f32 -1.442695, %v1082_v11  ;;  %v2424_v36 = vmul.f32 -1.442695, %v1083_v21 }
 0x238   : > { %v1893_v39 = vsel %vm3974_vm12, %v1892_v62, %v1888_v49  ;;  %2693 = vpow2.f32 %v2421_v20  ;;  %v4038_v25 = vadd.f32 1.0, %v2686_v34  ;;  %v2688_v37 = vpop.eup %2687  ;;  %v1084_v12 = vadd.f32 %v2952_v56, %v1026_v16 }
 0x239   : > { %2114 = vst [vmem:[%s4251_s3 + $0x138] sm:$0xff] %v1893_v39  ;;  %v1899_v1 = vadd.f32 %v2684_v59, %v1898_v26  ;;  %2695 = vpow2.f32 %v2422_v38  ;;  %v4047_v48 = vadd.f32 1.0, %v2688_v37  ;;  %v1085_v44 = vadd.f32 %v2950_v55, %v1027_v32 }
 0x23a   : > { %2697 = vpow2.f32 %v2423_v31  ;;  %v2690_v40 = vpop.eup %2689  ;;  %v1919_v41 = vand.u32 2147483647, %v4038_v25  ;;  %v1921_v51 = vand.u32 2147483648, %v4038_v25  ;;  %v4059_v57 = vmul.f32 -1.442695, %v1084_v12 }
 0x23b   : > { %v1903_v27 = vsel %vm4031_vm3, %v2684_v59, %v1899_v1  ;;  %2699 = vrcp.f32 %v4038_v25  ;;  %v2692_v43 = vpop.eup %2691  ;;  %v4049_v50 = vadd.f32 1.0, %v2690_v40  ;;  %v4062_v58 = vadd.f32 %v2952_v56, %v1028_v42 }
 0x23c   : > { %v1908_v35 = vsel %vm4022_vm2, %v1907_v30, %v1903_v27  ;;  %v4055_v29 = vadd.f32 1.0, %v2692_v43  ;;  %2701 = vpow2.f32 %v2424_v36  ;;  %vm1915_vm4 = vweird.f32 %v4038_v25 }
 0x23d   : > { %2115 = vst [vmem:[%s4251_s3 + $0x140] sm:$0xff] %v1908_v35  ;;  %2703 = vrcp.f32 %v4047_v48  ;;  %v1934_v60 = vand.u32 2147483647, %v4047_v48  ;;  %v1936_v61 = vand.u32 2147483648, %v4047_v48  ;;  %vm4068_vm5 = vcmp.eq.f32.partialorder %v1919_v41, 8.507059e+37 }
 0x23e   : > { %v2694_v52 = vpop.eup %2693  ;;  %2705 = vrcp.f32 %v4049_v50  ;;  %v1949_v63 = vand.u32 2147483647, %v4049_v50  ;;  %v1951_v47 = vand.u32 2147483648, %v4049_v50  ;;  %v1922_v4 = vor.u32 1.1754944e-38, %v1921_v51 }
 0x23f   : > { %v2696_v45 = vpop.eup %2695  ;;  %2707 = vrcp.f32 %v4055_v29  ;;  %vm1930_vm6 = vweird.f32 %v4047_v48  ;;  %v1964_v2 = vand.u32 2147483647, %v4055_v29  ;;  %v4077_v0 = vmul.f32 -1.442695, %v1085_v44 }
 0x240   : > { %v2698_v62 = vpop.eup %2697  ;;  %vm1945_vm7 = vweird.f32 %v4049_v50  ;;  %v1966_v46 = vand.u32 2147483648, %v4055_v29  ;;  %v4082_v6 = vadd.f32 1.0, %v2694_v52  ;;  %vm4086_vm8 = vcmp.eq.f32.partialorder %v1934_v60, 8.507059e+37 }
 0x241   : > { %v2700_v56 = vpop.eup %2699  ;;  %v1937_v7 = vor.u32 1.1754944e-38, %v1936_v61  ;;  %vm1960_vm11 = vweird.f32 %v4055_v29  ;;  %v4091_v9 = vadd.f32 1.0, %v2696_v45  ;;  %vm4093_vm10 = vcmp.eq.f32.partialorder %v1949_v63, 8.507059e+37 }
 0x242   : > { %v1911_v54 = vmul.f32 %v2700_v56, %v4038_v25  ;;  %v4084_v59 = vpop.eup %2701  ;;  %vm1916_vm9 = vweird.f32 %v2700_v56  ;;  %v1952_v8 = vor.u32 1.1754944e-38, %v1951_v47  ;;  %2709 = vrcp.f32 %v4082_v6 }
 0x243   : > { %v2704_v10 = vpop.eup %2703  ;;  %v4098_v53 = vadd.f32 1.0, %v2698_v62  ;;  %vm4101_vm12 = vcmp.eq.f32.partialorder %v1964_v2, 8.507059e+37  ;;  %v1979_v15 = vand.u32 2147483647, %v4082_v6  ;;  %v1981_v17 = vand.u32 2147483648, %v4082_v6  ;;  %vm4113_vm14 = vmor %vm1915_vm4, %vm1916_vm9 }
 0x244   : > { %v1912_v23 = vsub.f32 1.0, %v1911_v54  ;;  %v2706_v24 = vpop.eup %2705  ;;  %v1926_v13 = vmul.f32 %v2704_v10, %v4047_v48  ;;  %2711 = vrcp.f32 %v4091_v9  ;;  %v1967_v20 = vor.u32 1.1754944e-38, %v1966_v46 }
 0x245   : > { %v2708_v18 = vpop.eup %2707  ;;  %v1941_v33 = vmul.f32 %v2706_v24, %v4049_v50  ;;  %vm1975_vm13 = vweird.f32 %v4082_v6  ;;  %vm1931_vm15 = vweird.f32 %v2704_v10  ;;  %vm1946_vm0 = vweird.f32 %v2706_v24 }
 0x246   : > { %v1913_v19 = vmul.f32 %v2700_v56, %v1912_v23  ;;  %v1927_v21 = vsub.f32 1.0, %v1926_v13  ;;  %v1956_v49 = vmul.f32 %v2708_v18, %v4055_v29  ;;  %vm1961_vm1 = vweird.f32 %v2708_v18  ;;  %vm4128_vm3 = vmor %vm1930_vm6, %vm1931_vm15 }
 0x247   : > { %v1942_v22 = vsub.f32 1.0, %v1941_v33  ;;  %v1994_v38 = vand.u32 2147483647, %v4091_v9  ;;  %vm4119_vm2 = vcmp.eq.f32.partialorder %v1979_v15, 8.507059e+37  ;;  %v1982_v28 = vor.u32 1.1754944e-38, %v1981_v17  ;;  %vm4139_vm9 = vmor %vm1945_vm7, %vm1946_vm0 }
 0x248   : > { %v1914_v26 = vadd.f32 %v2700_v56, %v1913_v19  ;;  %v1928_v16 = vmul.f32 %v2704_v10, %v1927_v21  ;;  %v1957_v34 = vsub.f32 1.0, %v1956_v49  ;;  %2713 = vrcp.f32 %v4098_v53  ;;  %v2710_v30 = vpop.eup %2709 }
 0x249   : > { %v1943_v25 = vmul.f32 %v2706_v24, %v1942_v22  ;;  %vm1990_vm4 = vweird.f32 %v4091_v9  ;;  %v1996_v36 = vand.u32 2147483648, %v4091_v9  ;;  %v1971_v42 = vmul.f32 %v2710_v30, %v4082_v6 }
 0x24a   : > { %v1918_v31 = vsel %vm4113_vm14, %v2700_v56, %v1914_v26  ;;  %v2712_v37 = vpop.eup %2711  ;;  %v1929_v32 = vadd.f32 %v2704_v10, %v1928_v16  ;;  %v1958_v27 = vmul.f32 %v2708_v18, %v1957_v34  ;;  %vm4155_vm6 = vcmp.eq.f32.partialorder %v1994_v38, 8.507059e+37 }
 0x24b   : > { %v1923_v12 = vsel %vm4068_vm5, %v1922_v4, %v1918_v31  ;;  %v1944_v43 = vadd.f32 %v2706_v24, %v1943_v25  ;;  %vm4150_vm5 = vmor %vm1960_vm11, %vm1961_vm1  ;;  %v1986_v41 = vmul.f32 %v2712_v37, %v4091_v9  ;;  %vm2005_vm7 = vweird.f32 %v4098_v53 }
 0x24c   : > { %2116 = vst [vmem:[%s4251_s3 + $0x148] sm:$0xff] %v1923_v12  ;;  %v1933_v50 = vsel %vm4128_vm3, %v2704_v10, %v1929_v32  ;;  %v1959_v51 = vadd.f32 %v2708_v18, %v1958_v27  ;;  %v1972_v44 = vsub.f32 1.0, %v1971_v42  ;;  %vm1976_vm14 = vweird.f32 %v2710_v30 }
 0x24d   : > { %v1938_v29 = vsel %vm4086_vm8, %v1937_v7, %v1933_v50  ;;  %v1948_v52 = vsel %vm4139_vm9, %v2706_v24, %v1944_v43  ;;  %v1987_v45 = vsub.f32 1.0, %v1986_v41  ;;  %vm1991_vm11 = vweird.f32 %v2712_v37  ;;  %vm4180_vm8 = vmor %vm1975_vm13, %vm1976_vm14 }
 0x24e   : > { %v2714_v60 = vpop.eup %2713  ;;  %2117 = vst [vmem:[%s4251_s3 + $0x150] sm:$0xff] %v1938_v29  ;;  %v1953_v61 = vsel %vm4093_vm10, %v1952_v8, %v1948_v52  ;;  %v1963_v62 = vsel %vm4150_vm5, %v2708_v18, %v1959_v51  ;;  %v1973_v55 = vmul.f32 %v2710_v30, %v1972_v44  ;;  %v1997_v63 = vor.u32 1.1754944e-38, %v1996_v36  ;;  %vm1992_vm10 = vmor %vm1990_vm4, %vm1991_vm11 }
 0x24f   : > { %2118 = vst [vmem:[%s4251_s3 + $0x158] sm:$0xff] %v1953_v61  ;;  %v1968_v47 = vsel %vm4101_vm12, %v1967_v20, %v1963_v62  ;;  %v1988_v4 = vmul.f32 %v2712_v37, %v1987_v45  ;;  %v2001_v2 = vmul.f32 %v2714_v60, %v4098_v53  ;;  %v2009_v54 = vand.u32 2147483647, %v4098_v53 }
 0x250   : > { %2119 = vst [vmem:[%s4251_s3 + $0x160] sm:$0xff] %v1968_v47  ;;  %v1974_v46 = vadd.f32 %v2710_v30, %v1973_v55  ;;  %vm2006_vm12 = vweird.f32 %v2714_v60  ;;  %v2011_v6 = vand.u32 2147483648, %v4098_v53  ;;  %v1291_v5 = vadd.f32 1.0, %v4084_v59 }
 0x251   : > { %v1989_v7 = vadd.f32 %v2712_v37, %v1988_v4  ;;  %v2002_v10 = vsub.f32 1.0, %v2001_v2  ;;  %2715 = vpow2.f32 %v4059_v57  ;;  %v2427_v23 = vmul.f32 -1.442695, %v4062_v58  ;;  %vm2007_vm13 = vmor %vm2005_vm7, %vm2006_vm12 }
 0x252   : > { %v1978_v3 = vsel %vm4180_vm8, %v2710_v30, %v1974_v46  ;;  %2717 = vrcp.f32 %v1291_v5  ;;  %v2012_v57 = vor.u32 1.1754944e-38, %v2011_v6  ;;  %vm2010_vm15 = vcmp.eq.f32.partialorder %v2009_v54, 8.507059e+37 }
 0x253   : > { %v1983_v8 = vsel %vm4119_vm2, %v1982_v28, %v1978_v3  ;;  %v1993_v9 = vsel %vm1992_vm10, %v2712_v37, %v1989_v7  ;;  %v2003_v24 = vmul.f32 %v2714_v60, %v2002_v10  ;;  %2719 = vpow2.f32 %v4077_v0 }
 0x254   : > { %2120 = vst [vmem:[%s4251_s3 + $0x168] sm:$0xff] %v1983_v8  ;;  %v1998_v59 = vsel %vm4155_vm6, %v1997_v63, %v1993_v9  ;;  %2721 = vpow2.f32 %v2427_v23  ;;  %vm2020_vm0 = vweird.f32 %v1291_v5  ;;  %v2026_v0 = vand.u32 2147483648, %v1291_v5 }
 0x255   : > { %2121 = vst [vmem:[%s4251_s3 + $0x170] sm:$0xff] %v1998_v59  ;;  %v2004_v58 = vadd.f32 %v2714_v60, %v2003_v24  ;;  %v2024_v11 = vand.u32 2147483647, %v1291_v5 }
 0x256   : > { %v2027_v22 = vor.u32 1.1754944e-38, %v2026_v0 }
 0x257   : > { %v2716_v13 = vpop.eup %2715  ;;  %v2008_v14 = vsel %vm2007_vm13, %v2714_v60, %v2004_v58  ;;  %vm2025_vm3 = vcmp.eq.f32.partialorder %v2024_v11, 8.507059e+37 }
 0x258   : > { %v2718_v15 = vpop.eup %2717  ;;  %v2013_v17 = vsel %vm2010_vm15, %v2012_v57, %v2008_v14  ;;  %v1292_v18 = vadd.f32 1.0, %v2716_v13 }
 0x259   : > { %2122 = vst [vmem:[%s4251_s3 + $0x178] sm:$0xff] %v2013_v17  ;;  %v2016_v53 = vmul.f32 %v2718_v15, %v1291_v5  ;;  %v2720_v19 = vpop.eup %2719  ;;  %vm2021_vm1 = vweird.f32 %v2718_v15 }
 0x25a   : > { %2723 = vrcp.f32 %v1292_v18  ;;  %v2722_v33 = vpop.eup %2721  ;;  %v1293_v21 = vadd.f32 1.0, %v2720_v19  ;;  %vm2022_vm2 = vmor %vm2020_vm0, %vm2021_vm1  ;;  %v2039_v34 = vand.u32 2147483647, %v1292_v18  ;;  %v2041_v39 = vand.u32 2147483648, %v1292_v18 }
 0x25b   : > { %v2017_v20 = vsub.f32 1.0, %v2016_v53  ;;  %v1294_v49 = vadd.f32 1.0, %v2722_v33  ;;  %vm2035_vm4 = vweird.f32 %v1292_v18 }
 0x25c   : > { %2725 = vrcp.f32 %v1293_v21  ;;  %vm4217_vm5 = vcmp.eq.f32.partialorder %v2039_v34, 8.507059e+37  ;;  %v2042_v12 = vor.u32 1.1754944e-38, %v2041_v39  ;;  %vm2050_vm6 = vweird.f32 %v1293_v21 }
 0x25d   : > { %v2018_v26 = vmul.f32 %v2718_v15, %v2017_v20  ;;  %2727 = vrcp.f32 %v1294_v49  ;;  %v2054_v27 = vand.u32 2147483647, %v1293_v21  ;;  %v2056_v42 = vand.u32 2147483648, %v1293_v21 }
 0x25e   : > { %vm2065_vm11 = vweird.f32 %v1294_v49  ;;  %v2071_v41 = vand.u32 2147483648, %v1294_v49  ;;  %v2069_v51 = vand.u32 2147483647, %v1294_v49 }
 0x25f   : > { %v2019_v38 = vadd.f32 %v2718_v15, %v2018_v26  ;;  %v2057_v52 = vor.u32 1.1754944e-38, %v2056_v42  ;;  %vm2055_vm12 = vcmp.eq.f32.partialorder %v2054_v27, 8.507059e+37 }
 0x260   : > { %v2724_v16 = vpop.eup %2723  ;;  %v2072_v62 = vor.u32 1.1754944e-38, %v2071_v41  ;;  %vm2070_vm15 = vcmp.eq.f32.partialorder %v2069_v51, 8.507059e+37 }
 0x261   : > { %v2023_v28 = vsel %vm2022_vm2, %v2718_v15, %v2019_v38  ;;  %v2031_v30 = vmul.f32 %v2724_v16, %v1292_v18  ;;  %vm2036_vm9 = vweird.f32 %v2724_v16 }
 0x262   : > { %v2028_v31 = vsel %vm2025_vm3, %v2027_v22, %v2023_v28  ;;  %v2726_v1 = vpop.eup %2725  ;;  %vm2037_vm7 = vmor %vm2035_vm4, %vm2036_vm9 }
 0x263   : > { %2123 = vst [vmem:[%s4251_s3 + $0x180] sm:$0xff] %v2028_v31  ;;  %v2032_v25 = vsub.f32 1.0, %v2031_v30  ;;  %v2728_v36 = vpop.eup %2727  ;;  %v2046_v32 = vmul.f32 %v2726_v1, %v1293_v21  ;;  %vm2051_vm14 = vweird.f32 %v2726_v1 }
 0x264   : > { %v2061_v43 = vmul.f32 %v2728_v36, %v1294_v49  ;;  %vm2066_vm8 = vweird.f32 %v2728_v36  ;;  %vm2052_vm10 = vmor %vm2050_vm6, %vm2051_vm14 }
 0x265   : > { %v2033_v40 = vmul.f32 %v2724_v16, %v2032_v25  ;;  %v2047_v35 = vsub.f32 1.0, %v2046_v32  ;;  %vm2067_vm13 = vmor %vm2065_vm11, %vm2066_vm8 }
 0x266   : > { %v2062_v50 = vsub.f32 1.0, %v2061_v43 }
 0x267   : > { %v2034_v48 = vadd.f32 %v2724_v16, %v2033_v40  ;;  %v2048_v44 = vmul.f32 %v2726_v1, %v2047_v35 }
 0x268   : > { %v2063_v45 = vmul.f32 %v2728_v36, %v2062_v50 }
 0x269   : > { %v2038_v29 = vsel %vm2037_vm7, %v2724_v16, %v2034_v48  ;;  %v2049_v61 = vadd.f32 %v2726_v1, %v2048_v44 }
 0x26a   : > { %v2043_v60 = vsel %vm4217_vm5, %v2042_v12, %v2038_v29  ;;  %v2064_v55 = vadd.f32 %v2728_v36, %v2063_v45 }
 0x26b   : > { %2124 = vst [vmem:[%s4251_s3 + $0x188] sm:$0xff] %v2043_v60  ;;  %v2053_v63 = vsel %vm2052_vm10, %v2726_v1, %v2049_v61 }
 0x26c   : > { %v2058_v47 = vsel %vm2055_vm12, %v2057_v52, %v2053_v63  ;;  %v2068_v56 = vsel %vm2067_vm13, %v2728_v36, %v2064_v55 }
 0x26d   : > { %2125 = vst [vmem:[%s4251_s3 + $0x190] sm:$0xff] %v2058_v47  ;;  %v2073_v4 = vsel %vm2070_vm15, %v2072_v62, %v2068_v56 }
 0x26e   : > { %2126 = vst [vmem:[%s4251_s3 + $0x198] sm:$0xff] %v2073_v4 }
 0x26f PF: > { %s13_s16 = sadd.s32 1, %s2767_s16   ;;  %s4435_s12 = smov %s2755_s13 }
 0x270   : > { %p10_p12 = scmp.ge.s32.totalorder %s13_s16, 11   ;;  %s4436_s13 = smov %s2825_s20 }
 0x271   : > { %s4437_s14 = smov %s2763_s15  ;;  %s4438_s15 = smov %s4440_s17 }
 0x272   :  { %12 = sbr.rel (!%p10_p12) target bundleno = 3 (0x3), region = 122 }

// kernel: dummy_model_forward.12
= control target key start
LH: loop header
LB: loop body
LE: loop exit
PB: predicated region body
PF: predicated region fallthrough
CT: control target
= control target key end

     0   :  { %s2871_s0 = inlined_call_operand.vmem [shape: bf16[80,2304], index: 0, kind: input, shape index: {}]   ;;  %s2872_s1 = inlined_call_operand.vmem [shape: bf16[2304,512], index: 1, kind: input, shape index: {}]   ;;  %s2873_s2 = inlined_call_operand.vmem [shape: f32[1,512], index: 2, kind: input, shape index: {}]   ;;  %s2874_s3 = inlined_call_operand.vmem [shape: f32[80,512], index: 3, kind: output, shape index: {}]  }
   0x1   :  { %2876 = sst [smem:[#allocation7_spill]] %s2871_s0 }
   0x2   :  { %2877 = sst [smem:[#allocation8_spill]] %s2872_s1 }
   0x3   :  { %s2104_s12 = smov 0   ;;  %s2106_s13 = smov 0  }
   0x4   :  { %s2108_s14 = smov 0   ;;  %s2110_s15 = smov 0  }
   0x5   :  { %s2112_s16 = smov 0   ;;  %s2114_s17 = smov 0  }
   0x6   :  { %s2116_s18 = smov 0   ;;  %s2118_s19 = smov 0  }
   0x7   :  { %s2120_s20 = smov 0   ;;  %s2122_s21 = smov 0  }
   0x8   :  { %s2124_s22 = smov 0  }
   0x9 LB: > { %s1570_s23 = sadd.s32 4294967295, %s2081_s22   ;;  %s25_s24 = sadd.s32 1, %s2073_s20  ;;  %s2081_s22 = sphi %s2124_s22, %s13_s22   ;;  %s2077_s21 = sphi %s2122_s21, %s2953_s21   ;;  %s2073_s20 = sphi %s2120_s20, %s2952_s20   ;;  %s2069_s19 = sphi %s2118_s19, %s2951_s19   ;;  %s2065_s18 = sphi %s2116_s18, %s2950_s18   ;;  %s2061_s17 = sphi %s2114_s17, %s2949_s17   ;;  %s2057_s16 = sphi %s2112_s16, %s2948_s16   ;;  %s2053_s15 = sphi %s2110_s15, %s2947_s15   ;;  %s2049_s14 = sphi %s2108_s14, %s2946_s14   ;;  %s2045_s13 = sphi %s2106_s13, %s2945_s13   ;;  %s2041_s12 = sphi %s2104_s12, %s2944_s12  }
   0xa   : > { %p26_p0 = scmp.ge.s32.totalorder %s25_s24, 9  ;;  %s28_s25 = sadd.s32 1, %s2077_s21 }
   0xb   : > { %s41_s26 = sadd.s32 1, %s2061_s17  ;;  %p48_p1 = scmp.ne.s32.totalorder %s2061_s17, %s2057_s16 }
   0xc   : > { %s2955_s24 = smov (%p26_p0, %s25_s24), 0  ;;  %s2957_s25 = smov (!%p26_p0, %s28_s25), %s2077_s21 }
   0xd   : > { %s37_s27 = ssub.s32 %s2073_s20, %s2955_s24  ;;  %p49_p2 = scmp.eq.s32.totalorder %s2081_s22, 0 }
   0xe   : > { %p30_p3 = scmp.ge.s32.totalorder %s2957_s25, 2  ;;  %p39_p4 = scmp.eq.s32.totalorder %s37_s27, 0 }
   0xf   : > { %p2171_p5 = por %p49_p2, %p48_p1  ;;  %s69_s29 = sadd.s32 1, %s2053_s15 }
  0x10   : > { %s2959_s25 = smov (%p30_p3, %s2957_s25), 0  ;;  %p76_p6 = scmp.ne.s32.totalorder %s2053_s15, %s2049_s14 }
  0x11   : > { %2879 = sst [smem:[#allocation6_spill]] %s2959_s25  ;;  %s65_s4 = ssub.s32 %s2077_s21, %s2959_s25 }
  0x12   : > { %s2179_s30 = scalar_select %p39_p4, %s2061_s17, %s41_s26  }
  0x13   : > { %s66_s5 = sor.u32 %s65_s4, %s37_s27  ;;  %p121_p7 = scmp.eq.s32.totalorder %s65_s4, 0 }
  0x14   : > { %p67_p8 = scmp.eq.s32.totalorder %s66_s5, 0  ;;  %p2185_p9 = por %p76_p6, %p49_p2 }
  0x15   : > { %s123_s7 = sadd.s32 1, %s2045_s13  ;;  %p133_p10 = scmp.ne.s32.totalorder %s2045_s13, %s2041_s12 }
  0x16   : > { %s2193_s8 = scalar_select %p67_p8, %s2053_s15, %s69_s29  }
  0x17   : > { %s2196_s9 = scalar_select %p121_p7, %s2045_s13, %s123_s7  }
  0x18   : > { %p134_p11 = scmp.eq.s32.totalorder %s1570_s23, 17  ;;  %p1573_p13 = scmp.ge.s32.totalorder %s2081_s22, 18 }
  0x1a   : > { %p2198_p12 = por %p134_p11, %p133_p10  ;;  %156 = sbr.rel (%p1573_p13) target bundleno = 93 (0x5d), region = 16 }
  0x1f   : > { %159 = sbr.rel (!%p2171_p5) target bundleno = 51 (0x33), region = 20  ;;  %s161_s11 = sand.u32 (%p2171_p5), 1, %s2061_s17  }
  0x20   : > { %s1778_s26 = sshll.u32 (%p2171_p5), %s2073_s20, 3  ;;  %s1823_s27 = smul.u32 (%p2171_p5), 80, %s161_s11 }
  0x21   : > { %s2882_s0 = sld [smem:[#allocation7_spill]] (%p2171_p5) }
  0x22   : > { %s163_s23 = scalar_lea.vmem (%p2171_p5), [#allocation3], %s1823_s27 }
  0x27   : > { %s169_s5 = scalar_lea.vmem %s2882_s0, %s1778_s26 }
  0x28   : > { %v216_v0 = vld [vmem:[%s169_s5] sm:$0xff]  ;;  %v218_v1 = vld [vmem:[%s169_s5 + $0x48] sm:$0xff]  ;;  %v220_v2 = vld [vmem:[%s169_s5 + $0x90] sm:$0xff] }
  0x29   : > { %217 = vst [vmem:[%s163_s23] sm:$0xff] %v216_v0  ;;  %v222_v3 = vld [vmem:[%s169_s5 + $0xd8] sm:$0xff]  ;;  %v224_v4 = vld [vmem:[%s169_s5 + $0x120] sm:$0xff]  ;;  %v226_v5 = vld [vmem:[%s169_s5 + $0x168] sm:$0xff] }
  0x2a   : > { %219 = vst [vmem:[%s163_s23 + $0x8] sm:$0xff] %v218_v1  ;;  %v228_v6 = vld [vmem:[%s169_s5 + $0x1b0] sm:$0xff]  ;;  %v230_v7 = vld [vmem:[%s169_s5 + $0x1f8] sm:$0xff]  ;;  %v232_v8 = vld [vmem:[%s169_s5 + $0x240] sm:$0xff] }
  0x2b   : > { %221 = vst [vmem:[%s163_s23 + $0x10] sm:$0xff] %v220_v2  ;;  %v234_v9 = vld [vmem:[%s169_s5 + $0x288] sm:$0xff] }
  0x2c   : > { %223 = vst [vmem:[%s163_s23 + $0x18] sm:$0xff] %v222_v3 }
  0x2d   : > { %225 = vst [vmem:[%s163_s23 + $0x20] sm:$0xff] %v224_v4 }
  0x2e   : > { %227 = vst [vmem:[%s163_s23 + $0x28] sm:$0xff] %v226_v5 }
  0x2f   : > { %229 = vst [vmem:[%s163_s23 + $0x30] sm:$0xff] %v228_v6 }
  0x30   : > { %231 = vst [vmem:[%s163_s23 + $0x38] sm:$0xff] %v230_v7 }
  0x31   : > { %233 = vst [vmem:[%s163_s23 + $0x40] sm:$0xff] %v232_v8 }
  0x32   : > { %235 = vst [vmem:[%s163_s23 + $0x48] sm:$0xff] %v234_v9 }
  0x33 PF: > { %241 = sbr.rel (!%p2185_p9) target bundleno = 93 (0x5d), region = 58  ;;  %s243_s28 = sand.u32 (%p2185_p9), 1, %s2053_s15  }
  0x34   : > { %s1578_s7 = sshll.u32 (%p2185_p9), %s2077_s21, 1  ;;  %s1576_s11 = sshll.u32 (%p2185_p9), %s243_s28, 8 }
  0x35   : > { %s1779_s26 = sshll.u32 (%p2185_p9), %s2073_s20, 7  ;;  %s2883_s1 = sld [smem:[#allocation8_spill]] (%p2185_p9) }
  0x36   : > { %s249_s27 = sadd.s32 (%p2185_p9), %s1779_s26, %s1578_s7  ;;  %s2223_s6 = scalar_lea.vmem (%p2185_p9), [#allocation4], %s1576_s11 }
  0x37   : > { %s1580_s29 = sshll.u32 (%p2185_p9), %s249_s27, 2 }
  0x3b   : > { %s2218_s5 = scalar_lea.vmem %s2883_s1, %s1580_s29 }
  0x3c   : > { %v342_v10 = vld [vmem:[%s2218_s5] sm:$0xff]  ;;  %v344_v11 = vld [vmem:[%s2218_s5 + $0x10] sm:$0xff] }
  0x3d   : > { %v346_v12 = vld [vmem:[%s2218_s5 + $0x20] sm:$0xff]  ;;  %343 = vst [vmem:[%s2223_s6] sm:$0xff] %v342_v10  ;;  %v348_v13 = vld [vmem:[%s2218_s5 + $0x30] sm:$0xff] }
  0x3e   : > { %345 = vst [vmem:[%s2223_s6 + $0x8] sm:$0xff] %v344_v11  ;;  %v350_v14 = vld [vmem:[%s2218_s5 + $0x40] sm:$0xff]  ;;  %v352_v15 = vld [vmem:[%s2218_s5 + $0x50] sm:$0xff] }
  0x3f   : > { %347 = vst [vmem:[%s2223_s6 + $0x10] sm:$0xff] %v346_v12  ;;  %v354_v16 = vld [vmem:[%s2218_s5 + $0x60] sm:$0xff]  ;;  %v356_v17 = vld [vmem:[%s2218_s5 + $0x70] sm:$0xff] }
  0x40   : > { %349 = vst [vmem:[%s2223_s6 + $0x18] sm:$0xff] %v348_v13  ;;  %v358_v18 = vld [vmem:[%s2218_s5 + $0x80] sm:$0xff]  ;;  %v360_v19 = vld [vmem:[%s2218_s5 + $0x90] sm:$0xff] }
  0x41   : > { %351 = vst [vmem:[%s2223_s6 + $0x20] sm:$0xff] %v350_v14  ;;  %v362_v20 = vld [vmem:[%s2218_s5 + $0xa0] sm:$0xff]  ;;  %v364_v21 = vld [vmem:[%s2218_s5 + $0xb0] sm:$0xff] }
  0x42   : > { %353 = vst [vmem:[%s2223_s6 + $0x28] sm:$0xff] %v352_v15  ;;  %v366_v22 = vld [vmem:[%s2218_s5 + $0xc0] sm:$0xff]  ;;  %v368_v23 = vld [vmem:[%s2218_s5 + $0xd0] sm:$0xff] }
  0x43   : > { %355 = vst [vmem:[%s2223_s6 + $0x30] sm:$0xff] %v354_v16  ;;  %v370_v24 = vld [vmem:[%s2218_s5 + $0xe0] sm:$0xff]  ;;  %v372_v25 = vld [vmem:[%s2218_s5 + $0xf0] sm:$0xff] }
  0x44   : > { %357 = vst [vmem:[%s2223_s6 + $0x38] sm:$0xff] %v356_v17  ;;  %v374_v26 = vld [vmem:[%s2218_s5 + $0x100] sm:$0xff]  ;;  %v376_v27 = vld [vmem:[%s2218_s5 + $0x110] sm:$0xff] }
  0x45   : > { %359 = vst [vmem:[%s2223_s6 + $0x40] sm:$0xff] %v358_v18  ;;  %v378_v28 = vld [vmem:[%s2218_s5 + $0x120] sm:$0xff]  ;;  %v380_v29 = vld [vmem:[%s2218_s5 + $0x130] sm:$0xff] }
  0x46   : > { %361 = vst [vmem:[%s2223_s6 + $0x48] sm:$0xff] %v360_v19  ;;  %v382_v30 = vld [vmem:[%s2218_s5 + $0x140] sm:$0xff]  ;;  %v384_v31 = vld [vmem:[%s2218_s5 + $0x150] sm:$0xff] }
  0x47   : > { %363 = vst [vmem:[%s2223_s6 + $0x50] sm:$0xff] %v362_v20  ;;  %v386_v32 = vld [vmem:[%s2218_s5 + $0x160] sm:$0xff]  ;;  %v388_v33 = vld [vmem:[%s2218_s5 + $0x170] sm:$0xff] }
  0x48   : > { %365 = vst [vmem:[%s2223_s6 + $0x58] sm:$0xff] %v364_v21  ;;  %v390_v34 = vld [vmem:[%s2218_s5 + $0x180] sm:$0xff]  ;;  %v392_v35 = vld [vmem:[%s2218_s5 + $0x190] sm:$0xff] }
  0x49   : > { %367 = vst [vmem:[%s2223_s6 + $0x60] sm:$0xff] %v366_v22  ;;  %v394_v36 = vld [vmem:[%s2218_s5 + $0x1a0] sm:$0xff]  ;;  %v396_v37 = vld [vmem:[%s2218_s5 + $0x1b0] sm:$0xff] }
  0x4a   : > { %369 = vst [vmem:[%s2223_s6 + $0x68] sm:$0xff] %v368_v23  ;;  %v398_v38 = vld [vmem:[%s2218_s5 + $0x1c0] sm:$0xff]  ;;  %v400_v39 = vld [vmem:[%s2218_s5 + $0x1d0] sm:$0xff] }
  0x4b   : > { %371 = vst [vmem:[%s2223_s6 + $0x70] sm:$0xff] %v370_v24  ;;  %v402_v40 = vld [vmem:[%s2218_s5 + $0x1e0] sm:$0xff]  ;;  %v404_v41 = vld [vmem:[%s2218_s5 + $0x1f0] sm:$0xff] }
  0x4c   : > { %373 = vst [vmem:[%s2223_s6 + $0x78] sm:$0xff] %v372_v25 }
  0x4d   : > { %375 = vst [vmem:[%s2223_s6 + $0x80] sm:$0xff] %v374_v26 }
  0x4e   : > { %377 = vst [vmem:[%s2223_s6 + $0x88] sm:$0xff] %v376_v27 }
  0x4f   : > { %379 = vst [vmem:[%s2223_s6 + $0x90] sm:$0xff] %v378_v28 }
  0x50   : > { %381 = vst [vmem:[%s2223_s6 + $0x98] sm:$0xff] %v380_v29 }
  0x51   : > { %383 = vst [vmem:[%s2223_s6 + $0xa0] sm:$0xff] %v382_v30 }
  0x52   : > { %385 = vst [vmem:[%s2223_s6 + $0xa8] sm:$0xff] %v384_v31 }
  0x53   : > { %387 = vst [vmem:[%s2223_s6 + $0xb0] sm:$0xff] %v386_v32 }
  0x54   : > { %389 = vst [vmem:[%s2223_s6 + $0xb8] sm:$0xff] %v388_v33 }
  0x55   : > { %391 = vst [vmem:[%s2223_s6 + $0xc0] sm:$0xff] %v390_v34 }
  0x56   : > { %393 = vst [vmem:[%s2223_s6 + $0xc8] sm:$0xff] %v392_v35 }
  0x57   : > { %395 = vst [vmem:[%s2223_s6 + $0xd0] sm:$0xff] %v394_v36 }
  0x58   : > { %397 = vst [vmem:[%s2223_s6 + $0xd8] sm:$0xff] %v396_v37 }
  0x59   : > { %399 = vst [vmem:[%s2223_s6 + $0xe0] sm:$0xff] %v398_v38 }
  0x5a   : > { %401 = vst [vmem:[%s2223_s6 + $0xe8] sm:$0xff] %v400_v39 }
  0x5b   : > { %403 = vst [vmem:[%s2223_s6 + $0xf0] sm:$0xff] %v402_v40 }
  0x5c   : > { %405 = vst [vmem:[%s2223_s6 + $0xf8] sm:$0xff] %v404_v41 }
  0x5d PF: > { %p1581_p0 = scmp.ge.s32.totalorder %s2081_s22, 1  ;;  %p418_p1 = scmp.lt.s32.totalorder %s2081_s22, 19 }
  0x5f   : > { %p419_p2 = pnand %p1581_p0, %p418_p1 }
  0x60   : > { %s425_s0 = sand.u32 (!%p419_p2), 1, %s2057_s16   ;;  %s432_s23 = sand.u32 (!%p419_p2), 1, %s2049_s14  }
  0x61   : > { %422 = sbr.rel (%p419_p2) target bundleno = 501 (0x1f5), region = 100  ;;  %s1582_s7 = sshll.u32 (!%p419_p2), %s432_s23, 8 }
  0x62   : > { %s1824_s28 = smul.u32 (!%p419_p2), 80, %s425_s0  ;;  %s459_s11 = sand.u32 (!%p419_p2), 1, %s2041_s12  }
  0x63   : > { %s1825_s26 = smul.u32 (!%p419_p2), 160, %s459_s11  ;;  %s1583_s27 = sshll.u32 (!%p419_p2), %s2069_s19, 1 }
  0x64   : > { %p467_p3 = scmp.lt.s32.totalorder (!%p419_p2), %s1583_s27, 3  ;;  %s2298_s6 = scalar_lea.vmem (!%p419_p2), [#allocation3], %s1824_s28 }
  0x65   : > { %s2300_s1 = scalar_lea.vmem (!%p419_p2), [#allocation4], %s1582_s7  ;;  %s2302_s25 = scalar_lea.vmem (!%p419_p2), [#allocation5], %s1825_s26 }
  0x66   : > { %s2961_s27 = smov (!%p467_p3, %s1583_s27), 3  ;;  %p1584_p4 = scmp.ne.s32.totalorder %s2065_s18, 0 }
  0x67   : > { %s469_s5 = scalar_lea.vmem %s2873_s2, %s2961_s27 }
  0x68   : > { %476 = sbr.rel (%p1584_p4) target bundleno = 130 (0x82), region = 112 }
  0x6d   : > { %v2083_v42 = vmov 0.0  }
  0x6e   : > { %477 = vst [vmem:[#allocation2] sm:$0xff] %v2083_v42 }
  0x6f   : > { %478 = vst [vmem:[#allocation2 + $0x38] sm:$0xff] %v2083_v42 }
  0x70   : > { %479 = vst [vmem:[#allocation2 + $0x50] sm:$0xff] %v2083_v42 }
  0x71   : > { %480 = vst [vmem:[#allocation2 + $0x18] sm:$0xff] %v2083_v42 }
  0x72   : > { %481 = vst [vmem:[#allocation2 + $0x30] sm:$0xff] %v2083_v42 }
  0x73   : > { %482 = vst [vmem:[#allocation2 + $0x68] sm:$0xff] %v2083_v42 }
  0x74   : > { %483 = vst [vmem:[#allocation2 + $0x78] sm:$0xff] %v2083_v42 }
  0x75   : > { %484 = vst [vmem:[#allocation2 + $0x80] sm:$0xff] %v2083_v42 }
  0x76   : > { %485 = vst [vmem:[#allocation2 + $0x8] sm:$0xff] %v2083_v42 }
  0x77   : > { %486 = vst [vmem:[#allocation2 + $0x88] sm:$0xff] %v2083_v42 }
  0x78   : > { %487 = vst [vmem:[#allocation2 + $0x28] sm:$0xff] %v2083_v42 }
  0x79   : > { %488 = vst [vmem:[#allocation2 + $0x40] sm:$0xff] %v2083_v42 }
  0x7a   : > { %489 = vst [vmem:[#allocation2 + $0x58] sm:$0xff] %v2083_v42 }
  0x7b   : > { %490 = vst [vmem:[#allocation2 + $0x10] sm:$0xff] %v2083_v42 }
  0x7c   : > { %491 = vst [vmem:[#allocation2 + $0x98] sm:$0xff] %v2083_v42 }
  0x7d   : > { %492 = vst [vmem:[#allocation2 + $0x60] sm:$0xff] %v2083_v42 }
  0x7e   : > { %493 = vst [vmem:[#allocation2 + $0x20] sm:$0xff] %v2083_v42 }
  0x7f   : > { %494 = vst [vmem:[#allocation2 + $0x48] sm:$0xff] %v2083_v42 }
  0x80   : > { %495 = vst [vmem:[#allocation2 + $0x70] sm:$0xff] %v2083_v42 }
  0x81   : > { %496 = vst [vmem:[#allocation2 + $0x90] sm:$0xff] %v2083_v42 }
  0x82 PF: > { %v1683_v43 = vld [vmem:[%s2300_s1 + $0x70] sm:$0xf]  ;;  %v1805_v44 = vld [vmem:[%s2300_s1 + $0x74] sm:$0xf0]  ;;  %v1804_v48 = vld [vmem:[%s2300_s1 + $0x74] sm:$0xf] }
  0x83   : > { %v1747_v45 = vld [vmem:[%s2300_s1 + $0xf0] sm:$0xf]  ;;  %v1684_v46 = vor.u32 %v1805_v44, %v1683_v43  ;;  %v1821_v47 = vld [vmem:[%s2300_s1 + $0xf4] sm:$0xf0]  ;;  %v1685_v49 = vld [vmem:[%s2300_s1 + $0x78] sm:$0xf0] }
  0x84   : > { %v1748_v50 = vor.u32 %v1821_v47, %v1747_v45  ;;  %v1688_v51 = vor.u32 %v1804_v48, %v1685_v49  ;;  %v1820_v52 = vld [vmem:[%s2300_s1 + $0xf4] sm:$0xf]  ;;  %v1749_v53 = vld [vmem:[%s2300_s1 + $0xf8] sm:$0xf0]  ;;  %v1675_v54 = vld [vmem:[%s2300_s1 + $0x60] sm:$0xf] }
  0x85   : > { %769 = vmatpush.bf16.msra.mxu0 %v1684_v46  ;;  %v1752_v55 = vor.u32 %v1820_v52, %v1749_v53  ;;  %v1803_v56 = vld [vmem:[%s2300_s1 + $0x64] sm:$0xf0]  ;;  %v1739_v57 = vld [vmem:[%s2300_s1 + $0xe0] sm:$0xf]  ;;  %v1802_v61 = vld [vmem:[%s2300_s1 + $0x64] sm:$0xf] }
  0x86   : > { %v1819_v58 = vld [vmem:[%s2300_s1 + $0xe4] sm:$0xf0]  ;;  %803 = vmatpush.bf16.msra.mxu1 %v1748_v50  ;;  %837 = vmatpush.bf16.msra.mxu2 %v1688_v51  ;;  %v1676_v59 = vor.u32 %v1803_v56, %v1675_v54  ;;  %v1677_v62 = vld [vmem:[%s2300_s1 + $0x68] sm:$0xf0]  ;;  %v1818_v63 = vld [vmem:[%s2300_s1 + $0xe4] sm:$0xf] }
  0x87   : > { %v1740_v60 = vor.u32 %v1819_v58, %v1739_v57  ;;  %871 = vmatpush.bf16.msra.mxu3 %v1752_v55  ;;  %v1680_v0 = vor.u32 %v1802_v61, %v1677_v62  ;;  %v1741_v1 = vld [vmem:[%s2300_s1 + $0xe8] sm:$0xf0]  ;;  %v1667_v2 = vld [vmem:[%s2300_s1 + $0x50] sm:$0xf]  ;;  %v1801_v3 = vld [vmem:[%s2300_s1 + $0x54] sm:$0xf0] }
  0x88   : > { %v1744_v4 = vor.u32 %v1818_v63, %v1741_v1  ;;  %v1731_v5 = vld [vmem:[%s2300_s1 + $0xd0] sm:$0xf]  ;;  %v1817_v6 = vld [vmem:[%s2300_s1 + $0xd4] sm:$0xf0]  ;;  %v1800_v7 = vld [vmem:[%s2300_s1 + $0x54] sm:$0xf]  ;;  %v1668_v8 = vor.u32 %v1801_v3, %v1667_v2 }
  0x89   : > { %770 = vmatpush.bf16.msra.mxu0 %v1676_v59  ;;  %v1669_v9 = vld [vmem:[%s2300_s1 + $0x58] sm:$0xf0]  ;;  %v1816_v10 = vld [vmem:[%s2300_s1 + $0xd4] sm:$0xf]  ;;  %v1732_v12 = vor.u32 %v1817_v6, %v1731_v5  ;;  %v1659_v14 = vld [vmem:[%s2300_s1 + $0x40] sm:$0xf] }
  0x8a   : > { %v1733_v11 = vld [vmem:[%s2300_s1 + $0xd8] sm:$0xf0]  ;;  %804 = vmatpush.bf16.msra.mxu1 %v1740_v60  ;;  %838 = vmatpush.bf16.msra.mxu2 %v1680_v0  ;;  %v1672_v13 = vor.u32 %v1800_v7, %v1669_v9  ;;  %v1799_v15 = vld [vmem:[%s2300_s1 + $0x44] sm:$0xf0]  ;;  %v1723_v16 = vld [vmem:[%s2300_s1 + $0xc0] sm:$0xf] }
  0x8b   : > { %872 = vmatpush.bf16.msra.mxu3 %v1744_v4  ;;  %v1736_v17 = vor.u32 %v1816_v10, %v1733_v11  ;;  %v1815_v18 = vld [vmem:[%s2300_s1 + $0xc4] sm:$0xf0]  ;;  %v1798_v19 = vld [vmem:[%s2300_s1 + $0x44] sm:$0xf]  ;;  %v1661_v20 = vld [vmem:[%s2300_s1 + $0x48] sm:$0xf0]  ;;  %v1660_v23 = vor.u32 %v1799_v15, %v1659_v14 }
  0x8c   : > { %v1814_v21 = vld [vmem:[%s2300_s1 + $0xc4] sm:$0xf]  ;;  %v1725_v22 = vld [vmem:[%s2300_s1 + $0xc8] sm:$0xf0]  ;;  %v1724_v24 = vor.u32 %v1815_v18, %v1723_v16  ;;  %v1664_v25 = vor.u32 %v1798_v19, %v1661_v20  ;;  %v1651_v26 = vld [vmem:[%s2300_s1 + $0x30] sm:$0xf] }
  0x8d   : > { %771 = vmatpush.bf16.msra.mxu0 %v1668_v8  ;;  %v1797_v27 = vld [vmem:[%s2300_s1 + $0x34] sm:$0xf0]  ;;  %v1715_v28 = vld [vmem:[%s2300_s1 + $0xb0] sm:$0xf]  ;;  %v1728_v29 = vor.u32 %v1814_v21, %v1725_v22  ;;  %v1796_v31 = vld [vmem:[%s2300_s1 + $0x34] sm:$0xf] }
  0x8e   : > { %805 = vmatpush.bf16.msra.mxu1 %v1732_v12  ;;  %839 = vmatpush.bf16.msra.mxu2 %v1672_v13  ;;  %v1813_v30 = vld [vmem:[%s2300_s1 + $0xb4] sm:$0xf0]  ;;  %v1653_v32 = vld [vmem:[%s2300_s1 + $0x38] sm:$0xf0]  ;;  %v1812_v33 = vld [vmem:[%s2300_s1 + $0xb4] sm:$0xf]  ;;  %v1652_v35 = vor.u32 %v1797_v27, %v1651_v26 }
  0x8f   : > { %873 = vmatpush.bf16.msra.mxu3 %v1736_v17  ;;  %v1717_v34 = vld [vmem:[%s2300_s1 + $0xb8] sm:$0xf0]  ;;  %v1716_v36 = vor.u32 %v1813_v30, %v1715_v28  ;;  %v1656_v37 = vor.u32 %v1796_v31, %v1653_v32  ;;  %v1643_v38 = vld [vmem:[%s2300_s1 + $0x20] sm:$0xf]  ;;  %v1795_v39 = vld [vmem:[%s2300_s1 + $0x24] sm:$0xf0] }
  0x90   : > { %v1707_v40 = vld [vmem:[%s2300_s1 + $0xa0] sm:$0xf]  ;;  %v1720_v41 = vor.u32 %v1812_v33, %v1717_v34  ;;  %v1811_v42 = vld [vmem:[%s2300_s1 + $0xa4] sm:$0xf0]  ;;  %v1794_v43 = vld [vmem:[%s2300_s1 + $0x24] sm:$0xf]  ;;  %v1644_v47 = vor.u32 %v1795_v39, %v1643_v38 }
  0x91   : > { %772 = vmatpush.bf16.msra.mxu0 %v1660_v23  ;;  %v1645_v44 = vld [vmem:[%s2300_s1 + $0x28] sm:$0xf0]  ;;  %v1810_v45 = vld [vmem:[%s2300_s1 + $0xa4] sm:$0xf]  ;;  %v1708_v48 = vor.u32 %v1811_v42, %v1707_v40  ;;  %v1635_v50 = vld [vmem:[%s2300_s1 + $0x10] sm:$0xf] }
  0x92   : > { %806 = vmatpush.bf16.msra.mxu1 %v1724_v24  ;;  %840 = vmatpush.bf16.msra.mxu2 %v1664_v25  ;;  %v1709_v46 = vld [vmem:[%s2300_s1 + $0xa8] sm:$0xf0]  ;;  %v1648_v49 = vor.u32 %v1794_v43, %v1645_v44  ;;  %v1793_v51 = vld [vmem:[%s2300_s1 + $0x14] sm:$0xf0]  ;;  %v1699_v52 = vld [vmem:[%s2300_s1 + $0x90] sm:$0xf] }
  0x93   : > { %874 = vmatpush.bf16.msra.mxu3 %v1728_v29  ;;  %v1712_v53 = vor.u32 %v1810_v45, %v1709_v46  ;;  %v1809_v54 = vld [vmem:[%s2300_s1 + $0x94] sm:$0xf0]  ;;  %v1792_v55 = vld [vmem:[%s2300_s1 + $0x14] sm:$0xf]  ;;  %v1637_v56 = vld [vmem:[%s2300_s1 + $0x18] sm:$0xf0]  ;;  %v1636_v59 = vor.u32 %v1793_v51, %v1635_v50 }
  0x94   : > { %v1808_v57 = vld [vmem:[%s2300_s1 + $0x94] sm:$0xf]  ;;  %v1701_v58 = vld [vmem:[%s2300_s1 + $0x98] sm:$0xf0]  ;;  %v1700_v60 = vor.u32 %v1809_v54, %v1699_v52  ;;  %v1640_v61 = vor.u32 %v1792_v55, %v1637_v56  ;;  %v1627_v62 = vld [vmem:[%s2300_s1] sm:$0xf] }
  0x95   : > { %773 = vmatpush.bf16.msra.mxu0 %v1652_v35  ;;  %v1791_v63 = vld [vmem:[%s2300_s1 + $0x4] sm:$0xf0]  ;;  %v1691_v0 = vld [vmem:[%s2300_s1 + $0x80] sm:$0xf]  ;;  %v1704_v1 = vor.u32 %v1808_v57, %v1701_v58  ;;  %v1790_v3 = vld [vmem:[%s2300_s1 + $0x4] sm:$0xf] }
  0x96   : > { %807 = vmatpush.bf16.msra.mxu1 %v1716_v36  ;;  %841 = vmatpush.bf16.msra.mxu2 %v1656_v37  ;;  %v1807_v2 = vld [vmem:[%s2300_s1 + $0x84] sm:$0xf0]  ;;  %v1629_v4 = vld [vmem:[%s2300_s1 + $0x8] sm:$0xf0]  ;;  %v1806_v5 = vld [vmem:[%s2300_s1 + $0x84] sm:$0xf]  ;;  %v1628_v7 = vor.u32 %v1791_v63, %v1627_v62 }
  0x97   : > { %875 = vmatpush.bf16.msra.mxu3 %v1720_v41  ;;  %v1693_v6 = vld [vmem:[%s2300_s1 + $0x88] sm:$0xf0]  ;;  %v1587_v8 = vld [vmem:[%s2298_s6] sm:$0xf]  ;;  %v1781_v9 = vld [vmem:[%s2298_s6 + $0x4] sm:$0xf0]  ;;  %v1692_v10 = vor.u32 %v1807_v2, %v1691_v0  ;;  %v1632_v11 = vor.u32 %v1790_v3, %v1629_v4 }
  0x98   : > { %v1780_v12 = vld [vmem:[%s2298_s6 + $0x4] sm:$0xf]  ;;  %v1589_v13 = vld [vmem:[%s2298_s6 + $0x8] sm:$0xf0]  ;;  %v1696_v14 = vor.u32 %v1806_v5, %v1693_v6  ;;  %v1588_v15 = vor.u32 %v1781_v9, %v1587_v8  ;;  %v1595_v17 = vld [vmem:[%s2298_s6 + $0x10] sm:$0xf] }
  0x99   : > { %774 = vmatpush.bf16.msra.mxu0 %v1644_v47  ;;  %v1592_v16 = vor.u32 %v1780_v12, %v1589_v13  ;;  %v1783_v18 = vld [vmem:[%s2298_s6 + $0x14] sm:$0xf0]  ;;  %v1782_v19 = vld [vmem:[%s2298_s6 + $0x14] sm:$0xf]  ;;  %v1597_v20 = vld [vmem:[%s2298_s6 + $0x18] sm:$0xf0] }
  0x9a   : > { %808 = vmatpush.bf16.msra.mxu1 %v1708_v48  ;;  %842 = vmatpush.bf16.msra.mxu2 %v1648_v49  ;;  %v1596_v21 = vor.u32 %v1783_v18, %v1595_v17  ;;  %v1600_v22 = vor.u32 %v1782_v19, %v1597_v20  ;;  %v1603_v23 = vld [vmem:[%s2298_s6 + $0x20] sm:$0xf]  ;;  %v1785_v24 = vld [vmem:[%s2298_s6 + $0x24] sm:$0xf0]  ;;  %v1784_v25 = vld [vmem:[%s2298_s6 + $0x24] sm:$0xf] }
  0x9b   : > { %876 = vmatpush.bf16.msra.mxu3 %v1712_v53  ;;  %v1605_v26 = vld [vmem:[%s2298_s6 + $0x28] sm:$0xf0]  ;;  %v1604_v27 = vor.u32 %v1785_v24, %v1603_v23  ;;  %v1611_v29 = vld [vmem:[%s2298_s6 + $0x30] sm:$0xf]  ;;  %v1787_v30 = vld [vmem:[%s2298_s6 + $0x34] sm:$0xf0] }
  0x9c   : > { %v1608_v28 = vor.u32 %v1784_v25, %v1605_v26  ;;  %v1786_v31 = vld [vmem:[%s2298_s6 + $0x34] sm:$0xf]  ;;  %v1613_v32 = vld [vmem:[%s2298_s6 + $0x38] sm:$0xf0]  ;;  %v1612_v33 = vor.u32 %v1787_v30, %v1611_v29  ;;  %v1619_v35 = vld [vmem:[%s2298_s6 + $0x40] sm:$0xf] }
  0x9d   : > { %775 = vmatpush.bf16.msra.mxu0 %v1636_v59  ;;  %v1616_v34 = vor.u32 %v1786_v31, %v1613_v32  ;;  %v1789_v36 = vld [vmem:[%s2298_s6 + $0x44] sm:$0xf0]  ;;  %v1788_v37 = vld [vmem:[%s2298_s6 + $0x44] sm:$0xf]  ;;  %v1621_v38 = vld [vmem:[%s2298_s6 + $0x48] sm:$0xf0] }
  0x9e   : > { %809 = vmatpush.bf16.msra.mxu1 %v1700_v60  ;;  %843 = vmatpush.bf16.msra.mxu2 %v1640_v61  ;;  %v1620_v39 = vor.u32 %v1789_v36, %v1619_v35  ;;  %v1624_v40 = vor.u32 %v1788_v37, %v1621_v38  ;;  %v497_v42 = vld [vmem:[#allocation2] sm:$0xff]  ;;  %v498_v47 = vld [vmem:[#allocation2 + $0x38] sm:$0xff]  ;;  %v499_v51 = vld [vmem:[#allocation2 + $0x50] sm:$0xff]  ;;  %p1753_p5 = scmp.ne.s32.totalorder %s2065_s18, 8 }
  0x9f   : > { %877 = vmatpush.bf16.msra.mxu3 %v1704_v1  ;;  %v500_v57 = vld [vmem:[#allocation2 + $0x18] sm:$0xff]  ;;  %v501_v61 = vld [vmem:[#allocation2 + $0x30] sm:$0xff]  ;;  %v502_v3 = vld [vmem:[#allocation2 + $0x68] sm:$0xff] }
  0xa0   : > { %v504_v13 = vld [vmem:[#allocation2 + $0x80] sm:$0xff]  ;;  %v505_v17 = vld [vmem:[#allocation2 + $0x8] sm:$0xff]  ;;  %v509_v37 = vld [vmem:[#allocation2 + $0x58] sm:$0xff] }
  0xa1   : > { %776 = vmatpush.bf16.msra.mxu0 %v1628_v7  ;;  %v503_v7 = vld [vmem:[#allocation2 + $0x78] sm:$0xff]  ;;  %v506_v23 = vld [vmem:[#allocation2 + $0x88] sm:$0xff] }
  0xa2   : > { %810 = vmatpush.bf16.msra.mxu1 %v1692_v10  ;;  %844 = vmatpush.bf16.msra.mxu2 %v1632_v11 }
  0xa3   : > { %878 = vmatpush.bf16.msra.mxu3 %v1696_v14 }
  0xa4   : > { %777 = vmatmul.bf16.vlgmr.msra.gmra.mxu0 %v1588_v15 }
  0xa5   : > { %811 = vmatmul.bf16.vlgmr.msra.gmra.mxu1 %v1592_v16  ;;  %845 = vmatmul.bf16.vlgmr.msra.gmra.mxu2 %v1588_v15 }
  0xa6   : > { %879 = vmatmul.bf16.vlgmr.msra.gmra.mxu3 %v1592_v16 }
  0xb4   : > { %782 = vmatmul.bf16.gmra.mxu0 %v1596_v21 }
  0xb5   : > { %816 = vmatmul.bf16.gmra.mxu1 %v1600_v22  ;;  %850 = vmatmul.bf16.gmra.mxu2 %v1596_v21 }
  0xb6   : > { %884 = vmatmul.bf16.gmra.mxu3 %v1600_v22 }
  0xc4   : > { %787 = vmatmul.bf16.gmra.mxu0 %v1604_v27 }
  0xc5   : > { %821 = vmatmul.bf16.gmra.mxu1 %v1608_v28  ;;  %855 = vmatmul.bf16.gmra.mxu2 %v1604_v27  ;;  %v507_v27 = vld [vmem:[#allocation2 + $0x28] sm:$0xff] }
  0xc6   : > { %889 = vmatmul.bf16.gmra.mxu3 %v1608_v28 }
  0xd4   : > { %792 = vmatmul.bf16.gmra.mxu0 %v1612_v33 }
  0xd5   : > { %826 = vmatmul.bf16.gmra.mxu1 %v1616_v34  ;;  %860 = vmatmul.bf16.gmra.mxu2 %v1612_v33  ;;  %v508_v33 = vld [vmem:[#allocation2 + $0x40] sm:$0xff] }
  0xd6   : > { %894 = vmatmul.bf16.gmra.mxu3 %v1616_v34 }
  0xe4   : > { %797 = vmatmul.bf16.gmra.mxu0 %v1620_v39 }
  0xe5   : > { %831 = vmatmul.bf16.gmra.mxu1 %v1624_v40  ;;  %865 = vmatmul.bf16.gmra.mxu2 %v1620_v39 }
  0xe6   : > { %899 = vmatmul.bf16.gmra.mxu3 %v1624_v40 }
 0x121   : > { %v778_v41 = vpop.f32.mrf.mxu0 }
 0x122   : > { %v812_v43 = vpop.f32.mrf.mxu1 }
 0x123   : > { %v813_v44 = vadd.f32 %v812_v43, %v778_v41  ;;  %v510_v43 = vld [vmem:[#allocation2 + $0x10] sm:$0xff] }
 0x125   : > { %v905_v45 = vadd.f32 %v813_v44, %v497_v42 }
 0x127   : > { %925 = vst [vmem:[#allocation2] sm:$0xff] %v905_v45 }
 0x128   : > { %v846_v46 = vpop.f32.mrf.mxu2 }
 0x129   : > { %v880_v48 = vpop.f32.mrf.mxu3  ;;  %v780_v49 = vpop.f32.mrf.mxu0 }
 0x12a   : > { %v881_v50 = vadd.f32 %v880_v48, %v846_v46  ;;  %v814_v52 = vpop.f32.mrf.mxu1 }
 0x12b   : > { %v815_v53 = vadd.f32 %v814_v52, %v780_v49 }
 0x12c   : > { %v906_v54 = vadd.f32 %v881_v50, %v498_v47  ;;  %v511_v47 = vld [vmem:[#allocation2 + $0x98] sm:$0xff] }
 0x12d   : > { %v907_v55 = vadd.f32 %v815_v53, %v499_v51  ;;  %v512_v53 = vld [vmem:[#allocation2 + $0x60] sm:$0xff] }
 0x12e   : > { %926 = vst [vmem:[#allocation2 + $0x38] sm:$0xff] %v906_v54 }
 0x12f   : > { %927 = vst [vmem:[#allocation2 + $0x50] sm:$0xff] %v907_v55 }
 0x130   : > { %v848_v56 = vpop.f32.mrf.mxu2 }
 0x131   : > { %v882_v58 = vpop.f32.mrf.mxu3  ;;  %v783_v59 = vpop.f32.mrf.mxu0 }
 0x132   : > { %v883_v60 = vadd.f32 %v882_v58, %v848_v56  ;;  %v817_v62 = vpop.f32.mrf.mxu1 }
 0x133   : > { %v818_v63 = vadd.f32 %v817_v62, %v783_v59 }
 0x134   : > { %v908_v0 = vadd.f32 %v883_v60, %v500_v57  ;;  %v513_v57 = vld [vmem:[#allocation2 + $0x20] sm:$0xff] }
 0x135   : > { %v909_v1 = vadd.f32 %v818_v63, %v501_v61  ;;  %v514_v63 = vld [vmem:[#allocation2 + $0x48] sm:$0xff] }
 0x136   : > { %928 = vst [vmem:[#allocation2 + $0x18] sm:$0xff] %v908_v0 }
 0x137   : > { %929 = vst [vmem:[#allocation2 + $0x30] sm:$0xff] %v909_v1 }
 0x138   : > { %v851_v2 = vpop.f32.mrf.mxu2 }
 0x139   : > { %v885_v4 = vpop.f32.mrf.mxu3  ;;  %v785_v5 = vpop.f32.mrf.mxu0 }
 0x13a   : > { %v886_v6 = vadd.f32 %v885_v4, %v851_v2  ;;  %v819_v8 = vpop.f32.mrf.mxu1 }
 0x13b   : > { %v820_v9 = vadd.f32 %v819_v8, %v785_v5 }
 0x13c   : > { %v910_v10 = vadd.f32 %v886_v6, %v502_v3  ;;  %v515_v3 = vld [vmem:[#allocation2 + $0x70] sm:$0xff] }
 0x13d   : > { %v911_v11 = vadd.f32 %v820_v9, %v503_v7  ;;  %v516_v9 = vld [vmem:[#allocation2 + $0x90] sm:$0xff] }
 0x13e   : > { %930 = vst [vmem:[#allocation2 + $0x68] sm:$0xff] %v910_v10 }
 0x13f   : > { %931 = vst [vmem:[#allocation2 + $0x78] sm:$0xff] %v911_v11 }
 0x140   : > { %v853_v12 = vpop.f32.mrf.mxu2 }
 0x141   : > { %v887_v14 = vpop.f32.mrf.mxu3  ;;  %v788_v15 = vpop.f32.mrf.mxu0 }
 0x142   : > { %v888_v16 = vadd.f32 %v887_v14, %v853_v12  ;;  %v822_v18 = vpop.f32.mrf.mxu1 }
 0x143   : > { %v823_v19 = vadd.f32 %v822_v18, %v788_v15 }
 0x144   : > { %v912_v20 = vadd.f32 %v888_v16, %v504_v13 }
 0x145   : > { %v913_v21 = vadd.f32 %v823_v19, %v505_v17 }
 0x146   : > { %932 = vst [vmem:[#allocation2 + $0x80] sm:$0xff] %v912_v20 }
 0x147   : > { %933 = vst [vmem:[#allocation2 + $0x8] sm:$0xff] %v913_v21 }
 0x148   : > { %v856_v22 = vpop.f32.mrf.mxu2 }
 0x149   : > { %v890_v24 = vpop.f32.mrf.mxu3  ;;  %v790_v25 = vpop.f32.mrf.mxu0 }
 0x14a   : > { %v891_v26 = vadd.f32 %v890_v24, %v856_v22  ;;  %v824_v28 = vpop.f32.mrf.mxu1 }
 0x14b   : > { %v825_v29 = vadd.f32 %v824_v28, %v790_v25 }
 0x14c   : > { %v914_v30 = vadd.f32 %v891_v26, %v506_v23 }
 0x14d   : > { %v915_v31 = vadd.f32 %v825_v29, %v507_v27 }
 0x14e   : > { %934 = vst [vmem:[#allocation2 + $0x88] sm:$0xff] %v914_v30 }
 0x14f   : > { %935 = vst [vmem:[#allocation2 + $0x28] sm:$0xff] %v915_v31 }
 0x150   : > { %v858_v32 = vpop.f32.mrf.mxu2 }
 0x151   : > { %v892_v34 = vpop.f32.mrf.mxu3  ;;  %v793_v35 = vpop.f32.mrf.mxu0 }
 0x152   : > { %v893_v36 = vadd.f32 %v892_v34, %v858_v32  ;;  %v827_v38 = vpop.f32.mrf.mxu1 }
 0x153   : > { %v828_v39 = vadd.f32 %v827_v38, %v793_v35 }
 0x154   : > { %v916_v40 = vadd.f32 %v893_v36, %v508_v33 }
 0x155   : > { %v917_v41 = vadd.f32 %v828_v39, %v509_v37 }
 0x156   : > { %936 = vst [vmem:[#allocation2 + $0x40] sm:$0xff] %v916_v40 }
 0x157   : > { %937 = vst [vmem:[#allocation2 + $0x58] sm:$0xff] %v917_v41 }
 0x158   : > { %v861_v42 = vpop.f32.mrf.mxu2 }
 0x159   : > { %v895_v44 = vpop.f32.mrf.mxu3  ;;  %v795_v45 = vpop.f32.mrf.mxu0 }
 0x15a   : > { %v896_v46 = vadd.f32 %v895_v44, %v861_v42  ;;  %v829_v48 = vpop.f32.mrf.mxu1 }
 0x15b   : > { %v830_v49 = vadd.f32 %v829_v48, %v795_v45 }
 0x15c   : > { %v918_v50 = vadd.f32 %v896_v46, %v510_v43 }
 0x15d   : > { %v919_v51 = vadd.f32 %v830_v49, %v511_v47 }
 0x15e   : > { %938 = vst [vmem:[#allocation2 + $0x10] sm:$0xff] %v918_v50 }
 0x15f   : > { %939 = vst [vmem:[#allocation2 + $0x98] sm:$0xff] %v919_v51 }
 0x160   : > { %v863_v52 = vpop.f32.mrf.mxu2 }
 0x161   : > { %v897_v54 = vpop.f32.mrf.mxu3  ;;  %v798_v55 = vpop.f32.mrf.mxu0 }
 0x162   : > { %v898_v56 = vadd.f32 %v897_v54, %v863_v52  ;;  %v832_v58 = vpop.f32.mrf.mxu1 }
 0x163   : > { %v833_v59 = vadd.f32 %v832_v58, %v798_v55 }
 0x164   : > { %v920_v60 = vadd.f32 %v898_v56, %v512_v53 }
 0x165   : > { %v921_v61 = vadd.f32 %v833_v59, %v513_v57 }
 0x166   : > { %940 = vst [vmem:[#allocation2 + $0x60] sm:$0xff] %v920_v60 }
 0x167   : > { %941 = vst [vmem:[#allocation2 + $0x20] sm:$0xff] %v921_v61 }
 0x168   : > { %v866_v62 = vpop.f32.mrf.mxu2 }
 0x169   : > { %v900_v0 = vpop.f32.mrf.mxu3  ;;  %v800_v1 = vpop.f32.mrf.mxu0 }
 0x16a   : > { %v901_v2 = vadd.f32 %v900_v0, %v866_v62  ;;  %v834_v4 = vpop.f32.mrf.mxu1 }
 0x16b   : > { %v835_v5 = vadd.f32 %v834_v4, %v800_v1 }
 0x16c   : > { %v922_v6 = vadd.f32 %v901_v2, %v514_v63 }
 0x16d   : > { %v923_v7 = vadd.f32 %v835_v5, %v515_v3 }
 0x16e   : > { %942 = vst [vmem:[#allocation2 + $0x48] sm:$0xff] %v922_v6 }
 0x16f   : > { %943 = vst [vmem:[#allocation2 + $0x70] sm:$0xff] %v923_v7 }
 0x170   : > { %v868_v8 = vpop.f32.mrf.mxu2 }
 0x171   : > { %v902_v10 = vpop.f32.mrf.mxu3 }
 0x172   : > { %v903_v11 = vadd.f32 %v902_v10, %v868_v8  ;;  %948 = sbr.rel (%p1753_p5) target bundleno = 479 (0x1df), region = 116 }
 0x174   : > { %v924_v12 = vadd.f32 %v903_v11, %v516_v9 }
 0x176   : > { %944 = vst [vmem:[#allocation2 + $0x90] sm:$0xff] %v924_v12 }
 0x177   : > { %v949_v13 = vld [vmem:[#allocation2] sm:$0xff]  ;;  %v950_v15 = vld [vmem:[#allocation2 + $0x38] sm:$0xff]  ;;  %v951_v18 = vld [vmem:[#allocation2 + $0x50] sm:$0xff] }
 0x178   : > { %v969_v14 = vld [vmem:[%s469_s5] sm:$0x3]  ;;  %v952_v19 = vld [vmem:[#allocation2 + $0x18] sm:$0xff]  ;;  %v953_v20 = vld [vmem:[#allocation2 + $0x30] sm:$0xff] }
 0x179   : > { %v2395_v16 = vperm.slane %v969_v14, 0  ;;  %v2397_v17 = vperm.slane %v969_v14, 1  ;;  %v954_v21 = vld [vmem:[#allocation2 + $0x68] sm:$0xff]  ;;  %v955_v28 = vld [vmem:[#allocation2 + $0x78] sm:$0xff]  ;;  %v956_v35 = vld [vmem:[#allocation2 + $0x80] sm:$0xff] }
 0x17a   : > { %v957_v37 = vld [vmem:[#allocation2 + $0x8] sm:$0xff]  ;;  %v960_v41 = vld [vmem:[#allocation2 + $0x40] sm:$0xff]  ;;  %v961_v48 = vld [vmem:[#allocation2 + $0x58] sm:$0xff] }
 0x17b   : > { %v975_v22 = vadd.f32 %v2395_v16, %v949_v13  ;;  %v976_v23 = vadd.f32 %v2397_v17, %v950_v15  ;;  %v977_v24 = vadd.f32 %v2395_v16, %v951_v18  ;;  %v978_v25 = vadd.f32 %v2397_v17, %v952_v19  ;;  %v958_v38 = vld [vmem:[#allocation2 + $0x88] sm:$0xff]  ;;  %v962_v59 = vld [vmem:[#allocation2 + $0x10] sm:$0xff] }
 0x17c   : > { %v979_v26 = vadd.f32 %v2395_v16, %v953_v20  ;;  %v980_v27 = vadd.f32 %v2397_v17, %v954_v21  ;;  %v981_v34 = vadd.f32 %v2395_v16, %v955_v28  ;;  %v959_v39 = vld [vmem:[#allocation2 + $0x28] sm:$0xff]  ;;  %v982_v40 = vadd.f32 %v2397_v17, %v956_v35 }
 0x17d   : > { %v1754_v29 = vmul.f32 -1.442695, %v975_v22  ;;  %v1755_v30 = vmul.f32 -1.442695, %v976_v23  ;;  %v1756_v31 = vmul.f32 -1.442695, %v977_v24  ;;  %v983_v43 = vadd.f32 %v2395_v16, %v957_v37 }
 0x17e   : > { %v1757_v32 = vmul.f32 -1.442695, %v978_v25  ;;  %v1758_v33 = vmul.f32 -1.442695, %v979_v26  ;;  %v1759_v36 = vmul.f32 -1.442695, %v980_v27  ;;  %v984_v44 = vadd.f32 %v2397_v17, %v958_v38 }
 0x17f   : > { %1915 = vpow2.f32 %v1754_v29  ;;  %v1760_v42 = vmul.f32 -1.442695, %v981_v34  ;;  %v985_v45 = vadd.f32 %v2395_v16, %v959_v39  ;;  %v986_v47 = vadd.f32 %v2397_v17, %v960_v41 }
 0x180   : > { %1917 = vpow2.f32 %v1755_v30  ;;  %v1761_v51 = vmul.f32 -1.442695, %v982_v40  ;;  %v1762_v54 = vmul.f32 -1.442695, %v983_v43  ;;  %v2416_v56 = vmul.f32 -1.442695, %v984_v44 }
 0x181   : > { %1919 = vpow2.f32 %v1756_v31  ;;  %v2418_v57 = vmul.f32 -1.442695, %v985_v45  ;;  %v2421_v58 = vadd.f32 %v2395_v16, %v961_v48  ;;  %v2426_v63 = vmul.f32 -1.442695, %v986_v47 }
 0x182   : > { %1921 = vpow2.f32 %v1757_v32  ;;  %v2437_v6 = vadd.f32 %v2397_v17, %v962_v59 }
 0x183   : > { %1923 = vpow2.f32 %v1758_v33 }
 0x184   : > { %1925 = vpow2.f32 %v1759_v36 }
 0x185   : > { %v1916_v46 = vpop.eup %1915  ;;  %1927 = vpow2.f32 %v1760_v42 }
 0x186   : > { %v1918_v49 = vpop.eup %1917  ;;  %v2411_v50 = vadd.f32 1.0, %v1916_v46 }
 0x187   : > { %v1920_v52 = vpop.eup %1919  ;;  %v2413_v53 = vadd.f32 1.0, %v1918_v49 }
 0x188   : > { %v1922_v55 = vpop.eup %1921  ;;  %1929 = vrcp.f32 %v2411_v50  ;;  %v1084_v61 = vand.u32 2147483647, %v2411_v50  ;;  %v1086_v62 = vand.u32 2147483648, %v2411_v50  ;;  %v2429_v2 = vadd.f32 1.0, %v1920_v52 }
 0x189   : > { %v1924_v60 = vpop.eup %1923  ;;  %1931 = vrcp.f32 %v2413_v53  ;;  %v1099_v1 = vand.u32 2147483647, %v2413_v53  ;;  %v2431_v3 = vadd.f32 1.0, %v1922_v55  ;;  %v1101_v4 = vand.u32 2147483648, %v2413_v53 }
 0x18a   : > { %v1926_v0 = vpop.eup %1925  ;;  %1933 = vpow2.f32 %v1761_v51  ;;  %v2434_v5 = vadd.f32 1.0, %v1924_v60  ;;  %vm1080_vm0 = vweird.f32 %v2411_v50  ;;  %vm1095_vm1 = vweird.f32 %v2413_v53 }
 0x18b   : > { %1935 = vpow2.f32 %v1762_v54  ;;  %v1116_v7 = vand.u32 2147483648, %v2429_v2  ;;  %v1928_v8 = vpop.eup %1927  ;;  %vm2443_vm2 = vcmp.eq.f32.partialorder %v1084_v61, 8.507059e+37  ;;  %v1087_v10 = vor.u32 1.1754944e-38, %v1086_v62  ;;  %v967_v61 = vld [vmem:[#allocation2 + $0x70] sm:$0xff] }
 0x18c   : > { %1937 = vrcp.f32 %v2429_v2  ;;  %v1114_v11 = vand.u32 2147483647, %v2429_v2  ;;  %v2449_v12 = vadd.f32 1.0, %v1926_v0  ;;  %vm2451_vm3 = vcmp.eq.f32.partialorder %v1099_v1, 8.507059e+37 }
 0x18d   : > { %1939 = vrcp.f32 %v2431_v3  ;;  %v1129_v15 = vand.u32 2147483647, %v2431_v3  ;;  %v1131_v18 = vand.u32 2147483648, %v2431_v3  ;;  %v1102_v21 = vor.u32 1.1754944e-38, %v1101_v4 }
 0x18e   : > { %v1930_v13 = vpop.eup %1929  ;;  %1941 = vrcp.f32 %v2434_v5  ;;  %vm1110_vm4 = vweird.f32 %v2429_v2  ;;  %vm1125_vm5 = vweird.f32 %v2431_v3  ;;  %v1117_v24 = vor.u32 1.1754944e-38, %v1116_v7 }
 0x18f   : > { %v1932_v19 = vpop.eup %1931  ;;  %v1076_v20 = vmul.f32 %v1930_v13, %v2411_v50  ;;  %v1144_v25 = vand.u32 2147483647, %v2434_v5  ;;  %v1146_v26 = vand.u32 2147483648, %v2434_v5  ;;  %vm1081_vm6 = vweird.f32 %v1930_v13 }
 0x190   : > { %v1934_v22 = vpop.eup %1933  ;;  %v1091_v23 = vmul.f32 %v1932_v19, %v2413_v53  ;;  %vm2464_vm7 = vcmp.eq.f32.partialorder %v1114_v11, 8.507059e+37  ;;  %vm1140_vm8 = vweird.f32 %v2434_v5  ;;  %1943 = vrcp.f32 %v2449_v12  ;;  %vm2484_vm13 = vmor %vm1080_vm0, %vm1081_vm6 }
 0x191   : > { %v1936_v27 = vpop.eup %1935  ;;  %v1077_v28 = vsub.f32 1.0, %v1076_v20  ;;  %vm1096_vm9 = vweird.f32 %v1932_v19  ;;  %vm2470_vm10 = vcmp.eq.f32.partialorder %v1129_v15, 8.507059e+37  ;;  %v1132_v33 = vor.u32 1.1754944e-38, %v1131_v18  ;;  %v963_v20 = vld [vmem:[#allocation2 + $0x98] sm:$0xff] }
 0x192   : > { %v1938_v30 = vpop.eup %1937  ;;  %v1092_v31 = vsub.f32 1.0, %v1091_v23  ;;  %vm2476_vm12 = vcmp.eq.f32.partialorder %v1144_v25, 8.507059e+37  ;;  %v1159_v38 = vand.u32 2147483647, %v2449_v12  ;;  %v1147_v43 = vor.u32 1.1754944e-38, %v1146_v26  ;;  %vm2492_vm15 = vmor %vm1095_vm1, %vm1096_vm9 }
 0x193   : > { %v1940_v34 = vpop.eup %1939  ;;  %v1078_v35 = vmul.f32 %v1930_v13, %v1077_v28  ;;  %v1106_v36 = vmul.f32 %v1938_v30, %v2429_v2  ;;  %vm1111_vm14 = vweird.f32 %v1938_v30  ;;  %v2497_v50 = vadd.f32 1.0, %v1928_v8 }
 0x194   : > { %v1942_v39 = vpop.eup %1941  ;;  %v1093_v41 = vmul.f32 %v1932_v19, %v1092_v31  ;;  %v1121_v42 = vmul.f32 %v1940_v34, %v2431_v3  ;;  %vm1126_vm11 = vweird.f32 %v1940_v34  ;;  %v2501_v55 = vadd.f32 1.0, %v1934_v22  ;;  %vm2510_vm1 = vmor %vm1110_vm4, %vm1111_vm14 }
 0x195   : > { %v1079_v44 = vadd.f32 %v1930_v13, %v1078_v35  ;;  %v1107_v46 = vsub.f32 1.0, %v1106_v36  ;;  %v1136_v47 = vmul.f32 %v1942_v39, %v2434_v5  ;;  %vm1141_vm0 = vweird.f32 %v1942_v39 }
 0x196   : > { %v1094_v48 = vadd.f32 %v1932_v19, %v1093_v41  ;;  %v1122_v49 = vsub.f32 1.0, %v1121_v42  ;;  %v1944_v51 = vpop.eup %1943  ;;  %v1161_v8 = vand.u32 2147483648, %v2449_v12  ;;  %vm2530_vm4 = vmor %vm1140_vm8, %vm1141_vm0  ;;  %1945 = vrcp.f32 %v2497_v50 }
 0x197   : > { %v1083_v52 = vsel %vm2484_vm13, %v1930_v13, %v1079_v44  ;;  %v1108_v53 = vmul.f32 %v1938_v30, %v1107_v46  ;;  %v1137_v54 = vsub.f32 1.0, %v1136_v47  ;;  %v1151_v0 = vmul.f32 %v1944_v51, %v2449_v12  ;;  %v965_v46 = vld [vmem:[#allocation2 + $0x20] sm:$0xff] }
 0x198   : > { %v1088_v59 = vsel %vm2443_vm2, %v1087_v10, %v1083_v52  ;;  %v1098_v60 = vsel %vm2492_vm15, %v1932_v19, %v1094_v48  ;;  %v1123_v62 = vmul.f32 %v1940_v34, %v1122_v49  ;;  %vm2521_vm2 = vmor %vm1125_vm5, %vm1126_vm11  ;;  %v1174_v14 = vand.u32 2147483647, %v2497_v50  ;;  %v966_v52 = vld [vmem:[#allocation2 + $0x48] sm:$0xff] }
 0x199   : > { %1375 = vst [vmem:[%s2302_s25] sm:$0xff] %v1088_v59  ;;  %v1103_v1 = vsel %vm2451_vm3, %v1102_v21, %v1098_v60  ;;  %v1109_v4 = vadd.f32 %v1938_v30, %v1108_v53  ;;  %v1138_v2 = vmul.f32 %v1942_v39, %v1137_v54  ;;  %v1152_v11 = vsub.f32 1.0, %v1151_v0 }
 0x19a   : > { %1376 = vst [vmem:[%s2302_s25 + $0x8] sm:$0xff] %v1103_v1  ;;  %v1124_v9 = vadd.f32 %v1940_v34, %v1123_v62  ;;  %vm1156_vm3 = vweird.f32 %v1944_v51  ;;  %v2538_v15 = vadd.f32 1.0, %v1936_v27  ;;  %1947 = vrcp.f32 %v2501_v55 }
 0x19b   : > { %v1113_v3 = vsel %vm2510_vm1, %v1938_v30, %v1109_v4  ;;  %v1139_v13 = vadd.f32 %v1942_v39, %v1138_v2  ;;  %v1153_v19 = vmul.f32 %v1944_v51, %v1152_v11  ;;  %vm2904_vm5 = vweird.f32 %v2449_v12 }
 0x19c   : > { %v1118_v5 = vsel %vm2464_vm7, %v1117_v24, %v1113_v3  ;;  %v1128_v18 = vsel %vm2521_vm2, %v1940_v34, %v1124_v9  ;;  %vm2552_vm6 = vmor %vm2904_vm5, %vm1156_vm3  ;;  %v1162_v24 = vor.u32 1.1754944e-38, %v1161_v8  ;;  %v1176_v25 = vand.u32 2147483648, %v2497_v50  ;;  %v1946_v30 = vpop.eup %1945 }
 0x19d   : > { %1377 = vst [vmem:[%s2302_s25 + $0x10] sm:$0xff] %v1118_v5  ;;  %v1133_v21 = vsel %vm2470_vm10, %v1132_v33, %v1128_v18  ;;  %v1143_v22 = vsel %vm2530_vm4, %v1942_v39, %v1139_v13  ;;  %v1154_v27 = vadd.f32 %v1944_v51, %v1153_v19  ;;  %vm1160_vm7 = vcmp.eq.f32.partialorder %v1159_v38, 8.507059e+37 }
 0x19e   : > { %1378 = vst [vmem:[%s2302_s25 + $0x18] sm:$0xff] %v1133_v21  ;;  %v1148_v26 = vsel %vm2476_vm12, %v1147_v43, %v1143_v22  ;;  %v1766_v28 = vmul.f32 -1.442695, %v2421_v58  ;;  %vm1170_vm8 = vweird.f32 %v2497_v50  ;;  %1949 = vrcp.f32 %v2538_v15 }
 0x19f   : > { %1379 = vst [vmem:[%s2302_s25 + $0x20] sm:$0xff] %v1148_v26  ;;  %v1767_v12 = vmul.f32 -1.442695, %v2437_v6  ;;  %v989_v29 = vadd.f32 %v2395_v16, %v963_v20  ;;  %v1158_v31 = vsel %vm2552_vm6, %v1944_v51, %v1154_v27  ;;  %vm2568_vm9 = vcmp.eq.f32.partialorder %v1174_v14, 8.507059e+37  ;;  %v964_v6 = vld [vmem:[#allocation2 + $0x60] sm:$0xff] }
 0x1a0   : > { %v1189_v58 = vand.u32 2147483647, %v2501_v55  ;;  %1951 = vpow2.f32 %v2416_v56  ;;  %v1163_v33 = vsel %vm1160_vm7, %v1162_v24, %v1158_v31  ;;  %v1166_v34 = vmul.f32 %v1946_v30, %v2497_v50  ;;  %v1948_v36 = vpop.eup %1947 }
 0x1a1   : > { %v1177_v35 = vor.u32 1.1754944e-38, %v1176_v25  ;;  %vm1185_vm10 = vweird.f32 %v2501_v55  ;;  %1380 = vst [vmem:[%s2302_s25 + $0x28] sm:$0xff] %v1163_v33  ;;  %v1191_v37 = vand.u32 2147483648, %v2501_v55  ;;  %vm1200_vm11 = vweird.f32 %v2538_v15 }
 0x1a2   : > { %v1204_v38 = vand.u32 2147483647, %v2538_v15  ;;  %1953 = vpow2.f32 %v2418_v57  ;;  %v1167_v39 = vsub.f32 1.0, %v1166_v34  ;;  %vm1171_vm12 = vweird.f32 %v1946_v30 }
 0x1a3   : > { %v1181_v56 = vmul.f32 %v1948_v36, %v2501_v55  ;;  %1955 = vpow2.f32 %v2426_v63  ;;  %vm2583_vm13 = vcmp.eq.f32.partialorder %v1189_v58, 8.507059e+37  ;;  %v1768_v41 = vmul.f32 -1.442695, %v989_v29  ;;  %vm2591_vm15 = vmor %vm1170_vm8, %vm1171_vm12 }
 0x1a4   : > { %1957 = vpow2.f32 %v1766_v28  ;;  %v990_v42 = vadd.f32 %v2397_v17, %v964_v6  ;;  %v1950_v43 = vpop.eup %1949  ;;  %v1168_v44 = vmul.f32 %v1946_v30, %v1167_v39  ;;  %vm1186_vm14 = vweird.f32 %v1948_v36 }
 0x1a5   : > { %v1182_v45 = vsub.f32 1.0, %v1181_v56  ;;  %v1206_v57 = vand.u32 2147483648, %v2538_v15  ;;  %v1192_v48 = vor.u32 1.1754944e-38, %v1191_v37  ;;  %v1196_v49 = vmul.f32 %v1950_v43, %v2538_v15  ;;  %vm2605_vm1 = vmor %vm1185_vm10, %vm1186_vm14 }
 0x1a6   : > { %v1952_v47 = vpop.eup %1951  ;;  %vm2596_vm0 = vcmp.eq.f32.partialorder %v1204_v38, 8.507059e+37  ;;  %1959 = vpow2.f32 %v1767_v12  ;;  %v1169_v53 = vadd.f32 %v1946_v30, %v1168_v44  ;;  %v1769_v60 = vmul.f32 -1.442695, %v990_v42 }
 0x1a7   : > { %v1183_v54 = vmul.f32 %v1948_v36, %v1182_v45  ;;  %v2600_v59 = vadd.f32 1.0, %v1952_v47  ;;  %v1197_v0 = vsub.f32 1.0, %v1196_v49  ;;  %vm1201_vm2 = vweird.f32 %v1950_v43 }
 0x1a8   : > { %v1954_v50 = vpop.eup %1953  ;;  %1961 = vpow2.f32 %v1768_v41  ;;  %v991_v1 = vadd.f32 %v2395_v16, %v965_v46  ;;  %v1173_v7 = vsel %vm2591_vm15, %v1946_v30, %v1169_v53  ;;  %v992_v8 = vadd.f32 %v2397_v17, %v966_v52  ;;  %vm2623_vm4 = vmor %vm1200_vm11, %vm1201_vm2 }
 0x1a9   : > { %v1956_v4 = vpop.eup %1955  ;;  %v1184_v2 = vadd.f32 %v1948_v36, %v1183_v54  ;;  %1963 = vrcp.f32 %v2600_v59  ;;  %v1178_v9 = vsel %vm2568_vm9, %v1177_v35, %v1173_v7  ;;  %v1198_v10 = vmul.f32 %v1950_v43, %v1197_v0 }
 0x1aa   : > { %v1958_v55 = vpop.eup %1957  ;;  %v1207_v11 = vor.u32 1.1754944e-38, %v1206_v57  ;;  %v993_v3 = vadd.f32 %v2395_v16, %v967_v61  ;;  %1381 = vst [vmem:[%s2302_s25 + $0x30] sm:$0xff] %v1178_v9  ;;  %v2627_v5 = vadd.f32 1.0, %v1954_v50  ;;  %v2629_v18 = vadd.f32 1.0, %v1956_v4 }
 0x1ab   : > { %v1188_v13 = vsel %vm2605_vm1, %v1948_v36, %v1184_v2  ;;  %1965 = vpow2.f32 %v1769_v60  ;;  %v1199_v20 = vadd.f32 %v1950_v43, %v1198_v10  ;;  %v1219_v21 = vand.u32 2147483647, %v2600_v59  ;;  %v968_v60 = vld [vmem:[#allocation2 + $0x90] sm:$0xff] }
 0x1ac   : > { %v1960_v19 = vpop.eup %1959  ;;  %v1193_v16 = vsel %vm2583_vm13, %v1192_v48, %v1188_v13  ;;  %v2634_v22 = vadd.f32 1.0, %v1958_v55  ;;  %v1221_v15 = vand.u32 2147483648, %v2600_v59  ;;  %1967 = vrcp.f32 %v2627_v5 }
 0x1ad   : > { %1382 = vst [vmem:[%s2302_s25 + $0x38] sm:$0xff] %v1193_v16  ;;  %v1770_v23 = vmul.f32 -1.442695, %v991_v1  ;;  %v2639_v24 = vmul.f32 -1.442695, %v992_v8  ;;  %v1203_v26 = vsel %vm2623_vm4, %v1950_v43, %v1199_v20  ;;  %1969 = vrcp.f32 %v2629_v18 }
 0x1ae   : > { %v1962_v25 = vpop.eup %1961  ;;  %v1234_v27 = vand.u32 2147483647, %v2627_v5  ;;  %v2645_v28 = vmul.f32 -1.442695, %v993_v3  ;;  %v1208_v29 = vsel %vm2596_vm0, %v1207_v11, %v1203_v26  ;;  %v1236_v30 = vand.u32 2147483648, %v2627_v5 }
 0x1af   : > { %v1964_v12 = vpop.eup %1963  ;;  %v1249_v31 = vand.u32 2147483647, %v2629_v18  ;;  %v1251_v32 = vand.u32 2147483648, %v2629_v18  ;;  %1383 = vst [vmem:[%s2302_s25 + $0x40] sm:$0xff] %v1208_v29  ;;  %vm1215_vm3 = vweird.f32 %v2600_v59  ;;  %vm2655_vm5 = vcmp.eq.f32.partialorder %v1219_v21, 8.507059e+37 }
 0x1b0   : > { %v1211_v58 = vmul.f32 %v1964_v12, %v2600_v59  ;;  %1971 = vrcp.f32 %v2634_v22  ;;  %v1222_v35 = vor.u32 1.1754944e-38, %v1221_v15  ;;  %vm1230_vm6 = vweird.f32 %v2627_v5 }
 0x1b1   : > { %v1966_v34 = vpop.eup %1965  ;;  %vm1245_vm7 = vweird.f32 %v2629_v18  ;;  %v1264_v6 = vand.u32 2147483647, %v2634_v22  ;;  %vm1216_vm8 = vweird.f32 %v1964_v12  ;;  %vm2663_vm9 = vcmp.eq.f32.partialorder %v1234_v27, 8.507059e+37 }
 0x1b2   : > { %v1212_v36 = vsub.f32 1.0, %v1211_v58  ;;  %v2667_v38 = vadd.f32 1.0, %v1960_v19  ;;  %v2669_v39 = vadd.f32 1.0, %v1962_v25  ;;  %v1968_v56 = vpop.eup %1967  ;;  %v1237_v40 = vor.u32 1.1754944e-38, %v1236_v30  ;;  %vm2681_vm12 = vmor %vm1215_vm3, %vm1216_vm8 }
 0x1b3   : > { %vm2671_vm10 = vcmp.eq.f32.partialorder %v1249_v31, 8.507059e+37  ;;  %v1252_v42 = vor.u32 1.1754944e-38, %v1251_v32  ;;  %vm1260_vm11 = vweird.f32 %v2634_v22  ;;  %v1970_v43 = vpop.eup %1969  ;;  %v1226_v45 = vmul.f32 %v1968_v56, %v2627_v5 }
 0x1b4   : > { %v1213_v44 = vmul.f32 %v1964_v12, %v1212_v36  ;;  %v1266_v57 = vand.u32 2147483648, %v2634_v22  ;;  %1973 = vrcp.f32 %v2667_v38  ;;  %v1241_v47 = vmul.f32 %v1970_v43, %v2629_v18 }
 0x1b5   : > { %vm2686_vm13 = vcmp.eq.f32.partialorder %v1264_v6, 8.507059e+37  ;;  %v2690_v48 = vadd.f32 1.0, %v1966_v34  ;;  %1975 = vpow2.f32 %v1770_v23  ;;  %v1227_v52 = vsub.f32 1.0, %v1226_v45 }
 0x1b6   : > { %v1972_v49 = vpop.eup %1971  ;;  %v1214_v51 = vadd.f32 %v1964_v12, %v1213_v44  ;;  %vm1231_vm14 = vweird.f32 %v1968_v56  ;;  %1977 = vrcp.f32 %v2669_v39  ;;  %v1242_v53 = vsub.f32 1.0, %v1241_v47 }
 0x1b7   : > { %vm1246_vm15 = vweird.f32 %v1970_v43  ;;  %v1256_v54 = vmul.f32 %v1972_v49, %v2634_v22  ;;  %v1279_v59 = vand.u32 2147483647, %v2667_v38  ;;  %v1228_v50 = vmul.f32 %v1968_v56, %v1227_v52  ;;  %vm2702_vm0 = vmor %vm1230_vm6, %vm1231_vm14 }
 0x1b8   : > { %v1218_v61 = vsel %vm2681_vm12, %v1964_v12, %v1214_v51  ;;  %v1267_v62 = vor.u32 1.1754944e-38, %v1266_v57  ;;  %v1281_v0 = vand.u32 2147483648, %v2667_v38  ;;  %v1243_v7 = vmul.f32 %v1970_v43, %v1242_v53  ;;  %vm2710_vm2 = vmor %vm1245_vm7, %vm1246_vm15 }
 0x1b9   : > { %v1223_v1 = vsel %vm2655_vm5, %v1222_v35, %v1218_v61  ;;  %v1257_v2 = vsub.f32 1.0, %v1256_v54  ;;  %vm1261_vm1 = vweird.f32 %v1972_v49  ;;  %v1229_v55 = vadd.f32 %v1968_v56, %v1228_v50 }
 0x1ba   : > { %v1974_v8 = vpop.eup %1973  ;;  %1384 = vst [vmem:[%s2302_s25 + $0x48] sm:$0xff] %v1223_v1  ;;  %vm1275_vm4 = vweird.f32 %v2667_v38  ;;  %1979 = vrcp.f32 %v2690_v48  ;;  %v994_v10 = vadd.f32 %v2397_v17, %v968_v60  ;;  %v1244_v3 = vadd.f32 %v1970_v43, %v1243_v7  ;;  %vm2727_vm5 = vmor %vm1260_vm11, %vm1261_vm1 }
 0x1bb   : > { %v1976_v11 = vpop.eup %1975  ;;  %v1258_v13 = vmul.f32 %v1972_v49, %v1257_v2  ;;  %v1271_v14 = vmul.f32 %v1974_v8, %v2667_v38  ;;  %vm2718_vm3 = vcmp.eq.f32.partialorder %v1279_v59, 8.507059e+37  ;;  %v1233_v19 = vsel %vm2702_vm0, %v1968_v56, %v1229_v55 }
 0x1bc   : > { %v1978_v18 = vpop.eup %1977  ;;  %vm1276_vm6 = vweird.f32 %v1974_v8  ;;  %v1282_v16 = vor.u32 1.1754944e-38, %v1281_v0  ;;  %v1296_v20 = vand.u32 2147483648, %v2669_v39  ;;  %v1238_v21 = vsel %vm2663_vm9, %v1237_v40, %v1233_v19 }
 0x1bd   : > { %v1248_v15 = vsel %vm2710_vm2, %v1970_v43, %v1244_v3  ;;  %v1259_v23 = vadd.f32 %v1972_v49, %v1258_v13  ;;  %v1272_v25 = vsub.f32 1.0, %v1271_v14  ;;  %1385 = vst [vmem:[%s2302_s25 + $0x50] sm:$0xff] %v1238_v21  ;;  %v1286_v26 = vmul.f32 %v1978_v18, %v2669_v39  ;;  %vm2750_vm9 = vmor %vm1275_vm4, %vm1276_vm6 }
 0x1be   : > { %v1253_v22 = vsel %vm2671_vm10, %v1252_v42, %v1248_v15  ;;  %vm1290_vm7 = vweird.f32 %v2669_v39  ;;  %v1294_v27 = vand.u32 2147483647, %v2669_v39  ;;  %vm1291_vm8 = vweird.f32 %v1978_v18 }
 0x1bf   : > { %1386 = vst [vmem:[%s2302_s25 + $0x58] sm:$0xff] %v1253_v22  ;;  %v1263_v12 = vsel %vm2727_vm5, %v1972_v49, %v1259_v23  ;;  %v1273_v29 = vmul.f32 %v1974_v8, %v1272_v25  ;;  %v1071_v30 = vadd.f32 1.0, %v1976_v11  ;;  %v1287_v33 = vsub.f32 1.0, %v1286_v26  ;;  %vm1292_vm11 = vmor %vm1290_vm7, %vm1291_vm8 }
 0x1c0   : > { %v1980_v31 = vpop.eup %1979  ;;  %v1268_v32 = vsel %vm2686_vm13, %v1267_v62, %v1263_v12  ;;  %1981 = vpow2.f32 %v2639_v24  ;;  %v1773_v34 = vmul.f32 -1.442695, %v994_v10  ;;  %v1297_v6 = vor.u32 1.1754944e-38, %v1296_v20 }
 0x1c1   : > { %1387 = vst [vmem:[%s2302_s25 + $0x60] sm:$0xff] %v1268_v32  ;;  %v1274_v35 = vadd.f32 %v1974_v8, %v1273_v29  ;;  %v1301_v36 = vmul.f32 %v1980_v31, %v2690_v48  ;;  %vm1305_vm10 = vweird.f32 %v2690_v48  ;;  %v1288_v37 = vmul.f32 %v1978_v18, %v1287_v33 }
 0x1c2   : > { %v1309_v56 = vand.u32 2147483647, %v2690_v48  ;;  %v1311_v38 = vand.u32 2147483648, %v2690_v48  ;;  %1983 = vrcp.f32 %v1071_v30  ;;  %vm1306_vm12 = vweird.f32 %v1980_v31 }
 0x1c3   : > { %v1278_v40 = vsel %vm2750_vm9, %v1974_v8, %v1274_v35  ;;  %v1302_v24 = vsub.f32 1.0, %v1301_v36  ;;  %1985 = vpow2.f32 %v2645_v28  ;;  %v1289_v42 = vadd.f32 %v1978_v18, %v1288_v37  ;;  %vm1307_vm14 = vmor %vm1305_vm10, %vm1306_vm12 }
 0x1c4   : > { %v1283_v41 = vsel %vm2718_vm3, %v1282_v16, %v1278_v40  ;;  %vm1295_vm13 = vcmp.eq.f32.partialorder %v1294_v27, 8.507059e+37  ;;  %1987 = vpow2.f32 %v1773_v34  ;;  %v1312_v39 = vor.u32 1.1754944e-38, %v1311_v38 }
 0x1c5   : > { %1388 = vst [vmem:[%s2302_s25 + $0x68] sm:$0xff] %v1283_v41  ;;  %v1303_v43 = vmul.f32 %v1980_v31, %v1302_v24  ;;  %v1293_v45 = vsel %vm1292_vm11, %v1978_v18, %v1289_v42  ;;  %vm1310_vm15 = vcmp.eq.f32.partialorder %v1309_v56, 8.507059e+37  ;;  %vm1320_vm0 = vweird.f32 %v1071_v30 }
 0x1c6   : > { %v1982_v44 = vpop.eup %1981  ;;  %v1298_v57 = vsel %vm1295_vm13, %v1297_v6, %v1293_v45  ;;  %v1324_v54 = vand.u32 2147483647, %v1071_v30  ;;  %v1326_v59 = vand.u32 2147483648, %v1071_v30 }
 0x1c7   : > { %v1304_v46 = vadd.f32 %v1980_v31, %v1303_v43  ;;  %v1072_v28 = vadd.f32 1.0, %v1982_v44  ;;  %1389 = vst [vmem:[%s2302_s25 + $0x70] sm:$0xff] %v1298_v57 }
 0x1c8   : > { %v1984_v47 = vpop.eup %1983  ;;  %v1327_v62 = vor.u32 1.1754944e-38, %v1326_v59  ;;  %vm1325_vm4 = vcmp.eq.f32.partialorder %v1324_v54, 8.507059e+37 }
 0x1c9   : > { %v1986_v63 = vpop.eup %1985  ;;  %v1308_v49 = vsel %vm1307_vm14, %v1980_v31, %v1304_v46  ;;  %v1316_v51 = vmul.f32 %v1984_v47, %v1071_v30  ;;  %1989 = vrcp.f32 %v1072_v28  ;;  %vm1321_vm1 = vweird.f32 %v1984_v47 }
 0x1ca   : > { %v1988_v52 = vpop.eup %1987  ;;  %v1313_v53 = vsel %vm1310_vm15, %v1312_v39, %v1308_v49  ;;  %v1073_v60 = vadd.f32 1.0, %v1986_v63  ;;  %vm1322_vm2 = vmor %vm1320_vm0, %vm1321_vm1  ;;  %v1339_v7 = vand.u32 2147483647, %v1072_v28  ;;  %v1341_v2 = vand.u32 2147483648, %v1072_v28 }
 0x1cb   : > { %1390 = vst [vmem:[%s2302_s25 + $0x78] sm:$0xff] %v1313_v53  ;;  %v1317_v48 = vsub.f32 1.0, %v1316_v51  ;;  %v1074_v61 = vadd.f32 1.0, %v1988_v52  ;;  %vm1335_vm3 = vweird.f32 %v1072_v28 }
 0x1cc   : > { %1991 = vrcp.f32 %v1073_v60  ;;  %vm2774_vm6 = vcmp.eq.f32.partialorder %v1339_v7, 8.507059e+37  ;;  %v1342_v14 = vor.u32 1.1754944e-38, %v1341_v2  ;;  %vm1350_vm8 = vweird.f32 %v1073_v60 }
 0x1cd   : > { %v1318_v50 = vmul.f32 %v1984_v47, %v1317_v48  ;;  %1993 = vrcp.f32 %v1074_v61  ;;  %v1354_v19 = vand.u32 2147483647, %v1073_v60  ;;  %v1356_v17 = vand.u32 2147483648, %v1073_v60 }
 0x1ce   : > { %v1371_v15 = vand.u32 2147483648, %v1074_v61  ;;  %vm1365_vm10 = vweird.f32 %v1074_v61  ;;  %v1369_v25 = vand.u32 2147483647, %v1074_v61 }
 0x1cf   : > { %v1990_v0 = vpop.eup %1989  ;;  %v1319_v1 = vadd.f32 %v1984_v47, %v1318_v50  ;;  %v1357_v12 = vor.u32 1.1754944e-38, %v1356_v17  ;;  %vm1355_vm13 = vcmp.eq.f32.partialorder %v1354_v19, 8.507059e+37 }
 0x1d0   : > { %v1331_v4 = vmul.f32 %v1990_v0, %v1072_v28  ;;  %vm1336_vm5 = vweird.f32 %v1990_v0  ;;  %v1372_v31 = vor.u32 1.1754944e-38, %v1371_v15  ;;  %vm1370_vm15 = vcmp.eq.f32.partialorder %v1369_v25, 8.507059e+37 }
 0x1d1   : > { %v1323_v8 = vsel %vm1322_vm2, %v1984_v47, %v1319_v1  ;;  %vm2778_vm7 = vmor %vm1335_vm3, %vm1336_vm5 }
 0x1d2   : > { %v1328_v55 = vsel %vm1325_vm4, %v1327_v62, %v1323_v8  ;;  %v1332_v9 = vsub.f32 1.0, %v1331_v4  ;;  %v1992_v10 = vpop.eup %1991 }
 0x1d3   : > { %1391 = vst [vmem:[%s2302_s25 + $0x80] sm:$0xff] %v1328_v55  ;;  %v1994_v11 = vpop.eup %1993  ;;  %v1346_v5 = vmul.f32 %v1992_v10, %v1073_v60  ;;  %vm1351_vm9 = vweird.f32 %v1992_v10 }
 0x1d4   : > { %v1333_v3 = vmul.f32 %v1990_v0, %v1332_v9  ;;  %v1361_v16 = vmul.f32 %v1994_v11, %v1074_v61  ;;  %vm1366_vm11 = vweird.f32 %v1994_v11  ;;  %vm1352_vm12 = vmor %vm1350_vm8, %vm1351_vm9 }
 0x1d5   : > { %v1347_v21 = vsub.f32 1.0, %v1346_v5  ;;  %vm1367_vm14 = vmor %vm1365_vm10, %vm1366_vm11 }
 0x1d6   : > { %v1334_v20 = vadd.f32 %v1990_v0, %v1333_v3  ;;  %v1362_v23 = vsub.f32 1.0, %v1361_v16 }
 0x1d7   : > { %v1348_v26 = vmul.f32 %v1992_v10, %v1347_v21 }
 0x1d8   : > { %v1338_v22 = vsel %vm2778_vm7, %v1990_v0, %v1334_v20  ;;  %v1363_v29 = vmul.f32 %v1994_v11, %v1362_v23 }
 0x1d9   : > { %v1343_v27 = vsel %vm2774_vm6, %v1342_v14, %v1338_v22  ;;  %v1349_v30 = vadd.f32 %v1992_v10, %v1348_v26 }
 0x1da   : > { %1392 = vst [vmem:[%s2302_s25 + $0x88] sm:$0xff] %v1343_v27  ;;  %v1364_v32 = vadd.f32 %v1994_v11, %v1363_v29 }
 0x1db   : > { %v1353_v58 = vsel %vm1352_vm12, %v1992_v10, %v1349_v30 }
 0x1dc   : > { %v1358_v33 = vsel %vm1355_vm13, %v1357_v12, %v1353_v58  ;;  %v1368_v34 = vsel %vm1367_vm14, %v1994_v11, %v1364_v32 }
 0x1dd   : > { %1393 = vst [vmem:[%s2302_s25 + $0x90] sm:$0xff] %v1358_v33  ;;  %v1373_v35 = vsel %vm1370_vm15, %v1372_v31, %v1368_v34 }
 0x1de   : > { %1394 = vst [vmem:[%s2302_s25 + $0x98] sm:$0xff] %v1373_v35 }
 0x1df PF: > { %1401 = sbr.rel (!%p2198_p12) target bundleno = 501 (0x1f5), region = 120  ;;  %s1822_s14 = sshll.u32 (%p2198_p12), %s2069_s19, 4  ;;  %v1420_v6 = vld [vmem:[%s2302_s25] sm:$0xff] (%p2198_p12)  ;;  %v1422_v36 = vld [vmem:[%s2302_s25 + $0x8] sm:$0xff] (%p2198_p12)  ;;  %v1424_v37 = vld [vmem:[%s2302_s25 + $0x10] sm:$0xff] (%p2198_p12) }
 0x1e0   : > { %s2798_s0 = scalar_lea.vmem (%p2198_p12), %s2874_s3, %s1822_s14  ;;  %v1426_v56 = vld [vmem:[%s2302_s25 + $0x18] sm:$0xff] (%p2198_p12)  ;;  %v1428_v38 = vld [vmem:[%s2302_s25 + $0x20] sm:$0xff] (%p2198_p12)  ;;  %v1430_v40 = vld [vmem:[%s2302_s25 + $0x28] sm:$0xff] (%p2198_p12) }
 0x1e1   : > { %1421 = vst [vmem:[%s2798_s0] sm:$0xff] (%p2198_p12), %v1420_v6  ;;  %v1432_v24 = vld [vmem:[%s2302_s25 + $0x30] sm:$0xff] (%p2198_p12)  ;;  %v1434_v41 = vld [vmem:[%s2302_s25 + $0x38] sm:$0xff] (%p2198_p12)  ;;  %v1436_v42 = vld [vmem:[%s2302_s25 + $0x40] sm:$0xff] (%p2198_p12) }
 0x1e2   : > { %1423 = vst [vmem:[%s2798_s0 + $0x8] sm:$0xff] (%p2198_p12), %v1422_v36  ;;  %v1438_v43 = vld [vmem:[%s2302_s25 + $0x48] sm:$0xff] (%p2198_p12)  ;;  %v1440_v44 = vld [vmem:[%s2302_s25 + $0x50] sm:$0xff] (%p2198_p12)  ;;  %v1442_v45 = vld [vmem:[%s2302_s25 + $0x58] sm:$0xff] (%p2198_p12) }
 0x1e3   : > { %1425 = vst [vmem:[%s2798_s0 + $0x20] sm:$0xff] (%p2198_p12), %v1424_v37  ;;  %v1444_v39 = vld [vmem:[%s2302_s25 + $0x60] sm:$0xff] (%p2198_p12)  ;;  %v1446_v57 = vld [vmem:[%s2302_s25 + $0x68] sm:$0xff] (%p2198_p12)  ;;  %v1448_v46 = vld [vmem:[%s2302_s25 + $0x70] sm:$0xff] (%p2198_p12) }
 0x1e4   : > { %1427 = vst [vmem:[%s2798_s0 + $0x28] sm:$0xff] %v1426_v56  ;;  %v1450_v28 = vld [vmem:[%s2302_s25 + $0x78] sm:$0xff]  ;;  %v1452_v47 = vld [vmem:[%s2302_s25 + $0x80] sm:$0xff]  ;;  %v1454_v63 = vld [vmem:[%s2302_s25 + $0x88] sm:$0xff] }
 0x1e5   : > { %1429 = vst [vmem:[%s2798_s0 + $0x40] sm:$0xff] %v1428_v38  ;;  %v1456_v49 = vld [vmem:[%s2302_s25 + $0x90] sm:$0xff]  ;;  %v1458_v51 = vld [vmem:[%s2302_s25 + $0x98] sm:$0xff] }
 0x1e6   : > { %1431 = vst [vmem:[%s2798_s0 + $0x48] sm:$0xff] %v1430_v40 }
 0x1e7   : > { %1433 = vst [vmem:[%s2798_s0 + $0x60] sm:$0xff] %v1432_v24 }
 0x1e8   : > { %1435 = vst [vmem:[%s2798_s0 + $0x68] sm:$0xff] %v1434_v41 }
 0x1e9   : > { %1437 = vst [vmem:[%s2798_s0 + $0x80] sm:$0xff] %v1436_v42 }
 0x1ea   : > { %1439 = vst [vmem:[%s2798_s0 + $0x88] sm:$0xff] %v1438_v43 }
 0x1eb   : > { %1441 = vst [vmem:[%s2798_s0 + $0xa0] sm:$0xff] %v1440_v44 }
 0x1ec   : > { %1443 = vst [vmem:[%s2798_s0 + $0xa8] sm:$0xff] %v1442_v45 }
 0x1ed   : > { %1445 = vst [vmem:[%s2798_s0 + $0xc0] sm:$0xff] %v1444_v39 }
 0x1ee   : > { %1447 = vst [vmem:[%s2798_s0 + $0xc8] sm:$0xff] %v1446_v57 }
 0x1ef   : > { %1449 = vst [vmem:[%s2798_s0 + $0xe0] sm:$0xff] %v1448_v46 }
 0x1f0   : > { %1451 = vst [vmem:[%s2798_s0 + $0xe8] sm:$0xff] %v1450_v28 }
 0x1f1   : > { %1453 = vst [vmem:[%s2798_s0 + $0x100] sm:$0xff] %v1452_v47 }
 0x1f2   : > { %1455 = vst [vmem:[%s2798_s0 + $0x108] sm:$0xff] %v1454_v63 }
 0x1f3   : > { %1457 = vst [vmem:[%s2798_s0 + $0x120] sm:$0xff] %v1456_v49 }
 0x1f4   : > { %1459 = vst [vmem:[%s2798_s0 + $0x128] sm:$0xff] %v1458_v51 }
 0x1f5 PF: > { %s13_s22 = sadd.s32 1, %s2081_s22   ;;  %s2943_s10 = sld [smem:[#allocation6_spill]] }
 0x1f6   : > { %p10_p6 = scmp.ge.s32.totalorder %s13_s22, 20   ;;  %s2944_s12 = smov %s2045_s13 }
 0x1f7   : > { %s2945_s13 = smov %s2196_s9  ;;  %s2946_s14 = smov %s2053_s15 }
 0x1f8   : > { %s2947_s15 = smov %s2193_s8  ;;  %s2948_s16 = smov %s2061_s17 }
 0x1f9   : > { %s2949_s17 = smov %s2179_s30  ;;  %s2950_s18 = smov %s2073_s20 }
 0x1fa   : > { %s2951_s19 = smov %s2077_s21  ;;  %s2952_s20 = smov %s2955_s24 }
 0x1fb   : > { %s2953_s21 = smov %s2943_s10  ;;  %12 = sbr.rel (!%p10_p6) target bundleno = 9 (0x9), region = 185 }

// kernel: dummy_model_forward.13
= control target key start
LH: loop header
LB: loop body
LE: loop exit
PB: predicated region body
PF: predicated region fallthrough
CT: control target
= control target key end

     0   :  { %s2748_s0 = inlined_call_operand.vmem [shape: bf16[32,2048], index: 0, kind: input, shape index: {}]   ;;  %s2749_s1 = inlined_call_operand.vmem [shape: bf16[2048,1024], index: 1, kind: input, shape index: {}]   ;;  %s2750_s2 = inlined_call_operand.vmem [shape: f32[1,1024], index: 2, kind: input, shape index: {}]   ;;  %s2751_s3 = inlined_call_operand.vmem [shape: f32[32,1024], index: 3, kind: output, shape index: {}]  }
   0x1   :  { %2753 = sst [smem:[#allocation7_spill]] %s2748_s0 }
   0x2   :  { %2754 = sst [smem:[#allocation8_spill]] %s2749_s1 }
   0x3   :  { %s2145_s12 = smov 0   ;;  %s2147_s13 = smov 0  }
   0x4   :  { %s2149_s14 = smov 0   ;;  %s2151_s15 = smov 0  }
   0x5   :  { %s2153_s16 = smov 0   ;;  %s2155_s17 = smov 0  }
   0x6   :  { %s2157_s18 = smov 0   ;;  %s2159_s19 = smov 0  }
   0x7   :  { %s2161_s20 = smov 0   ;;  %s2163_s21 = smov 0  }
   0x8   :  { %s2165_s22 = smov 0  }
   0x9 LB: > { %s1520_s23 = sadd.s32 4294967295, %s2122_s22   ;;  %s25_s24 = sadd.s32 1, %s2114_s20  ;;  %s2122_s22 = sphi %s2165_s22, %s13_s22   ;;  %s2118_s21 = sphi %s2163_s21, %s2789_s21   ;;  %s2114_s20 = sphi %s2161_s20, %s2788_s20   ;;  %s2110_s19 = sphi %s2159_s19, %s2787_s19   ;;  %s2106_s18 = sphi %s2157_s18, %s2786_s18   ;;  %s2102_s17 = sphi %s2155_s17, %s2785_s17   ;;  %s2098_s16 = sphi %s2153_s16, %s2784_s16   ;;  %s2094_s15 = sphi %s2151_s15, %s2783_s15   ;;  %s2090_s14 = sphi %s2149_s14, %s2782_s14   ;;  %s2086_s13 = sphi %s2147_s13, %s2781_s13   ;;  %s2082_s12 = sphi %s2145_s12, %s2780_s12  }
   0xa   : > { %p26_p0 = scmp.ge.s32.totalorder %s25_s24, 4  ;;  %s28_s25 = sadd.s32 1, %s2118_s21 }
   0xb   : > { %s41_s26 = sadd.s32 1, %s2102_s17  ;;  %p48_p1 = scmp.ne.s32.totalorder %s2102_s17, %s2098_s16 }
   0xc   : > { %s2791_s24 = smov (%p26_p0, %s25_s24), 0  ;;  %s2793_s25 = smov (!%p26_p0, %s28_s25), %s2118_s21 }
   0xd   : > { %s37_s27 = ssub.s32 %s2114_s20, %s2791_s24  ;;  %p49_p2 = scmp.eq.s32.totalorder %s2122_s22, 0 }
   0xe   : > { %p30_p3 = scmp.ge.s32.totalorder %s2793_s25, 4  ;;  %p39_p4 = scmp.eq.s32.totalorder %s37_s27, 0 }
   0xf   : > { %p2212_p5 = por %p49_p2, %p48_p1  ;;  %s69_s29 = sadd.s32 1, %s2094_s15 }
  0x10   : > { %s2795_s25 = smov (%p30_p3, %s2793_s25), 0  ;;  %p76_p6 = scmp.ne.s32.totalorder %s2094_s15, %s2090_s14 }
  0x11   : > { %2756 = sst [smem:[#allocation6_spill]] %s2795_s25  ;;  %s65_s4 = ssub.s32 %s2118_s21, %s2795_s25 }
  0x12   : > { %s2220_s30 = scalar_select %p39_p4, %s2102_s17, %s41_s26  }
  0x13   : > { %s66_s5 = sor.u32 %s65_s4, %s37_s27  ;;  %p121_p7 = scmp.eq.s32.totalorder %s65_s4, 0 }
  0x14   : > { %p67_p8 = scmp.eq.s32.totalorder %s66_s5, 0  ;;  %p2226_p9 = por %p76_p6, %p49_p2 }
  0x15   : > { %s123_s7 = sadd.s32 1, %s2086_s13  ;;  %p133_p10 = scmp.ne.s32.totalorder %s2086_s13, %s2082_s12 }
  0x16   : > { %s2234_s8 = scalar_select %p67_p8, %s2094_s15, %s69_s29  }
  0x17   : > { %s2237_s9 = scalar_select %p121_p7, %s2086_s13, %s123_s7  }
  0x18   : > { %p134_p11 = scmp.eq.s32.totalorder %s1520_s23, 15  ;;  %p1523_p13 = scmp.ge.s32.totalorder %s2122_s22, 16 }
  0x1a   : > { %p2239_p12 = por %p134_p11, %p133_p10  ;;  %156 = sbr.rel (%p1523_p13) target bundleno = 123 (0x7b), region = 16 }
  0x1f   : > { %159 = sbr.rel (!%p2212_p5) target bundleno = 49 (0x31), region = 20  ;;  %s161_s11 = sand.u32 (%p2212_p5), 1, %s2102_s17  }
  0x20   : > { %s1840_s26 = sshll.u32 (%p2212_p5), %s2114_s20, 4  ;;  %s1524_s27 = sshll.u32 (%p2212_p5), %s161_s11, 6 }
  0x21   : > { %s2759_s0 = sld [smem:[#allocation7_spill]] (%p2212_p5)  ;;  %s163_s23 = scalar_lea.vmem (%p2212_p5), [#allocation3], %s1524_s27 }
  0x27   : > { %s169_s5 = scalar_lea.vmem %s2759_s0, %s1840_s26 }
  0x28   : > { %v182_v0 = vld [vmem:[%s169_s5] sm:$0xff]  ;;  %v184_v1 = vld [vmem:[%s169_s5 + $0x8] sm:$0xff] }
  0x29   : > { %v186_v2 = vld [vmem:[%s169_s5 + $0x40] sm:$0xff]  ;;  %183 = vst [vmem:[%s163_s23] sm:$0xff] %v182_v0  ;;  %v188_v3 = vld [vmem:[%s169_s5 + $0x48] sm:$0xff] }
  0x2a   : > { %185 = vst [vmem:[%s163_s23 + $0x8] sm:$0xff] %v184_v1  ;;  %v190_v4 = vld [vmem:[%s169_s5 + $0x80] sm:$0xff]  ;;  %v192_v5 = vld [vmem:[%s169_s5 + $0x88] sm:$0xff] }
  0x2b   : > { %187 = vst [vmem:[%s163_s23 + $0x10] sm:$0xff] %v186_v2  ;;  %v194_v6 = vld [vmem:[%s169_s5 + $0xc0] sm:$0xff]  ;;  %v196_v7 = vld [vmem:[%s169_s5 + $0xc8] sm:$0xff] }
  0x2c   : > { %189 = vst [vmem:[%s163_s23 + $0x18] sm:$0xff] %v188_v3 }
  0x2d   : > { %191 = vst [vmem:[%s163_s23 + $0x20] sm:$0xff] %v190_v4 }
  0x2e   : > { %193 = vst [vmem:[%s163_s23 + $0x28] sm:$0xff] %v192_v5 }
  0x2f   : > { %195 = vst [vmem:[%s163_s23 + $0x30] sm:$0xff] %v194_v6 }
  0x30   : > { %197 = vst [vmem:[%s163_s23 + $0x38] sm:$0xff] %v196_v7 }
  0x31 PF: > { %203 = sbr.rel (!%p2226_p9) target bundleno = 123 (0x7b), region = 43  ;;  %s205_s28 = sand.u32 (%p2226_p9), 1, %s2094_s15  }
  0x32   : > { %s1529_s7 = sshll.u32 (%p2226_p9), %s2118_s21, 1  ;;  %s1527_s11 = sshll.u32 (%p2226_p9), %s205_s28, 9 }
  0x33   : > { %s1841_s26 = sshll.u32 (%p2226_p9), %s2114_s20, 9  ;;  %s2760_s1 = sld [smem:[#allocation8_spill]] (%p2226_p9) }
  0x34   : > { %s211_s27 = sadd.s32 (%p2226_p9), %s1841_s26, %s1529_s7  ;;  %s2264_s6 = scalar_lea.vmem (%p2226_p9), [#allocation4], %s1527_s11 }
  0x35   : > { %s1531_s29 = sshll.u32 (%p2226_p9), %s211_s27, 2 }
  0x39   : > { %s2259_s5 = scalar_lea.vmem %s2760_s1, %s1531_s29 }
  0x3a   : > { %v368_v8 = vld [vmem:[%s2259_s5] sm:$0xff] }
  0x3b   : > { %v370_v9 = vld [vmem:[%s2259_s5 + $0x20] sm:$0xff]  ;;  %369 = vst [vmem:[%s2264_s6] sm:$0xff] %v368_v8 }
  0x3c   : > { %v372_v10 = vld [vmem:[%s2259_s5 + $0x40] sm:$0xff]  ;;  %371 = vst [vmem:[%s2264_s6 + $0x8] sm:$0xff] %v370_v9 }
  0x3d   : > { %v374_v11 = vld [vmem:[%s2259_s5 + $0x60] sm:$0xff]  ;;  %373 = vst [vmem:[%s2264_s6 + $0x10] sm:$0xff] %v372_v10 }
  0x3e   : > { %v376_v12 = vld [vmem:[%s2259_s5 + $0x80] sm:$0xff]  ;;  %375 = vst [vmem:[%s2264_s6 + $0x18] sm:$0xff] %v374_v11 }
  0x3f   : > { %v378_v13 = vld [vmem:[%s2259_s5 + $0xa0] sm:$0xff]  ;;  %377 = vst [vmem:[%s2264_s6 + $0x20] sm:$0xff] %v376_v12 }
  0x40   : > { %v380_v14 = vld [vmem:[%s2259_s5 + $0xc0] sm:$0xff]  ;;  %379 = vst [vmem:[%s2264_s6 + $0x28] sm:$0xff] %v378_v13 }
  0x41   : > { %v382_v15 = vld [vmem:[%s2259_s5 + $0xe0] sm:$0xff]  ;;  %381 = vst [vmem:[%s2264_s6 + $0x30] sm:$0xff] %v380_v14 }
  0x42   : > { %v384_v16 = vld [vmem:[%s2259_s5 + $0x100] sm:$0xff]  ;;  %383 = vst [vmem:[%s2264_s6 + $0x38] sm:$0xff] %v382_v15 }
  0x43   : > { %v386_v17 = vld [vmem:[%s2259_s5 + $0x120] sm:$0xff]  ;;  %385 = vst [vmem:[%s2264_s6 + $0x40] sm:$0xff] %v384_v16 }
  0x44   : > { %v388_v18 = vld [vmem:[%s2259_s5 + $0x140] sm:$0xff]  ;;  %387 = vst [vmem:[%s2264_s6 + $0x48] sm:$0xff] %v386_v17 }
  0x45   : > { %v390_v19 = vld [vmem:[%s2259_s5 + $0x160] sm:$0xff]  ;;  %389 = vst [vmem:[%s2264_s6 + $0x50] sm:$0xff] %v388_v18 }
  0x46   : > { %v392_v20 = vld [vmem:[%s2259_s5 + $0x180] sm:$0xff]  ;;  %391 = vst [vmem:[%s2264_s6 + $0x58] sm:$0xff] %v390_v19 }
  0x47   : > { %v394_v21 = vld [vmem:[%s2259_s5 + $0x1a0] sm:$0xff]  ;;  %393 = vst [vmem:[%s2264_s6 + $0x60] sm:$0xff] %v392_v20 }
  0x48   : > { %v396_v22 = vld [vmem:[%s2259_s5 + $0x1c0] sm:$0xff]  ;;  %395 = vst [vmem:[%s2264_s6 + $0x68] sm:$0xff] %v394_v21 }
  0x49   : > { %v398_v23 = vld [vmem:[%s2259_s5 + $0x1e0] sm:$0xff]  ;;  %397 = vst [vmem:[%s2264_s6 + $0x70] sm:$0xff] %v396_v22 }
  0x4a   : > { %v400_v24 = vld [vmem:[%s2259_s5 + $0x200] sm:$0xff]  ;;  %399 = vst [vmem:[%s2264_s6 + $0x78] sm:$0xff] %v398_v23 }
  0x4b   : > { %v402_v25 = vld [vmem:[%s2259_s5 + $0x220] sm:$0xff]  ;;  %401 = vst [vmem:[%s2264_s6 + $0x80] sm:$0xff] %v400_v24 }
  0x4c   : > { %v404_v26 = vld [vmem:[%s2259_s5 + $0x240] sm:$0xff]  ;;  %403 = vst [vmem:[%s2264_s6 + $0x88] sm:$0xff] %v402_v25 }
  0x4d   : > { %v406_v27 = vld [vmem:[%s2259_s5 + $0x260] sm:$0xff]  ;;  %405 = vst [vmem:[%s2264_s6 + $0x90] sm:$0xff] %v404_v26 }
  0x4e   : > { %v408_v28 = vld [vmem:[%s2259_s5 + $0x280] sm:$0xff]  ;;  %407 = vst [vmem:[%s2264_s6 + $0x98] sm:$0xff] %v406_v27 }
  0x4f   : > { %v410_v29 = vld [vmem:[%s2259_s5 + $0x2a0] sm:$0xff]  ;;  %409 = vst [vmem:[%s2264_s6 + $0xa0] sm:$0xff] %v408_v28 }
  0x50   : > { %v412_v30 = vld [vmem:[%s2259_s5 + $0x2c0] sm:$0xff]  ;;  %411 = vst [vmem:[%s2264_s6 + $0xa8] sm:$0xff] %v410_v29 }
  0x51   : > { %v414_v31 = vld [vmem:[%s2259_s5 + $0x2e0] sm:$0xff]  ;;  %413 = vst [vmem:[%s2264_s6 + $0xb0] sm:$0xff] %v412_v30 }
  0x52   : > { %v416_v32 = vld [vmem:[%s2259_s5 + $0x300] sm:$0xff]  ;;  %415 = vst [vmem:[%s2264_s6 + $0xb8] sm:$0xff] %v414_v31 }
  0x53   : > { %v418_v33 = vld [vmem:[%s2259_s5 + $0x320] sm:$0xff]  ;;  %417 = vst [vmem:[%s2264_s6 + $0xc0] sm:$0xff] %v416_v32 }
  0x54   : > { %v420_v34 = vld [vmem:[%s2259_s5 + $0x340] sm:$0xff]  ;;  %419 = vst [vmem:[%s2264_s6 + $0xc8] sm:$0xff] %v418_v33 }
  0x55   : > { %v422_v35 = vld [vmem:[%s2259_s5 + $0x360] sm:$0xff]  ;;  %421 = vst [vmem:[%s2264_s6 + $0xd0] sm:$0xff] %v420_v34 }
  0x56   : > { %v424_v36 = vld [vmem:[%s2259_s5 + $0x380] sm:$0xff]  ;;  %423 = vst [vmem:[%s2264_s6 + $0xd8] sm:$0xff] %v422_v35 }
  0x57   : > { %v426_v37 = vld [vmem:[%s2259_s5 + $0x3a0] sm:$0xff]  ;;  %425 = vst [vmem:[%s2264_s6 + $0xe0] sm:$0xff] %v424_v36 }
  0x58   : > { %v428_v38 = vld [vmem:[%s2259_s5 + $0x3c0] sm:$0xff]  ;;  %427 = vst [vmem:[%s2264_s6 + $0xe8] sm:$0xff] %v426_v37 }
  0x59   : > { %v430_v39 = vld [vmem:[%s2259_s5 + $0x3e0] sm:$0xff]  ;;  %429 = vst [vmem:[%s2264_s6 + $0xf0] sm:$0xff] %v428_v38 }
  0x5a   : > { %v432_v40 = vld [vmem:[%s2259_s5 + $0x400] sm:$0xff]  ;;  %431 = vst [vmem:[%s2264_s6 + $0xf8] sm:$0xff] %v430_v39 }
  0x5b   : > { %v434_v41 = vld [vmem:[%s2259_s5 + $0x420] sm:$0xff]  ;;  %433 = vst [vmem:[%s2264_s6 + $0x100] sm:$0xff] %v432_v40 }
  0x5c   : > { %v436_v42 = vld [vmem:[%s2259_s5 + $0x440] sm:$0xff]  ;;  %435 = vst [vmem:[%s2264_s6 + $0x108] sm:$0xff] %v434_v41 }
  0x5d   : > { %v438_v43 = vld [vmem:[%s2259_s5 + $0x460] sm:$0xff]  ;;  %437 = vst [vmem:[%s2264_s6 + $0x110] sm:$0xff] %v436_v42 }
  0x5e   : > { %v440_v44 = vld [vmem:[%s2259_s5 + $0x480] sm:$0xff]  ;;  %439 = vst [vmem:[%s2264_s6 + $0x118] sm:$0xff] %v438_v43 }
  0x5f   : > { %v442_v45 = vld [vmem:[%s2259_s5 + $0x4a0] sm:$0xff]  ;;  %441 = vst [vmem:[%s2264_s6 + $0x120] sm:$0xff] %v440_v44 }
  0x60   : > { %v444_v46 = vld [vmem:[%s2259_s5 + $0x4c0] sm:$0xff]  ;;  %443 = vst [vmem:[%s2264_s6 + $0x128] sm:$0xff] %v442_v45 }
  0x61   : > { %v446_v47 = vld [vmem:[%s2259_s5 + $0x4e0] sm:$0xff]  ;;  %445 = vst [vmem:[%s2264_s6 + $0x130] sm:$0xff] %v444_v46 }
  0x62   : > { %v448_v48 = vld [vmem:[%s2259_s5 + $0x500] sm:$0xff]  ;;  %447 = vst [vmem:[%s2264_s6 + $0x138] sm:$0xff] %v446_v47 }
  0x63   : > { %v450_v49 = vld [vmem:[%s2259_s5 + $0x520] sm:$0xff]  ;;  %449 = vst [vmem:[%s2264_s6 + $0x140] sm:$0xff] %v448_v48 }
  0x64   : > { %v452_v50 = vld [vmem:[%s2259_s5 + $0x540] sm:$0xff]  ;;  %451 = vst [vmem:[%s2264_s6 + $0x148] sm:$0xff] %v450_v49 }
  0x65   : > { %v454_v51 = vld [vmem:[%s2259_s5 + $0x560] sm:$0xff]  ;;  %453 = vst [vmem:[%s2264_s6 + $0x150] sm:$0xff] %v452_v50 }
  0x66   : > { %v456_v52 = vld [vmem:[%s2259_s5 + $0x580] sm:$0xff]  ;;  %455 = vst [vmem:[%s2264_s6 + $0x158] sm:$0xff] %v454_v51 }
  0x67   : > { %v458_v53 = vld [vmem:[%s2259_s5 + $0x5a0] sm:$0xff]  ;;  %457 = vst [vmem:[%s2264_s6 + $0x160] sm:$0xff] %v456_v52 }
  0x68   : > { %v460_v54 = vld [vmem:[%s2259_s5 + $0x5c0] sm:$0xff]  ;;  %459 = vst [vmem:[%s2264_s6 + $0x168] sm:$0xff] %v458_v53 }
  0x69   : > { %v462_v55 = vld [vmem:[%s2259_s5 + $0x5e0] sm:$0xff]  ;;  %461 = vst [vmem:[%s2264_s6 + $0x170] sm:$0xff] %v460_v54 }
  0x6a   : > { %v464_v56 = vld [vmem:[%s2259_s5 + $0x600] sm:$0xff]  ;;  %463 = vst [vmem:[%s2264_s6 + $0x178] sm:$0xff] %v462_v55 }
  0x6b   : > { %v466_v57 = vld [vmem:[%s2259_s5 + $0x620] sm:$0xff]  ;;  %465 = vst [vmem:[%s2264_s6 + $0x180] sm:$0xff] %v464_v56 }
  0x6c   : > { %v468_v58 = vld [vmem:[%s2259_s5 + $0x640] sm:$0xff]  ;;  %467 = vst [vmem:[%s2264_s6 + $0x188] sm:$0xff] %v466_v57 }
  0x6d   : > { %v470_v59 = vld [vmem:[%s2259_s5 + $0x660] sm:$0xff]  ;;  %469 = vst [vmem:[%s2264_s6 + $0x190] sm:$0xff] %v468_v58 }
  0x6e   : > { %v472_v60 = vld [vmem:[%s2259_s5 + $0x680] sm:$0xff]  ;;  %471 = vst [vmem:[%s2264_s6 + $0x198] sm:$0xff] %v470_v59 }
  0x6f   : > { %v474_v61 = vld [vmem:[%s2259_s5 + $0x6a0] sm:$0xff]  ;;  %473 = vst [vmem:[%s2264_s6 + $0x1a0] sm:$0xff] %v472_v60 }
  0x70   : > { %v476_v62 = vld [vmem:[%s2259_s5 + $0x6c0] sm:$0xff]  ;;  %475 = vst [vmem:[%s2264_s6 + $0x1a8] sm:$0xff] %v474_v61 }
  0x71   : > { %v478_v63 = vld [vmem:[%s2259_s5 + $0x6e0] sm:$0xff]  ;;  %477 = vst [vmem:[%s2264_s6 + $0x1b0] sm:$0xff] %v476_v62 }
  0x72   : > { %v480_v0 = vld [vmem:[%s2259_s5 + $0x700] sm:$0xff]  ;;  %479 = vst [vmem:[%s2264_s6 + $0x1b8] sm:$0xff] %v478_v63 }
  0x73   : > { %v482_v1 = vld [vmem:[%s2259_s5 + $0x720] sm:$0xff]  ;;  %481 = vst [vmem:[%s2264_s6 + $0x1c0] sm:$0xff] %v480_v0 }
  0x74   : > { %v484_v2 = vld [vmem:[%s2259_s5 + $0x740] sm:$0xff]  ;;  %483 = vst [vmem:[%s2264_s6 + $0x1c8] sm:$0xff] %v482_v1 }
  0x75   : > { %v486_v3 = vld [vmem:[%s2259_s5 + $0x760] sm:$0xff]  ;;  %485 = vst [vmem:[%s2264_s6 + $0x1d0] sm:$0xff] %v484_v2 }
  0x76   : > { %v488_v4 = vld [vmem:[%s2259_s5 + $0x780] sm:$0xff]  ;;  %487 = vst [vmem:[%s2264_s6 + $0x1d8] sm:$0xff] %v486_v3 }
  0x77   : > { %v490_v5 = vld [vmem:[%s2259_s5 + $0x7a0] sm:$0xff]  ;;  %489 = vst [vmem:[%s2264_s6 + $0x1e0] sm:$0xff] %v488_v4 }
  0x78   : > { %v492_v6 = vld [vmem:[%s2259_s5 + $0x7c0] sm:$0xff]  ;;  %491 = vst [vmem:[%s2264_s6 + $0x1e8] sm:$0xff] %v490_v5 }
  0x79   : > { %v494_v7 = vld [vmem:[%s2259_s5 + $0x7e0] sm:$0xff]  ;;  %493 = vst [vmem:[%s2264_s6 + $0x1f0] sm:$0xff] %v492_v6 }
  0x7a   : > { %495 = vst [vmem:[%s2264_s6 + $0x1f8] sm:$0xff] %v494_v7 }
  0x7b PF: > { %p1532_p0 = scmp.ge.s32.totalorder %s2122_s22, 1  ;;  %p508_p1 = scmp.lt.s32.totalorder %s2122_s22, 17 }
  0x7d   : > { %p509_p2 = pnand %p1532_p0, %p508_p1 }
  0x7e   : > { %s515_s0 = sand.u32 (!%p509_p2), 1, %s2098_s16   ;;  %s522_s23 = sand.u32 (!%p509_p2), 1, %s2090_s14  }
  0x7f   : > { %512 = sbr.rel (%p509_p2) target bundleno = 441 (0x1b9), region = 85  ;;  %s1533_s28 = sshll.u32 (!%p509_p2), %s515_s0, 6 }
  0x80   : > { %s1534_s7 = sshll.u32 (!%p509_p2), %s522_s23, 9  ;;  %s549_s11 = sand.u32 (!%p509_p2), 1, %s2082_s12  }
  0x81   : > { %s1536_s26 = sshll.u32 (!%p509_p2), %s2110_s19, 1  ;;  %s1535_s27 = sshll.u32 (!%p509_p2), %s549_s11, 6 }
  0x82   : > { %p557_p3 = scmp.lt.s32.totalorder (!%p509_p2), %s1536_s26, 7  ;;  %s2403_s6 = scalar_lea.vmem (!%p509_p2), [#allocation3], %s1533_s28 }
  0x83   : > { %s2405_s1 = scalar_lea.vmem (!%p509_p2), [#allocation4], %s1534_s7  ;;  %s2407_s25 = scalar_lea.vmem (!%p509_p2), [#allocation5], %s1535_s27 }
  0x84   : > { %s2797_s26 = smov (!%p557_p3, %s1536_s26), 7  ;;  %p1537_p4 = scmp.ne.s32.totalorder %s2106_s18, 0 }
  0x85   : > { %s559_s5 = scalar_lea.vmem %s2750_s2, %s2797_s26 }
  0x86   : > { %566 = sbr.rel (%p1537_p4) target bundleno = 148 (0x94), region = 97 }
  0x8b   : > { %v2124_v8 = vmov 0.0  }
  0x8c   : > { %567 = vst [vmem:[#allocation2 + $0x30] sm:$0xff] %v2124_v8 }
  0x8d   : > { %568 = vst [vmem:[#allocation2] sm:$0xff] %v2124_v8 }
  0x8e   : > { %569 = vst [vmem:[#allocation2 + $0x18] sm:$0xff] %v2124_v8 }
  0x8f   : > { %570 = vst [vmem:[#allocation2 + $0x10] sm:$0xff] %v2124_v8 }
  0x90   : > { %571 = vst [vmem:[#allocation2 + $0x8] sm:$0xff] %v2124_v8 }
  0x91   : > { %572 = vst [vmem:[#allocation2 + $0x20] sm:$0xff] %v2124_v8 }
  0x92   : > { %573 = vst [vmem:[#allocation2 + $0x28] sm:$0xff] %v2124_v8 }
  0x93   : > { %574 = vst [vmem:[#allocation2 + $0x38] sm:$0xff] %v2124_v8 }
  0x94 PF: > { %v1628_v9 = vld [vmem:[%s2405_s1 + $0x70] sm:$0xf]  ;;  %v1865_v10 = vld [vmem:[%s2405_s1 + $0x74] sm:$0xf0]  ;;  %v1620_v20 = vld [vmem:[%s2405_s1 + $0x60] sm:$0xf] }
  0x95   : > { %v1692_v11 = vld [vmem:[%s2405_s1 + $0xf0] sm:$0xf]  ;;  %v1629_v12 = vor.u32 %v1865_v10, %v1628_v9  ;;  %v1881_v13 = vld [vmem:[%s2405_s1 + $0xf4] sm:$0xf0]  ;;  %v1863_v22 = vld [vmem:[%s2405_s1 + $0x64] sm:$0xf0] }
  0x96   : > { %v1756_v14 = vld [vmem:[%s2405_s1 + $0x170] sm:$0xf]  ;;  %v1897_v15 = vld [vmem:[%s2405_s1 + $0x174] sm:$0xf0]  ;;  %v1693_v16 = vor.u32 %v1881_v13, %v1692_v11  ;;  %v1684_v23 = vld [vmem:[%s2405_s1 + $0xe0] sm:$0xf]  ;;  %v1621_v25 = vor.u32 %v1863_v22, %v1620_v20 }
  0x97   : > { %v1757_v17 = vor.u32 %v1897_v15, %v1756_v14  ;;  %v1820_v18 = vld [vmem:[%s2405_s1 + $0x1f0] sm:$0xf]  ;;  %v1913_v19 = vld [vmem:[%s2405_s1 + $0x1f4] sm:$0xf0]  ;;  %1015 = vmatpush.bf16.msra.mxu0 %v1629_v12  ;;  %v1879_v24 = vld [vmem:[%s2405_s1 + $0xe4] sm:$0xf0] }
  0x98   : > { %v1821_v21 = vor.u32 %v1913_v19, %v1820_v18  ;;  %1034 = vmatpush.bf16.msra.mxu1 %v1693_v16  ;;  %v1685_v26 = vor.u32 %v1879_v24, %v1684_v23  ;;  %v1748_v27 = vld [vmem:[%s2405_s1 + $0x160] sm:$0xf]  ;;  %v1895_v28 = vld [vmem:[%s2405_s1 + $0x164] sm:$0xf0]  ;;  %v1612_v32 = vld [vmem:[%s2405_s1 + $0x50] sm:$0xf] }
  0x99   : > { %1053 = vmatpush.bf16.msra.mxu2 %v1757_v17  ;;  %v1812_v29 = vld [vmem:[%s2405_s1 + $0x1e0] sm:$0xf]  ;;  %v1749_v30 = vor.u32 %v1895_v28, %v1748_v27  ;;  %v1911_v31 = vld [vmem:[%s2405_s1 + $0x1e4] sm:$0xf0]  ;;  %v1861_v33 = vld [vmem:[%s2405_s1 + $0x54] sm:$0xf0] }
  0x9a   : > { %1072 = vmatpush.bf16.msra.mxu3 %v1821_v21  ;;  %v1813_v34 = vor.u32 %v1911_v31, %v1812_v29  ;;  %v1676_v35 = vld [vmem:[%s2405_s1 + $0xd0] sm:$0xf]  ;;  %v1877_v36 = vld [vmem:[%s2405_s1 + $0xd4] sm:$0xf0]  ;;  %v1613_v38 = vor.u32 %v1861_v33, %v1612_v32  ;;  %v1604_v44 = vld [vmem:[%s2405_s1 + $0x40] sm:$0xf] }
  0x9b   : > { %v1740_v37 = vld [vmem:[%s2405_s1 + $0x150] sm:$0xf]  ;;  %1016 = vmatpush.bf16.msra.mxu0 %v1621_v25  ;;  %v1893_v39 = vld [vmem:[%s2405_s1 + $0x154] sm:$0xf0]  ;;  %v1677_v42 = vor.u32 %v1877_v36, %v1676_v35  ;;  %v1859_v45 = vld [vmem:[%s2405_s1 + $0x44] sm:$0xf0] }
  0x9c   : > { %v1804_v40 = vld [vmem:[%s2405_s1 + $0x1d0] sm:$0xf]  ;;  %v1909_v41 = vld [vmem:[%s2405_s1 + $0x1d4] sm:$0xf0]  ;;  %1035 = vmatpush.bf16.msra.mxu1 %v1685_v26  ;;  %v1741_v43 = vor.u32 %v1893_v39, %v1740_v37  ;;  %v1668_v46 = vld [vmem:[%s2405_s1 + $0xc0] sm:$0xf]  ;;  %v1605_v53 = vor.u32 %v1859_v45, %v1604_v44 }
  0x9d   : > { %1054 = vmatpush.bf16.msra.mxu2 %v1749_v30  ;;  %v1805_v47 = vor.u32 %v1909_v41, %v1804_v40  ;;  %v1875_v48 = vld [vmem:[%s2405_s1 + $0xc4] sm:$0xf0]  ;;  %v1732_v49 = vld [vmem:[%s2405_s1 + $0x140] sm:$0xf]  ;;  %v1596_v56 = vld [vmem:[%s2405_s1 + $0x30] sm:$0xf] }
  0x9e   : > { %1073 = vmatpush.bf16.msra.mxu3 %v1813_v34  ;;  %v1891_v50 = vld [vmem:[%s2405_s1 + $0x144] sm:$0xf0]  ;;  %v1796_v51 = vld [vmem:[%s2405_s1 + $0x1c0] sm:$0xf]  ;;  %v1669_v54 = vor.u32 %v1875_v48, %v1668_v46  ;;  %v1857_v57 = vld [vmem:[%s2405_s1 + $0x34] sm:$0xf0] }
  0x9f   : > { %v1907_v52 = vld [vmem:[%s2405_s1 + $0x1c4] sm:$0xf0]  ;;  %1017 = vmatpush.bf16.msra.mxu0 %v1613_v38  ;;  %v1733_v55 = vor.u32 %v1891_v50, %v1732_v49  ;;  %v1660_v58 = vld [vmem:[%s2405_s1 + $0xb0] sm:$0xf]  ;;  %v1873_v60 = vld [vmem:[%s2405_s1 + $0xb4] sm:$0xf0]  ;;  %v1597_v1 = vor.u32 %v1857_v57, %v1596_v56 }
  0xa0   : > { %1036 = vmatpush.bf16.msra.mxu1 %v1677_v42  ;;  %v1797_v59 = vor.u32 %v1907_v52, %v1796_v51  ;;  %v1724_v61 = vld [vmem:[%s2405_s1 + $0x130] sm:$0xf]  ;;  %v1889_v62 = vld [vmem:[%s2405_s1 + $0x134] sm:$0xf0]  ;;  %v1661_v2 = vor.u32 %v1873_v60, %v1660_v58  ;;  %v1588_v4 = vld [vmem:[%s2405_s1 + $0x20] sm:$0xf] }
  0xa1   : > { %1055 = vmatpush.bf16.msra.mxu2 %v1741_v43  ;;  %v1788_v63 = vld [vmem:[%s2405_s1 + $0x1b0] sm:$0xf]  ;;  %v1905_v0 = vld [vmem:[%s2405_s1 + $0x1b4] sm:$0xf0]  ;;  %v1725_v3 = vor.u32 %v1889_v62, %v1724_v61  ;;  %v1855_v5 = vld [vmem:[%s2405_s1 + $0x24] sm:$0xf0] }
  0xa2   : > { %1074 = vmatpush.bf16.msra.mxu3 %v1805_v47  ;;  %v1652_v6 = vld [vmem:[%s2405_s1 + $0xa0] sm:$0xf]  ;;  %v1789_v7 = vor.u32 %v1905_v0, %v1788_v63  ;;  %v1871_v8 = vld [vmem:[%s2405_s1 + $0xa4] sm:$0xf0]  ;;  %v1589_v13 = vor.u32 %v1855_v5, %v1588_v4  ;;  %v1580_v16 = vld [vmem:[%s2405_s1 + $0x10] sm:$0xf] }
  0xa3   : > { %1018 = vmatpush.bf16.msra.mxu0 %v1605_v53  ;;  %v1716_v9 = vld [vmem:[%s2405_s1 + $0x120] sm:$0xf]  ;;  %v1887_v10 = vld [vmem:[%s2405_s1 + $0x124] sm:$0xf0]  ;;  %v1653_v14 = vor.u32 %v1871_v8, %v1652_v6  ;;  %v1853_v17 = vld [vmem:[%s2405_s1 + $0x14] sm:$0xf0] }
  0xa4   : > { %1037 = vmatpush.bf16.msra.mxu1 %v1669_v54  ;;  %v1780_v11 = vld [vmem:[%s2405_s1 + $0x1a0] sm:$0xf]  ;;  %v1903_v12 = vld [vmem:[%s2405_s1 + $0x1a4] sm:$0xf0]  ;;  %v1717_v15 = vor.u32 %v1887_v10, %v1716_v9  ;;  %v1644_v18 = vld [vmem:[%s2405_s1 + $0x90] sm:$0xf]  ;;  %v1581_v26 = vor.u32 %v1853_v17, %v1580_v16 }
  0xa5   : > { %1056 = vmatpush.bf16.msra.mxu2 %v1733_v55  ;;  %v1781_v19 = vor.u32 %v1903_v12, %v1780_v11  ;;  %v1869_v20 = vld [vmem:[%s2405_s1 + $0x94] sm:$0xf0]  ;;  %v1708_v21 = vld [vmem:[%s2405_s1 + $0x110] sm:$0xf]  ;;  %v1572_v25 = vld [vmem:[%s2405_s1] sm:$0xf] }
  0xa6   : > { %1075 = vmatpush.bf16.msra.mxu3 %v1797_v59  ;;  %v1885_v22 = vld [vmem:[%s2405_s1 + $0x114] sm:$0xf0]  ;;  %v1772_v23 = vld [vmem:[%s2405_s1 + $0x190] sm:$0xf]  ;;  %v1851_v27 = vld [vmem:[%s2405_s1 + $0x4] sm:$0xf0]  ;;  %v1645_v30 = vor.u32 %v1869_v20, %v1644_v18 }
  0xa7   : > { %1019 = vmatpush.bf16.msra.mxu0 %v1597_v1  ;;  %v1901_v24 = vld [vmem:[%s2405_s1 + $0x194] sm:$0xf0]  ;;  %v1636_v28 = vld [vmem:[%s2405_s1 + $0x80] sm:$0xf]  ;;  %v1867_v29 = vld [vmem:[%s2405_s1 + $0x84] sm:$0xf0]  ;;  %v1709_v31 = vor.u32 %v1885_v22, %v1708_v21  ;;  %v1573_v43 = vor.u32 %v1851_v27, %v1572_v25 }
  0xa8   : > { %1038 = vmatpush.bf16.msra.mxu1 %v1661_v2  ;;  %v1700_v32 = vld [vmem:[%s2405_s1 + $0x100] sm:$0xf]  ;;  %v1883_v33 = vld [vmem:[%s2405_s1 + $0x104] sm:$0xf0]  ;;  %v1773_v35 = vor.u32 %v1901_v24, %v1772_v23  ;;  %v1844_v38 = vld [vmem:[%s2403_s6 + $0xc] sm:$0xf0]  ;;  %v1637_v47 = vor.u32 %v1867_v29, %v1636_v28 }
  0xa9   : > { %1057 = vmatpush.bf16.msra.mxu2 %v1725_v3  ;;  %v1764_v34 = vld [vmem:[%s2405_s1 + $0x180] sm:$0xf]  ;;  %v1899_v36 = vld [vmem:[%s2405_s1 + $0x184] sm:$0xf0]  ;;  %v1842_v39 = vld [vmem:[%s2403_s6 + $0x4] sm:$0xf]  ;;  %v1701_v48 = vor.u32 %v1883_v33, %v1700_v32 }
  0xaa   : > { %1076 = vmatpush.bf16.msra.mxu3 %v1789_v7  ;;  %v1540_v37 = vld [vmem:[%s2403_s6] sm:$0xf]  ;;  %v1542_v40 = vld [vmem:[%s2403_s6 + $0x10] sm:$0xf0]  ;;  %v1758_v42 = vld [vmem:[%s2405_s1 + $0x178] sm:$0xf0]  ;;  %v1765_v52 = vor.u32 %v1899_v36, %v1764_v34 }
  0xab   : > { %1020 = vmatpush.bf16.msra.mxu0 %v1589_v13  ;;  %v1896_v41 = vld [vmem:[%s2405_s1 + $0x174] sm:$0xf]  ;;  %v1548_v44 = vld [vmem:[%s2403_s6 + $0x8] sm:$0xf]  ;;  %v1694_v46 = vld [vmem:[%s2405_s1 + $0xf8] sm:$0xf0]  ;;  %v2489_v57 = vor.u32 %v1844_v38, %v1540_v37  ;;  %v2494_v62 = vor.u32 %v1842_v39, %v1542_v40 }
  0xac   : > { %1039 = vmatpush.bf16.msra.mxu1 %v1653_v14  ;;  %v1880_v45 = vld [vmem:[%s2405_s1 + $0xf4] sm:$0xf]  ;;  %v1845_v49 = vld [vmem:[%s2403_s6 + $0x14] sm:$0xf0]  ;;  %v1843_v50 = vld [vmem:[%s2403_s6 + $0xc] sm:$0xf]  ;;  %v1761_v53 = vor.u32 %v1896_v41, %v1758_v42 }
  0xad   : > { %1058 = vmatpush.bf16.msra.mxu2 %v1717_v15  ;;  %v1550_v51 = vld [vmem:[%s2403_s6 + $0x18] sm:$0xf0]  ;;  %v1864_v54 = vld [vmem:[%s2405_s1 + $0x74] sm:$0xf]  ;;  %v1697_v58 = vor.u32 %v1880_v45, %v1694_v46  ;;  %v1894_v60 = vld [vmem:[%s2405_s1 + $0x164] sm:$0xf]  ;;  %v2496_v63 = vor.u32 %v1845_v49, %v1548_v44 }
  0xae   : > { %1077 = vmatpush.bf16.msra.mxu3 %v1781_v19  ;;  %v1630_v55 = vld [vmem:[%s2405_s1 + $0x78] sm:$0xf0]  ;;  %v1912_v56 = vld [vmem:[%s2405_s1 + $0x1f4] sm:$0xf]  ;;  %v1750_v61 = vld [vmem:[%s2405_s1 + $0x168] sm:$0xf0]  ;;  %v2500_v2 = vor.u32 %v1843_v50, %v1550_v51 }
  0xaf   : > { %1021 = vmatpush.bf16.msra.mxu0 %v1581_v26  ;;  %v1822_v59 = vld [vmem:[%s2405_s1 + $0x1f8] sm:$0xf0]  ;;  %v1878_v0 = vld [vmem:[%s2405_s1 + $0xe4] sm:$0xf]  ;;  %v1686_v1 = vld [vmem:[%s2405_s1 + $0xe8] sm:$0xf0]  ;;  %v1633_v3 = vor.u32 %v1864_v54, %v1630_v55  ;;  %v1753_v5 = vor.u32 %v1894_v60, %v1750_v61 }
  0xb0   : > { %1040 = vmatpush.bf16.msra.mxu1 %v1645_v30  ;;  %v1825_v4 = vor.u32 %v1912_v56, %v1822_v59  ;;  %v1862_v6 = vld [vmem:[%s2405_s1 + $0x64] sm:$0xf]  ;;  %v1622_v7 = vld [vmem:[%s2405_s1 + $0x68] sm:$0xf0]  ;;  %v1689_v9 = vor.u32 %v1878_v0, %v1686_v1  ;;  %v1892_v11 = vld [vmem:[%s2405_s1 + $0x154] sm:$0xf] }
  0xb1   : > { %1059 = vmatpush.bf16.msra.mxu2 %v1709_v31  ;;  %v1910_v8 = vld [vmem:[%s2405_s1 + $0x1e4] sm:$0xf]  ;;  %v1814_v10 = vld [vmem:[%s2405_s1 + $0x1e8] sm:$0xf0]  ;;  %v1742_v12 = vld [vmem:[%s2405_s1 + $0x158] sm:$0xf0]  ;;  %v1625_v15 = vor.u32 %v1862_v6, %v1622_v7 }
  0xb2   : > { %1078 = vmatpush.bf16.msra.mxu3 %v1773_v35  ;;  %v1876_v13 = vld [vmem:[%s2405_s1 + $0xd4] sm:$0xf]  ;;  %v1678_v14 = vld [vmem:[%s2405_s1 + $0xd8] sm:$0xf0]  ;;  %v1817_v16 = vor.u32 %v1910_v8, %v1814_v10  ;;  %v1745_v17 = vor.u32 %v1892_v11, %v1742_v12  ;;  %v1890_v23 = vld [vmem:[%s2405_s1 + $0x144] sm:$0xf] }
  0xb3   : > { %1022 = vmatpush.bf16.msra.mxu0 %v1573_v43  ;;  %v1860_v18 = vld [vmem:[%s2405_s1 + $0x54] sm:$0xf]  ;;  %v1614_v19 = vld [vmem:[%s2405_s1 + $0x58] sm:$0xf0]  ;;  %v1681_v21 = vor.u32 %v1876_v13, %v1678_v14  ;;  %v1734_v24 = vld [vmem:[%s2405_s1 + $0x148] sm:$0xf0] }
  0xb4   : > { %1041 = vmatpush.bf16.msra.mxu1 %v1637_v47  ;;  %v1908_v20 = vld [vmem:[%s2405_s1 + $0x1d4] sm:$0xf]  ;;  %v1806_v22 = vld [vmem:[%s2405_s1 + $0x1d8] sm:$0xf0]  ;;  %v1874_v25 = vld [vmem:[%s2405_s1 + $0xc4] sm:$0xf]  ;;  %v1617_v27 = vor.u32 %v1860_v18, %v1614_v19  ;;  %v1737_v32 = vor.u32 %v1890_v23, %v1734_v24 }
  0xb5   : > { %1060 = vmatpush.bf16.msra.mxu2 %v1701_v48  ;;  %v1670_v26 = vld [vmem:[%s2405_s1 + $0xc8] sm:$0xf0]  ;;  %v1858_v28 = vld [vmem:[%s2405_s1 + $0x44] sm:$0xf]  ;;  %v1809_v31 = vor.u32 %v1908_v20, %v1806_v22  ;;  %v1556_v34 = vld [vmem:[%s2403_s6 + $0x20] sm:$0xf] }
  0xb6   : > { %1079 = vmatpush.bf16.msra.mxu3 %v1765_v52  ;;  %1023 = vmatmul.bf16.vlgmr.msra.gmra.mxu0 %v2489_v57  ;;  %v1606_v29 = vld [vmem:[%s2405_s1 + $0x48] sm:$0xf0]  ;;  %v1906_v30 = vld [vmem:[%s2405_s1 + $0x1c4] sm:$0xf]  ;;  %v1848_v35 = vld [vmem:[%s2403_s6 + $0x2c] sm:$0xf0]  ;;  %v1673_v36 = vor.u32 %v1874_v25, %v1670_v26 }
  0xb7   : > { %1042 = vmatmul.bf16.vlgmr.msra.gmra.mxu1 %v2494_v62  ;;  %1091 = vmatpush.bf16.msrb.mxu0 %v1633_v3  ;;  %v1798_v33 = vld [vmem:[%s2405_s1 + $0x1c8] sm:$0xf0]  ;;  %v1846_v37 = vld [vmem:[%s2403_s6 + $0x24] sm:$0xf]  ;;  %v1558_v38 = vld [vmem:[%s2403_s6 + $0x30] sm:$0xf0]  ;;  %v1609_v44 = vor.u32 %v1858_v28, %v1606_v29 }
  0xb8   : > { %1110 = vmatpush.bf16.msrb.mxu1 %v1697_v58  ;;  %1061 = vmatmul.bf16.vlgmr.msra.gmra.mxu2 %v2496_v63  ;;  %v1888_v39 = vld [vmem:[%s2405_s1 + $0x134] sm:$0xf]  ;;  %v1726_v40 = vld [vmem:[%s2405_s1 + $0x138] sm:$0xf0]  ;;  %v1564_v41 = vld [vmem:[%s2403_s6 + $0x28] sm:$0xf]  ;;  %v1801_v48 = vor.u32 %v1906_v30, %v1798_v33  ;;  %v2546_v59 = vor.u32 %v1846_v37, %v1558_v38 }
  0xb9   : > { %1129 = vmatpush.bf16.msrb.mxu2 %v1761_v53  ;;  %1080 = vmatmul.bf16.vlgmr.msra.gmra.mxu3 %v2500_v2  ;;  %v1872_v42 = vld [vmem:[%s2405_s1 + $0xb4] sm:$0xf]  ;;  %v1662_v43 = vld [vmem:[%s2405_s1 + $0xb8] sm:$0xf0]  ;;  %v1849_v45 = vld [vmem:[%s2403_s6 + $0x34] sm:$0xf0]  ;;  %v1729_v49 = vor.u32 %v1888_v39, %v1726_v40  ;;  %v2541_v53 = vor.u32 %v1848_v35, %v1556_v34 }
  0xba   : > { %1148 = vmatpush.bf16.msrb.mxu3 %v1825_v4  ;;  %v1847_v46 = vld [vmem:[%s2403_s6 + $0x2c] sm:$0xf]  ;;  %v1566_v47 = vld [vmem:[%s2403_s6 + $0x38] sm:$0xf0]  ;;  %v1856_v50 = vld [vmem:[%s2405_s1 + $0x34] sm:$0xf]  ;;  %v1665_v54 = vor.u32 %v1872_v42, %v1662_v43  ;;  %v2548_v60 = vor.u32 %v1849_v45, %v1564_v41 }
  0xbb   : > { %1092 = vmatpush.bf16.msrb.mxu0 %v1625_v15  ;;  %v1598_v51 = vld [vmem:[%s2405_s1 + $0x38] sm:$0xf0]  ;;  %v1904_v52 = vld [vmem:[%s2405_s1 + $0x1b4] sm:$0xf]  ;;  %v1886_v56 = vld [vmem:[%s2405_s1 + $0x124] sm:$0xf]  ;;  %v1569_v1 = vor.u32 %v1847_v46, %v1566_v47 }
  0xbc   : > { %1111 = vmatpush.bf16.msrb.mxu1 %v1689_v9  ;;  %v1790_v55 = vld [vmem:[%s2405_s1 + $0x1b8] sm:$0xf0]  ;;  %v1718_v58 = vld [vmem:[%s2405_s1 + $0x128] sm:$0xf0]  ;;  %v1870_v61 = vld [vmem:[%s2405_s1 + $0xa4] sm:$0xf]  ;;  %v1601_v3 = vor.u32 %v1856_v50, %v1598_v51 }
  0xbd   : > { %1130 = vmatpush.bf16.msrb.mxu2 %v1753_v5  ;;  %v1654_v0 = vld [vmem:[%s2405_s1 + $0xa8] sm:$0xf0]  ;;  %v1793_v4 = vor.u32 %v1904_v52, %v1790_v55  ;;  %v1721_v5 = vor.u32 %v1886_v56, %v1718_v58  ;;  %v1854_v6 = vld [vmem:[%s2405_s1 + $0x24] sm:$0xf]  ;;  %v1884_v11 = vld [vmem:[%s2405_s1 + $0x114] sm:$0xf] }
  0xbe   : > { %1149 = vmatpush.bf16.msrb.mxu3 %v1817_v16  ;;  %v1590_v7 = vld [vmem:[%s2405_s1 + $0x28] sm:$0xf0]  ;;  %v1902_v8 = vld [vmem:[%s2405_s1 + $0x1a4] sm:$0xf]  ;;  %v1657_v9 = vor.u32 %v1870_v61, %v1654_v0  ;;  %v1710_v12 = vld [vmem:[%s2405_s1 + $0x118] sm:$0xf0] }
  0xbf   : > { %1093 = vmatpush.bf16.msrb.mxu0 %v1617_v27  ;;  %v1782_v10 = vld [vmem:[%s2405_s1 + $0x1a8] sm:$0xf0]  ;;  %v1868_v13 = vld [vmem:[%s2405_s1 + $0x94] sm:$0xf]  ;;  %v1646_v14 = vld [vmem:[%s2405_s1 + $0x98] sm:$0xf0]  ;;  %v1593_v15 = vor.u32 %v1854_v6, %v1590_v7 }
  0xc0   : > { %1112 = vmatpush.bf16.msrb.mxu1 %v1681_v21  ;;  %v1785_v16 = vor.u32 %v1902_v8, %v1782_v10  ;;  %v1852_v18 = vld [vmem:[%s2405_s1 + $0x14] sm:$0xf]  ;;  %v1582_v19 = vld [vmem:[%s2405_s1 + $0x18] sm:$0xf0]  ;;  %v1649_v21 = vor.u32 %v1868_v13, %v1646_v14  ;;  %v1882_v23 = vld [vmem:[%s2405_s1 + $0x104] sm:$0xf] }
  0xc1   : > { %1131 = vmatpush.bf16.msrb.mxu2 %v1745_v17  ;;  %v1713_v17 = vor.u32 %v1884_v11, %v1710_v12  ;;  %v1900_v20 = vld [vmem:[%s2405_s1 + $0x194] sm:$0xf]  ;;  %v1774_v22 = vld [vmem:[%s2405_s1 + $0x198] sm:$0xf0]  ;;  %v1702_v24 = vld [vmem:[%s2405_s1 + $0x108] sm:$0xf0]  ;;  %v1585_v27 = vor.u32 %v1852_v18, %v1582_v19 }
  0xc2   : > { %1150 = vmatpush.bf16.msrb.mxu3 %v1809_v31  ;;  %v1866_v25 = vld [vmem:[%s2405_s1 + $0x84] sm:$0xf]  ;;  %v1638_v26 = vld [vmem:[%s2405_s1 + $0x88] sm:$0xf0]  ;;  %v1777_v28 = vor.u32 %v1900_v20, %v1774_v22  ;;  %v1705_v29 = vor.u32 %v1882_v23, %v1702_v24  ;;  %v575_v43 = vld [vmem:[#allocation2 + $0x30] sm:$0xff]  ;;  %p1826_p5 = scmp.ne.s32.totalorder %s2106_s18, 3 }
  0xc3   : > { %1094 = vmatpush.bf16.msrb.mxu0 %v1609_v44  ;;  %v1850_v30 = vld [vmem:[%s2405_s1 + $0x4] sm:$0xf]  ;;  %v1574_v31 = vld [vmem:[%s2405_s1 + $0x8] sm:$0xf0]  ;;  %v578_v24 = vld [vmem:[#allocation2 + $0x10] sm:$0xff] }
  0xc4   : > { %1113 = vmatpush.bf16.msrb.mxu1 %v1673_v36  ;;  %v1898_v33 = vld [vmem:[%s2405_s1 + $0x184] sm:$0xf]  ;;  %v1766_v34 = vld [vmem:[%s2405_s1 + $0x188] sm:$0xf0]  ;;  %v1577_v35 = vor.u32 %v1850_v30, %v1574_v31 }
  0xc5   : > { %1132 = vmatpush.bf16.msrb.mxu2 %v1737_v32  ;;  %v1641_v32 = vor.u32 %v1866_v25, %v1638_v26  ;;  %v1769_v36 = vor.u32 %v1898_v33, %v1766_v34  ;;  %v581_v6 = vld [vmem:[#allocation2 + $0x28] sm:$0xff]  ;;  %v580_v33 = vld [vmem:[#allocation2 + $0x20] sm:$0xff] }
  0xc6   : > { %1151 = vmatpush.bf16.msrb.mxu3 %v1801_v48  ;;  %1028 = vmatmul.bf16.gmra.mxu0 %v2541_v53 }
  0xc7   : > { %1047 = vmatmul.bf16.gmra.mxu1 %v2546_v59  ;;  %1095 = vmatpush.bf16.msrb.mxu0 %v1601_v3 }
  0xc8   : > { %1114 = vmatpush.bf16.msrb.mxu1 %v1665_v54  ;;  %1066 = vmatmul.bf16.gmra.mxu2 %v2548_v60 }
  0xc9   : > { %1133 = vmatpush.bf16.msrb.mxu2 %v1729_v49  ;;  %1085 = vmatmul.bf16.gmra.mxu3 %v1569_v1  ;;  %v577_v49 = vld [vmem:[#allocation2 + $0x18] sm:$0xff] }
  0xca   : > { %1152 = vmatpush.bf16.msrb.mxu3 %v1793_v4 }
  0xcb   : > { %1096 = vmatpush.bf16.msrb.mxu0 %v1593_v15 }
  0xcc   : > { %1115 = vmatpush.bf16.msrb.mxu1 %v1657_v9 }
  0xcd   : > { %1134 = vmatpush.bf16.msrb.mxu2 %v1721_v5 }
  0xce   : > { %1153 = vmatpush.bf16.msrb.mxu3 %v1785_v16 }
  0xcf   : > { %1097 = vmatpush.bf16.msrb.mxu0 %v1585_v27 }
  0xd0   : > { %1116 = vmatpush.bf16.msrb.mxu1 %v1649_v21 }
  0xd1   : > { %1135 = vmatpush.bf16.msrb.mxu2 %v1713_v17  ;;  %v576_v17 = vld [vmem:[#allocation2] sm:$0xff] }
  0xd2   : > { %1154 = vmatpush.bf16.msrb.mxu3 %v1777_v28 }
  0xd3   : > { %1098 = vmatpush.bf16.msrb.mxu0 %v1577_v35 }
  0xd4   : > { %1117 = vmatpush.bf16.msrb.mxu1 %v1641_v32 }
  0xd5   : > { %1136 = vmatpush.bf16.msrb.mxu2 %v1705_v29 }
  0xd6   : > { %1155 = vmatpush.bf16.msrb.mxu3 %v1769_v36  ;;  %1099 = vmatmul.bf16.vlgmr.msrb.gmra.mxu0 %v2489_v57 }
  0xd7   : > { %1118 = vmatmul.bf16.vlgmr.msrb.gmra.mxu1 %v2494_v62 }
  0xd8   : > { %1137 = vmatmul.bf16.vlgmr.msrb.gmra.mxu2 %v2496_v63 }
  0xd9   : > { %1156 = vmatmul.bf16.vlgmr.msrb.gmra.mxu3 %v2500_v2 }
  0xe6   : > { %1104 = vmatmul.bf16.gmra.mxu0 %v2541_v53 }
  0xe7   : > { %1123 = vmatmul.bf16.gmra.mxu1 %v2546_v59  ;;  %v579_v59 = vld [vmem:[#allocation2 + $0x8] sm:$0xff] }
  0xe8   : > { %1142 = vmatmul.bf16.gmra.mxu2 %v2548_v60 }
  0xe9   : > { %1161 = vmatmul.bf16.gmra.mxu3 %v1569_v1 }
 0x133   : > { %v1024_v37 = vpop.f32.mrf.mxu0 }
 0x134   : > { %v1043_v38 = vpop.f32.mrf.mxu1 }
 0x135   : > { %v1044_v39 = vadd.f32 %v1043_v38, %v1024_v37 }
 0x13b   : > { %v1062_v40 = vpop.f32.mrf.mxu2  ;;  %v1026_v57 = vpop.f32.mrf.mxu0 }
 0x13c   : > { %v1063_v41 = vadd.f32 %v1062_v40, %v1044_v39  ;;  %v1081_v42 = vpop.f32.mrf.mxu3  ;;  %v1045_v62 = vpop.f32.mrf.mxu1 }
 0x13d   : > { %v1046_v2 = vadd.f32 %v1045_v62, %v1026_v57 }
 0x13e   : > { %v1082_v44 = vadd.f32 %v1081_v42, %v1063_v41  ;;  %v582_v41 = vld [vmem:[#allocation2 + $0x38] sm:$0xff] }
 0x140   : > { %v1167_v63 = vadd.f32 %v1082_v44, %v575_v43 }
 0x142   : > { %1175 = vst [vmem:[#allocation2 + $0x30] sm:$0xff] %v1167_v63 }
 0x143   : > { %v1064_v45 = vpop.f32.mrf.mxu2  ;;  %v1029_v48 = vpop.f32.mrf.mxu0 }
 0x144   : > { %v1065_v46 = vadd.f32 %v1064_v45, %v1046_v2  ;;  %v1083_v47 = vpop.f32.mrf.mxu3  ;;  %v1048_v50 = vpop.f32.mrf.mxu1 }
 0x145   : > { %v1049_v53 = vadd.f32 %v1048_v50, %v1029_v48 }
 0x146   : > { %v1084_v51 = vadd.f32 %v1083_v47, %v1065_v46 }
 0x148   : > { %v1169_v52 = vadd.f32 %v1084_v51, %v577_v49 }
 0x14a   : > { %1177 = vst [vmem:[#allocation2 + $0x18] sm:$0xff] %v1169_v52 }
 0x14b   : > { %v1067_v54 = vpop.f32.mrf.mxu2  ;;  %v1031_v58 = vpop.f32.mrf.mxu0 }
 0x14c   : > { %v1068_v55 = vadd.f32 %v1067_v54, %v1049_v53  ;;  %v1086_v56 = vpop.f32.mrf.mxu3  ;;  %v1050_v60 = vpop.f32.mrf.mxu1 }
 0x14d   : > { %v1051_v1 = vadd.f32 %v1050_v60, %v1031_v58 }
 0x14e   : > { %v1087_v61 = vadd.f32 %v1086_v56, %v1068_v55 }
 0x150   : > { %v1171_v0 = vadd.f32 %v1087_v61, %v579_v59 }
 0x152   : > { %1179 = vst [vmem:[#allocation2 + $0x8] sm:$0xff] %v1171_v0 }
 0x153   : > { %v1069_v3 = vpop.f32.mrf.mxu2  ;;  %v1100_v7 = vpop.f32.mrf.mxu0 }
 0x154   : > { %v1070_v4 = vadd.f32 %v1069_v3, %v1051_v1  ;;  %v1088_v5 = vpop.f32.mrf.mxu3  ;;  %v1119_v8 = vpop.f32.mrf.mxu1 }
 0x155   : > { %v1120_v11 = vadd.f32 %v1119_v8, %v1100_v7 }
 0x156   : > { %v1089_v9 = vadd.f32 %v1088_v5, %v1070_v4 }
 0x158   : > { %v1173_v10 = vadd.f32 %v1089_v9, %v581_v6 }
 0x15a   : > { %1181 = vst [vmem:[#allocation2 + $0x28] sm:$0xff] %v1173_v10 }
 0x15b   : > { %v1138_v12 = vpop.f32.mrf.mxu2  ;;  %v1102_v15 = vpop.f32.mrf.mxu0 }
 0x15c   : > { %v1157_v13 = vpop.f32.mrf.mxu3  ;;  %v1139_v14 = vadd.f32 %v1138_v12, %v1120_v11  ;;  %v1121_v16 = vpop.f32.mrf.mxu1 }
 0x15d   : > { %v1122_v20 = vadd.f32 %v1121_v16, %v1102_v15 }
 0x15e   : > { %v1158_v18 = vadd.f32 %v1157_v13, %v1139_v14 }
 0x160   : > { %v1168_v19 = vadd.f32 %v1158_v18, %v576_v17 }
 0x162   : > { %1176 = vst [vmem:[#allocation2] sm:$0xff] %v1168_v19 }
 0x163   : > { %v1140_v21 = vpop.f32.mrf.mxu2  ;;  %v1105_v25 = vpop.f32.mrf.mxu0 }
 0x164   : > { %v1159_v22 = vpop.f32.mrf.mxu3  ;;  %v1141_v23 = vadd.f32 %v1140_v21, %v1122_v20  ;;  %v1124_v26 = vpop.f32.mrf.mxu1 }
 0x165   : > { %v1125_v29 = vadd.f32 %v1124_v26, %v1105_v25 }
 0x166   : > { %v1160_v27 = vadd.f32 %v1159_v22, %v1141_v23 }
 0x168   : > { %v1170_v28 = vadd.f32 %v1160_v27, %v578_v24 }
 0x16a   : > { %1178 = vst [vmem:[#allocation2 + $0x10] sm:$0xff] %v1170_v28 }
 0x16b   : > { %v1143_v30 = vpop.f32.mrf.mxu2  ;;  %v1107_v35 = vpop.f32.mrf.mxu0 }
 0x16c   : > { %v1162_v31 = vpop.f32.mrf.mxu3  ;;  %v1144_v32 = vadd.f32 %v1143_v30, %v1125_v29  ;;  %v1126_v36 = vpop.f32.mrf.mxu1 }
 0x16d   : > { %v1127_v38 = vadd.f32 %v1126_v36, %v1107_v35 }
 0x16e   : > { %v1163_v34 = vadd.f32 %v1162_v31, %v1144_v32 }
 0x170   : > { %v1172_v37 = vadd.f32 %v1163_v34, %v580_v33 }
 0x172   : > { %1180 = vst [vmem:[#allocation2 + $0x20] sm:$0xff] %v1172_v37 }
 0x173   : > { %v1145_v39 = vpop.f32.mrf.mxu2 }
 0x174   : > { %v1146_v40 = vadd.f32 %v1145_v39, %v1127_v38  ;;  %v1164_v42 = vpop.f32.mrf.mxu3 }
 0x176   : > { %v1165_v57 = vadd.f32 %v1164_v42, %v1146_v40  ;;  %1186 = sbr.rel (%p1826_p5) target bundleno = 431 (0x1af), region = 101 }
 0x178   : > { %v1174_v43 = vadd.f32 %v1165_v57, %v582_v41 }
 0x17a   : > { %1182 = vst [vmem:[#allocation2 + $0x38] sm:$0xff] %v1174_v43 }
 0x17b   : > { %v1187_v62 = vld [vmem:[#allocation2 + $0x30] sm:$0xff]  ;;  %v1195_v44 = vld [vmem:[%s559_s5] sm:$0x3]  ;;  %v1189_v46 = vld [vmem:[#allocation2 + $0x18] sm:$0xff] }
 0x17c   : > { %v1188_v63 = vld [vmem:[#allocation2] sm:$0xff]  ;;  %v1197_v2 = vperm.slane %v1195_v44, 0  ;;  %v1198_v45 = vperm.slane %v1195_v44, 1  ;;  %v1190_v47 = vld [vmem:[#allocation2 + $0x10] sm:$0xff]  ;;  %v1191_v48 = vld [vmem:[#allocation2 + $0x8] sm:$0xff] }
 0x17d   : > { %v1192_v49 = vld [vmem:[#allocation2 + $0x20] sm:$0xff]  ;;  %v1193_v0 = vld [vmem:[#allocation2 + $0x28] sm:$0xff] }
 0x17e   : > { %v1201_v50 = vadd.f32 %v1197_v2, %v1187_v62  ;;  %v1202_v51 = vadd.f32 %v1198_v45, %v1188_v63  ;;  %v1203_v52 = vadd.f32 %v1197_v2, %v1189_v46  ;;  %v1204_v53 = vadd.f32 %v1198_v45, %v1190_v47 }
 0x17f   : > { %v1205_v54 = vadd.f32 %v1197_v2, %v1191_v48  ;;  %v1206_v55 = vadd.f32 %v1198_v45, %v1192_v49  ;;  %v1207_v4 = vadd.f32 %v1197_v2, %v1193_v0 }
 0x180   : > { %v1827_v56 = vmul.f32 -1.442695, %v1201_v50  ;;  %v1828_v58 = vmul.f32 -1.442695, %v1202_v51  ;;  %v1829_v59 = vmul.f32 -1.442695, %v1203_v52 }
 0x181   : > { %v1830_v60 = vmul.f32 -1.442695, %v1204_v53  ;;  %v1831_v61 = vmul.f32 -1.442695, %v1205_v54  ;;  %v1832_v1 = vmul.f32 -1.442695, %v1206_v55 }
 0x182   : > { %2004 = vpow2.f32 %v1827_v56  ;;  %v1194_v3 = vld [vmem:[#allocation2 + $0x38] sm:$0xff]  ;;  %v1833_v9 = vmul.f32 -1.442695, %v1207_v4 }
 0x183   : > { %2006 = vpow2.f32 %v1828_v58  ;;  %v1208_v5 = vadd.f32 %v1198_v45, %v1194_v3 }
 0x184   : > { %2008 = vpow2.f32 %v1829_v59 }
 0x185   : > { %2010 = vpow2.f32 %v1830_v60  ;;  %v1834_v12 = vmul.f32 -1.442695, %v1208_v5 }
 0x186   : > { %2012 = vpow2.f32 %v1831_v61 }
 0x187   : > { %2014 = vpow2.f32 %v1832_v1 }
 0x188   : > { %v2005_v6 = vpop.eup %2004 }
 0x189   : > { %v2007_v7 = vpop.eup %2006  ;;  %v1233_v8 = vadd.f32 1.0, %v2005_v6 }
 0x18a   : > { %v2009_v10 = vpop.eup %2008  ;;  %v2588_v11 = vadd.f32 1.0, %v2007_v7 }
 0x18b   : > { %v2011_v13 = vpop.eup %2010  ;;  %2016 = vrcp.f32 %v1233_v8  ;;  %v1250_v15 = vand.u32 2147483647, %v1233_v8  ;;  %v1252_v17 = vand.u32 2147483648, %v1233_v8  ;;  %v2591_v18 = vadd.f32 1.0, %v2009_v10 }
 0x18c   : > { %v2013_v14 = vpop.eup %2012  ;;  %2018 = vrcp.f32 %v2588_v11  ;;  %v2593_v19 = vadd.f32 1.0, %v2011_v13  ;;  %v1265_v20 = vand.u32 2147483647, %v2588_v11  ;;  %v1267_v21 = vand.u32 2147483648, %v2588_v11 }
 0x18d   : > { %v2015_v16 = vpop.eup %2014  ;;  %2020 = vpow2.f32 %v1833_v9  ;;  %v2597_v22 = vadd.f32 1.0, %v2013_v14  ;;  %vm1246_vm0 = vweird.f32 %v1233_v8  ;;  %vm1261_vm1 = vweird.f32 %v2588_v11 }
 0x18e   : > { %2022 = vpow2.f32 %v1834_v12  ;;  %v1282_v23 = vand.u32 2147483648, %v2591_v18  ;;  %vm2602_vm2 = vcmp.eq.f32.partialorder %v1250_v15, 8.507059e+37  ;;  %v1280_v25 = vand.u32 2147483647, %v2591_v18 }
 0x18f   : > { %2024 = vrcp.f32 %v2591_v18  ;;  %v2608_v26 = vadd.f32 1.0, %v2015_v16  ;;  %v1253_v28 = vor.u32 1.1754944e-38, %v1252_v17  ;;  %v1295_v29 = vand.u32 2147483647, %v2593_v19 }
 0x190   : > { %2026 = vrcp.f32 %v2593_v19  ;;  %v1297_v30 = vand.u32 2147483648, %v2593_v19  ;;  %vm2613_vm3 = vcmp.eq.f32.partialorder %v1265_v20, 8.507059e+37  ;;  %v1268_v34 = vor.u32 1.1754944e-38, %v1267_v21 }
 0x191   : > { %v2017_v27 = vpop.eup %2016  ;;  %2028 = vrcp.f32 %v2597_v22  ;;  %vm1276_vm4 = vweird.f32 %v2591_v18  ;;  %v1283_v37 = vor.u32 1.1754944e-38, %v1282_v23  ;;  %vm1291_vm5 = vweird.f32 %v2593_v19 }
 0x192   : > { %v2019_v31 = vpop.eup %2018  ;;  %v1242_v32 = vmul.f32 %v2017_v27, %v1233_v8  ;;  %v1312_v38 = vand.u32 2147483648, %v2597_v22  ;;  %vm1247_vm6 = vweird.f32 %v2017_v27  ;;  %vm2621_vm7 = vcmp.eq.f32.partialorder %v1280_v25, 8.507059e+37 }
 0x193   : > { %v2021_v35 = vpop.eup %2020  ;;  %v1257_v36 = vmul.f32 %v2019_v31, %v2588_v11  ;;  %vm1306_vm8 = vweird.f32 %v2597_v22  ;;  %2030 = vrcp.f32 %v2608_v26  ;;  %vm1262_vm9 = vweird.f32 %v2019_v31  ;;  %vm2637_vm12 = vmor %vm1246_vm0, %vm1247_vm6 }
 0x194   : > { %v2023_v39 = vpop.eup %2022  ;;  %v1243_v40 = vsub.f32 1.0, %v1242_v32  ;;  %vm2627_vm10 = vcmp.eq.f32.partialorder %v1295_v29, 8.507059e+37  ;;  %v1298_v62 = vor.u32 1.1754944e-38, %v1297_v30  ;;  %v1310_v44 = vand.u32 2147483647, %v2597_v22  ;;  %vm2645_vm14 = vmor %vm1261_vm1, %vm1262_vm9 }
 0x195   : > { %v2025_v42 = vpop.eup %2024  ;;  %v1258_v57 = vsub.f32 1.0, %v1257_v36  ;;  %vm1321_vm11 = vweird.f32 %v2608_v26  ;;  %v1325_v46 = vand.u32 2147483647, %v2608_v26  ;;  %v1313_v51 = vor.u32 1.1754944e-38, %v1312_v38 }
 0x196   : > { %v2027_v63 = vpop.eup %2026  ;;  %v1244_v2 = vmul.f32 %v2017_v27, %v1243_v40  ;;  %v1272_v45 = vmul.f32 %v2025_v42, %v2591_v18  ;;  %vm1277_vm13 = vweird.f32 %v2025_v42  ;;  %v1239_v59 = vadd.f32 1.0, %v2021_v35 }
 0x197   : > { %v2029_v47 = vpop.eup %2028  ;;  %v1259_v49 = vmul.f32 %v2019_v31, %v1258_v57  ;;  %v1287_v50 = vmul.f32 %v2027_v63, %v2593_v19  ;;  %vm1292_vm15 = vweird.f32 %v2027_v63  ;;  %v1240_v3 = vadd.f32 1.0, %v2023_v39  ;;  %vm2659_vm1 = vmor %vm1276_vm4, %vm1277_vm13 }
 0x198   : > { %v1245_v52 = vadd.f32 %v2017_v27, %v1244_v2  ;;  %v1273_v54 = vsub.f32 1.0, %v1272_v45  ;;  %v1302_v55 = vmul.f32 %v2029_v47, %v2597_v22  ;;  %vm1307_vm0 = vweird.f32 %v2029_v47 }
 0x199   : > { %v1260_v56 = vadd.f32 %v2019_v31, %v1259_v49  ;;  %v1288_v58 = vsub.f32 1.0, %v1287_v50  ;;  %v2031_v60 = vpop.eup %2030  ;;  %v1327_v13 = vand.u32 2147483648, %v2608_v26  ;;  %vm2679_vm4 = vmor %vm1306_vm8, %vm1307_vm0  ;;  %2032 = vrcp.f32 %v1239_v59 }
 0x19a   : > { %v1249_v61 = vsel %vm2637_vm12, %v2017_v27, %v1245_v52  ;;  %v1274_v0 = vmul.f32 %v2025_v42, %v1273_v54  ;;  %v1303_v1 = vsub.f32 1.0, %v1302_v55  ;;  %v1317_v8 = vmul.f32 %v2031_v60, %v2608_v26 }
 0x19b   : > { %v1254_v4 = vsel %vm2602_vm2, %v1253_v28, %v1249_v61  ;;  %v1264_v5 = vsel %vm2645_vm14, %v2019_v31, %v1260_v56  ;;  %v1289_v7 = vmul.f32 %v2027_v63, %v1288_v58  ;;  %vm2670_vm2 = vmor %vm1291_vm5, %vm1292_vm15  ;;  %vm1311_vm5 = vcmp.eq.f32.partialorder %v1310_v44, 8.507059e+37 }
 0x19c   : > { %1361 = vst [vmem:[%s2407_s25] sm:$0xff] %v1254_v4  ;;  %v1269_v9 = vsel %vm2613_vm3, %v1268_v34, %v1264_v5  ;;  %v1275_v10 = vadd.f32 %v2025_v42, %v1274_v0  ;;  %v1304_v12 = vmul.f32 %v2029_v47, %v1303_v1  ;;  %v1318_v16 = vsub.f32 1.0, %v1317_v8 }
 0x19d   : > { %1362 = vst [vmem:[%s2407_s25 + $0x8] sm:$0xff] %v1269_v9  ;;  %v1290_v14 = vadd.f32 %v2027_v63, %v1289_v7  ;;  %vm1322_vm3 = vweird.f32 %v2031_v60  ;;  %2034 = vrcp.f32 %v1240_v3  ;;  %v1328_v24 = vor.u32 1.1754944e-38, %v1327_v13 }
 0x19e   : > { %v1279_v17 = vsel %vm2659_vm1, %v2025_v42, %v1275_v10  ;;  %v1305_v18 = vadd.f32 %v2029_v47, %v1304_v12  ;;  %v1319_v21 = vmul.f32 %v2031_v60, %v1318_v16  ;;  %vm1323_vm6 = vmor %vm1321_vm11, %vm1322_vm3  ;;  %vm1336_vm8 = vweird.f32 %v1239_v59 }
 0x19f   : > { %v1284_v19 = vsel %vm2621_vm7, %v1283_v37, %v1279_v17  ;;  %v1294_v20 = vsel %vm2670_vm2, %v2027_v63, %v1290_v14  ;;  %vm1326_vm7 = vcmp.eq.f32.partialorder %v1325_v46, 8.507059e+37  ;;  %v2033_v28 = vpop.eup %2032  ;;  %v1342_v33 = vand.u32 2147483648, %v1239_v59 }
 0x1a0   : > { %1363 = vst [vmem:[%s2407_s25 + $0x10] sm:$0xff] %v1284_v19  ;;  %v1299_v22 = vsel %vm2627_vm10, %v1298_v62, %v1294_v20  ;;  %v1309_v23 = vsel %vm2679_vm4, %v2029_v47, %v1305_v18  ;;  %v1320_v27 = vadd.f32 %v2031_v60, %v1319_v21  ;;  %v1332_v31 = vmul.f32 %v2033_v28, %v1239_v59 }
 0x1a1   : > { %1364 = vst [vmem:[%s2407_s25 + $0x18] sm:$0xff] %v1299_v22  ;;  %v1314_v25 = vsel %vm1311_vm5, %v1313_v51, %v1309_v23  ;;  %vm1337_vm9 = vweird.f32 %v2033_v28  ;;  %v1340_v35 = vand.u32 2147483647, %v1239_v59  ;;  %vm1351_vm10 = vweird.f32 %v1240_v3 }
 0x1a2   : > { %1365 = vst [vmem:[%s2407_s25 + $0x20] sm:$0xff] %v1314_v25  ;;  %v1324_v29 = vsel %vm1323_vm6, %v2031_v60, %v1320_v27  ;;  %v1333_v34 = vsub.f32 1.0, %v1332_v31  ;;  %v1357_v26 = vand.u32 2147483648, %v1240_v3  ;;  %v1355_v39 = vand.u32 2147483647, %v1240_v3  ;;  %vm1338_vm12 = vmor %vm1336_vm8, %vm1337_vm9 }
 0x1a3   : > { %v1329_v30 = vsel %vm1326_vm7, %v1328_v24, %v1324_v29  ;;  %v2035_v32 = vpop.eup %2034  ;;  %v1343_v40 = vor.u32 1.1754944e-38, %v1342_v33  ;;  %vm1341_vm13 = vcmp.eq.f32.partialorder %v1340_v35, 8.507059e+37 }
 0x1a4   : > { %1366 = vst [vmem:[%s2407_s25 + $0x28] sm:$0xff] %v1329_v30  ;;  %v1347_v36 = vmul.f32 %v2035_v32, %v1240_v3  ;;  %v1334_v37 = vmul.f32 %v2033_v28, %v1333_v34  ;;  %vm1352_vm11 = vweird.f32 %v2035_v32  ;;  %v1358_v57 = vor.u32 1.1754944e-38, %v1357_v26 }
 0x1a5   : > { %vm1353_vm14 = vmor %vm1351_vm10, %vm1352_vm11  ;;  %vm1356_vm15 = vcmp.eq.f32.partialorder %v1355_v39, 8.507059e+37 }
 0x1a6   : > { %v1348_v38 = vsub.f32 1.0, %v1347_v36  ;;  %v1335_v41 = vadd.f32 %v2033_v28, %v1334_v37 }
 0x1a8   : > { %v1349_v42 = vmul.f32 %v2035_v32, %v1348_v38  ;;  %v1339_v43 = vsel %vm1338_vm12, %v2033_v28, %v1335_v41 }
 0x1a9   : > { %v1344_v44 = vsel %vm1341_vm13, %v1343_v40, %v1339_v43 }
 0x1aa   : > { %v1350_v62 = vadd.f32 %v2035_v32, %v1349_v42  ;;  %1367 = vst [vmem:[%s2407_s25 + $0x30] sm:$0xff] %v1344_v44 }
 0x1ac   : > { %v1354_v63 = vsel %vm1353_vm14, %v2035_v32, %v1350_v62 }
 0x1ad   : > { %v1359_v2 = vsel %vm1356_vm15, %v1358_v57, %v1354_v63 }
 0x1ae   : > { %1368 = vst [vmem:[%s2407_s25 + $0x38] sm:$0xff] %v1359_v2 }
 0x1af PF: > { %1375 = sbr.rel (!%p2239_p12) target bundleno = 441 (0x1b9), region = 105  ;;  %s1914_s14 = sshll.u32 (%p2239_p12), %s2110_s19, 4  ;;  %v1394_v45 = vld [vmem:[%s2407_s25] sm:$0xff] (%p2239_p12)  ;;  %v1396_v46 = vld [vmem:[%s2407_s25 + $0x8] sm:$0xff] (%p2239_p12)  ;;  %v1398_v47 = vld [vmem:[%s2407_s25 + $0x10] sm:$0xff] (%p2239_p12) }
 0x1b0   : > { %s1381_s0 = scalar_lea.vmem (%p2239_p12), %s2751_s3, %s1914_s14  ;;  %v1400_v48 = vld [vmem:[%s2407_s25 + $0x18] sm:$0xff] (%p2239_p12)  ;;  %v1402_v49 = vld [vmem:[%s2407_s25 + $0x20] sm:$0xff] (%p2239_p12)  ;;  %v1404_v50 = vld [vmem:[%s2407_s25 + $0x28] sm:$0xff] (%p2239_p12) }
 0x1b1   : > { %1395 = vst [vmem:[%s1381_s0] sm:$0xff] (%p2239_p12), %v1394_v45  ;;  %v1406_v51 = vld [vmem:[%s2407_s25 + $0x30] sm:$0xff] (%p2239_p12) }
 0x1b2   : > { %1397 = vst [vmem:[%s1381_s0 + $0x8] sm:$0xff] (%p2239_p12), %v1396_v46 }
 0x1b3   : > { %1399 = vst [vmem:[%s1381_s0 + $0x40] sm:$0xff] (%p2239_p12), %v1398_v47 }
 0x1b4   : > { %1401 = vst [vmem:[%s1381_s0 + $0x48] sm:$0xff] %v1400_v48 }
 0x1b5   : > { %1403 = vst [vmem:[%s1381_s0 + $0x80] sm:$0xff] %v1402_v49  ;;  %v1408_v52 = vld [vmem:[%s2407_s25 + $0x38] sm:$0xff] }
 0x1b6   : > { %1405 = vst [vmem:[%s1381_s0 + $0x88] sm:$0xff] %v1404_v50 }
 0x1b7   : > { %1407 = vst [vmem:[%s1381_s0 + $0xc0] sm:$0xff] %v1406_v51 }
 0x1b8   : > { %1409 = vst [vmem:[%s1381_s0 + $0xc8] sm:$0xff] %v1408_v52 }
 0x1b9 PF: > { %s13_s22 = sadd.s32 1, %s2122_s22   ;;  %s2779_s10 = sld [smem:[#allocation6_spill]] }
 0x1ba   : > { %p10_p6 = scmp.ge.s32.totalorder %s13_s22, 18   ;;  %s2780_s12 = smov %s2086_s13 }
 0x1bb   : > { %s2781_s13 = smov %s2237_s9  ;;  %s2782_s14 = smov %s2094_s15 }
 0x1bc   : > { %s2783_s15 = smov %s2234_s8  ;;  %s2784_s16 = smov %s2102_s17 }
 0x1bd   : > { %s2785_s17 = smov %s2220_s30  ;;  %s2786_s18 = smov %s2114_s20 }
 0x1be   : > { %s2787_s19 = smov %s2118_s21  ;;  %s2788_s20 = smov %s2791_s24 }
 0x1bf   : > { %s2789_s21 = smov %s2779_s10  ;;  %12 = sbr.rel (!%p10_p6) target bundleno = 9 (0x9), region = 170 }

// kernel: dummy_model_forward.14
= control target key start
LH: loop header
LB: loop body
LE: loop exit
PB: predicated region body
PF: predicated region fallthrough
CT: control target
= control target key end

     0   :  { %s1540_s12 = smov 0   ;;  %s1542_s13 = smov 0   ;;  %s1806_s0 = inlined_call_operand.vmem [shape: bf16[16,4096], index: 0, kind: input, shape index: {}]   ;;  %s1807_s1 = inlined_call_operand.vmem [shape: bf16[4096,256], index: 1, kind: input, shape index: {}]   ;;  %s1808_s2 = inlined_call_operand.vmem [shape: f32[1,256], index: 2, kind: input, shape index: {}]   ;;  %s1809_s3 = inlined_call_operand.vmem [shape: f32[16,256], index: 3, kind: output, shape index: {}]  }
   0x1   :  { %s1544_s14 = smov 0   ;;  %s1546_s15 = smov 0  }
   0x2   :  { %s1548_s16 = smov 0  }
   0x3 LB: > { %s25_s17 = sadd.s32 1, %s1513_s15  ;;  %p48_p1 = scmp.ne.s32.totalorder %s1505_s13, %s1501_s12  ;;  %s1517_s16 = sphi %s1548_s16, %s13_s16   ;;  %s1513_s15 = sphi %s1546_s15, %s1821_s15   ;;  %s1509_s14 = sphi %s1544_s14, %s1820_s14   ;;  %s1505_s13 = sphi %s1542_s13, %s1819_s13   ;;  %s1501_s12 = sphi %s1540_s12, %s1818_s12  }
   0x4   : > { %p26_p0 = scmp.ge.s32.totalorder %s25_s17, 8  ;;  %p49_p2 = scmp.eq.s32.totalorder %s1517_s16, 0 }
   0x5   : > { %s41_s19 = sadd.s32 1, %s1505_s13  ;;  %p1061_p5 = scmp.ge.s32.totalorder %s1517_s16, 8 }
   0x6   : > { %s1823_s17 = smov (%p26_p0, %s25_s17), 0  ;;  %p50_p3 = por %p49_p2, %p48_p1 }
   0x7   : > { %s37_s18 = ssub.s32 %s1513_s15, %s1823_s17  ;;  %164 = sbr.rel (%p1061_p5) target bundleno = 20 (0x14), region = 20 }
   0x8   : > { %p39_p4 = scmp.eq.s32.totalorder %s37_s18, 0 }
   0xa   : > { %s1575_s20 = scalar_select %p39_p4, %s1505_s13, %s41_s19  }
   0xc   : > { %167 = sbr.rel (!%p50_p3) target bundleno = 20 (0x14), region = 24  ;;  %s169_s21 = sand.u32 (%p50_p3), 1, %s1505_s13  }
   0xd   : > { %s1352_s22 = sshll.u32 (%p50_p3), %s1513_s15, 4  ;;  %s1062_s23 = sshll.u32 (%p50_p3), %s169_s21, 5 }
   0xe   : > { %s177_s26 = scalar_lea.vmem (%p50_p3), %s1806_s0, %s1352_s22  ;;  %s171_s27 = scalar_lea.vmem (%p50_p3), [#allocation3], %s1062_s23 }
   0xf   : > { %v190_v0 = vld [vmem:[%s177_s26] sm:$0xff] (%p50_p3)  ;;  %v192_v1 = vld [vmem:[%s177_s26 + $0x8] sm:$0xff] (%p50_p3) }
  0x10   : > { %v194_v2 = vld [vmem:[%s177_s26 + $0x80] sm:$0xff] (%p50_p3)  ;;  %191 = vst [vmem:[%s171_s27] sm:$0xff] (%p50_p3), %v190_v0  ;;  %v196_v3 = vld [vmem:[%s177_s26 + $0x88] sm:$0xff] (%p50_p3) }
  0x11   : > { %193 = vst [vmem:[%s171_s27 + $0x8] sm:$0xff] %v192_v1 }
  0x12   : > { %195 = vst [vmem:[%s171_s27 + $0x10] sm:$0xff] %v194_v2 }
  0x13   : > { %197 = vst [vmem:[%s171_s27 + $0x18] sm:$0xff] %v196_v3 }
  0x14 PF: > { %p1065_p6 = scmp.ge.s32.totalorder %s1517_s16, 1  ;;  %p217_p7 = scmp.lt.s32.totalorder %s1517_s16, 9 }
  0x16   : > { %p218_p8 = pnand %p1065_p6, %p217_p7 }
  0x17   : > { %s224_s28 = sand.u32 (!%p218_p8), 1, %s1501_s12   ;;  %s1067_s29 = sshll.u32 (!%p218_p8), %s1509_s14, 6 }
  0x18   : > { %221 = sbr.rel (%p218_p8) target bundleno = 292 (0x124), region = 51  ;;  %s1066_s30 = sshll.u32 (!%p218_p8), %s224_s28, 5 }
  0x19   : > { %p270_p9 = scmp.lt.s32.totalorder (!%p218_p8), %s1067_s29, 511  ;;  %s1592_s8 = scalar_lea.vmem (!%p218_p8), [#allocation3], %s1066_s30 }
  0x1a   : > { %p1070_p10 = scmp.ne.s32.totalorder (!%p218_p8), %s1509_s14, 0 }
  0x1d   : > { %s1825_s29 = smov (!%p270_p9, %s1067_s29), 511  ;;  %300 = sbr.rel (%p1070_p10) target bundleno = 39 (0x27), region = 59 }
  0x1e   : > { %s1353_s4 = sshll.u32 %s1825_s29, 3 }
  0x1f   : > { %s1590_s7 = scalar_lea.vmem %s1807_s1, %s1353_s4 }
  0x22   : > { %v1519_v4 = vmov 0.0  }
  0x23   : > { %301 = vst [vmem:[#allocation2 + $0x10] sm:$0xff] %v1519_v4 }
  0x24   : > { %302 = vst [vmem:[#allocation2] sm:$0xff] %v1519_v4 }
  0x25   : > { %303 = vst [vmem:[#allocation2 + $0x18] sm:$0xff] %v1519_v4 }
  0x26   : > { %304 = vst [vmem:[#allocation2 + $0x8] sm:$0xff] %v1519_v4 }
  0x27 PF: > { %v1145_v5 = vld [vmem:[%s1590_s7 + $0x70] sm:$0xf]  ;;  %v1373_v6 = vld [vmem:[%s1590_s7 + $0x74] sm:$0xf0]  ;;  %v1137_v16 = vld [vmem:[%s1590_s7 + $0x60] sm:$0xf] }
  0x28   : > { %v1209_v7 = vld [vmem:[%s1590_s7 + $0xf0] sm:$0xf]  ;;  %v1146_v8 = vor.u32 %v1373_v6, %v1145_v5  ;;  %v1389_v9 = vld [vmem:[%s1590_s7 + $0xf4] sm:$0xf0]  ;;  %v1371_v18 = vld [vmem:[%s1590_s7 + $0x64] sm:$0xf0] }
  0x29   : > { %v1273_v10 = vld [vmem:[%s1590_s7 + $0x170] sm:$0xf]  ;;  %v1405_v11 = vld [vmem:[%s1590_s7 + $0x174] sm:$0xf0]  ;;  %v1210_v12 = vor.u32 %v1389_v9, %v1209_v7  ;;  %v1201_v19 = vld [vmem:[%s1590_s7 + $0xe0] sm:$0xf]  ;;  %v1138_v21 = vor.u32 %v1371_v18, %v1137_v16 }
  0x2a   : > { %v1274_v13 = vor.u32 %v1405_v11, %v1273_v10  ;;  %v1337_v14 = vld [vmem:[%s1590_s7 + $0x1f0] sm:$0xf]  ;;  %v1421_v15 = vld [vmem:[%s1590_s7 + $0x1f4] sm:$0xf0]  ;;  %717 = vmatpush.bf16.msra.mxu0 %v1146_v8  ;;  %v1387_v20 = vld [vmem:[%s1590_s7 + $0xe4] sm:$0xf0] }
  0x2b   : > { %v1338_v17 = vor.u32 %v1421_v15, %v1337_v14  ;;  %731 = vmatpush.bf16.msra.mxu1 %v1210_v12  ;;  %v1202_v22 = vor.u32 %v1387_v20, %v1201_v19  ;;  %v1265_v23 = vld [vmem:[%s1590_s7 + $0x160] sm:$0xf]  ;;  %v1403_v24 = vld [vmem:[%s1590_s7 + $0x164] sm:$0xf0]  ;;  %v1129_v28 = vld [vmem:[%s1590_s7 + $0x50] sm:$0xf] }
  0x2c   : > { %745 = vmatpush.bf16.msra.mxu2 %v1274_v13  ;;  %v1329_v25 = vld [vmem:[%s1590_s7 + $0x1e0] sm:$0xf]  ;;  %v1266_v26 = vor.u32 %v1403_v24, %v1265_v23  ;;  %v1419_v27 = vld [vmem:[%s1590_s7 + $0x1e4] sm:$0xf0]  ;;  %v1369_v29 = vld [vmem:[%s1590_s7 + $0x54] sm:$0xf0] }
  0x2d   : > { %759 = vmatpush.bf16.msra.mxu3 %v1338_v17  ;;  %v1330_v30 = vor.u32 %v1419_v27, %v1329_v25  ;;  %v1193_v31 = vld [vmem:[%s1590_s7 + $0xd0] sm:$0xf]  ;;  %v1385_v32 = vld [vmem:[%s1590_s7 + $0xd4] sm:$0xf0]  ;;  %v1130_v34 = vor.u32 %v1369_v29, %v1129_v28  ;;  %v1121_v40 = vld [vmem:[%s1590_s7 + $0x40] sm:$0xf] }
  0x2e   : > { %v1257_v33 = vld [vmem:[%s1590_s7 + $0x150] sm:$0xf]  ;;  %718 = vmatpush.bf16.msra.mxu0 %v1138_v21  ;;  %v1401_v35 = vld [vmem:[%s1590_s7 + $0x154] sm:$0xf0]  ;;  %v1194_v38 = vor.u32 %v1385_v32, %v1193_v31  ;;  %v1367_v41 = vld [vmem:[%s1590_s7 + $0x44] sm:$0xf0] }
  0x2f   : > { %v1321_v36 = vld [vmem:[%s1590_s7 + $0x1d0] sm:$0xf]  ;;  %v1417_v37 = vld [vmem:[%s1590_s7 + $0x1d4] sm:$0xf0]  ;;  %732 = vmatpush.bf16.msra.mxu1 %v1202_v22  ;;  %v1258_v39 = vor.u32 %v1401_v35, %v1257_v33  ;;  %v1185_v42 = vld [vmem:[%s1590_s7 + $0xc0] sm:$0xf]  ;;  %v1122_v49 = vor.u32 %v1367_v41, %v1121_v40 }
  0x30   : > { %746 = vmatpush.bf16.msra.mxu2 %v1266_v26  ;;  %v1322_v43 = vor.u32 %v1417_v37, %v1321_v36  ;;  %v1383_v44 = vld [vmem:[%s1590_s7 + $0xc4] sm:$0xf0]  ;;  %v1249_v45 = vld [vmem:[%s1590_s7 + $0x140] sm:$0xf]  ;;  %v1113_v52 = vld [vmem:[%s1590_s7 + $0x30] sm:$0xf] }
  0x31   : > { %760 = vmatpush.bf16.msra.mxu3 %v1330_v30  ;;  %v1399_v46 = vld [vmem:[%s1590_s7 + $0x144] sm:$0xf0]  ;;  %v1313_v47 = vld [vmem:[%s1590_s7 + $0x1c0] sm:$0xf]  ;;  %v1186_v50 = vor.u32 %v1383_v44, %v1185_v42  ;;  %v1365_v53 = vld [vmem:[%s1590_s7 + $0x34] sm:$0xf0] }
  0x32   : > { %v1415_v48 = vld [vmem:[%s1590_s7 + $0x1c4] sm:$0xf0]  ;;  %719 = vmatpush.bf16.msra.mxu0 %v1130_v34  ;;  %v1250_v51 = vor.u32 %v1399_v46, %v1249_v45  ;;  %v1177_v54 = vld [vmem:[%s1590_s7 + $0xb0] sm:$0xf]  ;;  %v1381_v56 = vld [vmem:[%s1590_s7 + $0xb4] sm:$0xf0]  ;;  %v1114_v61 = vor.u32 %v1365_v53, %v1113_v52 }
  0x33   : > { %733 = vmatpush.bf16.msra.mxu1 %v1194_v38  ;;  %v1314_v55 = vor.u32 %v1415_v48, %v1313_v47  ;;  %v1241_v57 = vld [vmem:[%s1590_s7 + $0x130] sm:$0xf]  ;;  %v1397_v58 = vld [vmem:[%s1590_s7 + $0x134] sm:$0xf0]  ;;  %v1178_v62 = vor.u32 %v1381_v56, %v1177_v54  ;;  %v1105_v0 = vld [vmem:[%s1590_s7 + $0x20] sm:$0xf] }
  0x34   : > { %747 = vmatpush.bf16.msra.mxu2 %v1258_v39  ;;  %v1305_v59 = vld [vmem:[%s1590_s7 + $0x1b0] sm:$0xf]  ;;  %v1413_v60 = vld [vmem:[%s1590_s7 + $0x1b4] sm:$0xf0]  ;;  %v1242_v63 = vor.u32 %v1397_v58, %v1241_v57  ;;  %v1363_v1 = vld [vmem:[%s1590_s7 + $0x24] sm:$0xf0] }
  0x35   : > { %761 = vmatpush.bf16.msra.mxu3 %v1322_v43  ;;  %v1169_v2 = vld [vmem:[%s1590_s7 + $0xa0] sm:$0xf]  ;;  %v1306_v3 = vor.u32 %v1413_v60, %v1305_v59  ;;  %v1379_v4 = vld [vmem:[%s1590_s7 + $0xa4] sm:$0xf0]  ;;  %v1106_v9 = vor.u32 %v1363_v1, %v1105_v0  ;;  %v1097_v12 = vld [vmem:[%s1590_s7 + $0x10] sm:$0xf] }
  0x36   : > { %720 = vmatpush.bf16.msra.mxu0 %v1122_v49  ;;  %v1233_v5 = vld [vmem:[%s1590_s7 + $0x120] sm:$0xf]  ;;  %v1395_v6 = vld [vmem:[%s1590_s7 + $0x124] sm:$0xf0]  ;;  %v1170_v10 = vor.u32 %v1379_v4, %v1169_v2  ;;  %v1361_v13 = vld [vmem:[%s1590_s7 + $0x14] sm:$0xf0] }
  0x37   : > { %734 = vmatpush.bf16.msra.mxu1 %v1186_v50  ;;  %v1297_v7 = vld [vmem:[%s1590_s7 + $0x1a0] sm:$0xf]  ;;  %v1411_v8 = vld [vmem:[%s1590_s7 + $0x1a4] sm:$0xf0]  ;;  %v1234_v11 = vor.u32 %v1395_v6, %v1233_v5  ;;  %v1161_v14 = vld [vmem:[%s1590_s7 + $0x90] sm:$0xf]  ;;  %v1098_v22 = vor.u32 %v1361_v13, %v1097_v12 }
  0x38   : > { %748 = vmatpush.bf16.msra.mxu2 %v1250_v51  ;;  %v1298_v15 = vor.u32 %v1411_v8, %v1297_v7  ;;  %v1377_v16 = vld [vmem:[%s1590_s7 + $0x94] sm:$0xf0]  ;;  %v1225_v17 = vld [vmem:[%s1590_s7 + $0x110] sm:$0xf]  ;;  %v1089_v21 = vld [vmem:[%s1590_s7] sm:$0xf] }
  0x39   : > { %762 = vmatpush.bf16.msra.mxu3 %v1314_v55  ;;  %v1393_v18 = vld [vmem:[%s1590_s7 + $0x114] sm:$0xf0]  ;;  %v1289_v19 = vld [vmem:[%s1590_s7 + $0x190] sm:$0xf]  ;;  %v1359_v23 = vld [vmem:[%s1590_s7 + $0x4] sm:$0xf0]  ;;  %v1162_v26 = vor.u32 %v1377_v16, %v1161_v14 }
  0x3a   : > { %721 = vmatpush.bf16.msra.mxu0 %v1114_v61  ;;  %v1409_v20 = vld [vmem:[%s1590_s7 + $0x194] sm:$0xf0]  ;;  %v1153_v24 = vld [vmem:[%s1590_s7 + $0x80] sm:$0xf]  ;;  %v1375_v25 = vld [vmem:[%s1590_s7 + $0x84] sm:$0xf0]  ;;  %v1226_v27 = vor.u32 %v1393_v18, %v1225_v17  ;;  %v1090_v38 = vor.u32 %v1359_v23, %v1089_v21 }
  0x3b   : > { %735 = vmatpush.bf16.msra.mxu1 %v1178_v62  ;;  %v1217_v28 = vld [vmem:[%s1590_s7 + $0x100] sm:$0xf]  ;;  %v1391_v29 = vld [vmem:[%s1590_s7 + $0x104] sm:$0xf0]  ;;  %v1290_v31 = vor.u32 %v1409_v20, %v1289_v19  ;;  %v1372_v33 = vld [vmem:[%s1590_s7 + $0x74] sm:$0xf]  ;;  %v1154_v42 = vor.u32 %v1375_v25, %v1153_v24 }
  0x3c   : > { %749 = vmatpush.bf16.msra.mxu2 %v1242_v63  ;;  %v1281_v30 = vld [vmem:[%s1590_s7 + $0x180] sm:$0xf]  ;;  %v1407_v32 = vld [vmem:[%s1590_s7 + $0x184] sm:$0xf0]  ;;  %v1147_v34 = vld [vmem:[%s1590_s7 + $0x78] sm:$0xf0]  ;;  %v1218_v43 = vor.u32 %v1391_v29, %v1217_v28 }
  0x3d   : > { %763 = vmatpush.bf16.msra.mxu3 %v1306_v3  ;;  %v1388_v35 = vld [vmem:[%s1590_s7 + $0xf4] sm:$0xf]  ;;  %v1211_v36 = vld [vmem:[%s1590_s7 + $0xf8] sm:$0xf0]  ;;  %v1370_v44 = vld [vmem:[%s1590_s7 + $0x64] sm:$0xf]  ;;  %v1282_v48 = vor.u32 %v1407_v32, %v1281_v30  ;;  %v1150_v49 = vor.u32 %v1372_v33, %v1147_v34 }
  0x3e   : > { %722 = vmatpush.bf16.msra.mxu0 %v1106_v9  ;;  %v1404_v37 = vld [vmem:[%s1590_s7 + $0x174] sm:$0xf]  ;;  %v1275_v39 = vld [vmem:[%s1590_s7 + $0x178] sm:$0xf0]  ;;  %v1139_v45 = vld [vmem:[%s1590_s7 + $0x68] sm:$0xf0]  ;;  %v1214_v54 = vor.u32 %v1388_v35, %v1211_v36 }
  0x3f   : > { %736 = vmatpush.bf16.msra.mxu1 %v1170_v10  ;;  %v1420_v40 = vld [vmem:[%s1590_s7 + $0x1f4] sm:$0xf]  ;;  %v1339_v41 = vld [vmem:[%s1590_s7 + $0x1f8] sm:$0xf0]  ;;  %v1081_v46 = vld [vmem:[%s1592_s8 + $0x8] sm:$0xf]  ;;  %v1278_v55 = vor.u32 %v1404_v37, %v1275_v39  ;;  %v1142_v4 = vor.u32 %v1370_v44, %v1139_v45 }
  0x40   : > { %750 = vmatpush.bf16.msra.mxu2 %v1234_v11  ;;  %v1357_v47 = vld [vmem:[%s1592_s8 + $0x14] sm:$0xf0]  ;;  %v1386_v50 = vld [vmem:[%s1590_s7 + $0xe4] sm:$0xf]  ;;  %v1203_v51 = vld [vmem:[%s1590_s7 + $0xe8] sm:$0xf0]  ;;  %v1342_v59 = vor.u32 %v1420_v40, %v1339_v41 }
  0x41   : > { %764 = vmatpush.bf16.msra.mxu3 %v1298_v15  ;;  %v1402_v52 = vld [vmem:[%s1590_s7 + $0x164] sm:$0xf]  ;;  %v1267_v53 = vld [vmem:[%s1590_s7 + $0x168] sm:$0xf0]  ;;  %v1083_v57 = vld [vmem:[%s1592_s8 + $0x18] sm:$0xf0]  ;;  %v1678_v60 = vor.u32 %v1357_v47, %v1081_v46  ;;  %v1206_v6 = vor.u32 %v1386_v50, %v1203_v51 }
  0x42   : > { %723 = vmatpush.bf16.msra.mxu0 %v1098_v22  ;;  %v1355_v56 = vld [vmem:[%s1592_s8 + $0xc] sm:$0xf]  ;;  %v1073_v58 = vld [vmem:[%s1592_s8] sm:$0xf]  ;;  %v1356_v61 = vld [vmem:[%s1592_s8 + $0xc] sm:$0xf0]  ;;  %v1270_v7 = vor.u32 %v1402_v52, %v1267_v53 }
  0x43   : > { %737 = vmatpush.bf16.msra.mxu1 %v1162_v26  ;;  %v1354_v62 = vld [vmem:[%s1592_s8 + $0x4] sm:$0xf]  ;;  %v1075_v63 = vld [vmem:[%s1592_s8 + $0x10] sm:$0xf0]  ;;  %v1331_v1 = vld [vmem:[%s1590_s7 + $0x1e8] sm:$0xf0]  ;;  %v1685_v2 = vor.u32 %v1355_v56, %v1083_v57  ;;  %v1687_v3 = vor.u32 %v1356_v61, %v1073_v58 }
  0x44   : > { %751 = vmatpush.bf16.msra.mxu2 %v1226_v27  ;;  %v1418_v0 = vld [vmem:[%s1590_s7 + $0x1e4] sm:$0xf]  ;;  %v1689_v5 = vor.u32 %v1354_v62, %v1075_v63  ;;  %v1368_v8 = vld [vmem:[%s1590_s7 + $0x54] sm:$0xf]  ;;  %v1131_v9 = vld [vmem:[%s1590_s7 + $0x58] sm:$0xf0] }
  0x45   : > { %765 = vmatpush.bf16.msra.mxu3 %v1290_v31  ;;  %v1384_v10 = vld [vmem:[%s1590_s7 + $0xd4] sm:$0xf]  ;;  %v1334_v11 = vor.u32 %v1418_v0, %v1331_v1  ;;  %v1195_v12 = vld [vmem:[%s1590_s7 + $0xd8] sm:$0xf0]  ;;  %v1134_v17 = vor.u32 %v1368_v8, %v1131_v9  ;;  %v1366_v20 = vld [vmem:[%s1590_s7 + $0x44] sm:$0xf] }
  0x46   : > { %724 = vmatpush.bf16.msra.mxu0 %v1090_v38  ;;  %v1400_v13 = vld [vmem:[%s1590_s7 + $0x154] sm:$0xf]  ;;  %v1259_v14 = vld [vmem:[%s1590_s7 + $0x158] sm:$0xf0]  ;;  %v1198_v18 = vor.u32 %v1384_v10, %v1195_v12  ;;  %v1123_v21 = vld [vmem:[%s1590_s7 + $0x48] sm:$0xf0] }
  0x47   : > { %738 = vmatpush.bf16.msra.mxu1 %v1154_v42  ;;  %v1416_v15 = vld [vmem:[%s1590_s7 + $0x1d4] sm:$0xf]  ;;  %v1323_v16 = vld [vmem:[%s1590_s7 + $0x1d8] sm:$0xf0]  ;;  %v1262_v19 = vor.u32 %v1400_v13, %v1259_v14  ;;  %v1382_v22 = vld [vmem:[%s1590_s7 + $0xc4] sm:$0xf]  ;;  %v1126_v29 = vor.u32 %v1366_v20, %v1123_v21 }
  0x48   : > { %752 = vmatpush.bf16.msra.mxu2 %v1218_v43  ;;  %v1326_v23 = vor.u32 %v1416_v15, %v1323_v16  ;;  %v1187_v24 = vld [vmem:[%s1590_s7 + $0xc8] sm:$0xf0]  ;;  %v1398_v25 = vld [vmem:[%s1590_s7 + $0x144] sm:$0xf]  ;;  %v1364_v32 = vld [vmem:[%s1590_s7 + $0x34] sm:$0xf] }
  0x49   : > { %766 = vmatpush.bf16.msra.mxu3 %v1282_v48  ;;  %725 = vmatmul.bf16.vlgmr.msra.gmra.mxu0 %v1687_v3  ;;  %v1251_v26 = vld [vmem:[%s1590_s7 + $0x148] sm:$0xf0]  ;;  %v1414_v27 = vld [vmem:[%s1590_s7 + $0x1c4] sm:$0xf]  ;;  %v1190_v30 = vor.u32 %v1382_v22, %v1187_v24  ;;  %v1115_v33 = vld [vmem:[%s1590_s7 + $0x38] sm:$0xf0] }
  0x4a   : > { %773 = vmatpush.bf16.msrb.mxu0 %v1150_v49  ;;  %739 = vmatmul.bf16.vlgmr.msra.gmra.mxu1 %v1689_v5  ;;  %v1315_v28 = vld [vmem:[%s1590_s7 + $0x1c8] sm:$0xf0]  ;;  %v1254_v31 = vor.u32 %v1398_v25, %v1251_v26  ;;  %v1380_v34 = vld [vmem:[%s1590_s7 + $0xb4] sm:$0xf]  ;;  %v1179_v36 = vld [vmem:[%s1590_s7 + $0xb8] sm:$0xf0]  ;;  %v1118_v41 = vor.u32 %v1364_v32, %v1115_v33 }
  0x4b   : > { %787 = vmatpush.bf16.msrb.mxu1 %v1214_v54  ;;  %753 = vmatmul.bf16.vlgmr.msra.gmra.mxu2 %v1678_v60  ;;  %v1318_v35 = vor.u32 %v1414_v27, %v1315_v28  ;;  %v1396_v37 = vld [vmem:[%s1590_s7 + $0x134] sm:$0xf]  ;;  %v1243_v38 = vld [vmem:[%s1590_s7 + $0x138] sm:$0xf0]  ;;  %v1182_v42 = vor.u32 %v1380_v34, %v1179_v36  ;;  %v1362_v44 = vld [vmem:[%s1590_s7 + $0x24] sm:$0xf] }
  0x4c   : > { %801 = vmatpush.bf16.msrb.mxu2 %v1278_v55  ;;  %767 = vmatmul.bf16.vlgmr.msra.gmra.mxu3 %v1685_v2  ;;  %v1412_v39 = vld [vmem:[%s1590_s7 + $0x1b4] sm:$0xf]  ;;  %v1307_v40 = vld [vmem:[%s1590_s7 + $0x1b8] sm:$0xf0]  ;;  %v1246_v43 = vor.u32 %v1396_v37, %v1243_v38  ;;  %v1107_v45 = vld [vmem:[%s1590_s7 + $0x28] sm:$0xf0] }
  0x4d   : > { %815 = vmatpush.bf16.msrb.mxu3 %v1342_v59  ;;  %v1378_v46 = vld [vmem:[%s1590_s7 + $0xa4] sm:$0xf]  ;;  %v1310_v47 = vor.u32 %v1412_v39, %v1307_v40  ;;  %v1171_v48 = vld [vmem:[%s1590_s7 + $0xa8] sm:$0xf0]  ;;  %v1110_v53 = vor.u32 %v1362_v44, %v1107_v45  ;;  %v1360_v56 = vld [vmem:[%s1590_s7 + $0x14] sm:$0xf] }
  0x4e   : > { %774 = vmatpush.bf16.msrb.mxu0 %v1142_v4  ;;  %v1394_v49 = vld [vmem:[%s1590_s7 + $0x124] sm:$0xf]  ;;  %v1235_v50 = vld [vmem:[%s1590_s7 + $0x128] sm:$0xf0]  ;;  %v1174_v54 = vor.u32 %v1378_v46, %v1171_v48  ;;  %v1099_v57 = vld [vmem:[%s1590_s7 + $0x18] sm:$0xf0] }
  0x4f   : > { %788 = vmatpush.bf16.msrb.mxu1 %v1206_v6  ;;  %v1410_v51 = vld [vmem:[%s1590_s7 + $0x1a4] sm:$0xf]  ;;  %v1299_v52 = vld [vmem:[%s1590_s7 + $0x1a8] sm:$0xf0]  ;;  %v1238_v55 = vor.u32 %v1394_v49, %v1235_v50  ;;  %v1376_v58 = vld [vmem:[%s1590_s7 + $0x94] sm:$0xf]  ;;  %v1102_v4 = vor.u32 %v1360_v56, %v1099_v57 }
  0x50   : > { %802 = vmatpush.bf16.msrb.mxu2 %v1270_v7  ;;  %v1302_v59 = vor.u32 %v1410_v51, %v1299_v52  ;;  %v1163_v61 = vld [vmem:[%s1590_s7 + $0x98] sm:$0xf0]  ;;  %v1392_v62 = vld [vmem:[%s1590_s7 + $0x114] sm:$0xf]  ;;  %v1358_v8 = vld [vmem:[%s1590_s7 + $0x4] sm:$0xf] }
  0x51   : > { %816 = vmatpush.bf16.msrb.mxu3 %v1334_v11  ;;  %v1227_v63 = vld [vmem:[%s1590_s7 + $0x118] sm:$0xf0]  ;;  %v1408_v0 = vld [vmem:[%s1590_s7 + $0x194] sm:$0xf]  ;;  %v1166_v6 = vor.u32 %v1376_v58, %v1163_v61  ;;  %v1091_v9 = vld [vmem:[%s1590_s7 + $0x8] sm:$0xf0] }
  0x52   : > { %775 = vmatpush.bf16.msrb.mxu0 %v1134_v17  ;;  %v1291_v1 = vld [vmem:[%s1590_s7 + $0x198] sm:$0xf0]  ;;  %v1230_v7 = vor.u32 %v1392_v62, %v1227_v63  ;;  %v1374_v10 = vld [vmem:[%s1590_s7 + $0x84] sm:$0xf]  ;;  %v1155_v12 = vld [vmem:[%s1590_s7 + $0x88] sm:$0xf0]  ;;  %v1094_v17 = vor.u32 %v1358_v8, %v1091_v9 }
  0x53   : > { %789 = vmatpush.bf16.msrb.mxu1 %v1198_v18  ;;  %v1294_v11 = vor.u32 %v1408_v0, %v1291_v1  ;;  %v1390_v13 = vld [vmem:[%s1590_s7 + $0x104] sm:$0xf]  ;;  %v1219_v14 = vld [vmem:[%s1590_s7 + $0x108] sm:$0xf0]  ;;  %v1158_v18 = vor.u32 %v1374_v10, %v1155_v12  ;;  %v305_v27 = vld [vmem:[#allocation2 + $0x10] sm:$0xff]  ;;  %p1343_p11 = scmp.ne.s32.totalorder %s1509_s14, 7 }
  0x54   : > { %803 = vmatpush.bf16.msrb.mxu2 %v1262_v19  ;;  %v1406_v15 = vld [vmem:[%s1590_s7 + $0x184] sm:$0xf]  ;;  %v1283_v16 = vld [vmem:[%s1590_s7 + $0x188] sm:$0xf0]  ;;  %v1222_v19 = vor.u32 %v1390_v13, %v1219_v14  ;;  %v307_v34 = vld [vmem:[#allocation2 + $0x18] sm:$0xff] }
  0x55   : > { %817 = vmatpush.bf16.msrb.mxu3 %v1326_v23  ;;  %v1286_v20 = vor.u32 %v1406_v15, %v1283_v16  ;;  %v308_v49 = vld [vmem:[#allocation2 + $0x8] sm:$0xff] }
  0x56   : > { %776 = vmatpush.bf16.msrb.mxu0 %v1126_v29 }
  0x57   : > { %790 = vmatpush.bf16.msrb.mxu1 %v1190_v30 }
  0x58   : > { %804 = vmatpush.bf16.msrb.mxu2 %v1254_v31 }
  0x59   : > { %818 = vmatpush.bf16.msrb.mxu3 %v1318_v35 }
  0x5a   : > { %777 = vmatpush.bf16.msrb.mxu0 %v1118_v41  ;;  %v306_v41 = vld [vmem:[#allocation2] sm:$0xff] }
  0x5b   : > { %791 = vmatpush.bf16.msrb.mxu1 %v1182_v42 }
  0x5c   : > { %805 = vmatpush.bf16.msrb.mxu2 %v1246_v43 }
  0x5d   : > { %819 = vmatpush.bf16.msrb.mxu3 %v1310_v47 }
  0x5e   : > { %778 = vmatpush.bf16.msrb.mxu0 %v1110_v53 }
  0x5f   : > { %792 = vmatpush.bf16.msrb.mxu1 %v1174_v54 }
  0x60   : > { %806 = vmatpush.bf16.msrb.mxu2 %v1238_v55 }
  0x61   : > { %820 = vmatpush.bf16.msrb.mxu3 %v1302_v59 }
  0x62   : > { %779 = vmatpush.bf16.msrb.mxu0 %v1102_v4 }
  0x63   : > { %793 = vmatpush.bf16.msrb.mxu1 %v1166_v6 }
  0x64   : > { %807 = vmatpush.bf16.msrb.mxu2 %v1230_v7 }
  0x65   : > { %821 = vmatpush.bf16.msrb.mxu3 %v1294_v11 }
  0x66   : > { %780 = vmatpush.bf16.msrb.mxu0 %v1094_v17 }
  0x67   : > { %794 = vmatpush.bf16.msrb.mxu1 %v1158_v18 }
  0x68   : > { %808 = vmatpush.bf16.msrb.mxu2 %v1222_v19 }
  0x69   : > { %822 = vmatpush.bf16.msrb.mxu3 %v1286_v20  ;;  %781 = vmatmul.bf16.vlgmr.msrb.gmra.mxu0 %v1687_v3 }
  0x6a   : > { %795 = vmatmul.bf16.vlgmr.msrb.gmra.mxu1 %v1689_v5 }
  0x6b   : > { %809 = vmatmul.bf16.vlgmr.msrb.gmra.mxu2 %v1678_v60 }
  0x6c   : > { %823 = vmatmul.bf16.vlgmr.msrb.gmra.mxu3 %v1685_v2 }
  0xc6   : > { %v726_v21 = vpop.f32.mrf.mxu0 }
  0xc7   : > { %v740_v22 = vpop.f32.mrf.mxu1 }
  0xc8   : > { %v741_v23 = vadd.f32 %v740_v22, %v726_v21 }
  0xce   : > { %v754_v24 = vpop.f32.mrf.mxu2  ;;  %v728_v29 = vpop.f32.mrf.mxu0 }
  0xcf   : > { %v755_v25 = vadd.f32 %v754_v24, %v741_v23  ;;  %v768_v26 = vpop.f32.mrf.mxu3  ;;  %v742_v30 = vpop.f32.mrf.mxu1 }
  0xd0   : > { %v743_v32 = vadd.f32 %v742_v30, %v728_v29 }
  0xd1   : > { %v769_v28 = vadd.f32 %v768_v26, %v755_v25 }
  0xd3   : > { %v829_v31 = vadd.f32 %v769_v28, %v305_v27 }
  0xd5   : > { %833 = vst [vmem:[#allocation2 + $0x10] sm:$0xff] %v829_v31 }
  0xd6   : > { %v756_v3 = vpop.f32.mrf.mxu2 }
  0xd7   : > { %v757_v33 = vadd.f32 %v756_v3, %v743_v32  ;;  %v770_v5 = vpop.f32.mrf.mxu3 }
  0xd9   : > { %v771_v60 = vadd.f32 %v770_v5, %v757_v33 }
  0xdb   : > { %v831_v35 = vadd.f32 %v771_v60, %v307_v34 }
  0xdd   : > { %835 = vst [vmem:[#allocation2 + $0x18] sm:$0xff] %v831_v35 }
  0xe6   : > { %v782_v2 = vpop.f32.mrf.mxu0 }
  0xe7   : > { %v796_v36 = vpop.f32.mrf.mxu1 }
  0xe8   : > { %v797_v37 = vadd.f32 %v796_v36, %v782_v2 }
  0xee   : > { %v810_v38 = vpop.f32.mrf.mxu2  ;;  %v784_v43 = vpop.f32.mrf.mxu0 }
  0xef   : > { %v811_v39 = vadd.f32 %v810_v38, %v797_v37  ;;  %v824_v40 = vpop.f32.mrf.mxu3  ;;  %v798_v44 = vpop.f32.mrf.mxu1 }
  0xf0   : > { %v799_v46 = vadd.f32 %v798_v44, %v784_v43 }
  0xf1   : > { %v825_v42 = vadd.f32 %v824_v40, %v811_v39 }
  0xf3   : > { %v830_v45 = vadd.f32 %v825_v42, %v306_v41 }
  0xf5   : > { %834 = vst [vmem:[#allocation2] sm:$0xff] %v830_v45 }
  0xf6   : > { %v812_v47 = vpop.f32.mrf.mxu2 }
  0xf7   : > { %v813_v48 = vadd.f32 %v812_v47, %v799_v46  ;;  %v826_v50 = vpop.f32.mrf.mxu3 }
  0xf9   : > { %v827_v51 = vadd.f32 %v826_v50, %v813_v48  ;;  %840 = sbr.rel (%p1343_p11) target bundleno = 292 (0x124), region = 63 }
  0xfb   : > { %v832_v52 = vadd.f32 %v827_v51, %v308_v49 }
  0xfd   : > { %836 = vst [vmem:[#allocation2 + $0x8] sm:$0xff] %v832_v52 }
  0xfe   : > { %v841_v53 = vld [vmem:[#allocation2 + $0x10] sm:$0xff]  ;;  %v845_v54 = vld [vmem:[%s1808_s2] sm:$0x3]  ;;  %v843_v58 = vld [vmem:[#allocation2 + $0x18] sm:$0xff] }
  0xff   : > { %v842_v55 = vld [vmem:[#allocation2] sm:$0xff]  ;;  %v847_v56 = vperm.slane %v845_v54, 0  ;;  %v848_v57 = vperm.slane %v845_v54, 1 }
 0x101   : > { %v851_v61 = vadd.f32 %v847_v56, %v841_v53  ;;  %v852_v62 = vadd.f32 %v848_v57, %v842_v55  ;;  %v853_v63 = vadd.f32 %v847_v56, %v843_v58 }
 0x103   : > { %v1344_v1 = vmul.f32 -1.442695, %v851_v61  ;;  %v1345_v4 = vmul.f32 -1.442695, %v852_v62  ;;  %v1346_v6 = vmul.f32 -1.442695, %v853_v63 }
 0x104   : > { %v844_v59 = vld [vmem:[#allocation2 + $0x8] sm:$0xff] }
 0x105   : > { %v854_v0 = vadd.f32 %v848_v57, %v844_v59  ;;  %1463 = vpow2.f32 %v1344_v1 }
 0x106   : > { %1465 = vpow2.f32 %v1345_v4 }
 0x107   : > { %v1347_v7 = vmul.f32 -1.442695, %v854_v0  ;;  %1467 = vpow2.f32 %v1346_v6 }
 0x109   : > { %1469 = vpow2.f32 %v1347_v7 }
 0x10b   : > { %v1464_v8 = vpop.eup %1463 }
 0x10c   : > { %v1466_v9 = vpop.eup %1465  ;;  %v867_v10 = vadd.f32 1.0, %v1464_v8 }
 0x10d   : > { %v1468_v11 = vpop.eup %1467  ;;  %v868_v12 = vadd.f32 1.0, %v1466_v9 }
 0x10e   : > { %1471 = vrcp.f32 %v867_v10  ;;  %v869_v14 = vadd.f32 1.0, %v1468_v11  ;;  %v880_v16 = vand.u32 2147483647, %v867_v10  ;;  %v882_v17 = vand.u32 2147483648, %v867_v10 }
 0x10f   : > { %v1470_v13 = vpop.eup %1469  ;;  %1473 = vrcp.f32 %v868_v12  ;;  %v895_v19 = vand.u32 2147483647, %v868_v12  ;;  %v897_v20 = vand.u32 2147483648, %v868_v12  ;;  %vm876_vm0 = vweird.f32 %v867_v10 }
 0x110   : > { %v870_v15 = vadd.f32 1.0, %v1470_v13  ;;  %1475 = vrcp.f32 %v869_v14  ;;  %vm891_vm1 = vweird.f32 %v868_v12  ;;  %vm1751_vm3 = vcmp.eq.f32.partialorder %v880_v16, 8.507059e+37 }
 0x111   : > { %v883_v26 = vor.u32 1.1754944e-38, %v882_v17  ;;  %vm1755_vm5 = vcmp.eq.f32.partialorder %v895_v19, 8.507059e+37  ;;  %v898_v30 = vor.u32 1.1754944e-38, %v897_v20  ;;  %vm906_vm6 = vweird.f32 %v869_v14 }
 0x112   : > { %1477 = vrcp.f32 %v870_v15  ;;  %v910_v33 = vand.u32 2147483647, %v869_v14  ;;  %v912_v60 = vand.u32 2147483648, %v869_v14  ;;  %vm921_vm8 = vweird.f32 %v870_v15 }
 0x113   : > { %v927_v38 = vand.u32 2147483648, %v870_v15  ;;  %v925_v41 = vand.u32 2147483647, %v870_v15 }
 0x114   : > { %v1472_v18 = vpop.eup %1471  ;;  %v913_v46 = vor.u32 1.1754944e-38, %v912_v60  ;;  %vm911_vm13 = vcmp.eq.f32.partialorder %v910_v33, 8.507059e+37 }
 0x115   : > { %v1474_v21 = vpop.eup %1473  ;;  %v872_v22 = vmul.f32 %v1472_v18, %v867_v10  ;;  %vm877_vm2 = vweird.f32 %v1472_v18  ;;  %v928_v50 = vor.u32 1.1754944e-38, %v927_v38  ;;  %vm926_vm15 = vcmp.eq.f32.partialorder %v925_v41, 8.507059e+37 }
 0x116   : > { %v887_v23 = vmul.f32 %v1474_v21, %v868_v12  ;;  %v1476_v27 = vpop.eup %1475  ;;  %vm892_vm4 = vweird.f32 %v1474_v21  ;;  %vm1760_vm7 = vmor %vm876_vm0, %vm877_vm2 }
 0x117   : > { %v873_v24 = vsub.f32 1.0, %v872_v22  ;;  %v902_v3 = vmul.f32 %v1476_v27, %v869_v14  ;;  %vm1765_vm9 = vmor %vm891_vm1, %vm892_vm4  ;;  %vm907_vm10 = vweird.f32 %v1476_v27 }
 0x118   : > { %v888_v28 = vsub.f32 1.0, %v887_v23  ;;  %v1478_v31 = vpop.eup %1477  ;;  %vm908_vm12 = vmor %vm906_vm6, %vm907_vm10 }
 0x119   : > { %v874_v32 = vmul.f32 %v1472_v18, %v873_v24  ;;  %v917_v35 = vmul.f32 %v1478_v31, %v870_v15  ;;  %v903_v37 = vsub.f32 1.0, %v902_v3  ;;  %vm922_vm11 = vweird.f32 %v1478_v31 }
 0x11a   : > { %v889_v34 = vmul.f32 %v1474_v21, %v888_v28  ;;  %vm923_vm14 = vmor %vm921_vm8, %vm922_vm11 }
 0x11b   : > { %v875_v2 = vadd.f32 %v1472_v18, %v874_v32  ;;  %v918_v40 = vsub.f32 1.0, %v917_v35  ;;  %v904_v43 = vmul.f32 %v1476_v27, %v903_v37 }
 0x11c   : > { %v890_v39 = vadd.f32 %v1474_v21, %v889_v34 }
 0x11d   : > { %v879_v42 = vsel %vm1760_vm7, %v1472_v18, %v875_v2  ;;  %v919_v47 = vmul.f32 %v1478_v31, %v918_v40  ;;  %v905_v49 = vadd.f32 %v1476_v27, %v904_v43 }
 0x11e   : > { %v884_v44 = vsel %vm1751_vm3, %v883_v26, %v879_v42  ;;  %v894_v45 = vsel %vm1765_vm9, %v1474_v21, %v890_v39 }
 0x11f   : > { %931 = vst [vmem:[%s1809_s3] sm:$0xff] %v884_v44  ;;  %v899_v48 = vsel %vm1755_vm5, %v898_v30, %v894_v45  ;;  %v920_v51 = vadd.f32 %v1478_v31, %v919_v47  ;;  %v909_v52 = vsel %vm908_vm12, %v1476_v27, %v905_v49 }
 0x120   : > { %932 = vst [vmem:[%s1809_s3 + $0x8] sm:$0xff] %v899_v48  ;;  %v914_v53 = vsel %vm911_vm13, %v913_v46, %v909_v52 }
 0x121   : > { %v924_v54 = vsel %vm923_vm14, %v1478_v31, %v920_v51  ;;  %933 = vst [vmem:[%s1809_s3 + $0x10] sm:$0xff] %v914_v53 }
 0x122   : > { %v929_v55 = vsel %vm926_vm15, %v928_v50, %v924_v54 }
 0x123   : > { %934 = vst [vmem:[%s1809_s3 + $0x18] sm:$0xff] %v929_v55 }
 0x124 PF: > { %s13_s16 = sadd.s32 1, %s1517_s16   ;;  %s1818_s12 = smov %s1505_s13 }
 0x125   : > { %p10_p12 = scmp.ge.s32.totalorder %s13_s16, 10   ;;  %s1819_s13 = smov %s1575_s20 }
 0x126   : > { %s1820_s14 = smov %s1513_s15  ;;  %s1821_s15 = smov %s1823_s17 }
 0x127   :  { %12 = sbr.rel (!%p10_p12) target bundleno = 3 (0x3), region = 104 }

// kernel: dummy_model_forward.15
= control target key start
LH: loop header
LB: loop body
LE: loop exit
PB: predicated region body
PF: predicated region fallthrough
CT: control target
= control target key end

     0   :  { %s1053_s12 = smov 0   ;;  %s1055_s13 = smov 0   ;;  %s1173_s0 = inlined_call_operand.vmem [shape: bf16[16,1024], index: 0, kind: input, shape index: {}]   ;;  %s1174_s1 = inlined_call_operand.vmem [shape: bf16[1024,128], index: 1, kind: input, shape index: {}]   ;;  %s1175_s2 = inlined_call_operand.vmem [shape: f32[1,128], index: 2, kind: input, shape index: {}]   ;;  %s1176_s3 = inlined_call_operand.vmem [shape: f32[16,128], index: 3, kind: output, shape index: {}]  }
   0x1   :  { %s1057_s14 = smov 0   ;;  %s1059_s15 = smov 0  }
   0x2   :  { %s1061_s16 = smov 0  }
   0x3 LB: > { %s25_s17 = sadd.s32 1, %s1026_s15  ;;  %p48_p1 = scmp.ne.s32.totalorder %s1018_s13, %s1014_s12  ;;  %s1030_s16 = sphi %s1061_s16, %s13_s16   ;;  %s1026_s15 = sphi %s1059_s15, %s1180_s15   ;;  %s1022_s14 = sphi %s1057_s14, %s1179_s14   ;;  %s1018_s13 = sphi %s1055_s13, %s1178_s13   ;;  %s1014_s12 = sphi %s1053_s12, %s1177_s12  }
   0x4   : > { %p26_p0 = scmp.ge.s32.totalorder %s25_s17, 2  ;;  %p49_p2 = scmp.eq.s32.totalorder %s1030_s16, 0 }
   0x5   : > { %s41_s19 = sadd.s32 1, %s1018_s13  ;;  %p755_p5 = scmp.ge.s32.totalorder %s1030_s16, 2 }
   0x6   : > { %s1182_s17 = smov (%p26_p0, %s25_s17), 0  ;;  %p50_p3 = por %p49_p2, %p48_p1 }
   0x7   : > { %s37_s18 = ssub.s32 %s1026_s15, %s1182_s17  ;;  %162 = sbr.rel (%p755_p5) target bundleno = 20 (0x14), region = 20 }
   0x8   : > { %p39_p4 = scmp.eq.s32.totalorder %s37_s18, 0 }
   0xa   : > { %s1088_s20 = scalar_select %p39_p4, %s1018_s13, %s41_s19  }
   0xc   : > { %165 = sbr.rel (!%p50_p3) target bundleno = 20 (0x14), region = 24  ;;  %s167_s21 = sand.u32 (%p50_p3), 1, %s1018_s13  }
   0xd   : > { %s913_s22 = sshll.u32 (%p50_p3), %s1026_s15, 4  ;;  %s756_s23 = sshll.u32 (%p50_p3), %s167_s21, 5 }
   0xe   : > { %s175_s26 = scalar_lea.vmem (%p50_p3), %s1173_s0, %s913_s22  ;;  %s169_s27 = scalar_lea.vmem (%p50_p3), [#allocation3], %s756_s23 }
   0xf   : > { %v188_v0 = vld [vmem:[%s175_s26] sm:$0xff] (%p50_p3)  ;;  %v190_v1 = vld [vmem:[%s175_s26 + $0x8] sm:$0xff] (%p50_p3) }
  0x10   : > { %v192_v2 = vld [vmem:[%s175_s26 + $0x20] sm:$0xff] (%p50_p3)  ;;  %189 = vst [vmem:[%s169_s27] sm:$0xff] (%p50_p3), %v188_v0  ;;  %v194_v3 = vld [vmem:[%s175_s26 + $0x28] sm:$0xff] (%p50_p3) }
  0x11   : > { %191 = vst [vmem:[%s169_s27 + $0x8] sm:$0xff] %v190_v1 }
  0x12   : > { %193 = vst [vmem:[%s169_s27 + $0x10] sm:$0xff] %v192_v2 }
  0x13   : > { %195 = vst [vmem:[%s169_s27 + $0x18] sm:$0xff] %v194_v3 }
  0x14 PF: > { %p759_p6 = scmp.ge.s32.totalorder %s1030_s16, 1  ;;  %p212_p7 = scmp.lt.s32.totalorder %s1030_s16, 3 }
  0x16   : > { %p213_p8 = pnand %p759_p6, %p212_p7 }
  0x17   : > { %s219_s28 = sand.u32 (!%p213_p8), 1, %s1014_s12   ;;  %s761_s29 = sshll.u32 (!%p213_p8), %s1022_s14, 6 }
  0x18   : > { %216 = sbr.rel (%p213_p8) target bundleno = 228 (0xe4), region = 51  ;;  %s760_s30 = sshll.u32 (!%p213_p8), %s219_s28, 5 }
  0x19   : > { %p259_p9 = scmp.lt.s32.totalorder (!%p213_p8), %s761_s29, 127  ;;  %s1105_s8 = scalar_lea.vmem (!%p213_p8), [#allocation3], %s760_s30 }
  0x1a   : > { %p763_p10 = scmp.ne.s32.totalorder (!%p213_p8), %s1022_s14, 0 }
  0x1d   : > { %s1184_s29 = smov (!%p259_p9, %s761_s29), 127  ;;  %282 = sbr.rel (%p763_p10) target bundleno = 37 (0x25), region = 59 }
  0x1e   : > { %s762_s4 = sshll.u32 %s1184_s29, 2 }
  0x1f   : > { %s1103_s7 = scalar_lea.vmem %s1174_s1, %s762_s4 }
  0x22   : > { %v1032_v4 = vmov 0.0  }
  0x23   : > { %283 = vst [vmem:[#allocation2] sm:$0xff] %v1032_v4 }
  0x24   : > { %284 = vst [vmem:[#allocation2 + $0x8] sm:$0xff] %v1032_v4 }
  0x25 PF: > { %v925_v5 = vld [vmem:[%s1103_s7 + $0x38] sm:$0xff]  ;;  %v924_v9 = vld [vmem:[%s1103_s7 + $0x30] sm:$0xff]  ;;  %v923_v13 = vld [vmem:[%s1103_s7 + $0x28] sm:$0xff]  ;;  %p908_p11 = scmp.ne.s32.totalorder %s1022_s14, 1 }
  0x26   : > { %v933_v6 = vld [vmem:[%s1103_s7 + $0x78] sm:$0xff]  ;;  %567 = vmatpush.bf16.msra.mxu0 %v925_v5  ;;  %v932_v10 = vld [vmem:[%s1103_s7 + $0x70] sm:$0xff]  ;;  %v931_v14 = vld [vmem:[%s1103_s7 + $0x68] sm:$0xff] }
  0x27   : > { %v941_v7 = vld [vmem:[%s1103_s7 + $0xb8] sm:$0xff]  ;;  %581 = vmatpush.bf16.msra.mxu1 %v933_v6  ;;  %v940_v11 = vld [vmem:[%s1103_s7 + $0xb0] sm:$0xff]  ;;  %v939_v15 = vld [vmem:[%s1103_s7 + $0xa8] sm:$0xff] }
  0x28   : > { %v949_v8 = vld [vmem:[%s1103_s7 + $0xf8] sm:$0xff]  ;;  %595 = vmatpush.bf16.msra.mxu2 %v941_v7  ;;  %v948_v12 = vld [vmem:[%s1103_s7 + $0xf0] sm:$0xff]  ;;  %v947_v16 = vld [vmem:[%s1103_s7 + $0xe8] sm:$0xff] }
  0x29   : > { %609 = vmatpush.bf16.msra.mxu3 %v949_v8  ;;  %v922_v17 = vld [vmem:[%s1103_s7 + $0x20] sm:$0xff]  ;;  %v921_v21 = vld [vmem:[%s1103_s7 + $0x18] sm:$0xff]  ;;  %v920_v25 = vld [vmem:[%s1103_s7 + $0x10] sm:$0xff] }
  0x2a   : > { %568 = vmatpush.bf16.msra.mxu0 %v924_v9  ;;  %v930_v18 = vld [vmem:[%s1103_s7 + $0x60] sm:$0xff]  ;;  %v929_v22 = vld [vmem:[%s1103_s7 + $0x58] sm:$0xff]  ;;  %v928_v26 = vld [vmem:[%s1103_s7 + $0x50] sm:$0xff] }
  0x2b   : > { %582 = vmatpush.bf16.msra.mxu1 %v932_v10  ;;  %v938_v19 = vld [vmem:[%s1103_s7 + $0xa0] sm:$0xff]  ;;  %v937_v23 = vld [vmem:[%s1103_s7 + $0x98] sm:$0xff]  ;;  %v936_v27 = vld [vmem:[%s1103_s7 + $0x90] sm:$0xff] }
  0x2c   : > { %596 = vmatpush.bf16.msra.mxu2 %v940_v11  ;;  %v946_v20 = vld [vmem:[%s1103_s7 + $0xe0] sm:$0xff]  ;;  %v945_v24 = vld [vmem:[%s1103_s7 + $0xd8] sm:$0xff]  ;;  %v944_v28 = vld [vmem:[%s1103_s7 + $0xd0] sm:$0xff] }
  0x2d   : > { %610 = vmatpush.bf16.msra.mxu3 %v948_v12  ;;  %v919_v29 = vld [vmem:[%s1103_s7 + $0x8] sm:$0xff]  ;;  %v918_v33 = vld [vmem:[%s1103_s7] sm:$0xff]  ;;  %v766_v37 = vld [vmem:[%s1105_s8] sm:$0xf] }
  0x2e   : > { %569 = vmatpush.bf16.msra.mxu0 %v923_v13  ;;  %v927_v30 = vld [vmem:[%s1103_s7 + $0x48] sm:$0xff]  ;;  %v926_v34 = vld [vmem:[%s1103_s7 + $0x40] sm:$0xff]  ;;  %v914_v39 = vld [vmem:[%s1105_s8 + $0x4] sm:$0xf] }
  0x2f   : > { %583 = vmatpush.bf16.msra.mxu1 %v931_v14  ;;  %v935_v31 = vld [vmem:[%s1103_s7 + $0x88] sm:$0xff]  ;;  %v934_v35 = vld [vmem:[%s1103_s7 + $0x80] sm:$0xff]  ;;  %v774_v41 = vld [vmem:[%s1105_s8 + $0x8] sm:$0xf] }
  0x30   : > { %597 = vmatpush.bf16.msra.mxu2 %v939_v15  ;;  %v943_v32 = vld [vmem:[%s1103_s7 + $0xc8] sm:$0xff]  ;;  %v942_v36 = vld [vmem:[%s1103_s7 + $0xc0] sm:$0xff]  ;;  %v915_v43 = vld [vmem:[%s1105_s8 + $0xc] sm:$0xf] }
  0x31   : > { %611 = vmatpush.bf16.msra.mxu3 %v947_v16  ;;  %v916_v38 = vld [vmem:[%s1105_s8 + $0xc] sm:$0xf0]  ;;  %v768_v40 = vld [vmem:[%s1105_s8 + $0x10] sm:$0xf0]  ;;  %v917_v42 = vld [vmem:[%s1105_s8 + $0x14] sm:$0xf0] }
  0x32   : > { %570 = vmatpush.bf16.msra.mxu0 %v922_v17  ;;  %v776_v44 = vld [vmem:[%s1105_s8 + $0x18] sm:$0xf0]  ;;  %v767_v45 = vor.u32 %v916_v38, %v766_v37  ;;  %v771_v46 = vor.u32 %v914_v39, %v768_v40  ;;  %v775_v47 = vor.u32 %v917_v42, %v774_v41  ;;  %v285_v55 = vld [vmem:[#allocation2] sm:$0xff] }
  0x33   : > { %584 = vmatpush.bf16.msra.mxu1 %v930_v18  ;;  %v779_v48 = vor.u32 %v915_v43, %v776_v44  ;;  %v286_v63 = vld [vmem:[#allocation2 + $0x8] sm:$0xff] }
  0x34   : > { %598 = vmatpush.bf16.msra.mxu2 %v938_v19 }
  0x35   : > { %612 = vmatpush.bf16.msra.mxu3 %v946_v20 }
  0x36   : > { %571 = vmatpush.bf16.msra.mxu0 %v921_v21 }
  0x37   : > { %585 = vmatpush.bf16.msra.mxu1 %v929_v22 }
  0x38   : > { %599 = vmatpush.bf16.msra.mxu2 %v937_v23 }
  0x39   : > { %613 = vmatpush.bf16.msra.mxu3 %v945_v24 }
  0x3a   : > { %572 = vmatpush.bf16.msra.mxu0 %v920_v25 }
  0x3b   : > { %586 = vmatpush.bf16.msra.mxu1 %v928_v26 }
  0x3c   : > { %600 = vmatpush.bf16.msra.mxu2 %v936_v27 }
  0x3d   : > { %614 = vmatpush.bf16.msra.mxu3 %v944_v28 }
  0x3e   : > { %573 = vmatpush.bf16.msra.mxu0 %v919_v29 }
  0x3f   : > { %587 = vmatpush.bf16.msra.mxu1 %v927_v30 }
  0x40   : > { %601 = vmatpush.bf16.msra.mxu2 %v935_v31 }
  0x41   : > { %615 = vmatpush.bf16.msra.mxu3 %v943_v32 }
  0x42   : > { %574 = vmatpush.bf16.msra.mxu0 %v918_v33 }
  0x43   : > { %588 = vmatpush.bf16.msra.mxu1 %v926_v34 }
  0x44   : > { %602 = vmatpush.bf16.msra.mxu2 %v934_v35 }
  0x45   : > { %616 = vmatpush.bf16.msra.mxu3 %v942_v36  ;;  %575 = vmatmul.bf16.vlgmr.msra.gmra.mxu0 %v767_v45 }
  0x46   : > { %589 = vmatmul.bf16.vlgmr.msra.gmra.mxu1 %v771_v46 }
  0x47   : > { %603 = vmatmul.bf16.vlgmr.msra.gmra.mxu2 %v775_v47 }
  0x48   : > { %617 = vmatmul.bf16.vlgmr.msra.gmra.mxu3 %v779_v48 }
  0xc2   : > { %v576_v49 = vpop.f32.mrf.mxu0 }
  0xc3   : > { %v590_v50 = vpop.f32.mrf.mxu1 }
  0xc4   : > { %v591_v51 = vadd.f32 %v590_v50, %v576_v49 }
  0xca   : > { %v604_v52 = vpop.f32.mrf.mxu2  ;;  %v578_v57 = vpop.f32.mrf.mxu0 }
  0xcb   : > { %v618_v53 = vpop.f32.mrf.mxu3  ;;  %v605_v54 = vadd.f32 %v604_v52, %v591_v51  ;;  %v592_v58 = vpop.f32.mrf.mxu1 }
  0xcc   : > { %v593_v60 = vadd.f32 %v592_v58, %v578_v57 }
  0xcd   : > { %v619_v56 = vadd.f32 %v618_v53, %v605_v54 }
  0xcf   : > { %v623_v59 = vadd.f32 %v619_v56, %v285_v55 }
  0xd1   : > { %625 = vst [vmem:[#allocation2] sm:$0xff] %v623_v59 }
  0xd2   : > { %v606_v61 = vpop.f32.mrf.mxu2 }
  0xd3   : > { %v607_v62 = vadd.f32 %v606_v61, %v593_v60  ;;  %v620_v0 = vpop.f32.mrf.mxu3 }
  0xd5   : > { %v621_v1 = vadd.f32 %v620_v0, %v607_v62  ;;  %630 = sbr.rel (%p908_p11) target bundleno = 228 (0xe4), region = 63 }
  0xd7   : > { %v624_v2 = vadd.f32 %v621_v1, %v286_v63 }
  0xd9   : > { %626 = vst [vmem:[#allocation2 + $0x8] sm:$0xff] %v624_v2 }
  0xda   : > { %v631_v3 = vld [vmem:[#allocation2] sm:$0xff] }
  0xdb   : > { %v991_v4 = vld [vmem:[%s1175_s2] ss:$0 sm:$0xff] }
  0xdc   : > { %v637_v6 = vadd.f32 %v991_v4, %v631_v3 }
  0xde   : > { %639 = vst [vmem:[%s1176_s3] sm:$0xff] %v637_v6 }
  0xe0   : > { %v632_v5 = vld [vmem:[#allocation2 + $0x8] sm:$0xff] }
  0xe1   : > { %v638_v7 = vadd.f32 %v991_v4, %v632_v5 }
  0xe3   : > { %640 = vst [vmem:[%s1176_s3 + $0x8] sm:$0xff] %v638_v7 }
  0xe4 PF: > { %s13_s16 = sadd.s32 1, %s1030_s16   ;;  %s1177_s12 = smov %s1018_s13 }
  0xe5   : > { %p10_p12 = scmp.ge.s32.totalorder %s13_s16, 4   ;;  %s1178_s13 = smov %s1088_s20 }
  0xe6   : > { %s1179_s14 = smov %s1026_s15  ;;  %s1180_s15 = smov %s1182_s17 }
  0xe7   :  { %12 = sbr.rel (!%p10_p12) target bundleno = 3 (0x3), region = 104 }

</bundles_post_ra>
